<compile_context>
chip_gen: v7x
topology: tpu7x:2x2x1
jax: 0.10.0
libtpu: 0.0.40
codegen_flags: <defaults>
</compile_context>

<pallas_src>
import jax
import jax.numpy as jnp
from jax import lax
from jax.experimental import pallas as pl
from jax.experimental.pallas import tpu as pltpu

# make the XLA reference and the Pallas kernel use the same (full f32) matmul path
jax.config.update("jax_default_matmul_precision", "highest")

# ---------------- config (small, consistent with the module) ----------------
B = 2
D = 32                       # config['model']['dim']
S = 8                        # config['model']['summerize_num_tokens']
M = 8                        # config['model']['memory_tokens_size']
H_IN = W_IN = 16             # config['train']['input_H/W']
PATCH = 4                    # config['model']['patch_size']
N_PATCH = ((H_IN - PATCH) // PATCH + 1) * ((W_IN - PATCH) // PATCH + 1)   # 16
MT = M + S + N_PATCH         # AddEraseWrite_input = 32
H3 = 3 * D                   # 96
D2, S2, H6 = 2 * D, 2 * S, 2 * H3
EPS = 1e-5                   # torch LayerNorm default

# ---------------- packed-parameter buffer layout (one buffer, 192 lanes) ----
WP = H6                      # 192 lanes (widest natural weight width)
# bias / LayerNorm table rows (one row each, inside rows [0, 16))
R_G1, R_BT1, R_GLN, R_BLN = 0, 1, 2, 3
R_B1, R_B2, R_B37, R_B48, R_B59, R_B610 = 4, 5, 6, 7, 8, 9
# weight sub-blocks (row offsets are all multiples of 8)
R_BFB = 16                   # fn bias, pre-broadcast to (M, 2D)
R_WFT = 24                   # fn weight transposed      (M, MT)
R_W1 = 32                    # mlp1 Linear(D,3D)         (D, H3)
R_W2 = 64                    # mlp1 Linear(3D,S)         (H3, S)
R_W37 = 160                  # [w3 | w7]                 (S, 2H3)
R_W48 = 168                  # blkdiag(w4, w8)           (2H3, 2S)
R_W59 = 360                  # blkdiag(w5, w9)           (2D, 2H3)
R_W610 = 424                 # blkdiag(w6, w10)          (2H3, 2D)
PR = 616                     # total rows (multiple of 8)


# ------------------------------ math helpers --------------------------------
def _layernorm(x, g, b):
    mu = jnp.mean(x, axis=-1, keepdims=True)
    var = jnp.mean((x - mu) ** 2, axis=-1, keepdims=True)
    return (x - mu) * lax.rsqrt(var + EPS) * g + b


def _erf(x):
    # Abramowitz & Stegun 7.1.26, max abs error ~1.5e-7; only mul/add/exp/where.
    z = jnp.abs(x)
    t = 1.0 / (1.0 + 0.3275911 * z)
    poly = t * (0.254829592 + t * (-0.284496736 + t * (1.421413741
           + t * (-1.453152027 + t * 1.061405429))))
    e = 1.0 - poly * jnp.exp(-z * z)
    return jnp.where(x >= 0.0, e, -e)


def _gelu(x):
    # torch nn.GELU() default is the exact erf formulation
    return 0.5 * x * (1.0 + _erf(x * 0.7071067811865476))


def _gelu_exact(x):
    return jax.nn.gelu(x, approximate=False)


def _mm(a, b):
    return jnp.dot(a, b, preferred_element_type=jnp.float32)


def _mmT(a, b):
    # a.T @ b without materializing the transpose (contract dim 0 of both operands)
    return lax.dot_general(a, b, (((0,), (0,)), ((), ())),
                           preferred_element_type=jnp.float32)


# ------------------------------- kernel -------------------------------------
def taew_kernel(mem_ref, ctrl_ref, p_ref, o_ref, cn_sc, x34_sc, out_sc):
    # -------- unpack packed parameters (static slices of one VMEM buffer) ----
    g1 = p_ref[R_G1:R_G1 + 1, 0:D]
    bt1 = p_ref[R_BT1:R_BT1 + 1, 0:D]
    gln = p_ref[R_GLN:R_GLN + 1, 0:D]
    bln = p_ref[R_BLN:R_BLN + 1, 0:D]
    b1 = p_ref[R_B1:R_B1 + 1, 0:H3]
    b2 = p_ref[R_B2:R_B2 + 1, 0:S]
    b37 = p_ref[R_B37:R_B37 + 1, 0:H6]
    b48 = p_ref[R_B48:R_B48 + 1, 0:S2]
    b59 = p_ref[R_B59:R_B59 + 1, 0:H6]
    b610 = p_ref[R_B610:R_B610 + 1, 0:D2]
    bfb = p_ref[R_BFB:R_BFB + M, 0:D2]            # (M, 2D)  fn bias (pre-broadcast)
    wft = p_ref[R_WFT:R_WFT + M, 0:MT]            # (M, MT)  fn weight (pre-transposed)
    w1 = p_ref[R_W1:R_W1 + D, 0:H3]               # (D, H3)
    w2 = p_ref[R_W2:R_W2 + H3, 0:S]               # (H3, S)
    w37 = p_ref[R_W37:R_W37 + S, 0:H6]            # (S, 2H3)   [w3 | w7]
    w48 = p_ref[R_W48:R_W48 + H6, 0:S2]           # (2H3, 2S)  blkdiag(w4, w8)
    w59 = p_ref[R_W59:R_W59 + D2, 0:H6]           # (2D, 2H3)  blkdiag(w5, w9)
    w610 = p_ref[R_W610:R_W610 + H6, 0:D2]        # (2H3, 2D)  blkdiag(w6, w10)

    mem = mem_ref[...]                            # (B*MT, D)
    ctrl = ctrl_ref[...]                          # (B*S, D)

    # -------- front section: both batch items in one pair of matmuls ---------
    x = _layernorm(mem, g1, bt1)                  # (B*MT, D)
    h = _gelu(_mm(x, w1) + b1)                    # (B*MT, H3)
    sel = _gelu(_mm(h, w2) + b2)                  # (B*MT, S)
    cn = _layernorm(ctrl, gln, bln)               # (B*S, D)

    # -------- erase + add branches, both batches: 4 fused matmuls total ------
    # cn_cat = [cn_b0 | cn_b1]  (S, 2D): batches lane-concatenated
    cn_sc[:, 0:D] = cn[0:S, :]
    cn_sc[:, D:D2] = cn[S:2 * S, :]
    cn_cat = cn_sc[...]

    # stage 1/2 (mlp_block2 / mlp_block4 fused): rows = (batch, dim), cols = [et|at]
    h24 = _gelu(_mmT(cn_cat, w37) + b37)          # (2D, 2H3)
    etat = _gelu(_mm(h24, w48) + b48)             # (2D, 2S)

    # permute (batch-rows, branch-cols) -> (branch-rows, batch-cols) for stage 3/4
    x34_sc[0:D, 0:S] = etat[0:D, 0:S]             # et, batch 0
    x34_sc[0:D, S:S2] = etat[D:D2, 0:S]           # et, batch 1
    x34_sc[D:D2, 0:S] = etat[0:D, S:S2]           # at, batch 0
    x34_sc[D:D2, S:S2] = etat[D:D2, S:S2]         # at, batch 1
    x34 = x34_sc[...]                             # (2D, 2S)

    # stage 3/4 (mlp_block3 / mlp_block5 fused): rows = (batch, token), cols = [et2|at2]
    h35 = _gelu(_mmT(x34, w59) + b59)             # (2S, 2H3)
    etat2 = _gelu(_mm(h35, w610) + b610)          # (2S, 2D)

    inv_s = 1.0 / S
    for b in range(B):                            # B == 2: fully unrolled
        sel_b = sel[b * MT:(b + 1) * MT, :]       # (MT, S)
        # softmax over the memory-token axis == softmax(sel_b.T, -1).T (no transpose)
        mx = jnp.max(sel_b, axis=0, keepdims=True)
        ex = jnp.exp(sel_b - mx)
        w_sm = ex / jnp.sum(ex, axis=0, keepdims=True)   # (MT, S)

        et2_b = etat2[b * S:(b + 1) * S, 0:D]     # (S, D)
        at2_b = etat2[b * S:(b + 1) * S, D:D2]    # (S, D)
        mem_b = mem[b * MT:(b + 1) * MT, :]       # (MT, D)

        # erase: running product over S (small unrolled VALU loop)
        prod = 1.0 - w_sm[:, 0:1] * et2_b[0:1, :]
        for s in range(1, S):
            prod = prod * (1.0 - w_sm[:, s:s + 1] * et2_b[s:s + 1, :])
        # add: mean_s(1 - w*at2) == 1 - (w_sm @ at2)/S  -> one tiny MXU dot
        wat_mean = 1.0 - _mm(w_sm, at2_b) * inv_s

        out_sc[:, b * D:(b + 1) * D] = mem_b * prod + wat_mean   # (MT, D)

    # fn (token axis MT -> M) for BOTH batches in one matmul, single output store
    y = jnp.maximum(_mm(wft, out_sc[...]) + bfb, 0.0)            # (M, 2D)
    o_ref[...] = y


# --------------------------- wrapper + packing --------------------------------
def pack_params(p):
    """One-time packing of the 26 parameter tensors into a single (PR, WP) buffer."""
    def blkdiag(a, b):
        ra, ca = a.shape
        rb, cb = b.shape
        top = jnp.concatenate([a, jnp.zeros((ra, cb), jnp.float32)], axis=1)
        bot = jnp.concatenate([jnp.zeros((rb, ca), jnp.float32), b], axis=1)
        return jnp.concatenate([top, bot], axis=0)

    buf = jnp.zeros((PR, WP), jnp.float32)

    def put(buf, r, arr):
        arr = jnp.asarray(arr, jnp.float32)
        if arr.ndim == 1:
            arr = arr.reshape(1, -1)
        return buf.at[r:r + arr.shape[0], 0:arr.shape[1]].set(arr)

    buf = put(buf, R_G1, p["g1"])
    buf = put(buf, R_BT1, p["bt1"])
    buf = put(buf, R_GLN, p["gln"])
    buf = put(buf, R_BLN, p["bln"])
    buf = put(buf, R_B1, p["b1"])
    buf = put(buf, R_B2, p["b2"])
    buf = put(buf, R_B37, jnp.concatenate([p["b3"], p["b7"]], axis=-1))
    buf = put(buf, R_B48, jnp.concatenate([p["b4"], p["b8"]], axis=-1))
    buf = put(buf, R_B59, jnp.concatenate([p["b5"], p["b9"]], axis=-1))
    buf = put(buf, R_B610, jnp.concatenate([p["b6"], p["b10"]], axis=-1))
    buf = put(buf, R_BFB, jnp.broadcast_to(p["bf"].reshape(M, 1), (M, D2)))
    buf = put(buf, R_WFT, p["wf"].T)
    buf = put(buf, R_W1, p["w1"])
    buf = put(buf, R_W2, p["w2"])
    buf = put(buf, R_W37, jnp.concatenate([p["w3"], p["w7"]], axis=1))
    buf = put(buf, R_W48, blkdiag(p["w4"], p["w8"]))
    buf = put(buf, R_W59, blkdiag(p["w5"], p["w9"]))
    buf = put(buf, R_W610, blkdiag(p["w6"], p["w10"]))
    return buf


def token_add_erase_write(mem, ctrl, packed):
    mem2 = mem.reshape(B * MT, D)
    ctrl2 = ctrl.reshape(B * S, D)

    out = pl.pallas_call(
        taew_kernel,
        out_shape=jax.ShapeDtypeStruct((M, B * D), jnp.float32),
        grid_spec=pltpu.PrefetchScalarGridSpec(
            num_scalar_prefetch=0,
            grid=(1,),
            in_specs=[
                pl.BlockSpec((B * MT, D), lambda i: (0, 0)),
                pl.BlockSpec((B * S, D), lambda i: (0, 0)),
                pl.BlockSpec((PR, WP), lambda i: (0, 0)),
            ],
            out_specs=pl.BlockSpec((M, B * D), lambda i: (0, 0)),
            scratch_shapes=[
                pltpu.VMEM((S, D2), jnp.float32),     # cn lane-concat
                pltpu.VMEM((D2, S2), jnp.float32),    # (batch,branch) permutation
                pltpu.VMEM((MT, D2), jnp.float32),    # per-batch outputs, lane-concat
            ],
        ),
        compiler_params=pltpu.CompilerParams(
            dimension_semantics=("arbitrary",)),
    )(mem2, ctrl2, packed)

    # (M, B*D) -> (B, M, D): pure layout plumbing outside the kernel
    return jnp.transpose(out.reshape(M, B, D), (1, 0, 2))


# --------------------------- pure-JAX reference -------------------------------
def token_add_erase_write_ref(mem, ctrl, p):
    x = _layernorm(mem, p["g1"], p["bt1"])
    h = _gelu_exact(x @ p["w1"] + p["b1"])
    sel = _gelu_exact(h @ p["w2"] + p["b2"])                 # (B, MT, S)
    selT = jax.nn.softmax(jnp.swapaxes(sel, 1, 2), axis=-1)  # (B, S, MT)

    cn = _layernorm(ctrl, p["gln"], p["bln"])                # (B, S, D)
    cnT = jnp.swapaxes(cn, 1, 2)                             # (B, D, S)

    et = _gelu_exact(_gelu_exact(cnT @ p["w3"] + p["b3"]) @ p["w4"] + p["b4"])
    etT = jnp.swapaxes(et, 1, 2)
    et2 = _gelu_exact(_gelu_exact(etT @ p["w5"] + p["b5"]) @ p["w6"] + p["b6"])

    wet = 1.0 - selT[:, :, :, None] * et2[:, :, None, :]
    out = mem * jnp.prod(wet, axis=1)

    at = _gelu_exact(_gelu_exact(cnT @ p["w7"] + p["b7"]) @ p["w8"] + p["b8"])
    atT = jnp.swapaxes(at, 1, 2)
    at2 = _gelu_exact(_gelu_exact(atT @ p["w9"] + p["b9"]) @ p["w10"] + p["b10"])

    wat = 1.0 - selT[:, :, :, None] * at2[:, :, None, :]
    out = out + jnp.mean(wat, axis=1)

    outT = jnp.swapaxes(out, 1, 2)                           # (B, D, MT)
    y = jnp.maximum(outT @ p["wf"] + p["bf"], 0.0)           # (B, D, M)
    return jnp.swapaxes(y, 1, 2)                             # (B, M, D)


# ------------------------------- params --------------------------------------
def make_params(key):
    ks = iter(jax.random.split(key, 40))

    def nrm(shape, scale=0.05):
        return (scale * jax.random.normal(next(ks), shape)).astype(jnp.float32)

    p = {
        # mlp_block1: LN(D) + Linear(D,3D) + GELU + Linear(3D,S) + GELU
        "g1": 1.0 + nrm((1, D), 0.1), "bt1": nrm((1, D)),
        "w1": nrm((D, H3)), "b1": nrm((1, H3)),
        "w2": nrm((H3, S)), "b2": nrm((1, S)),
        # shared laynorm
        "gln": 1.0 + nrm((1, D), 0.1), "bln": nrm((1, D)),
        # mlp_block2: Linear(S,3D)+GELU+Linear(3D,S)+GELU
        "w3": nrm((S, H3)), "b3": nrm((1, H3)),
        "w4": nrm((H3, S)), "b4": nrm((1, S)),
        # mlp_block3: Linear(D,3D)+GELU+Linear(3D,D)+GELU
        "w5": nrm((D, H3)), "b5": nrm((1, H3)),
        "w6": nrm((H3, D)), "b6": nrm((1, D)),
        # mlp_block4
        "w7": nrm((S, H3)), "b7": nrm((1, H3)),
        "w8": nrm((H3, S)), "b8": nrm((1, S)),
        # mlp_block5
        "w9": nrm((D, H3)), "b9": nrm((1, H3)),
        "w10": nrm((H3, D)), "b10": nrm((1, D)),
        # fn: Linear(MT, M)
        "wf": nrm((MT, M)), "bf": nrm((1, M)),
    }
    # TODO(synk): self.query and self.trans_outdim (nn.MultiheadAttention) are defined
    # in __init__ but never used in forward(), so they are intentionally omitted.
    return p


# ------------------------------- main ----------------------------------------
if __name__ == "__main__":
    key = jax.random.PRNGKey(0)
    k_mem, k_ctrl, k_par = jax.random.split(key, 3)

    memory_tokens = jax.random.normal(k_mem, (B, MT, D), dtype=jnp.float32)
    control_inputs = jax.random.normal(k_ctrl, (B, S, D), dtype=jnp.float32)
    params = make_params(k_par)

    # one-time parameter packing (hoisted out of the per-forward path)
    packed = jax.block_until_ready(pack_params(params))

    fwd = jax.jit(token_add_erase_write)
    out = jax.block_until_ready(fwd(memory_tokens, control_inputs, packed))

    ref = jax.block_until_ready(
        token_add_erase_write_ref(memory_tokens, control_inputs, params))

    assert out.shape == (B, M, D), out.shape
    max_err = float(jnp.max(jnp.abs(out - ref)))
    assert jnp.allclose(out, ref, rtol=2e-4, atol=1e-4), max_err

    print("KERNEL_OK")
</pallas_src>

<mosaic_0001>
module attributes {stable_mosaic.version = 11 : i64} {
  func.func @taew_kernel(%arg0: i32, %arg1: memref<64x32xf32, #tpu.memory_space<vmem>>, %arg2: memref<16x32xf32, #tpu.memory_space<vmem>>, %arg3: memref<616x192xf32, #tpu.memory_space<vmem>>, %arg4: memref<8x64xf32, #tpu.memory_space<vmem>>, %arg5: memref<8x64xf32, #tpu.memory_space<vmem>>, %arg6: memref<64x16xf32, #tpu.memory_space<vmem>>, %arg7: memref<32x64xf32, #tpu.memory_space<vmem>>) attributes {dimension_semantics = [#tpu.dimension_semantics<arbitrary>], iteration_bounds = array<i64: 1>, scalar_prefetch = 0 : i64, scratch_operands = 3 : i64, tpu.core_type = #tpu.core_type<tc>, window_params = [{pipeline_mode = #tpu.pipeline_mode<synchronous>, transform_indices = @transform_0, window_bounds = array<i64: 64, 32>}, {pipeline_mode = #tpu.pipeline_mode<synchronous>, transform_indices = @transform_1, window_bounds = array<i64: 16, 32>}, {pipeline_mode = #tpu.pipeline_mode<synchronous>, transform_indices = @transform_2, window_bounds = array<i64: 616, 192>}, {pipeline_mode = #tpu.pipeline_mode<synchronous>, transform_indices = @transform_3, window_bounds = array<i64: 8, 64>}]} {
    %c0 = arith.constant 0 : index
    %c0_0 = arith.constant 0 : index
    %0 = vector.load %arg3[%c0, %c0_0] : memref<616x192xf32, #tpu.memory_space<vmem>>, vector<1x32xf32>
    %c1 = arith.constant 1 : index
    %c0_1 = arith.constant 0 : index
    %1 = vector.load %arg3[%c1, %c0_1] : memref<616x192xf32, #tpu.memory_space<vmem>>, vector<1x32xf32>
    %c2 = arith.constant 2 : index
    %c0_2 = arith.constant 0 : index
    %2 = vector.load %arg3[%c2, %c0_2] : memref<616x192xf32, #tpu.memory_space<vmem>>, vector<1x32xf32>
    %c3 = arith.constant 3 : index
    %c0_3 = arith.constant 0 : index
    %3 = vector.load %arg3[%c3, %c0_3] : memref<616x192xf32, #tpu.memory_space<vmem>>, vector<1x32xf32>
    %c4 = arith.constant 4 : index
    %c0_4 = arith.constant 0 : index
    %4 = vector.load %arg3[%c4, %c0_4] : memref<616x192xf32, #tpu.memory_space<vmem>>, vector<1x96xf32>
    %c5 = arith.constant 5 : index
    %c0_5 = arith.constant 0 : index
    %5 = vector.load %arg3[%c5, %c0_5] : memref<616x192xf32, #tpu.memory_space<vmem>>, vector<1x8xf32>
    %c6 = arith.constant 6 : index
    %c0_6 = arith.constant 0 : index
    %6 = vector.load %arg3[%c6, %c0_6] : memref<616x192xf32, #tpu.memory_space<vmem>>, vector<1x192xf32>
    %c7 = arith.constant 7 : index
    %c0_7 = arith.constant 0 : index
    %7 = vector.load %arg3[%c7, %c0_7] : memref<616x192xf32, #tpu.memory_space<vmem>>, vector<1x16xf32>
    %c8 = arith.constant 8 : index
    %c0_8 = arith.constant 0 : index
    %8 = vector.load %arg3[%c8, %c0_8] : memref<616x192xf32, #tpu.memory_space<vmem>>, vector<1x192xf32>
    %c9 = arith.constant 9 : index
    %c0_9 = arith.constant 0 : index
    %9 = vector.load %arg3[%c9, %c0_9] : memref<616x192xf32, #tpu.memory_space<vmem>>, vector<1x64xf32>
    %c16 = arith.constant 16 : index
    %c0_10 = arith.constant 0 : index
    %10 = vector.load %arg3[%c16, %c0_10] : memref<616x192xf32, #tpu.memory_space<vmem>>, vector<8x64xf32>
    %c24 = arith.constant 24 : index
    %c0_11 = arith.constant 0 : index
    %11 = vector.load %arg3[%c24, %c0_11] : memref<616x192xf32, #tpu.memory_space<vmem>>, vector<8x32xf32>
    %c32 = arith.constant 32 : index
    %c0_12 = arith.constant 0 : index
    %12 = vector.load %arg3[%c32, %c0_12] : memref<616x192xf32, #tpu.memory_space<vmem>>, vector<32x96xf32>
    %c64 = arith.constant 64 : index
    %c0_13 = arith.constant 0 : index
    %13 = vector.load %arg3[%c64, %c0_13] : memref<616x192xf32, #tpu.memory_space<vmem>>, vector<96x8xf32>
    %c160 = arith.constant 160 : index
    %c0_14 = arith.constant 0 : index
    %14 = vector.load %arg3[%c160, %c0_14] : memref<616x192xf32, #tpu.memory_space<vmem>>, vector<8x192xf32>
    %c168 = arith.constant 168 : index
    %c0_15 = arith.constant 0 : index
    %15 = vector.load %arg3[%c168, %c0_15] : memref<616x192xf32, #tpu.memory_space<vmem>>, vector<192x16xf32>
    %c360 = arith.constant 360 : index
    %c0_16 = arith.constant 0 : index
    %16 = vector.load %arg3[%c360, %c0_16] : memref<616x192xf32, #tpu.memory_space<vmem>>, vector<64x192xf32>
    %c424 = arith.constant 424 : index
    %c0_17 = arith.constant 0 : index
    %17 = vector.load %arg3[%c424, %c0_17] : memref<616x192xf32, #tpu.memory_space<vmem>>, vector<192x64xf32>
    %c0_18 = arith.constant 0 : index
    %c0_19 = arith.constant 0 : index
    %18 = vector.load %arg1[%c0_18, %c0_19] : memref<64x32xf32, #tpu.memory_space<vmem>>, vector<64x32xf32>
    %c0_20 = arith.constant 0 : index
    %c0_21 = arith.constant 0 : index
    %19 = vector.load %arg2[%c0_20, %c0_21] : memref<16x32xf32, #tpu.memory_space<vmem>>, vector<16x32xf32>
    %cst = arith.constant dense<0.000000e+00> : vector<64xf32>
    %20 = vector.multi_reduction <add>, %18, %cst [1] : vector<64x32xf32> to vector<64xf32>
    %21 = vector.shape_cast %20 : vector<64xf32> to vector<64x1xf32>
    %cst_22 = arith.constant 3.200000e+01 : f32
    %22 = vector.broadcast %cst_22 : f32 to vector<64x1xf32>
    %23 = arith.divf %21, %22 : vector<64x1xf32>
    %24 = vector.broadcast %23 : vector<64x1xf32> to vector<64x32xf32>
    %25 = arith.subf %18, %24 : vector<64x32xf32>
    %26 = arith.mulf %25, %25 : vector<64x32xf32>
    %cst_23 = arith.constant dense<0.000000e+00> : vector<64xf32>
    %27 = vector.multi_reduction <add>, %26, %cst_23 [1] : vector<64x32xf32> to vector<64xf32>
    %28 = vector.shape_cast %27 : vector<64xf32> to vector<64x1xf32>
    %cst_24 = arith.constant 3.200000e+01 : f32
    %29 = vector.broadcast %cst_24 : f32 to vector<64x1xf32>
    %30 = arith.divf %28, %29 : vector<64x1xf32>
    %31 = vector.broadcast %23 : vector<64x1xf32> to vector<64x32xf32>
    %32 = arith.subf %18, %31 : vector<64x32xf32>
    %cst_25 = arith.constant 9.99999974E-6 : f32
    %33 = vector.broadcast %cst_25 : f32 to vector<64x1xf32>
    %34 = arith.addf %30, %33 : vector<64x1xf32>
    %35 = math.rsqrt %34 : vector<64x1xf32>
    %36 = vector.broadcast %35 : vector<64x1xf32> to vector<64x32xf32>
    %37 = arith.mulf %32, %36 : vector<64x32xf32>
    %38 = vector.broadcast %0 : vector<1x32xf32> to vector<64x32xf32>
    %39 = arith.mulf %37, %38 : vector<64x32xf32>
    %40 = vector.broadcast %1 : vector<1x32xf32> to vector<64x32xf32>
    %41 = arith.addf %39, %40 : vector<64x32xf32>
    %cst_26 = arith.constant dense<0.000000e+00> : vector<64x96xf32>
    %42 = tpu.matmul %41, %12, %cst_26 {dimension_numbers = #tpu.dot_dimension_numbers<[1], [0], [0], [1], [0, 0, 1, 1], [], []>, precision = #tpu.contract_precision<fp32>} : vector<64x32xf32>, vector<32x96xf32>, vector<64x96xf32> -> vector<64x96xf32>
    %43 = vector.broadcast %4 : vector<1x96xf32> to vector<64x96xf32>
    %44 = arith.addf %42, %43 : vector<64x96xf32>
    %cst_27 = arith.constant 5.000000e-01 : f32
    %45 = vector.broadcast %cst_27 : f32 to vector<64x96xf32>
    %46 = arith.mulf %45, %44 : vector<64x96xf32>
    %cst_28 = arith.constant 0.707106769 : f32
    %47 = vector.broadcast %cst_28 : f32 to vector<64x96xf32>
    %48 = arith.mulf %44, %47 : vector<64x96xf32>
    %49 = math.absf %48 : vector<64x96xf32>
    %cst_29 = arith.constant 0.327591091 : f32
    %50 = vector.broadcast %cst_29 : f32 to vector<64x96xf32>
    %51 = arith.mulf %50, %49 : vector<64x96xf32>
    %cst_30 = arith.constant 1.000000e+00 : f32
    %52 = vector.broadcast %cst_30 : f32 to vector<64x96xf32>
    %53 = arith.addf %52, %51 : vector<64x96xf32>
    %cst_31 = arith.constant 1.000000e+00 : f32
    %54 = vector.broadcast %cst_31 : f32 to vector<64x96xf32>
    %55 = arith.divf %54, %53 : vector<64x96xf32>
    %cst_32 = arith.constant 1.06140542 : f32
    %56 = vector.broadcast %cst_32 : f32 to vector<64x96xf32>
    %57 = arith.mulf %55, %56 : vector<64x96xf32>
    %cst_33 = arith.constant -1.45315206 : f32
    %58 = vector.broadcast %cst_33 : f32 to vector<64x96xf32>
    %59 = arith.addf %58, %57 : vector<64x96xf32>
    %60 = arith.mulf %55, %59 : vector<64x96xf32>
    %cst_34 = arith.constant 1.42141378 : f32
    %61 = vector.broadcast %cst_34 : f32 to vector<64x96xf32>
    %62 = arith.addf %61, %60 : vector<64x96xf32>
    %63 = arith.mulf %55, %62 : vector<64x96xf32>
    %cst_35 = arith.constant -0.284496725 : f32
    %64 = vector.broadcast %cst_35 : f32 to vector<64x96xf32>
    %65 = arith.addf %64, %63 : vector<64x96xf32>
    %66 = arith.mulf %55, %65 : vector<64x96xf32>
    %cst_36 = arith.constant 0.254829586 : f32
    %67 = vector.broadcast %cst_36 : f32 to vector<64x96xf32>
    %68 = arith.addf %67, %66 : vector<64x96xf32>
    %69 = arith.mulf %55, %68 : vector<64x96xf32>
    %cst_37 = arith.constant 0.000000e+00 : f32
    %70 = vector.broadcast %cst_37 : f32 to vector<64x96xf32>
    %71 = arith.subf %70, %49 : vector<64x96xf32>
    %72 = arith.mulf %71, %49 : vector<64x96xf32>
    %73 = math.exp %72 : vector<64x96xf32>
    %74 = arith.mulf %69, %73 : vector<64x96xf32>
    %cst_38 = arith.constant 1.000000e+00 : f32
    %75 = vector.broadcast %cst_38 : f32 to vector<64x96xf32>
    %76 = arith.subf %75, %74 : vector<64x96xf32>
    %cst_39 = arith.constant 0.000000e+00 : f32
    %77 = vector.broadcast %cst_39 : f32 to vector<64x96xf32>
    %78 = arith.cmpf oge, %48, %77 : vector<64x96xf32>
    %cst_40 = arith.constant 0.000000e+00 : f32
    %79 = vector.broadcast %cst_40 : f32 to vector<64x96xf32>
    %80 = arith.subf %79, %76 : vector<64x96xf32>
    %81 = arith.select %78, %76, %80 : vector<64x96xi1>, vector<64x96xf32>
    %cst_41 = arith.constant 1.000000e+00 : f32
    %82 = vector.broadcast %cst_41 : f32 to vector<64x96xf32>
    %83 = arith.addf %82, %81 : vector<64x96xf32>
    %84 = arith.mulf %46, %83 : vector<64x96xf32>
    %cst_42 = arith.constant dense<0.000000e+00> : vector<64x8xf32>
    %85 = tpu.matmul %84, %13, %cst_42 {dimension_numbers = #tpu.dot_dimension_numbers<[1], [0], [0], [1], [0, 0, 1, 1], [], []>, precision = #tpu.contract_precision<fp32>} : vector<64x96xf32>, vector<96x8xf32>, vector<64x8xf32> -> vector<64x8xf32>
    %86 = vector.broadcast %5 : vector<1x8xf32> to vector<64x8xf32>
    %87 = arith.addf %85, %86 : vector<64x8xf32>
    %cst_43 = arith.constant 5.000000e-01 : f32
    %88 = vector.broadcast %cst_43 : f32 to vector<64x8xf32>
    %89 = arith.mulf %88, %87 : vector<64x8xf32>
    %cst_44 = arith.constant 0.707106769 : f32
    %90 = vector.broadcast %cst_44 : f32 to vector<64x8xf32>
    %91 = arith.mulf %87, %90 : vector<64x8xf32>
    %92 = math.absf %91 : vector<64x8xf32>
    %cst_45 = arith.constant 0.327591091 : f32
    %93 = vector.broadcast %cst_45 : f32 to vector<64x8xf32>
    %94 = arith.mulf %93, %92 : vector<64x8xf32>
    %cst_46 = arith.constant 1.000000e+00 : f32
    %95 = vector.broadcast %cst_46 : f32 to vector<64x8xf32>
    %96 = arith.addf %95, %94 : vector<64x8xf32>
    %cst_47 = arith.constant 1.000000e+00 : f32
    %97 = vector.broadcast %cst_47 : f32 to vector<64x8xf32>
    %98 = arith.divf %97, %96 : vector<64x8xf32>
    %cst_48 = arith.constant 1.06140542 : f32
    %99 = vector.broadcast %cst_48 : f32 to vector<64x8xf32>
    %100 = arith.mulf %98, %99 : vector<64x8xf32>
    %cst_49 = arith.constant -1.45315206 : f32
    %101 = vector.broadcast %cst_49 : f32 to vector<64x8xf32>
    %102 = arith.addf %101, %100 : vector<64x8xf32>
    %103 = arith.mulf %98, %102 : vector<64x8xf32>
    %cst_50 = arith.constant 1.42141378 : f32
    %104 = vector.broadcast %cst_50 : f32 to vector<64x8xf32>
    %105 = arith.addf %104, %103 : vector<64x8xf32>
    %106 = arith.mulf %98, %105 : vector<64x8xf32>
    %cst_51 = arith.constant -0.284496725 : f32
    %107 = vector.broadcast %cst_51 : f32 to vector<64x8xf32>
    %108 = arith.addf %107, %106 : vector<64x8xf32>
    %109 = arith.mulf %98, %108 : vector<64x8xf32>
    %cst_52 = arith.constant 0.254829586 : f32
    %110 = vector.broadcast %cst_52 : f32 to vector<64x8xf32>
    %111 = arith.addf %110, %109 : vector<64x8xf32>
    %112 = arith.mulf %98, %111 : vector<64x8xf32>
    %cst_53 = arith.constant 0.000000e+00 : f32
    %113 = vector.broadcast %cst_53 : f32 to vector<64x8xf32>
    %114 = arith.subf %113, %92 : vector<64x8xf32>
    %115 = arith.mulf %114, %92 : vector<64x8xf32>
    %116 = math.exp %115 : vector<64x8xf32>
    %117 = arith.mulf %112, %116 : vector<64x8xf32>
    %cst_54 = arith.constant 1.000000e+00 : f32
    %118 = vector.broadcast %cst_54 : f32 to vector<64x8xf32>
    %119 = arith.subf %118, %117 : vector<64x8xf32>
    %cst_55 = arith.constant 0.000000e+00 : f32
    %120 = vector.broadcast %cst_55 : f32 to vector<64x8xf32>
    %121 = arith.cmpf oge, %91, %120 : vector<64x8xf32>
    %cst_56 = arith.constant 0.000000e+00 : f32
    %122 = vector.broadcast %cst_56 : f32 to vector<64x8xf32>
    %123 = arith.subf %122, %119 : vector<64x8xf32>
    %124 = arith.select %121, %119, %123 : vector<64x8xi1>, vector<64x8xf32>
    %cst_57 = arith.constant 1.000000e+00 : f32
    %125 = vector.broadcast %cst_57 : f32 to vector<64x8xf32>
    %126 = arith.addf %125, %124 : vector<64x8xf32>
    %127 = arith.mulf %89, %126 : vector<64x8xf32>
    %cst_58 = arith.constant dense<0.000000e+00> : vector<16xf32>
    %128 = vector.multi_reduction <add>, %19, %cst_58 [1] : vector<16x32xf32> to vector<16xf32>
    %129 = vector.shape_cast %128 : vector<16xf32> to vector<16x1xf32>
    %cst_59 = arith.constant 3.200000e+01 : f32
    %130 = vector.broadcast %cst_59 : f32 to vector<16x1xf32>
    %131 = arith.divf %129, %130 : vector<16x1xf32>
    %132 = vector.broadcast %131 : vector<16x1xf32> to vector<16x32xf32>
    %133 = arith.subf %19, %132 : vector<16x32xf32>
    %134 = arith.mulf %133, %133 : vector<16x32xf32>
    %cst_60 = arith.constant dense<0.000000e+00> : vector<16xf32>
    %135 = vector.multi_reduction <add>, %134, %cst_60 [1] : vector<16x32xf32> to vector<16xf32>
    %136 = vector.shape_cast %135 : vector<16xf32> to vector<16x1xf32>
    %cst_61 = arith.constant 3.200000e+01 : f32
    %137 = vector.broadcast %cst_61 : f32 to vector<16x1xf32>
    %138 = arith.divf %136, %137 : vector<16x1xf32>
    %139 = vector.broadcast %131 : vector<16x1xf32> to vector<16x32xf32>
    %140 = arith.subf %19, %139 : vector<16x32xf32>
    %cst_62 = arith.constant 9.99999974E-6 : f32
    %141 = vector.broadcast %cst_62 : f32 to vector<16x1xf32>
    %142 = arith.addf %138, %141 : vector<16x1xf32>
    %143 = math.rsqrt %142 : vector<16x1xf32>
    %144 = vector.broadcast %143 : vector<16x1xf32> to vector<16x32xf32>
    %145 = arith.mulf %140, %144 : vector<16x32xf32>
    %146 = vector.broadcast %2 : vector<1x32xf32> to vector<16x32xf32>
    %147 = arith.mulf %145, %146 : vector<16x32xf32>
    %148 = vector.broadcast %3 : vector<1x32xf32> to vector<16x32xf32>
    %149 = arith.addf %147, %148 : vector<16x32xf32>
    %150 = vector.extract_strided_slice %149 {offsets = [0, 0], sizes = [8, 32], strides = [1, 1]} : vector<16x32xf32> to vector<8x32xf32>
    %c0_63 = arith.constant 0 : index
    %c0_64 = arith.constant 0 : index
    %151 = vector.load %arg5[%c0_63, %c0_64] : memref<8x64xf32, #tpu.memory_space<vmem>>, vector<8x32xf32>
    tpu.vector_store %arg5[%c0_63, %c0_64], %150 {strides = array<i32>} : memref<8x64xf32, #tpu.memory_space<vmem>>, vector<8x32xf32>,
    %152 = vector.extract_strided_slice %149 {offsets = [8, 0], sizes = [8, 32], strides = [1, 1]} : vector<16x32xf32> to vector<8x32xf32>
    %c0_65 = arith.constant 0 : index
    %c32_66 = arith.constant 32 : index
    %153 = vector.load %arg5[%c0_65, %c32_66] : memref<8x64xf32, #tpu.memory_space<vmem>>, vector<8x32xf32>
    tpu.vector_store %arg5[%c0_65, %c32_66], %152 {strides = array<i32>} : memref<8x64xf32, #tpu.memory_space<vmem>>, vector<8x32xf32>,
    %c0_67 = arith.constant 0 : index
    %c0_68 = arith.constant 0 : index
    %154 = vector.load %arg5[%c0_67, %c0_68] : memref<8x64xf32, #tpu.memory_space<vmem>>, vector<8x64xf32>
    %cst_69 = arith.constant dense<0.000000e+00> : vector<64x192xf32>
    %155 = tpu.matmul %154, %14, %cst_69 {dimension_numbers = #tpu.dot_dimension_numbers<[0], [0], [1], [1], [0, 1, 1, 1], [], []>, precision = #tpu.contract_precision<fp32>} : vector<8x64xf32>, vector<8x192xf32>, vector<64x192xf32> -> vector<64x192xf32>
    %156 = vector.broadcast %6 : vector<1x192xf32> to vector<64x192xf32>
    %157 = arith.addf %155, %156 : vector<64x192xf32>
    %cst_70 = arith.constant 5.000000e-01 : f32
    %158 = vector.broadcast %cst_70 : f32 to vector<64x192xf32>
    %159 = arith.mulf %158, %157 : vector<64x192xf32>
    %cst_71 = arith.constant 0.707106769 : f32
    %160 = vector.broadcast %cst_71 : f32 to vector<64x192xf32>
    %161 = arith.mulf %157, %160 : vector<64x192xf32>
    %162 = math.absf %161 : vector<64x192xf32>
    %cst_72 = arith.constant 0.327591091 : f32
    %163 = vector.broadcast %cst_72 : f32 to vector<64x192xf32>
    %164 = arith.mulf %163, %162 : vector<64x192xf32>
    %cst_73 = arith.constant 1.000000e+00 : f32
    %165 = vector.broadcast %cst_73 : f32 to vector<64x192xf32>
    %166 = arith.addf %165, %164 : vector<64x192xf32>
    %cst_74 = arith.constant 1.000000e+00 : f32
    %167 = vector.broadcast %cst_74 : f32 to vector<64x192xf32>
    %168 = arith.divf %167, %166 : vector<64x192xf32>
    %cst_75 = arith.constant 1.06140542 : f32
    %169 = vector.broadcast %cst_75 : f32 to vector<64x192xf32>
    %170 = arith.mulf %168, %169 : vector<64x192xf32>
    %cst_76 = arith.constant -1.45315206 : f32
    %171 = vector.broadcast %cst_76 : f32 to vector<64x192xf32>
    %172 = arith.addf %171, %170 : vector<64x192xf32>
    %173 = arith.mulf %168, %172 : vector<64x192xf32>
    %cst_77 = arith.constant 1.42141378 : f32
    %174 = vector.broadcast %cst_77 : f32 to vector<64x192xf32>
    %175 = arith.addf %174, %173 : vector<64x192xf32>
    %176 = arith.mulf %168, %175 : vector<64x192xf32>
    %cst_78 = arith.constant -0.284496725 : f32
    %177 = vector.broadcast %cst_78 : f32 to vector<64x192xf32>
    %178 = arith.addf %177, %176 : vector<64x192xf32>
    %179 = arith.mulf %168, %178 : vector<64x192xf32>
    %cst_79 = arith.constant 0.254829586 : f32
    %180 = vector.broadcast %cst_79 : f32 to vector<64x192xf32>
    %181 = arith.addf %180, %179 : vector<64x192xf32>
    %182 = arith.mulf %168, %181 : vector<64x192xf32>
    %cst_80 = arith.constant 0.000000e+00 : f32
    %183 = vector.broadcast %cst_80 : f32 to vector<64x192xf32>
    %184 = arith.subf %183, %162 : vector<64x192xf32>
    %185 = arith.mulf %184, %162 : vector<64x192xf32>
    %186 = math.exp %185 : vector<64x192xf32>
    %187 = arith.mulf %182, %186 : vector<64x192xf32>
    %cst_81 = arith.constant 1.000000e+00 : f32
    %188 = vector.broadcast %cst_81 : f32 to vector<64x192xf32>
    %189 = arith.subf %188, %187 : vector<64x192xf32>
    %cst_82 = arith.constant 0.000000e+00 : f32
    %190 = vector.broadcast %cst_82 : f32 to vector<64x192xf32>
    %191 = arith.cmpf oge, %161, %190 : vector<64x192xf32>
    %cst_83 = arith.constant 0.000000e+00 : f32
    %192 = vector.broadcast %cst_83 : f32 to vector<64x192xf32>
    %193 = arith.subf %192, %189 : vector<64x192xf32>
    %194 = arith.select %191, %189, %193 : vector<64x192xi1>, vector<64x192xf32>
    %cst_84 = arith.constant 1.000000e+00 : f32
    %195 = vector.broadcast %cst_84 : f32 to vector<64x192xf32>
    %196 = arith.addf %195, %194 : vector<64x192xf32>
    %197 = arith.mulf %159, %196 : vector<64x192xf32>
    %cst_85 = arith.constant dense<0.000000e+00> : vector<64x16xf32>
    %198 = tpu.matmul %197, %15, %cst_85 {dimension_numbers = #tpu.dot_dimension_numbers<[1], [0], [0], [1], [0, 0, 1, 1], [], []>, precision = #tpu.contract_precision<fp32>} : vector<64x192xf32>, vector<192x16xf32>, vector<64x16xf32> -> vector<64x16xf32>
    %199 = vector.broadcast %7 : vector<1x16xf32> to vector<64x16xf32>
    %200 = arith.addf %198, %199 : vector<64x16xf32>
    %cst_86 = arith.constant 5.000000e-01 : f32
    %201 = vector.broadcast %cst_86 : f32 to vector<64x16xf32>
    %202 = arith.mulf %201, %200 : vector<64x16xf32>
    %cst_87 = arith.constant 0.707106769 : f32
    %203 = vector.broadcast %cst_87 : f32 to vector<64x16xf32>
    %204 = arith.mulf %200, %203 : vector<64x16xf32>
    %205 = math.absf %204 : vector<64x16xf32>
    %cst_88 = arith.constant 0.327591091 : f32
    %206 = vector.broadcast %cst_88 : f32 to vector<64x16xf32>
    %207 = arith.mulf %206, %205 : vector<64x16xf32>
    %cst_89 = arith.constant 1.000000e+00 : f32
    %208 = vector.broadcast %cst_89 : f32 to vector<64x16xf32>
    %209 = arith.addf %208, %207 : vector<64x16xf32>
    %cst_90 = arith.constant 1.000000e+00 : f32
    %210 = vector.broadcast %cst_90 : f32 to vector<64x16xf32>
    %211 = arith.divf %210, %209 : vector<64x16xf32>
    %cst_91 = arith.constant 1.06140542 : f32
    %212 = vector.broadcast %cst_91 : f32 to vector<64x16xf32>
    %213 = arith.mulf %211, %212 : vector<64x16xf32>
    %cst_92 = arith.constant -1.45315206 : f32
    %214 = vector.broadcast %cst_92 : f32 to vector<64x16xf32>
    %215 = arith.addf %214, %213 : vector<64x16xf32>
    %216 = arith.mulf %211, %215 : vector<64x16xf32>
    %cst_93 = arith.constant 1.42141378 : f32
    %217 = vector.broadcast %cst_93 : f32 to vector<64x16xf32>
    %218 = arith.addf %217, %216 : vector<64x16xf32>
    %219 = arith.mulf %211, %218 : vector<64x16xf32>
    %cst_94 = arith.constant -0.284496725 : f32
    %220 = vector.broadcast %cst_94 : f32 to vector<64x16xf32>
    %221 = arith.addf %220, %219 : vector<64x16xf32>
    %222 = arith.mulf %211, %221 : vector<64x16xf32>
    %cst_95 = arith.constant 0.254829586 : f32
    %223 = vector.broadcast %cst_95 : f32 to vector<64x16xf32>
    %224 = arith.addf %223, %222 : vector<64x16xf32>
    %225 = arith.mulf %211, %224 : vector<64x16xf32>
    %cst_96 = arith.constant 0.000000e+00 : f32
    %226 = vector.broadcast %cst_96 : f32 to vector<64x16xf32>
    %227 = arith.subf %226, %205 : vector<64x16xf32>
    %228 = arith.mulf %227, %205 : vector<64x16xf32>
    %229 = math.exp %228 : vector<64x16xf32>
    %230 = arith.mulf %225, %229 : vector<64x16xf32>
    %cst_97 = arith.constant 1.000000e+00 : f32
    %231 = vector.broadcast %cst_97 : f32 to vector<64x16xf32>
    %232 = arith.subf %231, %230 : vector<64x16xf32>
    %cst_98 = arith.constant 0.000000e+00 : f32
    %233 = vector.broadcast %cst_98 : f32 to vector<64x16xf32>
    %234 = arith.cmpf oge, %204, %233 : vector<64x16xf32>
    %cst_99 = arith.constant 0.000000e+00 : f32
    %235 = vector.broadcast %cst_99 : f32 to vector<64x16xf32>
    %236 = arith.subf %235, %232 : vector<64x16xf32>
    %237 = arith.select %234, %232, %236 : vector<64x16xi1>, vector<64x16xf32>
    %cst_100 = arith.constant 1.000000e+00 : f32
    %238 = vector.broadcast %cst_100 : f32 to vector<64x16xf32>
    %239 = arith.addf %238, %237 : vector<64x16xf32>
    %240 = arith.mulf %202, %239 : vector<64x16xf32>
    %241 = vector.extract_strided_slice %240 {offsets = [0, 0], sizes = [32, 8], strides = [1, 1]} : vector<64x16xf32> to vector<32x8xf32>
    %c0_101 = arith.constant 0 : index
    %c0_102 = arith.constant 0 : index
    %242 = vector.load %arg6[%c0_101, %c0_102] : memref<64x16xf32, #tpu.memory_space<vmem>>, vector<32x8xf32>
    tpu.vector_store %arg6[%c0_101, %c0_102], %241 {strides = array<i32>} : memref<64x16xf32, #tpu.memory_space<vmem>>, vector<32x8xf32>,
    %243 = vector.extract_strided_slice %240 {offsets = [32, 0], sizes = [32, 8], strides = [1, 1]} : vector<64x16xf32> to vector<32x8xf32>
    %c0_103 = arith.constant 0 : index
    %c8_104 = arith.constant 8 : index
    %244 = vector.load %arg6[%c0_103, %c8_104] : memref<64x16xf32, #tpu.memory_space<vmem>>, vector<32x8xf32>
    tpu.vector_store %arg6[%c0_103, %c8_104], %243 {strides = array<i32>} : memref<64x16xf32, #tpu.memory_space<vmem>>, vector<32x8xf32>,
    %245 = vector.extract_strided_slice %240 {offsets = [0, 8], sizes = [32, 8], strides = [1, 1]} : vector<64x16xf32> to vector<32x8xf32>
    %c32_105 = arith.constant 32 : index
    %c0_106 = arith.constant 0 : index
    %246 = vector.load %arg6[%c32_105, %c0_106] : memref<64x16xf32, #tpu.memory_space<vmem>>, vector<32x8xf32>
    tpu.vector_store %arg6[%c32_105, %c0_106], %245 {strides = array<i32>} : memref<64x16xf32, #tpu.memory_space<vmem>>, vector<32x8xf32>,
    %247 = vector.extract_strided_slice %240 {offsets = [32, 8], sizes = [32, 8], strides = [1, 1]} : vector<64x16xf32> to vector<32x8xf32>
    %c32_107 = arith.constant 32 : index
    %c8_108 = arith.constant 8 : index
    %248 = vector.load %arg6[%c32_107, %c8_108] : memref<64x16xf32, #tpu.memory_space<vmem>>, vector<32x8xf32>
    tpu.vector_store %arg6[%c32_107, %c8_108], %247 {strides = array<i32>} : memref<64x16xf32, #tpu.memory_space<vmem>>, vector<32x8xf32>,
    %c0_109 = arith.constant 0 : index
    %c0_110 = arith.constant 0 : index
    %249 = vector.load %arg6[%c0_109, %c0_110] : memref<64x16xf32, #tpu.memory_space<vmem>>, vector<64x16xf32>
    %cst_111 = arith.constant dense<0.000000e+00> : vector<16x192xf32>
    %250 = tpu.matmul %249, %16, %cst_111 {dimension_numbers = #tpu.dot_dimension_numbers<[0], [0], [1], [1], [0, 1, 1, 1], [], []>, precision = #tpu.contract_precision<fp32>} : vector<64x16xf32>, vector<64x192xf32>, vector<16x192xf32> -> vector<16x192xf32>
    %251 = vector.broadcast %8 : vector<1x192xf32> to vector<16x192xf32>
    %252 = arith.addf %250, %251 : vector<16x192xf32>
    %cst_112 = arith.constant 5.000000e-01 : f32
    %253 = vector.broadcast %cst_112 : f32 to vector<16x192xf32>
    %254 = arith.mulf %253, %252 : vector<16x192xf32>
    %cst_113 = arith.constant 0.707106769 : f32
    %255 = vector.broadcast %cst_113 : f32 to vector<16x192xf32>
    %256 = arith.mulf %252, %255 : vector<16x192xf32>
    %257 = math.absf %256 : vector<16x192xf32>
    %cst_114 = arith.constant 0.327591091 : f32
    %258 = vector.broadcast %cst_114 : f32 to vector<16x192xf32>
    %259 = arith.mulf %258, %257 : vector<16x192xf32>
    %cst_115 = arith.constant 1.000000e+00 : f32
    %260 = vector.broadcast %cst_115 : f32 to vector<16x192xf32>
    %261 = arith.addf %260, %259 : vector<16x192xf32>
    %cst_116 = arith.constant 1.000000e+00 : f32
    %262 = vector.broadcast %cst_116 : f32 to vector<16x192xf32>
    %263 = arith.divf %262, %261 : vector<16x192xf32>
    %cst_117 = arith.constant 1.06140542 : f32
    %264 = vector.broadcast %cst_117 : f32 to vector<16x192xf32>
    %265 = arith.mulf %263, %264 : vector<16x192xf32>
    %cst_118 = arith.constant -1.45315206 : f32
    %266 = vector.broadcast %cst_118 : f32 to vector<16x192xf32>
    %267 = arith.addf %266, %265 : vector<16x192xf32>
    %268 = arith.mulf %263, %267 : vector<16x192xf32>
    %cst_119 = arith.constant 1.42141378 : f32
    %269 = vector.broadcast %cst_119 : f32 to vector<16x192xf32>
    %270 = arith.addf %269, %268 : vector<16x192xf32>
    %271 = arith.mulf %263, %270 : vector<16x192xf32>
    %cst_120 = arith.constant -0.284496725 : f32
    %272 = vector.broadcast %cst_120 : f32 to vector<16x192xf32>
    %273 = arith.addf %272, %271 : vector<16x192xf32>
    %274 = arith.mulf %263, %273 : vector<16x192xf32>
    %cst_121 = arith.constant 0.254829586 : f32
    %275 = vector.broadcast %cst_121 : f32 to vector<16x192xf32>
    %276 = arith.addf %275, %274 : vector<16x192xf32>
    %277 = arith.mulf %263, %276 : vector<16x192xf32>
    %cst_122 = arith.constant 0.000000e+00 : f32
    %278 = vector.broadcast %cst_122 : f32 to vector<16x192xf32>
    %279 = arith.subf %278, %257 : vector<16x192xf32>
    %280 = arith.mulf %279, %257 : vector<16x192xf32>
    %281 = math.exp %280 : vector<16x192xf32>
    %282 = arith.mulf %277, %281 : vector<16x192xf32>
    %cst_123 = arith.constant 1.000000e+00 : f32
    %283 = vector.broadcast %cst_123 : f32 to vector<16x192xf32>
    %284 = arith.subf %283, %282 : vector<16x192xf32>
    %cst_124 = arith.constant 0.000000e+00 : f32
    %285 = vector.broadcast %cst_124 : f32 to vector<16x192xf32>
    %286 = arith.cmpf oge, %256, %285 : vector<16x192xf32>
    %cst_125 = arith.constant 0.000000e+00 : f32
    %287 = vector.broadcast %cst_125 : f32 to vector<16x192xf32>
    %288 = arith.subf %287, %284 : vector<16x192xf32>
    %289 = arith.select %286, %284, %288 : vector<16x192xi1>, vector<16x192xf32>
    %cst_126 = arith.constant 1.000000e+00 : f32
    %290 = vector.broadcast %cst_126 : f32 to vector<16x192xf32>
    %291 = arith.addf %290, %289 : vector<16x192xf32>
    %292 = arith.mulf %254, %291 : vector<16x192xf32>
    %cst_127 = arith.constant dense<0.000000e+00> : vector<16x64xf32>
    %293 = tpu.matmul %292, %17, %cst_127 {dimension_numbers = #tpu.dot_dimension_numbers<[1], [0], [0], [1], [0, 0, 1, 1], [], []>, precision = #tpu.contract_precision<fp32>} : vector<16x192xf32>, vector<192x64xf32>, vector<16x64xf32> -> vector<16x64xf32>
    %294 = vector.broadcast %9 : vector<1x64xf32> to vector<16x64xf32>
    %295 = arith.addf %293, %294 : vector<16x64xf32>
    %cst_128 = arith.constant 5.000000e-01 : f32
    %296 = vector.broadcast %cst_128 : f32 to vector<16x64xf32>
    %297 = arith.mulf %296, %295 : vector<16x64xf32>
    %cst_129 = arith.constant 0.707106769 : f32
    %298 = vector.broadcast %cst_129 : f32 to vector<16x64xf32>
    %299 = arith.mulf %295, %298 : vector<16x64xf32>
    %300 = math.absf %299 : vector<16x64xf32>
    %cst_130 = arith.constant 0.327591091 : f32
    %301 = vector.broadcast %cst_130 : f32 to vector<16x64xf32>
    %302 = arith.mulf %301, %300 : vector<16x64xf32>
    %cst_131 = arith.constant 1.000000e+00 : f32
    %303 = vector.broadcast %cst_131 : f32 to vector<16x64xf32>
    %304 = arith.addf %303, %302 : vector<16x64xf32>
    %cst_132 = arith.constant 1.000000e+00 : f32
    %305 = vector.broadcast %cst_132 : f32 to vector<16x64xf32>
    %306 = arith.divf %305, %304 : vector<16x64xf32>
    %cst_133 = arith.constant 1.06140542 : f32
    %307 = vector.broadcast %cst_133 : f32 to vector<16x64xf32>
    %308 = arith.mulf %306, %307 : vector<16x64xf32>
    %cst_134 = arith.constant -1.45315206 : f32
    %309 = vector.broadcast %cst_134 : f32 to vector<16x64xf32>
    %310 = arith.addf %309, %308 : vector<16x64xf32>
    %311 = arith.mulf %306, %310 : vector<16x64xf32>
    %cst_135 = arith.constant 1.42141378 : f32
    %312 = vector.broadcast %cst_135 : f32 to vector<16x64xf32>
    %313 = arith.addf %312, %311 : vector<16x64xf32>
    %314 = arith.mulf %306, %313 : vector<16x64xf32>
    %cst_136 = arith.constant -0.284496725 : f32
    %315 = vector.broadcast %cst_136 : f32 to vector<16x64xf32>
    %316 = arith.addf %315, %314 : vector<16x64xf32>
    %317 = arith.mulf %306, %316 : vector<16x64xf32>
    %cst_137 = arith.constant 0.254829586 : f32
    %318 = vector.broadcast %cst_137 : f32 to vector<16x64xf32>
    %319 = arith.addf %318, %317 : vector<16x64xf32>
    %320 = arith.mulf %306, %319 : vector<16x64xf32>
    %cst_138 = arith.constant 0.000000e+00 : f32
    %321 = vector.broadcast %cst_138 : f32 to vector<16x64xf32>
    %322 = arith.subf %321, %300 : vector<16x64xf32>
    %323 = arith.mulf %322, %300 : vector<16x64xf32>
    %324 = math.exp %323 : vector<16x64xf32>
    %325 = arith.mulf %320, %324 : vector<16x64xf32>
    %cst_139 = arith.constant 1.000000e+00 : f32
    %326 = vector.broadcast %cst_139 : f32 to vector<16x64xf32>
    %327 = arith.subf %326, %325 : vector<16x64xf32>
    %cst_140 = arith.constant 0.000000e+00 : f32
    %328 = vector.broadcast %cst_140 : f32 to vector<16x64xf32>
    %329 = arith.cmpf oge, %299, %328 : vector<16x64xf32>
    %cst_141 = arith.constant 0.000000e+00 : f32
    %330 = vector.broadcast %cst_141 : f32 to vector<16x64xf32>
    %331 = arith.subf %330, %327 : vector<16x64xf32>
    %332 = arith.select %329, %327, %331 : vector<16x64xi1>, vector<16x64xf32>
    %cst_142 = arith.constant 1.000000e+00 : f32
    %333 = vector.broadcast %cst_142 : f32 to vector<16x64xf32>
    %334 = arith.addf %333, %332 : vector<16x64xf32>
    %335 = arith.mulf %297, %334 : vector<16x64xf32>
    %336 = vector.extract_strided_slice %127 {offsets = [0, 0], sizes = [32, 8], strides = [1, 1]} : vector<64x8xf32> to vector<32x8xf32>
    %cst_143 = arith.constant dense<0xFF800000> : vector<8xf32>
    %337 = vector.multi_reduction <maximumf>, %336, %cst_143 [0] : vector<32x8xf32> to vector<8xf32>
    %338 = vector.shape_cast %337 : vector<8xf32> to vector<1x8xf32>
    %339 = vector.broadcast %338 : vector<1x8xf32> to vector<32x8xf32>
    %340 = arith.subf %336, %339 : vector<32x8xf32>
    %341 = math.exp %340 : vector<32x8xf32>
    %cst_144 = arith.constant dense<0.000000e+00> : vector<8xf32>
    %342 = vector.multi_reduction <add>, %341, %cst_144 [0] : vector<32x8xf32> to vector<8xf32>
    %343 = vector.shape_cast %342 : vector<8xf32> to vector<1x8xf32>
    %344 = vector.broadcast %343 : vector<1x8xf32> to vector<32x8xf32>
    %345 = arith.divf %341, %344 : vector<32x8xf32>
    %346 = vector.extract_strided_slice %335 {offsets = [0, 0], sizes = [8, 32], strides = [1, 1]} : vector<16x64xf32> to vector<8x32xf32>
    %347 = vector.extract_strided_slice %335 {offsets = [0, 32], sizes = [8, 32], strides = [1, 1]} : vector<16x64xf32> to vector<8x32xf32>
    %348 = vector.extract_strided_slice %18 {offsets = [0, 0], sizes = [32, 32], strides = [1, 1]} : vector<64x32xf32> to vector<32x32xf32>
    %349 = vector.extract_strided_slice %345 {offsets = [0, 0], sizes = [32, 1], strides = [1, 1]} : vector<32x8xf32> to vector<32x1xf32>
    %350 = vector.extract_strided_slice %346 {offsets = [0, 0], sizes = [1, 32], strides = [1, 1]} : vector<8x32xf32> to vector<1x32xf32>
    %351 = vector.broadcast %349 : vector<32x1xf32> to vector<32x32xf32>
    %352 = vector.broadcast %350 : vector<1x32xf32> to vector<32x32xf32>
    %353 = arith.mulf %351, %352 : vector<32x32xf32>
    %cst_145 = arith.constant 1.000000e+00 : f32
    %354 = vector.broadcast %cst_145 : f32 to vector<32x32xf32>
    %355 = arith.subf %354, %353 : vector<32x32xf32>
    %356 = vector.extract_strided_slice %345 {offsets = [0, 1], sizes = [32, 1], strides = [1, 1]} : vector<32x8xf32> to vector<32x1xf32>
    %357 = vector.extract_strided_slice %346 {offsets = [1, 0], sizes = [1, 32], strides = [1, 1]} : vector<8x32xf32> to vector<1x32xf32>
    %358 = vector.broadcast %356 : vector<32x1xf32> to vector<32x32xf32>
    %359 = vector.broadcast %357 : vector<1x32xf32> to vector<32x32xf32>
    %360 = arith.mulf %358, %359 : vector<32x32xf32>
    %cst_146 = arith.constant 1.000000e+00 : f32
    %361 = vector.broadcast %cst_146 : f32 to vector<32x32xf32>
    %362 = arith.subf %361, %360 : vector<32x32xf32>
    %363 = arith.mulf %355, %362 : vector<32x32xf32>
    %364 = vector.extract_strided_slice %345 {offsets = [0, 2], sizes = [32, 1], strides = [1, 1]} : vector<32x8xf32> to vector<32x1xf32>
    %365 = vector.extract_strided_slice %346 {offsets = [2, 0], sizes = [1, 32], strides = [1, 1]} : vector<8x32xf32> to vector<1x32xf32>
    %366 = vector.broadcast %364 : vector<32x1xf32> to vector<32x32xf32>
    %367 = vector.broadcast %365 : vector<1x32xf32> to vector<32x32xf32>
    %368 = arith.mulf %366, %367 : vector<32x32xf32>
    %cst_147 = arith.constant 1.000000e+00 : f32
    %369 = vector.broadcast %cst_147 : f32 to vector<32x32xf32>
    %370 = arith.subf %369, %368 : vector<32x32xf32>
    %371 = arith.mulf %363, %370 : vector<32x32xf32>
    %372 = vector.extract_strided_slice %345 {offsets = [0, 3], sizes = [32, 1], strides = [1, 1]} : vector<32x8xf32> to vector<32x1xf32>
    %373 = vector.extract_strided_slice %346 {offsets = [3, 0], sizes = [1, 32], strides = [1, 1]} : vector<8x32xf32> to vector<1x32xf32>
    %374 = vector.broadcast %372 : vector<32x1xf32> to vector<32x32xf32>
    %375 = vector.broadcast %373 : vector<1x32xf32> to vector<32x32xf32>
    %376 = arith.mulf %374, %375 : vector<32x32xf32>
    %cst_148 = arith.constant 1.000000e+00 : f32
    %377 = vector.broadcast %cst_148 : f32 to vector<32x32xf32>
    %378 = arith.subf %377, %376 : vector<32x32xf32>
    %379 = arith.mulf %371, %378 : vector<32x32xf32>
    %380 = vector.extract_strided_slice %345 {offsets = [0, 4], sizes = [32, 1], strides = [1, 1]} : vector<32x8xf32> to vector<32x1xf32>
    %381 = vector.extract_strided_slice %346 {offsets = [4, 0], sizes = [1, 32], strides = [1, 1]} : vector<8x32xf32> to vector<1x32xf32>
    %382 = vector.broadcast %380 : vector<32x1xf32> to vector<32x32xf32>
    %383 = vector.broadcast %381 : vector<1x32xf32> to vector<32x32xf32>
    %384 = arith.mulf %382, %383 : vector<32x32xf32>
    %cst_149 = arith.constant 1.000000e+00 : f32
    %385 = vector.broadcast %cst_149 : f32 to vector<32x32xf32>
    %386 = arith.subf %385, %384 : vector<32x32xf32>
    %387 = arith.mulf %379, %386 : vector<32x32xf32>
    %388 = vector.extract_strided_slice %345 {offsets = [0, 5], sizes = [32, 1], strides = [1, 1]} : vector<32x8xf32> to vector<32x1xf32>
    %389 = vector.extract_strided_slice %346 {offsets = [5, 0], sizes = [1, 32], strides = [1, 1]} : vector<8x32xf32> to vector<1x32xf32>
    %390 = vector.broadcast %388 : vector<32x1xf32> to vector<32x32xf32>
    %391 = vector.broadcast %389 : vector<1x32xf32> to vector<32x32xf32>
    %392 = arith.mulf %390, %391 : vector<32x32xf32>
    %cst_150 = arith.constant 1.000000e+00 : f32
    %393 = vector.broadcast %cst_150 : f32 to vector<32x32xf32>
    %394 = arith.subf %393, %392 : vector<32x32xf32>
    %395 = arith.mulf %387, %394 : vector<32x32xf32>
    %396 = vector.extract_strided_slice %345 {offsets = [0, 6], sizes = [32, 1], strides = [1, 1]} : vector<32x8xf32> to vector<32x1xf32>
    %397 = vector.extract_strided_slice %346 {offsets = [6, 0], sizes = [1, 32], strides = [1, 1]} : vector<8x32xf32> to vector<1x32xf32>
    %398 = vector.broadcast %396 : vector<32x1xf32> to vector<32x32xf32>
    %399 = vector.broadcast %397 : vector<1x32xf32> to vector<32x32xf32>
    %400 = arith.mulf %398, %399 : vector<32x32xf32>
    %cst_151 = arith.constant 1.000000e+00 : f32
    %401 = vector.broadcast %cst_151 : f32 to vector<32x32xf32>
    %402 = arith.subf %401, %400 : vector<32x32xf32>
    %403 = arith.mulf %395, %402 : vector<32x32xf32>
    %404 = vector.extract_strided_slice %345 {offsets = [0, 7], sizes = [32, 1], strides = [1, 1]} : vector<32x8xf32> to vector<32x1xf32>
    %405 = vector.extract_strided_slice %346 {offsets = [7, 0], sizes = [1, 32], strides = [1, 1]} : vector<8x32xf32> to vector<1x32xf32>
    %406 = vector.broadcast %404 : vector<32x1xf32> to vector<32x32xf32>
    %407 = vector.broadcast %405 : vector<1x32xf32> to vector<32x32xf32>
    %408 = arith.mulf %406, %407 : vector<32x32xf32>
    %cst_152 = arith.constant 1.000000e+00 : f32
    %409 = vector.broadcast %cst_152 : f32 to vector<32x32xf32>
    %410 = arith.subf %409, %408 : vector<32x32xf32>
    %411 = arith.mulf %403, %410 : vector<32x32xf32>
    %cst_153 = arith.constant dense<0.000000e+00> : vector<32x32xf32>
    %412 = tpu.matmul %345, %347, %cst_153 {dimension_numbers = #tpu.dot_dimension_numbers<[1], [0], [0], [1], [0, 0, 1, 1], [], []>, precision = #tpu.contract_precision<fp32>} : vector<32x8xf32>, vector<8x32xf32>, vector<32x32xf32> -> vector<32x32xf32>
    %cst_154 = arith.constant 1.250000e-01 : f32
    %413 = vector.broadcast %cst_154 : f32 to vector<32x32xf32>
    %414 = arith.mulf %412, %413 : vector<32x32xf32>
    %cst_155 = arith.constant 1.000000e+00 : f32
    %415 = vector.broadcast %cst_155 : f32 to vector<32x32xf32>
    %416 = arith.subf %415, %414 : vector<32x32xf32>
    %417 = arith.mulf %348, %411 : vector<32x32xf32>
    %418 = arith.addf %417, %416 : vector<32x32xf32>
    %c0_156 = arith.constant 0 : index
    %c0_157 = arith.constant 0 : index
    %419 = vector.load %arg7[%c0_156, %c0_157] : memref<32x64xf32, #tpu.memory_space<vmem>>, vector<32x32xf32>
    tpu.vector_store %arg7[%c0_156, %c0_157], %418 {strides = array<i32>} : memref<32x64xf32, #tpu.memory_space<vmem>>, vector<32x32xf32>,
    %420 = vector.extract_strided_slice %127 {offsets = [32, 0], sizes = [32, 8], strides = [1, 1]} : vector<64x8xf32> to vector<32x8xf32>
    %cst_158 = arith.constant dense<0xFF800000> : vector<8xf32>
    %421 = vector.multi_reduction <maximumf>, %420, %cst_158 [0] : vector<32x8xf32> to vector<8xf32>
    %422 = vector.shape_cast %421 : vector<8xf32> to vector<1x8xf32>
    %423 = vector.broadcast %422 : vector<1x8xf32> to vector<32x8xf32>
    %424 = arith.subf %420, %423 : vector<32x8xf32>
    %425 = math.exp %424 : vector<32x8xf32>
    %cst_159 = arith.constant dense<0.000000e+00> : vector<8xf32>
    %426 = vector.multi_reduction <add>, %425, %cst_159 [0] : vector<32x8xf32> to vector<8xf32>
    %427 = vector.shape_cast %426 : vector<8xf32> to vector<1x8xf32>
    %428 = vector.broadcast %427 : vector<1x8xf32> to vector<32x8xf32>
    %429 = arith.divf %425, %428 : vector<32x8xf32>
    %430 = vector.extract_strided_slice %335 {offsets = [8, 0], sizes = [8, 32], strides = [1, 1]} : vector<16x64xf32> to vector<8x32xf32>
    %431 = vector.extract_strided_slice %335 {offsets = [8, 32], sizes = [8, 32], strides = [1, 1]} : vector<16x64xf32> to vector<8x32xf32>
    %432 = vector.extract_strided_slice %18 {offsets = [32, 0], sizes = [32, 32], strides = [1, 1]} : vector<64x32xf32> to vector<32x32xf32>
    %433 = vector.extract_strided_slice %429 {offsets = [0, 0], sizes = [32, 1], strides = [1, 1]} : vector<32x8xf32> to vector<32x1xf32>
    %434 = vector.extract_strided_slice %430 {offsets = [0, 0], sizes = [1, 32], strides = [1, 1]} : vector<8x32xf32> to vector<1x32xf32>
    %435 = vector.broadcast %433 : vector<32x1xf32> to vector<32x32xf32>
    %436 = vector.broadcast %434 : vector<1x32xf32> to vector<32x32xf32>
    %437 = arith.mulf %435, %436 : vector<32x32xf32>
    %cst_160 = arith.constant 1.000000e+00 : f32
    %438 = vector.broadcast %cst_160 : f32 to vector<32x32xf32>
    %439 = arith.subf %438, %437 : vector<32x32xf32>
    %440 = vector.extract_strided_slice %429 {offsets = [0, 1], sizes = [32, 1], strides = [1, 1]} : vector<32x8xf32> to vector<32x1xf32>
    %441 = vector.extract_strided_slice %430 {offsets = [1, 0], sizes = [1, 32], strides = [1, 1]} : vector<8x32xf32> to vector<1x32xf32>
    %442 = vector.broadcast %440 : vector<32x1xf32> to vector<32x32xf32>
    %443 = vector.broadcast %441 : vector<1x32xf32> to vector<32x32xf32>
    %444 = arith.mulf %442, %443 : vector<32x32xf32>
    %cst_161 = arith.constant 1.000000e+00 : f32
    %445 = vector.broadcast %cst_161 : f32 to vector<32x32xf32>
    %446 = arith.subf %445, %444 : vector<32x32xf32>
    %447 = arith.mulf %439, %446 : vector<32x32xf32>
    %448 = vector.extract_strided_slice %429 {offsets = [0, 2], sizes = [32, 1], strides = [1, 1]} : vector<32x8xf32> to vector<32x1xf32>
    %449 = vector.extract_strided_slice %430 {offsets = [2, 0], sizes = [1, 32], strides = [1, 1]} : vector<8x32xf32> to vector<1x32xf32>
    %450 = vector.broadcast %448 : vector<32x1xf32> to vector<32x32xf32>
    %451 = vector.broadcast %449 : vector<1x32xf32> to vector<32x32xf32>
    %452 = arith.mulf %450, %451 : vector<32x32xf32>
    %cst_162 = arith.constant 1.000000e+00 : f32
    %453 = vector.broadcast %cst_162 : f32 to vector<32x32xf32>
    %454 = arith.subf %453, %452 : vector<32x32xf32>
    %455 = arith.mulf %447, %454 : vector<32x32xf32>
    %456 = vector.extract_strided_slice %429 {offsets = [0, 3], sizes = [32, 1], strides = [1, 1]} : vector<32x8xf32> to vector<32x1xf32>
    %457 = vector.extract_strided_slice %430 {offsets = [3, 0], sizes = [1, 32], strides = [1, 1]} : vector<8x32xf32> to vector<1x32xf32>
    %458 = vector.broadcast %456 : vector<32x1xf32> to vector<32x32xf32>
    %459 = vector.broadcast %457 : vector<1x32xf32> to vector<32x32xf32>
    %460 = arith.mulf %458, %459 : vector<32x32xf32>
    %cst_163 = arith.constant 1.000000e+00 : f32
    %461 = vector.broadcast %cst_163 : f32 to vector<32x32xf32>
    %462 = arith.subf %461, %460 : vector<32x32xf32>
    %463 = arith.mulf %455, %462 : vector<32x32xf32>
    %464 = vector.extract_strided_slice %429 {offsets = [0, 4], sizes = [32, 1], strides = [1, 1]} : vector<32x8xf32> to vector<32x1xf32>
    %465 = vector.extract_strided_slice %430 {offsets = [4, 0], sizes = [1, 32], strides = [1, 1]} : vector<8x32xf32> to vector<1x32xf32>
    %466 = vector.broadcast %464 : vector<32x1xf32> to vector<32x32xf32>
    %467 = vector.broadcast %465 : vector<1x32xf32> to vector<32x32xf32>
    %468 = arith.mulf %466, %467 : vector<32x32xf32>
    %cst_164 = arith.constant 1.000000e+00 : f32
    %469 = vector.broadcast %cst_164 : f32 to vector<32x32xf32>
    %470 = arith.subf %469, %468 : vector<32x32xf32>
    %471 = arith.mulf %463, %470 : vector<32x32xf32>
    %472 = vector.extract_strided_slice %429 {offsets = [0, 5], sizes = [32, 1], strides = [1, 1]} : vector<32x8xf32> to vector<32x1xf32>
    %473 = vector.extract_strided_slice %430 {offsets = [5, 0], sizes = [1, 32], strides = [1, 1]} : vector<8x32xf32> to vector<1x32xf32>
    %474 = vector.broadcast %472 : vector<32x1xf32> to vector<32x32xf32>
    %475 = vector.broadcast %473 : vector<1x32xf32> to vector<32x32xf32>
    %476 = arith.mulf %474, %475 : vector<32x32xf32>
    %cst_165 = arith.constant 1.000000e+00 : f32
    %477 = vector.broadcast %cst_165 : f32 to vector<32x32xf32>
    %478 = arith.subf %477, %476 : vector<32x32xf32>
    %479 = arith.mulf %471, %478 : vector<32x32xf32>
    %480 = vector.extract_strided_slice %429 {offsets = [0, 6], sizes = [32, 1], strides = [1, 1]} : vector<32x8xf32> to vector<32x1xf32>
    %481 = vector.extract_strided_slice %430 {offsets = [6, 0], sizes = [1, 32], strides = [1, 1]} : vector<8x32xf32> to vector<1x32xf32>
    %482 = vector.broadcast %480 : vector<32x1xf32> to vector<32x32xf32>
    %483 = vector.broadcast %481 : vector<1x32xf32> to vector<32x32xf32>
    %484 = arith.mulf %482, %483 : vector<32x32xf32>
    %cst_166 = arith.constant 1.000000e+00 : f32
    %485 = vector.broadcast %cst_166 : f32 to vector<32x32xf32>
    %486 = arith.subf %485, %484 : vector<32x32xf32>
    %487 = arith.mulf %479, %486 : vector<32x32xf32>
    %488 = vector.extract_strided_slice %429 {offsets = [0, 7], sizes = [32, 1], strides = [1, 1]} : vector<32x8xf32> to vector<32x1xf32>
    %489 = vector.extract_strided_slice %430 {offsets = [7, 0], sizes = [1, 32], strides = [1, 1]} : vector<8x32xf32> to vector<1x32xf32>
    %490 = vector.broadcast %488 : vector<32x1xf32> to vector<32x32xf32>
    %491 = vector.broadcast %489 : vector<1x32xf32> to vector<32x32xf32>
    %492 = arith.mulf %490, %491 : vector<32x32xf32>
    %cst_167 = arith.constant 1.000000e+00 : f32
    %493 = vector.broadcast %cst_167 : f32 to vector<32x32xf32>
    %494 = arith.subf %493, %492 : vector<32x32xf32>
    %495 = arith.mulf %487, %494 : vector<32x32xf32>
    %cst_168 = arith.constant dense<0.000000e+00> : vector<32x32xf32>
    %496 = tpu.matmul %429, %431, %cst_168 {dimension_numbers = #tpu.dot_dimension_numbers<[1], [0], [0], [1], [0, 0, 1, 1], [], []>, precision = #tpu.contract_precision<fp32>} : vector<32x8xf32>, vector<8x32xf32>, vector<32x32xf32> -> vector<32x32xf32>
    %cst_169 = arith.constant 1.250000e-01 : f32
    %497 = vector.broadcast %cst_169 : f32 to vector<32x32xf32>
    %498 = arith.mulf %496, %497 : vector<32x32xf32>
    %cst_170 = arith.constant 1.000000e+00 : f32
    %499 = vector.broadcast %cst_170 : f32 to vector<32x32xf32>
    %500 = arith.subf %499, %498 : vector<32x32xf32>
    %501 = arith.mulf %432, %495 : vector<32x32xf32>
    %502 = arith.addf %501, %500 : vector<32x32xf32>
    %c0_171 = arith.constant 0 : index
    %c32_172 = arith.constant 32 : index
    %503 = vector.load %arg7[%c0_171, %c32_172] : memref<32x64xf32, #tpu.memory_space<vmem>>, vector<32x32xf32>
    tpu.vector_store %arg7[%c0_171, %c32_172], %502 {strides = array<i32>} : memref<32x64xf32, #tpu.memory_space<vmem>>, vector<32x32xf32>,
    %c0_173 = arith.constant 0 : index
    %c0_174 = arith.constant 0 : index
    %504 = vector.load %arg7[%c0_173, %c0_174] : memref<32x64xf32, #tpu.memory_space<vmem>>, vector<32x64xf32>
    %cst_175 = arith.constant dense<0.000000e+00> : vector<8x64xf32>
    %505 = tpu.matmul %11, %504, %cst_175 {dimension_numbers = #tpu.dot_dimension_numbers<[1], [0], [0], [1], [0, 0, 1, 1], [], []>, precision = #tpu.contract_precision<fp32>} : vector<8x32xf32>, vector<32x64xf32>, vector<8x64xf32> -> vector<8x64xf32>
    %506 = arith.addf %505, %10 : vector<8x64xf32>
    %cst_176 = arith.constant 0.000000e+00 : f32
    %507 = vector.broadcast %cst_176 : f32 to vector<8x64xf32>
    %508 = arith.maximumf %506, %507 : vector<8x64xf32>
    %c0_177 = arith.constant 0 : index
    %c0_178 = arith.constant 0 : index
    %509 = vector.load %arg4[%c0_177, %c0_178] : memref<8x64xf32, #tpu.memory_space<vmem>>, vector<8x64xf32>
    tpu.vector_store %arg4[%c0_177, %c0_178], %508 {strides = array<i32>} : memref<8x64xf32, #tpu.memory_space<vmem>>, vector<8x64xf32>,
    return
  }
  func.func @transform_0(%arg0: i32) -> (i32, i32) {
    %c0_i32 = arith.constant 0 : i32
    %c0_i32_0 = arith.constant 0 : i32
    %c0_i32_1 = arith.constant 0 : i32
    return %c0_i32, %c0_i32_0 : i32, i32
  }
  func.func @transform_1(%arg0: i32) -> (i32, i32) {
    %c0_i32 = arith.constant 0 : i32
    %c0_i32_0 = arith.constant 0 : i32
    %c0_i32_1 = arith.constant 0 : i32
    return %c0_i32, %c0_i32_0 : i32, i32
  }
  func.func @transform_2(%arg0: i32) -> (i32, i32) {
    %c0_i32 = arith.constant 0 : i32
    %c0_i32_0 = arith.constant 0 : i32
    %c0_i32_1 = arith.constant 0 : i32
    return %c0_i32, %c0_i32_0 : i32, i32
  }
  func.func @transform_3(%arg0: i32) -> (i32, i32) {
    %c0_i32 = arith.constant 0 : i32
    %c0_i32_0 = arith.constant 0 : i32
    %c0_i32_1 = arith.constant 0 : i32
    return %c0_i32, %c0_i32_0 : i32, i32
  }
}

</mosaic_0001>

<bundles_post_ra>
// kernel: token_add_erase_write.1
= control target key start
LH: loop header
LB: loop body
LE: loop exit
PB: predicated region body
PF: predicated region fallthrough
CT: control target
= control target key end

     0   :  { %vm120_vm0 = vcmask 261120   ;;  %s11452_s20 = smov 32   ;;  %vm2434_vm1 = vcmask 523520   ;;  %vm2480_vm2 = vcmask 64512   ;;  %vm1268_vm5 = vcmask 785408   ;;  %s11455_s10 = smov 120   ;;  %s15761_s1 = inlined_call_operand.vmem [shape: f32[16,32], index: 1, kind: input, shape index: {}]   ;;  %s15762_s0 = inlined_call_operand.vmem [shape: f32[64,32], index: 0, kind: input, shape index: {}]   ;;  %s15763_s2 = inlined_call_operand.vmem [shape: f32[616,192], index: 2, kind: input, shape index: {}]   ;;  %s15764_s3 = inlined_call_operand.vmem [shape: f32[8,64], index: 3, kind: output, shape index: {}]  }
   0x1   :  { %v119_v0 = vld [vmem:[%s15761_s1 + $0x8] sm:$0xff]  ;;  %v110_v2 = vld [vmem:[%s15762_s0] sm:$0xff]  ;;  %v112_v5 = vld [vmem:[%s15762_s0 + $0x10] sm:$0xff]  ;;  %vm3745_vm15 = vcmask 523264   ;;  %s11456_s11 = smov 8   ;;  %s11465_s15 = smov 96  }
   0x2   :  { %v111_v1 = vld [vmem:[%s15762_s0 + $0x8] sm:$0xff]  ;;  %v2402_v3 = vsel %vm120_vm0, %v119_v0, 0.0  ;;  %v121_v6 = vsel %vm120_vm0, %v110_v2, 0.0  ;;  %v127_v7 = vsel %vm120_vm0, %v112_v5, 0.0  ;;  %v113_v8 = vld [vmem:[%s15762_s0 + $0x18] sm:$0xff]  ;;  %v114_v9 = vld [vmem:[%s15762_s0 + $0x20] sm:$0xff] }
   0x3   :  { %v124_v4 = vsel %vm120_vm0, %v111_v1, 0.0  ;;  %2403 = vadd.xlane.f32.xlu0 %v2402_v3  ;;  %v130_v10 = vsel %vm120_vm0, %v113_v8, 0.0  ;;  %v133_v11 = vsel %vm120_vm0, %v114_v9, 0.0  ;;  %v115_v12 = vld [vmem:[%s15762_s0 + $0x28] sm:$0xff]  ;;  %v116_v13 = vld [vmem:[%s15762_s0 + $0x30] sm:$0xff]  ;;  %v117_v16 = vld [vmem:[%s15762_s0 + $0x38] sm:$0xff] }
   0x4   :  { %125 = vadd.xlane.f32.xlu1 %v124_v4  ;;  %v136_v14 = vsel %vm120_vm0, %v115_v12, 0.0  ;;  %v139_v15 = vsel %vm120_vm0, %v116_v13, 0.0  ;;  %v118_v17 = vld [vmem:[%s15761_s1] sm:$0xff]  ;;  %v142_v18 = vsel %vm120_vm0, %v117_v16, 0.0 }
   0x5   :  { %v2399_v19 = vsel %vm120_vm0, %v118_v17, 0.0 }
   0x7   :  { %122 = vadd.xlane.f32.xlu0 %v121_v6  ;;  %v28_v6 = vld [vmem:[%s15763_s2 + $0x40] sm:$0xff] }
   0x8   :  { %128 = vadd.xlane.f32.xlu1 %v127_v7  ;;  %v29_v7 = vld [vmem:[%s15763_s2 + $0x50] sm:$0xff] }
   0xb   :  { %131 = vadd.xlane.f32.xlu0 %v130_v10 }
   0xc   :  { %134 = vadd.xlane.f32.xlu1 %v133_v11  ;;  %v30_v11 = vld [vmem:[%s15763_s2 + $0x60] sm:$0xff] }
   0xf   :  { %137 = vadd.xlane.f32.xlu0 %v136_v14 }
  0x10   :  { %140 = vadd.xlane.f32.xlu1 %v139_v15 }
  0x13   :  { %143 = vadd.xlane.f32.xlu0 %v142_v18 }
  0x14   :  { %2400 = vadd.xlane.f32.xlu1 %v2399_v19 }
  0x90   :  { %v2404_v20 = vpop.xlane.xlu0 %2403 }
  0x91   :  { %v126_v21 = vpop.xlane.xlu1 %125  ;;  %v2406_v22 = vmul.f32 0.03125, %v2404_v20 }
  0x92   :  { %v147_v23 = vmul.f32 0.03125, %v126_v21 }
  0x93   :  { %v11527_v24 = vsub.f32 %v119_v0, %v2406_v22 }
  0x94   :  { %v11529_v25 = vsub.f32 %v111_v1, %v147_v23  ;;  %v123_v26 = vpop.xlane.xlu0 %122 }
  0x95   :  { %v129_v27 = vpop.xlane.xlu1 %128  ;;  %v146_v28 = vmul.f32 0.03125, %v123_v26  ;;  %v2410_v30 = vmul.f32 %v11527_v24, %v11527_v24 }
  0x96   :  { %v148_v29 = vmul.f32 0.03125, %v129_v27  ;;  %v163_v31 = vmul.f32 %v11529_v25, %v11529_v25 }
  0x97   :  { %v11535_v32 = vsub.f32 %v110_v2, %v146_v28  ;;  %v2414_v34 = vsel %vm120_vm0, %v2410_v30, 0.0 }
  0x98   :  { %v11537_v33 = vsub.f32 %v112_v5, %v148_v29  ;;  %2415 = vadd.xlane.f32.xlu0 %v2414_v34  ;;  %v132_v35 = vpop.xlane.xlu0 %131  ;;  %v173_v37 = vsel %vm120_vm0, %v163_v31, 0.0 }
  0x99   :  { %v135_v36 = vpop.xlane.xlu1 %134  ;;  %v149_v38 = vmul.f32 0.03125, %v132_v35  ;;  %v162_v40 = vmul.f32 %v11535_v32, %v11535_v32 }
  0x9a   :  { %v150_v39 = vmul.f32 0.03125, %v135_v36  ;;  %v164_v41 = vmul.f32 %v11537_v33, %v11537_v33 }
  0x9b   :  { %v11545_v42 = vsub.f32 %v113_v8, %v149_v38  ;;  %v170_v44 = vsel %vm120_vm0, %v162_v40, 0.0  ;;  %v267_v8 = vand.u32 4294901760, %v28_v6 }
  0x9c   :  { %v11547_v43 = vsub.f32 %v114_v9, %v150_v39  ;;  %174 = vadd.xlane.f32.xlu0 %v173_v37  ;;  %171 = vadd.xlane.f32.xlu1 %v170_v44  ;;  %v138_v45 = vpop.xlane.xlu0 %137  ;;  %v176_v47 = vsel %vm120_vm0, %v164_v41, 0.0  ;;  %v270_v9 = vand.u32 4294901760, %v29_v7 }
  0x9d   :  { %v141_v46 = vpop.xlane.xlu1 %140  ;;  %v151_v48 = vmul.f32 0.03125, %v138_v45  ;;  %v165_v50 = vmul.f32 %v11545_v42, %v11545_v42 }
  0x9e   :  { %v152_v49 = vmul.f32 0.03125, %v141_v46  ;;  %v166_v51 = vmul.f32 %v11547_v43, %v11547_v43  ;;  %v11583_v10 = vpack.c.bf16 %v270_v9, %v267_v8 }
  0x9f   :  { %v11555_v52 = vsub.f32 %v115_v12, %v151_v48  ;;  %v179_v54 = vsel %vm120_vm0, %v165_v50, 0.0  ;;  %v31_v12 = vld [vmem:[%s15763_s2 + $0x70] sm:$0xff] }
  0xa0   :  { %v11557_v53 = vsub.f32 %v116_v13, %v152_v49  ;;  %177 = vadd.xlane.f32.xlu1 %v176_v47  ;;  %180 = vadd.xlane.f32.xlu0 %v179_v54  ;;  %v144_v55 = vpop.xlane.xlu0 %143  ;;  %v182_v57 = vsel %vm120_vm0, %v166_v51, 0.0  ;;  %v273_v13 = vand.u32 4294901760, %v30_v11  ;;  %v276_v14 = vand.u32 4294901760, %v31_v12 }
  0xa1   :  { %v2401_v56 = vpop.xlane.xlu1 %2400  ;;  %v153_v58 = vmul.f32 0.03125, %v144_v55  ;;  %v167_v60 = vmul.f32 %v11555_v52, %v11555_v52  ;;  %10029 = vmatprep.subr.bf16.mxu0 %v11583_v10 }
  0xa2   :  { %v2405_v59 = vmul.f32 0.03125, %v2401_v56  ;;  %v168_v61 = vmul.f32 %v11557_v53, %v11557_v53  ;;  %10031 = vmatpush3.bf16.msra.mxu0 %v11583_v10  ;;  %v11593_v15 = vpack.c.bf16 %v276_v14, %v273_v13  ;;  %v431_v26 = vsub.f32 %v30_v11, %v273_v13  ;;  %v11619_v13 = vld [vmem:[%s15763_s2 + $0x3] ss:$0 sm:$0xff] }
  0xa3   :  { %v11565_v62 = vsub.f32 %v117_v16, %v153_v58  ;;  %v185_v0 = vsel %vm120_vm0, %v167_v60, 0.0  ;;  %v417_v16 = vsub.f32 %v28_v6, %v267_v8  ;;  %v438_v27 = vsub.f32 %v31_v12, %v276_v14  ;;  %v11613_v6 = vld [vmem:[%s15763_s2 + $0x2] ss:$0 sm:$0xff] }
  0xa4   :  { %v11567_v63 = vsub.f32 %v118_v17, %v2405_v59  ;;  %183 = vadd.xlane.f32.xlu1 %v182_v57  ;;  %186 = vadd.xlane.f32.xlu0 %v185_v0  ;;  %v188_v1 = vsel %vm120_vm0, %v168_v61, 0.0  ;;  %v424_v17 = vsub.f32 %v29_v7, %v270_v9  ;;  %v432_v29 = vand.u32 4294901760, %v431_v26 }
  0xa5   :  { %v169_v2 = vmul.f32 %v11565_v62, %v11565_v62  ;;  %10033 = vmatprep.subr.bf16.mxu0 %v11593_v15  ;;  %v418_v18 = vand.u32 4294901760, %v417_v16  ;;  %v439_v30 = vand.u32 4294901760, %v438_v27  ;;  %v11604_v39 = vpack.c.bf16 %v438_v27, %v431_v26 }
  0xa6   :  { %v2409_v3 = vmul.f32 %v11567_v63, %v11567_v63  ;;  %10035 = vmatpush3.bf16.msra.mxu0 %v11593_v15  ;;  %v425_v19 = vand.u32 4294901760, %v424_v17  ;;  %v433_v31 = vsub.f32 %v431_v26, %v432_v29  ;;  %v11602_v38 = vpack.c.bf16 %v424_v17, %v417_v16 }
  0xa7   :  { %v191_v4 = vsel %vm120_vm0, %v169_v2, 0.0  ;;  %v419_v20 = vsub.f32 %v417_v16, %v418_v18  ;;  %v440_v34 = vsub.f32 %v438_v27, %v439_v30  ;;  %v11608_v41 = vpack.c.bf16 %v439_v30, %v432_v29  ;;  %v11633_v27 = vld [vmem:[%s15763_s2 + $0x1] ss:$0 sm:$0xff] }
  0xa8   :  { %189 = vadd.xlane.f32.xlu1 %v188_v1  ;;  %192 = vadd.xlane.f32.xlu0 %v191_v4  ;;  %v2411_v5 = vsel %vm120_vm0, %v2409_v3, 0.0  ;;  %v426_v21 = vsub.f32 %v424_v17, %v425_v19  ;;  %v434_v35 = vand.u32 4294901760, %v433_v31  ;;  %v11606_v40 = vpack.c.bf16 %v425_v19, %v418_v18  ;;  %v11625_v19 = vld [vmem:[%s15763_s2] ss:$0 sm:$0xff] }
  0xa9   :  { %v420_v22 = vand.u32 4294901760, %v419_v20  ;;  %v441_v36 = vand.u32 4294901760, %v440_v34 }
  0xaa   :  { %v427_v23 = vand.u32 4294901760, %v426_v21 }
  0xab   :  { %v11600_v37 = vpack.c.bf16 %v441_v36, %v434_v35 }
  0xac   :  { %2412 = vadd.xlane.f32.xlu1 %v2411_v5  ;;  %v11597_v28 = vpack.c.bf16 %v427_v23, %v420_v22 }
  0xae   :  { %10037 = vmatprep.subr.bf16.mxu0 %v11597_v28 }
 0x125   :  { %v2416_v44 = vpop.xlane.xlu0 %2415 }
 0x126   :  { %v2418_v45 = vmul.f32 0.03125, %v2416_v44 }
 0x128   :  { %v2420_v46 = vadd.f32 1e-05, %v2418_v45 }
 0x129   :  { %v172_v47 = vpop.xlane.xlu1 %171  ;;  %v175_v48 = vpop.xlane.xlu0 %174 }
 0x12a   :  { %11213 = vrsqrt.f32 %v2420_v46  ;;  %v194_v49 = vmul.f32 0.03125, %v172_v47  ;;  %v195_v50 = vmul.f32 0.03125, %v175_v48 }
 0x12c   :  { %v202_v51 = vadd.f32 1e-05, %v194_v49  ;;  %v203_v54 = vadd.f32 1e-05, %v195_v50 }
 0x12d   :  { %v178_v55 = vpop.xlane.xlu1 %177  ;;  %v181_v56 = vpop.xlane.xlu0 %180 }
 0x12e   :  { %11215 = vrsqrt.f32 %v202_v51  ;;  %v196_v57 = vmul.f32 0.03125, %v178_v55  ;;  %v197_v58 = vmul.f32 0.03125, %v181_v56 }
 0x12f   :  { %11217 = vrsqrt.f32 %v203_v54 }
 0x130   :  { %v204_v59 = vadd.f32 1e-05, %v196_v57  ;;  %v205_v60 = vadd.f32 1e-05, %v197_v58 }
 0x131   :  { %v184_v61 = vpop.xlane.xlu1 %183  ;;  %v187_v0 = vpop.xlane.xlu0 %186 }
 0x132   :  { %11219 = vrsqrt.f32 %v204_v59  ;;  %v198_v1 = vmul.f32 0.03125, %v184_v61  ;;  %v199_v2 = vmul.f32 0.03125, %v187_v0 }
 0x133   :  { %11221 = vrsqrt.f32 %v205_v60 }
 0x134   :  { %v11214_v3 = vpop.eup %11213  ;;  %v206_v4 = vadd.f32 1e-05, %v198_v1  ;;  %v207_v5 = vadd.f32 1e-05, %v199_v2 }
 0x135   :  { %v190_v7 = vpop.xlane.xlu1 %189  ;;  %v193_v8 = vpop.xlane.xlu0 %192  ;;  %v2424_v9 = vmul.f32 %v11214_v3, %v11527_v24 }
 0x136   :  { %11223 = vrsqrt.f32 %v206_v4  ;;  %v200_v11 = vmul.f32 0.03125, %v190_v7  ;;  %v201_v12 = vmul.f32 0.03125, %v193_v8 }
 0x137   :  { %11225 = vrsqrt.f32 %v207_v5  ;;  %v2426_v14 = vmul.f32 %v2424_v9, %v11613_v6 }
 0x138   :  { %v11216_v16 = vpop.eup %11215  ;;  %v208_v17 = vadd.f32 1e-05, %v200_v11  ;;  %v209_v18 = vadd.f32 1e-05, %v201_v12 }
 0x139   :  { %v11218_v24 = vpop.eup %11217  ;;  %v2413_v20 = vpop.xlane.xlu1 %2412  ;;  %v2428_v21 = vadd.f32 %v2426_v14, %v11619_v13  ;;  %v218_v22 = vmul.f32 %v11216_v16, %v11535_v32 }
 0x13a   :  { %v219_v23 = vmul.f32 %v11218_v24, %v11529_v25  ;;  %11227 = vrsqrt.f32 %v208_v17  ;;  %v2417_v26 = vmul.f32 0.03125, %v2413_v20 }
 0x13b   :  { %11229 = vrsqrt.f32 %v209_v18  ;;  %2431 = vrot.lane.b32.xlu0 %v2428_v21, %s11452_s20  ;;  %v226_v29 = vmul.f32 %v218_v22, %v11625_v19 }
 0x13c   :  { %v11220_v30 = vpop.eup %11219  ;;  %v2419_v31 = vadd.f32 1e-05, %v2417_v26  ;;  %v227_v34 = vmul.f32 %v219_v23, %v11625_v19 }
 0x13d   :  { %v11222_v32 = vpop.eup %11221  ;;  %v220_v25 = vmul.f32 %v11220_v30, %v11537_v33  ;;  %v234_v35 = vadd.f32 %v226_v29, %v11633_v27 }
 0x13e   :  { %v221_v36 = vmul.f32 %v11222_v32, %v11545_v42  ;;  %11231 = vrsqrt.f32 %v2419_v31  ;;  %v235_v44 = vadd.f32 %v227_v34, %v11633_v27 }
 0x13f   :  { %v243_v45 = vsel %vm120_vm0, %v234_v35, 0  ;;  %v228_v46 = vmul.f32 %v220_v25, %v11625_v19 }
 0x140   :  { %v11224_v47 = vpop.eup %11223  ;;  %v11644_v48 = vand.u32 4294901760, %v243_v45  ;;  %v246_v49 = vsel %vm120_vm0, %v235_v44, 0  ;;  %v229_v50 = vmul.f32 %v221_v36, %v11625_v19 }
 0x141   :  { %v11226_v51 = vpop.eup %11225  ;;  %v222_v33 = vmul.f32 %v11224_v47, %v11547_v43  ;;  %v11649_v54 = vand.u32 4294901760, %v246_v49  ;;  %v236_v42 = vadd.f32 %v228_v46, %v11633_v27 }
 0x142   :  { %v223_v55 = vmul.f32 %v11226_v51, %v11555_v52  ;;  %v11654_v56 = vsub.f32 %v243_v45, %v11644_v48  ;;  %v237_v57 = vadd.f32 %v229_v50, %v11633_v27 }
 0x143   :  { %v11658_v58 = vsub.f32 %v246_v49, %v11649_v54  ;;  %v249_v59 = vsel %vm120_vm0, %v236_v42, 0  ;;  %v230_v60 = vmul.f32 %v222_v33, %v11625_v19 }
 0x144   :  { %v11228_v61 = vpop.eup %11227  ;;  %v337_v43 = vand.u32 4294901760, %v11654_v56  ;;  %v11663_v0 = vand.u32 4294901760, %v249_v59  ;;  %v252_v1 = vsel %vm120_vm0, %v237_v57, 0  ;;  %v231_v52 = vmul.f32 %v223_v55, %v11625_v19 }
 0x145   :  { %v11230_v2 = vpop.eup %11229  ;;  %v224_v3 = vmul.f32 %v11228_v61, %v11557_v53  ;;  %v347_v4 = vand.u32 4294901760, %v11658_v58  ;;  %v11669_v5 = vand.u32 4294901760, %v252_v1  ;;  %v238_v7 = vadd.f32 %v230_v60, %v11633_v27 }
 0x146   :  { %v225_v8 = vmul.f32 %v11230_v2, %v11565_v62  ;;  %v338_v9 = vsub.f32 %v11654_v56, %v337_v43  ;;  %v11677_v11 = vsub.f32 %v249_v59, %v11663_v0  ;;  %v239_v12 = vadd.f32 %v231_v52, %v11633_v27 }
 0x147   :  { %v348_v53 = vsub.f32 %v11658_v58, %v347_v4  ;;  %v11684_v14 = vsub.f32 %v252_v1, %v11669_v5  ;;  %v255_v16 = vsel %vm120_vm0, %v238_v7, 0  ;;  %v232_v62 = vmul.f32 %v224_v3, %v11625_v19  ;;  %v35_v7 = vld [vmem:[%s15763_s2 + $0xb0] sm:$0xff] }
 0x148   :  { %v11232_v17 = vpop.eup %11231  ;;  %v339_v18 = vand.u32 4294901760, %v338_v9  ;;  %v357_v24 = vand.u32 4294901760, %v11677_v11  ;;  %v11689_v20 = vand.u32 4294901760, %v255_v16  ;;  %v258_v21 = vsel %vm120_vm0, %v239_v12, 0  ;;  %v36_v12 = vld [vmem:[%s15763_s2 + $0xc0] sm:$0xff] }
 0x149   :  { %v349_v22 = vand.u32 4294901760, %v348_v53  ;;  %v367_v23 = vand.u32 4294901760, %v11684_v14  ;;  %v11693_v26 = vand.u32 4294901760, %v258_v21  ;;  %v240_v29 = vadd.f32 %v232_v62, %v11633_v27  ;;  %v37_v53 = vld [vmem:[%s15763_s2 + $0xd0] sm:$0xff] }
 0x14a   :  { %9538 = vmatprep.mubr.f32.mxu0 %v339_v18  ;;  %v358_v30 = vsub.f32 %v11677_v11, %v357_v24  ;;  %v11700_v31 = vsub.f32 %v255_v16, %v11689_v20  ;;  %v233_v34 = vmul.f32 %v225_v8, %v11625_v19  ;;  %v2423_v32 = vmul.f32 %v11232_v17, %v11567_v63  ;;  %v38_v17 = vld [vmem:[%s15763_s2 + $0xe0] sm:$0xff]  ;;  %v39_v18 = vld [vmem:[%s15763_s2 + $0xf0] sm:$0xff] }
 0x14b   :  { %9539 = vmatmul.mubr.f32.vlgmr.msra.gmra.mrb[0].mxu0 %v349_v22  ;;  %v368_v25 = vsub.f32 %v11684_v14, %v367_v23  ;;  %v11708_v35 = vsub.f32 %v258_v21, %v11693_v26  ;;  %v261_v36 = vsel %vm120_vm0, %v240_v29, 0  ;;  %v1303_v9 = vand.u32 4294901760, %v35_v7  ;;  %v11845_v22 = vld [vmem:[%s15763_s2 + $0x100] sm:$0xff] }
 0x14c   :  { %v359_v44 = vand.u32 4294901760, %v358_v30  ;;  %v377_v45 = vand.u32 4294901760, %v11700_v31  ;;  %10039 = vmatpush3.bf16.msra.mxu0 %v11597_v28  ;;  %v11713_v46 = vand.u32 4294901760, %v261_v36  ;;  %v241_v19 = vadd.f32 %v233_v34, %v11633_v27 }
 0x14d   :  { %v369_v63 = vand.u32 4294901760, %v368_v25  ;;  %v387_v47 = vand.u32 4294901760, %v11708_v35  ;;  %10041 = vmatprep.subr.bf16.mxu0 %v11600_v37  ;;  %v2425_v49 = vmul.f32 %v2423_v32, %v11613_v6  ;;  %v1309_v16 = vand.u32 4294901760, %v37_v53  ;;  %v11872_v25 = vld [vmem:[%s15763_s2 + $0x120] sm:$0xff] }
 0x14e   :  { %9541 = vmatprep.mubr.f32.mxu0 %v359_v44  ;;  %v378_v50 = vsub.f32 %v11700_v31, %v377_v45  ;;  %v396_v51 = vsub.f32 %v261_v36, %v11713_v46  ;;  %v264_v33 = vsel %vm120_vm0, %v241_v19, 0  ;;  %v1324_v36 = vand.u32 4294901760, %v11872_v25 }
 0x14f   :  { %9542 = vmatmul.mubr.f32.gmra.mrb[2].mxu0 %v369_v63  ;;  %v388_v28 = vsub.f32 %v11708_v35, %v387_v47  ;;  %v11723_v42 = vand.u32 4294901760, %v264_v33  ;;  %v2427_v27 = vadd.f32 %v2425_v49, %v11619_v13 }
 0x150   :  { %v379_v55 = vand.u32 4294901760, %v378_v50  ;;  %v397_v57 = vand.u32 4294901760, %v396_v51  ;;  %10043 = vmatpush3.bf16.msra.mxu0 %v11600_v37  ;;  %v45_v37 = vld [vmem:[%s15763_s2 + $0x148] sm:$0xff] }
 0x151   :  { %v389_v59 = vand.u32 4294901760, %v388_v28  ;;  %v406_v6 = vsub.f32 %v264_v33, %v11723_v42  ;;  %10045 = vmatprep.subr.bf16.mxu0 %v11602_v38  ;;  %2429 = vst.msk [vmem:[#allocation2] sm:$0xff] %vm120_vm0, %v2427_v27  ;;  %v11900_v33 = vsub.f32 %v35_v7, %v1303_v9 }
 0x152   :  { %9544 = vmatprep.mubr.f32.mxu0 %v379_v55  ;;  %v398_v60 = vsub.f32 %v396_v51, %v397_v57 }
 0x153   :  { %9545 = vmatmul.mubr.f32.gmra.mrb[4].mxu0 %v389_v59  ;;  %v407_v61 = vand.u32 4294901760, %v406_v6  ;;  %16080 = vst [vmem:[#allocation15_spill] sm:$0xff] %v11900_v33  ;;  %v15773_v59 = vand.u32 4294901760, %v11900_v33 }
 0x154   :  { %v399_v1 = vand.u32 4294901760, %v398_v60 }
 0x155   :  { %v408_v52 = vsub.f32 %v406_v6, %v407_v61 }
 0x156   :  { %9547 = vmatprep.mubr.f32.mxu0 %v399_v1  ;;  %v11916_v1 = vsub.f32 %v37_v53, %v1309_v16 }
 0x157   :  { %v409_v2 = vand.u32 4294901760, %v408_v52 }
 0x158   :  { %16082 = vst [vmem:[#allocation17_spill] sm:$0xff] %v11916_v1 }
 0x159   :  { %9548 = vmatmul.mubr.f32.gmra.mrb[6].mxu0 %v409_v2 }
 0x15a   :  { %9558 = vmatprep.mubr.f32.mxu0 %v11644_v48 }
 0x15d   :  { %9559 = vmatmul.mubr.f32.vlgmr.msra.gmra.mrb[0].mxu0 %v11649_v54 }
 0x15e   :  { %9561 = vmatprep.mubr.f32.mxu0 %v11663_v0  ;;  %10047 = vmatpush3.bf16.msra.mxu0 %v11602_v38  ;;  %v44_v38 = vld [vmem:[%s15763_s2 + $0x140] sm:$0xff] }
 0x15f   :  { %10049 = vmatprep.subr.bf16.mxu0 %v11604_v39 }
 0x161   :  { %9562 = vmatmul.mubr.f32.gmra.mrb[2].mxu0 %v11669_v5 }
 0x162   :  { %9564 = vmatprep.mubr.f32.mxu0 %v11689_v20  ;;  %10051 = vmatpush3.bf16.msra.mxu0 %v11604_v39  ;;  %v11790_v39 = vand.u32 4294901760, %v45_v37 }
 0x163   :  { %10053 = vmatprep.subr.bf16.mxu0 %v11583_v10 }
 0x164   :  { %v11798_v13 = vsub.f32 %v45_v37, %v11790_v39 }
 0x165   :  { %9565 = vmatmul.mubr.f32.gmra.mrb[4].mxu0 %v11693_v26 }
 0x166   :  { %9567 = vmatprep.mubr.f32.mxu0 %v11713_v46 }
 0x169   :  { %9568 = vmatmul.mubr.f32.gmra.mrb[6].mxu0 %v11723_v42 }
 0x16a   :  { %9578 = vmatprep.mubr.f32.mxu0 %v11654_v56 }
 0x16d   :  { %9579 = vmatmul.mubr.f32.vlgmr.msra.gmra.mrb[0].mxu0 %v11658_v58  ;;  %v32_v58 = vld [vmem:[%s15763_s2 + $0x80] sm:$0xff] }
 0x16e   :  { %9581 = vmatprep.mubr.f32.mxu0 %v11677_v11  ;;  %10055 = vmatpush3.bf16.msra.mxu0 %v11583_v10 }
 0x16f   :  { %10057 = vmatprep.subr.bf16.mxu0 %v11593_v15 }
 0x171   :  { %9582 = vmatmul.mubr.f32.gmra.mrb[2].mxu0 %v11684_v14  ;;  %v1306_v14 = vand.u32 4294901760, %v36_v12 }
 0x172   :  { %9584 = vmatprep.mubr.f32.mxu0 %v11700_v31  ;;  %10059 = vmatpush3.bf16.msra.mxu0 %v11593_v15 }
 0x173   :  { %10061 = vmatprep.subr.bf16.mxu0 %v11606_v40  ;;  %v11830_v62 = vpack.c.bf16 %v1309_v16, %v1306_v14 }
 0x175   :  { %9585 = vmatmul.mubr.f32.gmra.mrb[4].mxu0 %v11708_v35  ;;  %16073 = vst [vmem:[#allocation8_spill] sm:$0xff] %v11830_v62  ;;  %v11877_v35 = vld [vmem:[%s15763_s2 + $0x130] sm:$0xff] }
 0x176   :  { %9587 = vmatprep.mubr.f32.mxu0 %v396_v51  ;;  %v1327_v44 = vand.u32 4294901760, %v11877_v35 }
 0x178   :  { %v11889_v19 = vpack.c.bf16 %v1327_v44, %v1324_v36 }
 0x179   :  { %9588 = vmatmul.mubr.f32.gmra.mrb[6].mxu0 %v406_v6 }
 0x17a   :  { %9598 = vmatprep.mubr.f32.mxu0 %v337_v43  ;;  %v33_v43 = vld [vmem:[%s15763_s2 + $0x90] sm:$0xff]  ;;  %16078 = vst [vmem:[#allocation13_spill] sm:$0xff] %v11889_v19 }
 0x17b   :  { %v1297_v3 = vand.u32 4294901760, %v33_v43 }
 0x17d   :  { %9599 = vmatmul.mubr.f32.vlgmr.msra.gmra.mrb[0].mxu0 %v347_v4  ;;  %v11864_v34 = vsub.f32 %v33_v43, %v1297_v3 }
 0x17e   :  { %9601 = vmatprep.mubr.f32.mxu0 %v357_v24  ;;  %10063 = vmatpush3.bf16.msra.mxu0 %v11606_v40  ;;  %v11792_v40 = vand.u32 4294901760, %v44_v38  ;;  %v1312_v24 = vand.u32 4294901760, %v38_v17 }
 0x17f   :  { %10065 = vmatprep.subr.bf16.mxu0 %v11608_v41  ;;  %16077 = vst [vmem:[#allocation12_spill] sm:$0xff] %v11864_v34 }
 0x180   :  { %16070 = vst [vmem:[#allocation5_spill] sm:$0xff] %v11792_v40  ;;  %v11867_v32 = vsub.f32 %v44_v38, %v11792_v40  ;;  %v11940_v7 = vsub.f32 %v38_v17, %v1312_v24 }
 0x181   :  { %9602 = vmatmul.mubr.f32.gmra.mrb[2].mxu0 %v367_v23  ;;  %v11850_v23 = vld [vmem:[%s15763_s2 + $0x110] sm:$0xff] }
 0x182   :  { %9604 = vmatprep.mubr.f32.mxu0 %v377_v45  ;;  %10067 = vmatpush3.bf16.msra.mxu0 %v11608_v41  ;;  %v15811_v41 = vmov 0.0   ;;  %v1321_v29 = vand.u32 4294901760, %v11850_v23  ;;  %v15784_v51 = vand.u32 4294901760, %v11867_v32  ;;  %16084 = vst [vmem:[#allocation19_spill] sm:$0xff] %v11940_v7  ;;  %v15770_v17 = vand.u32 4294901760, %v11940_v7 }
 0x183   :  { %10069 = vmatprep.subr.bf16.mxu0 %v11583_v10 }
 0x185   :  { %9605 = vmatmul.mubr.f32.gmra.mrb[4].mxu0 %v387_v47 }
 0x186   :  { %9607 = vmatprep.mubr.f32.mxu0 %v397_v57 }
 0x189   :  { %9608 = vmatmul.mubr.f32.gmra.mrb[6].mxu0 %v407_v61  ;;  %v11914_v61 = vsub.f32 %v36_v12, %v1306_v14 }
 0x18a   :  { %9618 = vmatprep.mubr.f32.mxu0 %v11644_v48 }
 0x18b   :  { %16081 = vst [vmem:[#allocation16_spill] sm:$0xff] %v11914_v61 }
 0x18d   :  { %9619 = vmatmul.mubr.f32.vlgmr.msra.gmra.mrb[0].mxu0 %v11649_v54 }
 0x18e   :  { %9621 = vmatprep.mubr.f32.mxu0 %v11663_v0  ;;  %10071 = vmatpush3.bf16.msra.mxu0 %v11583_v10 }
 0x18f   :  { %10073 = vmatprep.subr.bf16.mxu0 %v11593_v15 }
 0x191   :  { %9622 = vmatmul.mubr.f32.gmra.mrb[2].mxu0 %v11669_v5 }
 0x192   :  { %9624 = vmatprep.mubr.f32.mxu0 %v11689_v20  ;;  %10075 = vmatpush3.bf16.msra.mxu0 %v11593_v15 }
 0x193   :  { %2506 = vmatprep.subr.mxu0 %v11790_v39 }
 0x195   :  { %9625 = vmatmul.mubr.f32.gmra.mrb[4].mxu0 %v11693_v26 }
 0x196   :  { %9627 = vmatprep.mubr.f32.mxu0 %v11713_v46 }
 0x199   :  { %9628 = vmatmul.mubr.f32.gmra.mrb[6].mxu0 %v11723_v42 }
 0x19a   :  { %9638 = vmatprep.mubr.f32.mxu0 %v11644_v48  ;;  %v15786_v48 = vand.u32 4294901760, %v11798_v13 }
 0x19d   :  { %9639 = vmatmul.mubr.f32.vlgmr.msra.gmra.mrb[0].mxu0 %v11649_v54  ;;  %v2663_v54 = vsub.f32 %v11798_v13, %v15786_v48 }
 0x19e   :  { %9641 = vmatprep.mubr.f32.mxu0 %v11663_v0  ;;  %2508 = vmatpush1.msra.mxu0 %v11792_v40  ;;  %v1294_v0 = vand.u32 4294901760, %v32_v58 }
 0x19f   :  { %v2664_v56 = vand.u32 4294901760, %v2663_v54  ;;  %v15772_v54 = vand.u32 4294901760, %v11914_v61 }
 0x1a0   :  { %v11810_v4 = vpack.c.bf16 %v1297_v3, %v1294_v0  ;;  %v11862_v31 = vsub.f32 %v32_v58, %v1294_v0 }
 0x1a1   :  { %9642 = vmatmul.mubr.f32.gmra.mrb[2].mxu0 %v11669_v5  ;;  %2665 = vmatprep.subr.mxu0 %v2664_v56  ;;  %v34_v5 = vld [vmem:[%s15763_s2 + $0xa0] sm:$0xff]  ;;  %v15771_v56 = vand.u32 4294901760, %v11916_v1  ;;  %v1482_v3 = vsub.f32 %v11914_v61, %v15772_v54 }
 0x1a2   :  { %9644 = vmatprep.mubr.f32.mxu0 %v11689_v20  ;;  %16071 = vst [vmem:[#allocation6_spill] sm:$0xff] %v11810_v4  ;;  %10077 = vmatprep.subr.bf16.mxu1 %v11810_v4  ;;  %v1300_v8 = vand.u32 4294901760, %v34_v5  ;;  %v1315_v20 = vand.u32 4294901760, %v39_v18  ;;  %16076 = vst [vmem:[#allocation11_spill] sm:$0xff] %v11862_v31  ;;  %v15776_v45 = vand.u32 4294901760, %v11862_v31 }
 0x1a3   :  { %10079 = vmatpush3.bf16.msra.mxu1 %v11810_v4 }
 0x1a4   :  { %v11820_v11 = vpack.c.bf16 %v1303_v9, %v1300_v8  ;;  %v11840_v21 = vpack.c.bf16 %v1315_v20, %v1312_v24  ;;  %v1454_v63 = vsub.f32 %v11862_v31, %v15776_v45  ;;  %v11897_v49 = vsub.f32 %v34_v5, %v1300_v8 }
 0x1a5   :  { %9645 = vmatmul.mubr.f32.gmra.mrb[4].mxu0 %v11693_v26  ;;  %v1318_v26 = vand.u32 4294901760, %v11845_v22  ;;  %v1489_v5 = vsub.f32 %v11916_v1, %v15771_v56  ;;  %v11942_v8 = vsub.f32 %v39_v18, %v1315_v20 }
 0x1a6   :  { %9647 = vmatprep.mubr.f32.mxu0 %v11713_v46  ;;  %16072 = vst [vmem:[#allocation7_spill] sm:$0xff] %v11820_v11  ;;  %10081 = vmatprep.subr.bf16.mxu1 %v11820_v11  ;;  %16074 = vst [vmem:[#allocation9_spill] sm:$0xff] %v11840_v21  ;;  %v15775_v46 = vand.u32 4294901760, %v11864_v34  ;;  %v15774_v55 = vand.u32 4294901760, %v11897_v49 }
 0x1a7   :  { %10083 = vmatpush3.bf16.msra.mxu1 %v11820_v11  ;;  %v11860_v30 = vpack.c.bf16 %v1321_v29, %v1318_v26  ;;  %16079 = vst [vmem:[#allocation14_spill] sm:$0xff] %v11897_v49  ;;  %16085 = vst [vmem:[#allocation20_spill] sm:$0xff] %v11942_v8 }
 0x1a8   :  { %10085 = vmatprep.subr.bf16.mxu1 %v11830_v62  ;;  %v1461_v47 = vsub.f32 %v11864_v34, %v15775_v46  ;;  %v1468_v60 = vsub.f32 %v11897_v49, %v15774_v55  ;;  %v12074_v55 = vpack.c.bf16 %v11916_v1, %v11914_v61 }
 0x1a9   :  { %9648 = vmatmul.mubr.f32.gmra.mrb[6].mxu0 %v11723_v42  ;;  %16075 = vst [vmem:[#allocation10_spill] sm:$0xff] %v11860_v30  ;;  %v1455_v42 = vand.u32 4294901760, %v1454_v63 }
 0x1aa   :  { %2571 = vmatprep.mubr.f32.mxu0 %v15811_v41  ;;  %v1462_v27 = vand.u32 4294901760, %v1461_v47  ;;  %v1469_v38 = vand.u32 4294901760, %v1468_v60  ;;  %v1483_v47 = vand.u32 4294901760, %v1482_v3  ;;  %v11966_v60 = vsub.f32 %v11845_v22, %v1318_v26  ;;  %16099 = vst [vmem:[#allocation34_spill] sm:$0xff] %v12074_v55 }
 0x1ab   :  { %10087 = vmatpush3.bf16.msra.mxu1 %v11830_v62 }
 0x1ac   :  { %10089 = vmatprep.subr.bf16.mxu1 %v11840_v21  ;;  %v11909_v6 = vpack.c.bf16 %v1462_v27, %v1455_v42  ;;  %v1496_v27 = vsub.f32 %v11940_v7, %v15770_v17  ;;  %16087 = vst [vmem:[#allocation22_spill] sm:$0xff] %v11966_v60  ;;  %v15767_v26 = vand.u32 4294901760, %v11966_v60 }
 0x1ad   :  { %v2432_v10 = vpop.permute.xlu0 %2431 }
 0x1ae   :  { %2435 = vst.msk [vmem:[#allocation2] sm:$0xff] %vm2434_vm1, %v2432_v10  ;;  %v2669_v10 = vsub.f32 %v11867_v32, %v15784_v51 }
 0x1af   :  { %10091 = vmatpush3.bf16.msra.mxu1 %v11840_v21 }
 0x1b0   :  { %10093 = vmatprep.subr.bf16.mxu1 %v11860_v30  ;;  %v2670_v14 = vand.u32 4294901760, %v2669_v10 }
 0x1b3   :  { %10095 = vmatpush3.bf16.msra.mxu1 %v11860_v30 }
 0x1b4   :  { %10097 = vmatprep.subr.bf16.mxu1 %v11889_v19 }
 0x1b5   :  { %v2436_v15 = vld [vmem:[#allocation2] sm:$0xff] }
 0x1b6   :  { %2448 = vxpose.xlu1.b32.start.end [1/1] (short) (narrow) %v2436_v15, 64  ;;  %v1475_v15 = vsub.f32 %v11900_v33, %v15773_v59 }
 0x1b7   :  { %10099 = vmatpush3.bf16.msra.mxu1 %v11889_v19 }
 0x1b8   :  { %10101 = vmatprep.subr.bf16.mxu1 %v11909_v6  ;;  %v1476_v0 = vand.u32 4294901760, %v1475_v15 }
 0x1ba   :  { %v11950_v16 = vpack.c.bf16 %v1476_v0, %v1469_v38 }
 0x236   :  { %v2464_v50 = vpop.trf.xlu1 }
 0x237   :  { %v2482_v28 = vsel %vm2480_vm2, %v2464_v50, 0  ;;  %v1490_v50 = vand.u32 4294901760, %v1489_v5 }
 0x238   :  { %v11905_v57 = vand.u32 4294901760, %v2482_v28 }
 0x239   :  { %v11958_v42 = vpack.c.bf16 %v1490_v50, %v1483_v47  ;;  %v12004_v47 = vsub.f32 %v11877_v35, %v1327_v44 }
 0x23a   :  { %v11919_v52 = vsub.f32 %v2482_v28, %v11905_v57  ;;  %v2465_v2 = vpop.trf.xlu1  ;;  %v15768_v28 = vand.u32 4294901760, %v11942_v8 }
 0x23b   :  { %v2485_v37 = vsel %vm2480_vm2, %v2465_v2, 0  ;;  %v11971_v2 = vsub.f32 %v11850_v23, %v1321_v29  ;;  %v1497_v23 = vand.u32 4294901760, %v1496_v27  ;;  %16091 = vst [vmem:[#allocation26_spill] sm:$0xff] %v12004_v47 }
 0x23c   :  { %v15785_v58 = vand.u32 4294901760, %v11919_v52  ;;  %v11932_v43 = vand.u32 4294901760, %v2485_v37  ;;  %v1503_v38 = vsub.f32 %v11942_v8, %v15768_v28 }
 0x23d   :  { %16088 = vst [vmem:[#allocation23_spill] sm:$0xff] %v11971_v2  ;;  %v15765_v29 = vand.u32 4294901760, %v11971_v2  ;;  %v12090_v45 = vpack.c.bf16 %v11971_v2, %v11966_v60 }
 0x23e   :  { %16083 = vst [vmem:[#allocation18_spill] sm:$0xff] %v11932_v43  ;;  %v2575_v9 = vsub.f32 %v11919_v52, %v15785_v58  ;;  %v11948_v12 = vsub.f32 %v2485_v37, %v11932_v43  ;;  %v2466_v53 = vpop.trf.xlu1 }
 0x23f   :  { %v2488_v63 = vsel %vm2480_vm2, %v2466_v53, 0  ;;  %v1510_v53 = vsub.f32 %v11966_v60, %v15767_v26  ;;  %v12042_v26 = vpack.c.bf16 %v11864_v34, %v11862_v31  ;;  %16101 = vst [vmem:[#allocation36_spill] sm:$0xff] %v12090_v45 }
 0x240   :  { %v2576_v24 = vand.u32 4294901760, %v2575_v9  ;;  %v15783_v18 = vand.u32 4294901760, %v11948_v12  ;;  %v11955_v20 = vand.u32 4294901760, %v2488_v63  ;;  %v1504_v9 = vand.u32 4294901760, %v1503_v38 }
 0x241   :  { %16094 = vst [vmem:[#allocation29_spill] sm:$0xff] %v12042_v26 }
 0x242   :  { %16086 = vst [vmem:[#allocation21_spill] sm:$0xff] %v11955_v20  ;;  %v11974_v10 = vsub.f32 %v2488_v63, %v11955_v20  ;;  %2577 = vmatmul.mubr.f32.vlgmr.msra.gmra.mrb[8].mxu0 %v2576_v24  ;;  %v2467_v15 = vpop.trf.xlu1  ;;  %v2586_v37 = vsub.f32 %v11948_v12, %v15783_v18  ;;  %v11999_v63 = vsub.f32 %v11872_v25, %v1324_v36  ;;  %v1511_v25 = vand.u32 4294901760, %v1510_v53 }
 0x243   :  { %v2491_v22 = vsel %vm2480_vm2, %v2467_v15, 0  ;;  %2582 = vmatprep.mubr.f32.mxu0 %v15811_v41  ;;  %2671 = vmatpush1.msra.mxu0 %v2670_v14  ;;  %v1517_v14 = vsub.f32 %v11971_v2, %v15765_v29  ;;  %v12012_v15 = vpack.c.bf16 %v1504_v9, %v1497_v23 }
 0x244   :  { %v15782_v0 = vand.u32 4294901760, %v11974_v10  ;;  %v11987_v3 = vand.u32 4294901760, %v2491_v22  ;;  %v2587_v5 = vand.u32 4294901760, %v2586_v37  ;;  %2793 = vmatprep.subr.mxu0 %v11798_v13  ;;  %16090 = vst [vmem:[#allocation25_spill] sm:$0xff] %v11999_v63  ;;  %v15766_v35 = vand.u32 4294901760, %v11999_v63 }
 0x245   :  { %v1518_v36 = vand.u32 4294901760, %v1517_v14 }
 0x246   :  { %16089 = vst [vmem:[#allocation24_spill] sm:$0xff] %v11987_v3  ;;  %v12007_v50 = vsub.f32 %v2491_v22, %v11987_v3  ;;  %2588 = vmatmul.mubr.f32.gmra.mrb[10].mxu0 %v2587_v5  ;;  %v2468_v24 = vpop.trf.xlu1  ;;  %v2597_v27 = vsub.f32 %v11974_v10, %v15782_v0  ;;  %v15769_v5 = vand.u32 4294901760, %v12004_v47  ;;  %v1524_v23 = vsub.f32 %v11999_v63, %v15766_v35 }
 0x247   :  { %v2494_v37 = vsel %vm2480_vm2, %v2468_v24, 0  ;;  %2593 = vmatprep.mubr.f32.mxu0 %v15811_v41  ;;  %v12021_v29 = vpack.c.bf16 %v1518_v36, %v1511_v25 }
 0x248   :  { %v15781_v44 = vand.u32 4294901760, %v12007_v50  ;;  %v12018_v38 = vand.u32 4294901760, %v2494_v37  ;;  %v2598_v22 = vand.u32 4294901760, %v2597_v27  ;;  %v1531_v24 = vsub.f32 %v12004_v47, %v15769_v5 }
 0x249   :  { %v1525_v25 = vand.u32 4294901760, %v1524_v23 }
 0x24a   :  { %16092 = vst [vmem:[#allocation27_spill] sm:$0xff] %v12018_v38  ;;  %v12027_v9 = vsub.f32 %v2494_v37, %v12018_v38  ;;  %2599 = vmatmul.mubr.f32.gmra.mrb[12].mxu0 %v2598_v22  ;;  %v2469_v53 = vpop.trf.xlu1  ;;  %v2608_v14 = vsub.f32 %v12007_v50, %v15781_v44  ;;  %v1532_v22 = vand.u32 4294901760, %v1531_v24 }
 0x24b   :  { %v2497_v27 = vsel %vm2480_vm2, %v2469_v53, 0  ;;  %2604 = vmatprep.mubr.f32.mxu0 %v15811_v41 }
 0x24c   :  { %v15780_v36 = vand.u32 4294901760, %v12027_v9  ;;  %v12038_v35 = vand.u32 4294901760, %v2497_v27  ;;  %v2609_v37 = vand.u32 4294901760, %v2608_v14  ;;  %v12050_v23 = vpack.c.bf16 %v1532_v22, %v1525_v25 }
 0x24e   :  { %16093 = vst [vmem:[#allocation28_spill] sm:$0xff] %v12038_v35  ;;  %v12045_v28 = vsub.f32 %v2497_v27, %v12038_v35  ;;  %2610 = vmatmul.mubr.f32.gmra.mrb[14].mxu0 %v2609_v37  ;;  %v2470_v5 = vpop.trf.xlu1  ;;  %v2619_v53 = vsub.f32 %v12027_v9, %v15780_v36  ;;  %16095 = vst [vmem:[#allocation30_spill] sm:$0xff] %v12050_v23  ;;  %v12059_v27 = vpack.c.bf16 %v11900_v33, %v11897_v49 }
 0x24f   :  { %v2500_v17 = vsel %vm2480_vm2, %v2470_v5, 0  ;;  %2615 = vmatprep.mubr.f32.mxu0 %v15811_v41 }
 0x250   :  { %v15779_v14 = vand.u32 4294901760, %v12045_v28  ;;  %v12055_v24 = vand.u32 4294901760, %v2500_v17  ;;  %v2620_v56 = vand.u32 4294901760, %v2619_v53  ;;  %16097 = vst [vmem:[#allocation32_spill] sm:$0xff] %v12059_v27 }
 0x252   :  { %16096 = vst [vmem:[#allocation31_spill] sm:$0xff] %v12055_v24  ;;  %v12062_v37 = vsub.f32 %v2500_v17, %v12055_v24  ;;  %2621 = vmatmul.mubr.f32.gmra.mrb[16].mxu0 %v2620_v56  ;;  %v2471_v54 = vpop.trf.xlu1  ;;  %v2630_v5 = vsub.f32 %v12045_v28, %v15779_v14 }
 0x253   :  { %v2503_v25 = vsel %vm2480_vm2, %v2471_v54, 0  ;;  %2626 = vmatprep.mubr.f32.mxu0 %v15811_v41 }
 0x254   :  { %v15777_v22 = vand.u32 4294901760, %v12062_v37  ;;  %v12070_v53 = vand.u32 4294901760, %v2503_v25  ;;  %v2631_v59 = vand.u32 4294901760, %v2630_v5  ;;  %v12086_v5 = vpack.c.bf16 %v11942_v8, %v11940_v7 }
 0x256   :  { %16098 = vst [vmem:[#allocation33_spill] sm:$0xff] %v12070_v53  ;;  %v12077_v56 = vsub.f32 %v2503_v25, %v12070_v53  ;;  %2632 = vmatmul.mubr.f32.gmra.mrb[18].mxu0 %v2631_v59  ;;  %v2641_v17 = vsub.f32 %v12062_v37, %v15777_v22  ;;  %16100 = vst [vmem:[#allocation35_spill] sm:$0xff] %v12086_v5  ;;  %v12098_v22 = vpack.c.bf16 %v12004_v47, %v11999_v63 }
 0x257   :  { %2637 = vmatprep.mubr.f32.mxu0 %v15811_v41 }
 0x258   :  { %v15778_v54 = vand.u32 4294901760, %v12077_v56  ;;  %v2642_v46 = vand.u32 4294901760, %v2641_v17  ;;  %16102 = vst [vmem:[#allocation37_spill] sm:$0xff] %v12098_v22 }
 0x25a   :  { %2643 = vmatmul.mubr.f32.gmra.mrb[20].mxu0 %v2642_v46  ;;  %v2652_v59 = vsub.f32 %v12077_v56, %v15778_v54  ;;  %v18_v46 = vld [vmem:[%s15763_s2 + $0x4] ss:$0 sm:$0xff] }
 0x25b   :  { %2648 = vmatprep.mubr.f32.mxu0 %v15811_v41 }
 0x25c   :  { %v2653_v25 = vand.u32 4294901760, %v2652_v59 }
 0x25e   :  { %2654 = vmatmul.mubr.f32.gmra.mrb[22].mxu0 %v2653_v25 }
 0x25f   :  { %2734 = vmatprep.mubr.f32.mxu0 %v15811_v41 }
 0x262   :  { %2736 = vmatmul.mubr.f32.vlgmr.msra.gmra.mrb[8].mxu0 %v11905_v57 }
 0x263   :  { %2741 = vmatprep.mubr.f32.mxu0 %v15811_v41  ;;  %2796 = vmatpush1.msra.mxu0 %v11867_v32 }
 0x264   :  { %2925 = vmatprep.subr.mxu0 %v11790_v39 }
 0x266   :  { %2743 = vmatmul.mubr.f32.gmra.mrb[10].mxu0 %v11932_v43 }
 0x267   :  { %2748 = vmatprep.mubr.f32.mxu0 %v15811_v41 }
 0x26a   :  { %2750 = vmatmul.mubr.f32.gmra.mrb[12].mxu0 %v11955_v20 }
 0x26b   :  { %2755 = vmatprep.mubr.f32.mxu0 %v15811_v41 }
 0x26e   :  { %2757 = vmatmul.mubr.f32.gmra.mrb[14].mxu0 %v11987_v3 }
 0x26f   :  { %2762 = vmatprep.mubr.f32.mxu0 %v15811_v41 }
 0x270   :  { %v9640_v17 = vpop.f32.mrb[0].mxu0 }
 0x271   :  { %v10784_v59 = vadd.f32 %v9640_v17, %v18_v46  ;;  %v1006_v25 = vpop.f32.mrb[1].mxu0 }
 0x272   :  { %v10785_v54 = vadd.f32 %v1006_v25, %v18_v46  ;;  %2764 = vmatmul.mubr.f32.gmra.mrb[16].mxu0 %v12018_v38 }
 0x273   :  { %v12115_v14 = vmul.f32 0.70710677, %v10784_v59  ;;  %2769 = vmatprep.mubr.f32.mxu0 %v15811_v41 }
 0x274   :  { %v12118_v36 = vmul.f32 0.70710677, %v10785_v54  ;;  %v9643_v44 = vpop.f32.mrb[2].mxu0 }
 0x275   :  { %v1069_v0 = vand.u32 2147483647, %v12115_v14  ;;  %v10786_v18 = vadd.f32 %v9643_v44, %v18_v46  ;;  %v1018_v51 = vpop.f32.mrb[3].mxu0  ;;  %vm1229_vm3 = vcmp.ge.f32.partialorder %v12115_v14, 0.0 }
 0x276   :  { %v1068_v58 = vand.u32 2147483647, %v12118_v36  ;;  %v10787_v48 = vadd.f32 %v1018_v51, %v18_v46  ;;  %2771 = vmatmul.mubr.f32.gmra.mrb[18].mxu0 %v12038_v35  ;;  %vm1228_vm4 = vcmp.ge.f32.partialorder %v12118_v36, 0.0 }
 0x277   :  { %v1077_v17 = vmul.f32 0.3275911, %v1069_v0  ;;  %v12123_v25 = vmul.f32 0.70710677, %v10786_v18  ;;  %2776 = vmatprep.mubr.f32.mxu0 %v15811_v41  ;;  %v1181_v47 = vsub.f32 0.0, %v1069_v0 }
 0x278   :  { %v1076_v63 = vmul.f32 0.3275911, %v1068_v58  ;;  %v12126_v2 = vmul.f32 0.70710677, %v10787_v48  ;;  %v1180_v8 = vsub.f32 0.0, %v1068_v58  ;;  %v9646_v44 = vpop.f32.mrb[4].mxu0 }
 0x279   :  { %v1085_v60 = vadd.f32 1.0, %v1077_v17  ;;  %v1071_v7 = vand.u32 2147483647, %v12123_v25  ;;  %v1030_v51 = vpop.f32.mrb[5].mxu0  ;;  %v1189_v49 = vmul.f32 %v1181_v47, %v1069_v0  ;;  %v10788_v30 = vadd.f32 %v9646_v44, %v18_v46 }
 0x27a   :  { %v1084_v1 = vadd.f32 1.0, %v1076_v63  ;;  %v1070_v61 = vand.u32 2147483647, %v12126_v2  ;;  %2778 = vmatmul.mubr.f32.gmra.mrb[20].mxu0 %v12055_v24  ;;  %v1188_v19 = vmul.f32 %v1180_v8, %v1068_v58  ;;  %v12132_v11 = vadd.f32 %v1030_v51, %v18_v46 }
 0x27b   :  { %11233 = vrcp.f32 %v1085_v60  ;;  %v1079_v33 = vmul.f32 0.3275911, %v1071_v7  ;;  %2783 = vmatprep.mubr.f32.mxu0 %v15811_v41  ;;  %v1183_v63 = vsub.f32 0.0, %v1071_v7  ;;  %v12135_v4 = vmul.f32 0.70710677, %v10788_v30 }
 0x27c   :  { %11235 = vrcp.f32 %v1084_v1  ;;  %v1078_v34 = vmul.f32 0.3275911, %v1070_v61  ;;  %v9649_v31 = vpop.f32.mrb[6].mxu0  ;;  %v1198_v60 = vmul.f32 1.442695, %v1189_v49  ;;  %v12144_v0 = vmul.f32 0.5, %v10784_v59 }
 0x27d   :  { %v1087_v17 = vadd.f32 1.0, %v1079_v33  ;;  %v1042_v21 = vpop.f32.mrb[7].mxu0  ;;  %v12139_v1 = vmul.f32 0.70710677, %v12132_v11  ;;  %v1196_v58 = vmul.f32 1.442695, %v1188_v19  ;;  %v1191_v49 = vmul.f32 %v1183_v63, %v1071_v7 }
 0x27e   :  { %v1086_v62 = vadd.f32 1.0, %v1078_v34  ;;  %2785 = vmatmul.mubr.f32.gmra.mrb[22].mxu0 %v12070_v53  ;;  %v1182_v33 = vsub.f32 0.0, %v1070_v61  ;;  %v1073_v8 = vand.u32 2147483647, %v12135_v4  ;;  %v12142_v34 = vadd.f32 %v9649_v31, %v18_v46 }
 0x27f   :  { %11237 = vrcp.f32 %v1087_v17  ;;  %2859 = vmatprep.mubr.f32.mxu0 %v15811_v41  ;;  %v12146_v47 = vmul.f32 0.5, %v10785_v54  ;;  %v1072_v44 = vand.u32 2147483647, %v12139_v1  ;;  %v12149_v51 = vadd.f32 %v1042_v21, %v18_v46 }
 0x280   :  { %11239 = vrcp.f32 %v1086_v62  ;;  %v12152_v62 = vmul.f32 0.5, %v10786_v18  ;;  %v1081_v17 = vmul.f32 0.3275911, %v1073_v8  ;;  %v12155_v19 = vmul.f32 0.70710677, %v12142_v34 }
 0x281   :  { %11241 = vpow2.f32 %v1198_v60  ;;  %v12159_v31 = vmul.f32 0.5, %v10787_v48  ;;  %v1080_v54 = vmul.f32 0.3275911, %v1072_v44  ;;  %v12162_v21 = vmul.f32 0.70710677, %v12149_v51 }
 0x282   :  { %2862 = vmatmul.mubr.f32.vlgmr.msra.gmra.mrb[8].mxu0 %v11919_v52  ;;  %v16103_v46 = vand.u32 4294901760, %v11798_v13  ;;  %11243 = vpow2.f32 %v1196_v58  ;;  %v1190_v7 = vmul.f32 %v1182_v33, %v1070_v61  ;;  %v1089_v59 = vadd.f32 1.0, %v1081_v17 }
 0x283   :  { %2867 = vmatprep.mubr.f32.mxu0 %v15811_v41  ;;  %2927 = vmatpush1.msra.mxu0 %v11792_v40  ;;  %v1075_v63 = vand.u32 2147483647, %v12155_v19  ;;  %v1185_v48 = vsub.f32 0.0, %v1073_v8  ;;  %v1088_v53 = vadd.f32 1.0, %v1080_v54  ;;  %v1074_v22 = vand.u32 2147483647, %v12162_v21 }
 0x284   :  { %3066 = vmatprep.subr.mxu0 %v16103_v46  ;;  %v1202_v46 = vmul.f32 1.442695, %v1191_v49  ;;  %11245 = vrcp.f32 %v1089_v59  ;;  %v16104_v58 = vmov 0.0   ;;  %v1184_v33 = vsub.f32 0.0, %v1072_v44 }
 0x285   :  { %v12166_v18 = vpop.eup %11233  ;;  %v1083_v24 = vmul.f32 0.3275911, %v1075_v63  ;;  %11247 = vrcp.f32 %v1088_v53  ;;  %v1187_v17 = vsub.f32 0.0, %v1075_v63  ;;  %v12178_v5 = vmul.f32 0.5, %v10788_v30 }
 0x286   :  { %v12169_v41 = vpop.eup %11235  ;;  %v1109_v60 = vmul.f32 1.0614054, %v12166_v18  ;;  %2870 = vmatmul.mubr.f32.gmra.mrb[10].mxu0 %v11948_v12  ;;  %v1082_v38 = vmul.f32 0.3275911, %v1074_v22  ;;  %v1200_v59 = vmul.f32 1.442695, %v1190_v7  ;;  %v1193_v27 = vmul.f32 %v1185_v48, %v1073_v8 }
 0x287   :  { %v1108_v13 = vmul.f32 1.0614054, %v12169_v41  ;;  %2875 = vmatprep.mubr.f32.mxu0 %v16104_v58  ;;  %v1091_v54 = vadd.f32 1.0, %v1083_v24  ;;  %v1192_v20 = vmul.f32 %v1184_v33, %v1072_v44  ;;  %v1195_v26 = vmul.f32 %v1187_v17, %v1075_v63 }
 0x288   :  { %v1117_v61 = vadd.f32 -1.4531521, %v1109_v60  ;;  %v1186_v23 = vsub.f32 0.0, %v1074_v22  ;;  %v12191_v40 = vmul.f32 0.5, %v12132_v11  ;;  %v12197_v63 = vmul.f32 0.5, %v12142_v34 }
 0x289   :  { %v12176_v45 = vpop.eup %11237  ;;  %v1116_v35 = vadd.f32 -1.4531521, %v1108_v13  ;;  %11249 = vrcp.f32 %v1091_v54  ;;  %v1090_v13 = vadd.f32 1.0, %v1082_v38  ;;  %vm1231_vm6 = vcmp.ge.f32.partialorder %v12123_v25, 0.0 }
 0x28a   :  { %v12180_v55 = vpop.eup %11239  ;;  %v1125_v3 = vmul.f32 %v12166_v18, %v1117_v61  ;;  %v1111_v49 = vmul.f32 1.0614054, %v12176_v45  ;;  %2878 = vmatmul.mubr.f32.gmra.mrb[12].mxu0 %v11974_v10  ;;  %v1194_v33 = vmul.f32 %v1186_v23, %v1074_v22  ;;  %vm1230_vm7 = vcmp.ge.f32.partialorder %v12126_v2, 0.0 }
 0x28b   :  { %v1124_v53 = vmul.f32 %v12169_v41, %v1116_v35  ;;  %v1110_v60 = vmul.f32 1.0614054, %v12180_v55  ;;  %2883 = vmatprep.mubr.f32.mxu0 %v16104_v58  ;;  %11251 = vrcp.f32 %v1090_v13  ;;  %v11242_v7 = vpop.eup %11241  ;;  %v1206_v35 = vmul.f32 1.442695, %v1193_v27 }
 0x28c   :  { %v1133_v30 = vadd.f32 1.4214138, %v1125_v3  ;;  %v1119_v24 = vadd.f32 -1.4531521, %v1111_v49  ;;  %v11244_v38 = vpop.eup %11243  ;;  %11253 = vpow2.f32 %v1202_v46  ;;  %v1204_v27 = vmul.f32 1.442695, %v1192_v20 }
 0x28d   :  { %v1132_v43 = vadd.f32 1.4214138, %v1124_v53  ;;  %v1118_v61 = vadd.f32 -1.4531521, %v1110_v60  ;;  %11255 = vpow2.f32 %v1200_v59  ;;  %v1210_v60 = vmul.f32 1.442695, %v1195_v26 }
 0x28e   :  { %v1141_v8 = vmul.f32 %v12166_v18, %v1133_v30  ;;  %v1127_v48 = vmul.f32 %v12176_v45, %v1119_v24  ;;  %2886 = vmatmul.mubr.f32.gmra.mrb[14].mxu0 %v12007_v50  ;;  %v12200_v49 = vpop.eup %11245  ;;  %11257 = vpow2.f32 %v1206_v35  ;;  %v1208_v30 = vmul.f32 1.442695, %v1194_v33 }
 0x28f   :  { %v1140_v3 = vmul.f32 %v12169_v41, %v1132_v43  ;;  %v1126_v44 = vmul.f32 %v12180_v55, %v1118_v61  ;;  %2891 = vmatprep.mubr.f32.mxu0 %v16104_v58  ;;  %v12202_v13 = vpop.eup %11247  ;;  %v1113_v23 = vmul.f32 1.0614054, %v12200_v49  ;;  %11259 = vpow2.f32 %v1204_v27 }
 0x290   :  { %v1149_v17 = vadd.f32 -0.28449672, %v1141_v8  ;;  %v1135_v54 = vadd.f32 1.4214138, %v1127_v48  ;;  %v1112_v46 = vmul.f32 1.0614054, %v12202_v13  ;;  %11261 = vpow2.f32 %v1210_v60 }
 0x291   :  { %v1148_v11 = vadd.f32 -0.28449672, %v1140_v3  ;;  %v1134_v53 = vadd.f32 1.4214138, %v1126_v44  ;;  %v1121_v24 = vadd.f32 -1.4531521, %v1113_v23  ;;  %11263 = vpow2.f32 %v1208_v30 }
 0x292   :  { %v1157_v43 = vmul.f32 %v12166_v18, %v1149_v17  ;;  %v1143_v34 = vmul.f32 %v12176_v45, %v1135_v54  ;;  %2894 = vmatmul.mubr.f32.gmra.mrb[16].mxu0 %v12027_v9  ;;  %v1120_v35 = vadd.f32 -1.4531521, %v1112_v46  ;;  %vm1233_vm8 = vcmp.ge.f32.partialorder %v12135_v4, 0.0 }
 0x293   :  { %v1156_v22 = vmul.f32 %v12169_v41, %v1148_v11  ;;  %v1142_v20 = vmul.f32 %v12180_v55, %v1134_v53  ;;  %2899 = vmatprep.mubr.f32.mxu0 %v16104_v58  ;;  %v12212_v61 = vpop.eup %11249  ;;  %v1129_v33 = vmul.f32 %v12200_v49, %v1121_v24  ;;  %vm1232_vm9 = vcmp.ge.f32.partialorder %v12139_v1, 0.0 }
 0x294   :  { %v1165_v26 = vadd.f32 0.2548296, %v1157_v43  ;;  %v1151_v59 = vadd.f32 -0.28449672, %v1143_v34  ;;  %v1115_v17 = vmul.f32 1.0614054, %v12212_v61  ;;  %v1128_v53 = vmul.f32 %v12202_v13, %v1120_v35 }
 0x295   :  { %v1164_v8 = vadd.f32 0.2548296, %v1156_v22  ;;  %v1150_v48 = vadd.f32 -0.28449672, %v1142_v20  ;;  %v12221_v54 = vpop.eup %11251  ;;  %v1137_v43 = vadd.f32 1.4214138, %v1129_v33 }
 0x296   :  { %v1173_v3 = vmul.f32 %v12166_v18, %v1165_v26  ;;  %v1159_v44 = vmul.f32 %v12176_v45, %v1151_v59  ;;  %2902 = vmatmul.mubr.f32.gmra.mrb[18].mxu0 %v12045_v28  ;;  %v1123_v34 = vadd.f32 -1.4531521, %v1115_v17  ;;  %v1136_v20 = vadd.f32 1.4214138, %v1128_v53 }
 0x297   :  { %v1172_v27 = vmul.f32 %v12169_v41, %v1164_v8  ;;  %v1158_v11 = vmul.f32 %v12180_v55, %v1150_v48  ;;  %2907 = vmatprep.mubr.f32.mxu0 %v16104_v58  ;;  %v1114_v46 = vmul.f32 1.0614054, %v12221_v54  ;;  %v11254_v41 = vpop.eup %11253  ;;  %v1145_v30 = vmul.f32 %v12200_v49, %v1137_v43 }
 0x298   :  { %v1213_v18 = vmul.f32 %v11242_v7, %v1173_v3  ;;  %v1167_v60 = vadd.f32 0.2548296, %v1159_v44  ;;  %v1131_v7 = vmul.f32 %v12212_v61, %v1123_v34  ;;  %v11256_v24 = vpop.eup %11255  ;;  %v1144_v48 = vmul.f32 %v12202_v13, %v1136_v20 }
 0x299   :  { %v1212_v23 = vmul.f32 %v11244_v38, %v1172_v27  ;;  %v1166_v22 = vadd.f32 0.2548296, %v1158_v11  ;;  %v1122_v35 = vadd.f32 -1.4531521, %v1114_v46  ;;  %v11258_v3 = vpop.eup %11257  ;;  %v1153_v33 = vadd.f32 -0.28449672, %v1145_v30 }
 0x29a   :  { %v1221_v26 = vsub.f32 1.0, %v1213_v18  ;;  %v1175_v59 = vmul.f32 %v12176_v45, %v1167_v60  ;;  %2910 = vmatmul.mubr.f32.gmra.mrb[20].mxu0 %v12062_v37  ;;  %v1139_v17 = vadd.f32 1.4214138, %v1131_v7  ;;  %v1152_v53 = vadd.f32 -0.28449672, %v1144_v48  ;;  %v11260_v60 = vpop.eup %11259 }
 0x29b   :  { %v1220_v38 = vsub.f32 1.0, %v1212_v23  ;;  %v1174_v8 = vmul.f32 %v12180_v55, %v1166_v22  ;;  %2915 = vmatprep.mubr.f32.mxu0 %v16104_v58  ;;  %v1130_v18 = vmul.f32 %v12221_v54, %v1122_v35  ;;  %v1161_v34 = vmul.f32 %v12200_v49, %v1153_v33  ;;  %v11262_v22 = vpop.eup %11261 }
 0x29c   :  { %v1237_v44 = vsub.f32 0.0, %v1221_v26  ;;  %v1215_v45 = vmul.f32 %v11254_v41, %v1175_v59  ;;  %v1147_v23 = vmul.f32 %v12212_v61, %v1139_v17  ;;  %v1160_v59 = vmul.f32 %v12202_v13, %v1152_v53 }
 0x29d   :  { %v1236_v27 = vsub.f32 0.0, %v1220_v38  ;;  %v1214_v11 = vmul.f32 %v11256_v24, %v1174_v8  ;;  %v12247_v24 = vpop.eup %11263  ;;  %v16105_v17 = vand.u32 4294901760, %v11919_v52  ;;  %v16106_v25 = vand.u32 4294901760, %v11867_v32 }
 0x29e   :  { %v1245_v43 = vsel %vm1229_vm3, %v1221_v26, %v1237_v44  ;;  %v1223_v55 = vsub.f32 1.0, %v1215_v45  ;;  %2918 = vmatmul.mubr.f32.gmra.mrb[22].mxu0 %v12077_v56  ;;  %v1169_v26 = vadd.f32 0.2548296, %v1161_v34  ;;  %v1155_v7 = vadd.f32 -0.28449672, %v1147_v23 }
 0x29f   :  { %v1253_v20 = vadd.f32 1.0, %v1245_v43  ;;  %v1244_v46 = vsel %vm1228_vm4, %v1220_v38, %v1236_v27  ;;  %v1222_v41 = vsub.f32 1.0, %v1214_v11  ;;  %2990 = vmatprep.mubr.f32.mxu0 %v16104_v58  ;;  %v1168_v35 = vadd.f32 0.2548296, %v1160_v59 }
 0x2a0   :  { %v1252_v30 = vadd.f32 1.0, %v1244_v46  ;;  %v1239_v14 = vsub.f32 0.0, %v1223_v55  ;;  %v1138_v44 = vadd.f32 1.4214138, %v1130_v18  ;;  %v1177_v45 = vmul.f32 %v12200_v49, %v1169_v26 }
 0x2a1   :  { %v1261_v8 = vmul.f32 %v1253_v20, %v12144_v0  ;;  %v1238_v48 = vsub.f32 0.0, %v1222_v41  ;;  %v1163_v33 = vmul.f32 %v12212_v61, %v1155_v7  ;;  %vm1235_vm10 = vcmp.ge.f32.partialorder %v12155_v19, 0.0 }
 0x2a2   :  { %v1260_v36 = vmul.f32 %v1252_v30, %v12146_v47  ;;  %v1247_v38 = vsel %vm1231_vm6, %v1223_v55, %v1239_v14  ;;  %2994 = vmatmul.mubr.f32.vlgmr.msra.gmra.mrb[8].mxu0 %v16105_v17  ;;  %v1176_v47 = vmul.f32 %v12202_v13, %v1168_v35  ;;  %v1217_v18 = vmul.f32 %v11258_v3, %v1177_v45 }
 0x2a3   :  { %v1273_v0 = vsel %vm1268_vm5, %v1261_v8, 0  ;;  %v1255_v27 = vadd.f32 1.0, %v1247_v38  ;;  %v1246_v11 = vsel %vm1230_vm7, %v1222_v41, %v1238_v48  ;;  %2999 = vmatprep.mubr.f32.mxu0 %v16104_v58  ;;  %3070 = vmatpush1.msra.mxu0 %v16106_v25  ;;  %v1171_v43 = vadd.f32 0.2548296, %v1163_v33 }
 0x2a4   :  { %v12266_v49 = vand.u32 4294901760, %v1273_v0  ;;  %v1254_v53 = vadd.f32 1.0, %v1246_v11  ;;  %3191 = vmatprep.subr.mxu0 %v11790_v39  ;;  %v1216_v55 = vmul.f32 %v11260_v60, %v1176_v47  ;;  %v1146_v2 = vmul.f32 %v12221_v54, %v1138_v44 }
 0x2a5   :  { %v1263_v52 = vmul.f32 %v1255_v27, %v12152_v62  ;;  %v1270_v13 = vsel %vm1268_vm5, %v1260_v36, 0  ;;  %v1225_v23 = vsub.f32 1.0, %v1217_v18  ;;  %v1179_v3 = vmul.f32 %v12212_v61, %v1171_v43 }
 0x2a6   :  { %v12274_v34 = vsub.f32 %v1273_v0, %v12266_v49  ;;  %v1262_v32 = vmul.f32 %v1254_v53, %v12159_v31  ;;  %v16107_v20 = vand.u32 4294901760, %v11948_v12  ;;  %v1224_v62 = vsub.f32 1.0, %v1216_v55 }
 0x2a7   :  { %v1279_v39 = vsel %vm1268_vm5, %v1263_v52, 0  ;;  %v1154_v60 = vadd.f32 -0.28449672, %v1146_v2  ;;  %v12282_v46 = vand.u32 4294901760, %v1270_v13  ;;  %v1241_v30 = vsub.f32 0.0, %v1225_v23 }
 0x2a8   :  { %3003 = vmatmul.mubr.f32.gmra.mrb[10].mxu0 %v16107_v20  ;;  %v12284_v41 = vand.u32 4294901760, %v1279_v39  ;;  %v1276_v59 = vsel %vm1268_vm5, %v1262_v32, 0  ;;  %v1219_v31 = vmul.f32 %v11262_v22, %v1179_v3  ;;  %v1240_v61 = vsub.f32 0.0, %v1224_v62 }
 0x2a9   :  { %3008 = vmatprep.mubr.f32.mxu0 %v16104_v58  ;;  %v12287_v14 = vand.u32 4294901760, %v1276_v59  ;;  %v1162_v12 = vmul.f32 %v12221_v54, %v1154_v60  ;;  %v12291_v26 = vsub.f32 %v1270_v13, %v12282_v46  ;;  %v1249_v8 = vsel %vm1233_vm8, %v1225_v23, %v1241_v30 }
 0x2aa   :  { %v12294_v7 = vsub.f32 %v1279_v39, %v12284_v41  ;;  %v1227_v48 = vsub.f32 1.0, %v1219_v31  ;;  %v16108_v35 = vand.u32 4294901760, %v11974_v10  ;;  %v1382_v22 = vand.u32 4294901760, %v12274_v34 }
 0x2ab   :  { %v12302_v44 = vsub.f32 %v1276_v59, %v12287_v14  ;;  %v1257_v36 = vadd.f32 1.0, %v1249_v8  ;;  %v1248_v38 = vsel %vm1232_vm9, %v1224_v62, %v1240_v61  ;;  %v1170_v45 = vadd.f32 0.2548296, %v1162_v12 }
 0x2ac   :  { %3012 = vmatmul.mubr.f32.gmra.mrb[12].mxu0 %v16108_v35  ;;  %v1256_v33 = vadd.f32 1.0, %v1248_v38  ;;  %v1243_v17 = vsub.f32 0.0, %v1227_v48  ;;  %v1372_v4 = vand.u32 4294901760, %v12291_v26  ;;  %v1383_v10 = vsub.f32 %v12274_v34, %v1382_v22 }
 0x2ad   :  { %3017 = vmatprep.mubr.f32.mxu0 %v16104_v58  ;;  %v1265_v0 = vmul.f32 %v1257_v36, %v12178_v5  ;;  %v1178_v27 = vmul.f32 %v12221_v54, %v1170_v45  ;;  %v1392_v11 = vand.u32 4294901760, %v12302_v44  ;;  %v1402_v1 = vand.u32 4294901760, %v12294_v7 }
 0x2ae   :  { %v1264_v47 = vmul.f32 %v1256_v33, %v12191_v40  ;;  %v1251_v25 = vsel %vm1235_vm10, %v1227_v48, %v1243_v17  ;;  %v1373_v53 = vsub.f32 %v12291_v26, %v1372_v4  ;;  %v1384_v18 = vand.u32 4294901760, %v1383_v10 }
 0x2af   :  { %v16109_v43 = vand.u32 4294901760, %v12007_v50  ;;  %v1285_v5 = vsel %vm1268_vm5, %v1265_v0, 0  ;;  %v1259_v54 = vadd.f32 1.0, %v1251_v25  ;;  %v1218_v52 = vmul.f32 %v12247_v24, %v1178_v27  ;;  %v16116_v25 = vld [vmem:[#allocation18_spill] sm:$0xff] }
 0x2b0   :  { %v1393_v40 = vsub.f32 %v12302_v44, %v1392_v11  ;;  %v12329_v19 = vand.u32 4294901760, %v1285_v5  ;;  %v1282_v55 = vsel %vm1268_vm5, %v1264_v47, 0  ;;  %v1374_v2 = vand.u32 4294901760, %v1373_v53  ;;  %v16115_v47 = vld [vmem:[#allocation30_spill] sm:$0xff]  ;;  %v16118_v53 = vld [vmem:[#allocation21_spill] sm:$0xff] }
 0x2b1   :  { %3021 = vmatmul.mubr.f32.gmra.mrb[14].mxu0 %v16109_v43  ;;  %v1403_v50 = vsub.f32 %v12294_v7, %v1402_v1  ;;  %v12335_v13 = vand.u32 4294901760, %v1282_v55  ;;  %v1267_v32 = vmul.f32 %v1259_v54, %v12197_v63  ;;  %v1226_v24 = vsub.f32 1.0, %v1218_v52  ;;  %v16121_v43 = vld [vmem:[#allocation34_spill] sm:$0xff]  ;;  %v16123_v54 = vld [vmem:[#allocation35_spill] sm:$0xff]  ;;  %v16124_v52 = vld [vmem:[#allocation28_spill] sm:$0xff] }
 0x2b2   :  { %3026 = vmatprep.mubr.f32.mxu0 %v16104_v58  ;;  %v1394_v23 = vand.u32 4294901760, %v1393_v40  ;;  %v12339_v3 = vsub.f32 %v1285_v5, %v12329_v19  ;;  %9674 = vmatprep.mubr.f32.mxu1 %v1374_v2  ;;  %v16110_v20 = vand.u32 4294901760, %v12027_v9  ;;  %vm1234_vm11 = vcmp.ge.f32.partialorder %v12162_v21, 0.0  ;;  %v16122_v5 = vld [vmem:[#allocation27_spill] sm:$0xff]  ;;  %v16125_v40 = vld [vmem:[#allocation36_spill] sm:$0xff]  ;;  %v16127_v2 = vld [vmem:[#allocation37_spill] sm:$0xff] }
 0x2b3   :  { %v12344_v39 = vsub.f32 %v1282_v55, %v12335_v13  ;;  %v1291_v62 = vsel %vm1268_vm5, %v1267_v32, 0  ;;  %v1242_v60 = vsub.f32 0.0, %v1226_v24  ;;  %9675 = vmatmul.mubr.f32.vlgmr.msra.gmra.mrb[0].mxu1 %v1384_v18  ;;  %v1404_v30 = vand.u32 4294901760, %v1403_v50  ;;  %v16120_v18 = vld [vmem:[#allocation24_spill] sm:$0xff]  ;;  %v16126_v55 = vld [vmem:[#allocation31_spill] sm:$0xff]  ;;  %v16128_v50 = vld [vmem:[#allocation33_spill] sm:$0xff] }
 0x2b4   :  { %v12348_v59 = vand.u32 4294901760, %v1291_v62  ;;  %10103 = vmatpush3.bf16.msra.mxu1 %v11909_v6  ;;  %9677 = vmatprep.mubr.f32.mxu1 %v1394_v23  ;;  %v1422_v63 = vand.u32 4294901760, %v12339_v3  ;;  %v1058_v61 = vmul.f32 0.5, %v12149_v51  ;;  %v16111_v21 = vand.u32 4294901760, %v12045_v28  ;;  %v16129_v32 = vld [vmem:[#allocation6_spill] sm:$0xff]  ;;  %v16132_v23 = vld [vmem:[#allocation9_spill] sm:$0xff] }
 0x2b5   :  { %3030 = vmatmul.mubr.f32.gmra.mrb[16].mxu0 %v16110_v20  ;;  %v1250_v9 = vsel %vm1234_vm11, %v1226_v24, %v1242_v60  ;;  %10105 = vmatprep.subr.bf16.mxu1 %v11950_v16  ;;  %v1412_v31 = vand.u32 4294901760, %v12344_v39  ;;  %v16112_v38 = vand.u32 4294901760, %v12062_v37  ;;  %v16130_v24 = vld [vmem:[#allocation7_spill] sm:$0xff]  ;;  %v16133_v20 = vld [vmem:[#allocation10_spill] sm:$0xff] }
 0x2b6   :  { %3035 = vmatprep.mubr.f32.mxu0 %v16104_v58  ;;  %v1258_v12 = vadd.f32 1.0, %v1250_v9  ;;  %v1423_v8 = vsub.f32 %v12339_v3, %v1422_v63  ;;  %v12366_v48 = vsub.f32 %v1291_v62, %v12348_v59  ;;  %v16134_v62 = vld [vmem:[#allocation13_spill] sm:$0xff]  ;;  %v16135_v60 = vld [vmem:[#allocation11_spill] sm:$0xff] }
 0x2b7   :  { %9678 = vmatmul.mubr.f32.gmra.mrb[2].mxu1 %v1404_v30  ;;  %v1413_v6 = vsub.f32 %v12344_v39, %v1412_v31  ;;  %v16136_v9 = vand.u32 4294901760, %v16135_v60  ;;  %v16137_v30 = vld [vmem:[#allocation12_spill] sm:$0xff] }
 0x2b8   :  { %v1266_v35 = vmul.f32 %v1258_v12, %v1058_v61  ;;  %10107 = vmatpush3.bf16.msra.mxu1 %v11950_v16  ;;  %v1424_v28 = vand.u32 4294901760, %v1423_v8  ;;  %v1442_v33 = vand.u32 4294901760, %v12366_v48  ;;  %v16113_v16 = vand.u32 4294901760, %v12077_v56  ;;  %v16114_v56 = vld [vmem:[#allocation5_spill] sm:$0xff]  ;;  %v16141_v8 = vld [vmem:[#allocation15_spill] sm:$0xff] }
 0x2b9   :  { %3039 = vmatmul.mubr.f32.gmra.mrb[18].mxu0 %v16111_v21  ;;  %v1414_v51 = vand.u32 4294901760, %v1413_v6  ;;  %10109 = vmatprep.subr.bf16.mxu1 %v11958_v42  ;;  %v16138_v61 = vand.u32 4294901760, %v16137_v30  ;;  %v16142_v21 = vand.u32 4294901760, %v16141_v8 }
 0x2ba   :  { %3044 = vmatprep.mubr.f32.mxu0 %v16104_v58  ;;  %v1288_v36 = vsel %vm1268_vm5, %v1266_v35, 0  ;;  %v1443_v10 = vsub.f32 %v12366_v48, %v1442_v33  ;;  %v16143_v35 = vld [vmem:[#allocation16_spill] sm:$0xff] }
 0x2bb   :  { %v12373_v45 = vand.u32 4294901760, %v1288_v36  ;;  %9680 = vmatprep.mubr.f32.mxu1 %v1414_v51  ;;  %v10172_v12 = vpack.c.bf16 %v16138_v61, %v16136_v9  ;;  %v16144_v51 = vand.u32 4294901760, %v16143_v35  ;;  %v12680_v35 = vld [vmem:[%s15763_s2 + $0x250] sm:$0xff] }
 0x2bc   :  { %9681 = vmatmul.mubr.f32.gmra.mrb[4].mxu1 %v1424_v28  ;;  %v1444_v27 = vand.u32 4294901760, %v1443_v10  ;;  %v16153_v10 = vld [vmem:[#allocation23_spill] sm:$0xff] }
 0x2bd   :  { %3048 = vmatmul.mubr.f32.gmra.mrb[20].mxu0 %v16112_v38  ;;  %v12378_v17 = vsub.f32 %v1288_v36, %v12373_v45  ;;  %10111 = vmatpush3.bf16.msra.mxu1 %v11958_v42  ;;  %v16145_v36 = vld [vmem:[#allocation17_spill] sm:$0xff] }
 0x2be   :  { %3053 = vmatprep.mubr.f32.mxu0 %v16104_v58  ;;  %10113 = vmatprep.subr.bf16.mxu1 %v12012_v15  ;;  %v16146_v28 = vand.u32 4294901760, %v16145_v36  ;;  %v15844_v36 = vand.u32 4294901760, %v12680_v35 }
 0x2bf   :  { %v1432_v37 = vand.u32 4294901760, %v12378_v17 }
 0x2c0   :  { %v10180_v38 = vpack.c.bf16 %v16146_v28, %v16144_v51  ;;  %v12685_v51 = vld [vmem:[%s15763_s2 + $0x260] sm:$0xff] }
 0x2c1   :  { %3057 = vmatmul.mubr.f32.gmra.mrb[22].mxu0 %v16113_v16  ;;  %v1433_v0 = vsub.f32 %v12378_v17, %v1432_v37  ;;  %10115 = vmatpush3.bf16.msra.mxu1 %v12012_v15  ;;  %v16117_v15 = vld [vmem:[#allocation29_spill] sm:$0xff]  ;;  %v15843_v28 = vand.u32 4294901760, %v12685_v51 }
 0x2c2   :  { %3133 = vmatprep.mubr.f32.mxu0 %v16104_v58  ;;  %10117 = vmatprep.subr.bf16.mxu1 %v12021_v29 }
 0x2c3   :  { %v1434_v42 = vand.u32 4294901760, %v1433_v0  ;;  %v16155_v0 = vld [vmem:[#allocation25_spill] sm:$0xff] }
 0x2c5   :  { %3135 = vmatmul.mubr.f32.vlgmr.msra.gmra.mrb[8].mxu0 %v11905_v57  ;;  %9683 = vmatprep.mubr.f32.mxu1 %v1434_v42 }
 0x2c6   :  { %3140 = vmatprep.mubr.f32.mxu0 %v16104_v58  ;;  %3193 = vmatpush1.msra.mxu0 %v16114_v56  ;;  %v12562_v56 = vld [vmem:[%s15763_s2 + $0x190] sm:$0xff] }
 0x2c7   :  { %10119 = vmatpush3.bf16.msra.mxu1 %v12021_v29  ;;  %v16119_v29 = vld [vmem:[#allocation32_spill] sm:$0xff] }
 0x2c8   :  { %9684 = vmatmul.mubr.f32.gmra.mrb[6].mxu1 %v1444_v27  ;;  %10121 = vmatprep.subr.bf16.mxu1 %v16115_v47  ;;  %v12567_v27 = vld [vmem:[%s15763_s2 + $0x1a0] sm:$0xff] }
 0x2c9   :  { %9710 = vmatprep.mubr.f32.mxu1 %v12282_v46  ;;  %3142 = vmatmul.mubr.f32.gmra.mrb[10].mxu0 %v16116_v25 }
 0x2ca   :  { %3147 = vmatprep.mubr.f32.mxu0 %v16104_v58 }
 0x2cb   :  { %10123 = vmatpush3.bf16.msra.mxu1 %v16115_v47  ;;  %v3783_v47 = vand.u32 4294901760, %v12562_v56 }
 0x2cc   :  { %10125 = vmatprep.subr.bf16.mxu1 %v16117_v15 }
 0x2cd   :  { %3149 = vmatmul.mubr.f32.gmra.mrb[12].mxu0 %v16118_v53 }
 0x2ce   :  { %9711 = vmatmul.mubr.f32.vlgmr.msra.gmra.mrb[0].mxu1 %v12266_v49  ;;  %3154 = vmatprep.mubr.f32.mxu0 %v16104_v58 }
 0x2cf   :  { %9713 = vmatprep.mubr.f32.mxu1 %v12287_v14  ;;  %10127 = vmatpush3.bf16.msra.mxu1 %v16117_v15 }
 0x2d0   :  { %10129 = vmatprep.subr.bf16.mxu1 %v16119_v29 }
 0x2d1   :  { %3156 = vmatmul.mubr.f32.gmra.mrb[14].mxu0 %v16120_v18 }
 0x2d2   :  { %9714 = vmatmul.mubr.f32.gmra.mrb[2].mxu1 %v12284_v41  ;;  %3161 = vmatprep.mubr.f32.mxu0 %v16104_v58 }
 0x2d3   :  { %9716 = vmatprep.mubr.f32.mxu1 %v12335_v13  ;;  %10131 = vmatpush3.bf16.msra.mxu1 %v16119_v29  ;;  %v12583_v29 = vld [vmem:[%s15763_s2 + $0x1c0] sm:$0xff] }
 0x2d4   :  { %10133 = vmatprep.subr.bf16.mxu1 %v16121_v43 }
 0x2d5   :  { %3163 = vmatmul.mubr.f32.gmra.mrb[16].mxu0 %v16122_v5 }
 0x2d6   :  { %9717 = vmatmul.mubr.f32.gmra.mrb[4].mxu1 %v12329_v19  ;;  %3168 = vmatprep.mubr.f32.mxu0 %v16104_v58 }
 0x2d7   :  { %9719 = vmatprep.mubr.f32.mxu1 %v12373_v45  ;;  %10135 = vmatpush3.bf16.msra.mxu1 %v16121_v43  ;;  %v3792_v43 = vand.u32 4294901760, %v12583_v29 }
 0x2d8   :  { %10137 = vmatprep.subr.bf16.mxu1 %v16123_v54 }
 0x2d9   :  { %3170 = vmatmul.mubr.f32.gmra.mrb[18].mxu0 %v16124_v52 }
 0x2da   :  { %9720 = vmatmul.mubr.f32.gmra.mrb[6].mxu1 %v12348_v59  ;;  %3175 = vmatprep.mubr.f32.mxu0 %v16104_v58 }
 0x2db   :  { %10139 = vmatpush3.bf16.msra.mxu1 %v16123_v54  ;;  %9746 = vmatprep.mubr.f32.mxu1 %v12291_v26  ;;  %v16139_v26 = vld [vmem:[#allocation14_spill] sm:$0xff] }
 0x2dc   :  { %10141 = vmatprep.subr.bf16.mxu1 %v16125_v40  ;;  %v12598_v54 = vld [vmem:[%s15763_s2 + $0x1d0] sm:$0xff] }
 0x2dd   :  { %3177 = vmatmul.mubr.f32.gmra.mrb[20].mxu0 %v16126_v55 }
 0x2de   :  { %3182 = vmatprep.mubr.f32.mxu0 %v16104_v58 }
 0x2df   :  { %10143 = vmatpush3.bf16.msra.mxu1 %v16125_v40  ;;  %v3795_v40 = vand.u32 4294901760, %v12598_v54 }
 0x2e0   :  { %10145 = vmatprep.subr.bf16.mxu1 %v16127_v2 }
 0x2e1   :  { %3184 = vmatmul.mubr.f32.gmra.mrb[22].mxu0 %v16128_v50 }
 0x2e2   :  { %3256 = vmatprep.mubr.f32.mxu0 %v16104_v58 }
 0x2e3   :  { %10147 = vmatpush3.bf16.msra.mxu1 %v16127_v2 }
 0x2e4   :  { %10149 = vmatprep.subr.bf16.mxu1 %v16129_v32 }
 0x2e5   :  { %3258 = vmatmul.mubr.f32.vlgmr.msra.gmra.mrb[8].mxu0 %v11905_v57  ;;  %v16131_v57 = vld [vmem:[#allocation8_spill] sm:$0xff] }
 0x2e6   :  { %9747 = vmatmul.mubr.f32.vlgmr.msra.gmra.mrb[0].mxu1 %v12274_v34  ;;  %3263 = vmatprep.mubr.f32.mxu0 %v16104_v58  ;;  %v16147_v34 = vld [vmem:[#allocation19_spill] sm:$0xff] }
 0x2e7   :  { %9749 = vmatprep.mubr.f32.mxu1 %v12302_v44  ;;  %10151 = vmatpush3.bf16.msra.mxu1 %v16129_v32  ;;  %v16149_v44 = vld [vmem:[#allocation20_spill] sm:$0xff] }
 0x2e8   :  { %10153 = vmatprep.subr.bf16.mxu1 %v16130_v24 }
 0x2e9   :  { %3265 = vmatmul.mubr.f32.gmra.mrb[10].mxu0 %v16116_v25  ;;  %v3786_v25 = vand.u32 4294901760, %v12567_v27 }
 0x2ea   :  { %9750 = vmatmul.mubr.f32.gmra.mrb[2].mxu1 %v12294_v7  ;;  %3270 = vmatprep.mubr.f32.mxu0 %v16104_v58  ;;  %v16151_v7 = vld [vmem:[#allocation22_spill] sm:$0xff] }
 0x2eb   :  { %9752 = vmatprep.mubr.f32.mxu1 %v12344_v39  ;;  %10155 = vmatpush3.bf16.msra.mxu1 %v16130_v24  ;;  %v16154_v39 = vand.u32 4294901760, %v16153_v10  ;;  %v12571_v15 = vpack.c.bf16 %v3786_v25, %v3783_v47  ;;  %v12724_v10 = vld [vmem:[%s15763_s2 + $0x290] sm:$0xff] }
 0x2ec   :  { %10157 = vmatprep.subr.bf16.mxu1 %v16131_v57  ;;  %16174 = vst [vmem:[#allocation6_spill] sm:$0xff] %v12724_v10 }
 0x2ed   :  { %3272 = vmatmul.mubr.f32.gmra.mrb[12].mxu0 %v16118_v53  ;;  %16161 = vst [vmem:[#allocation18_spill] sm:$0xff] %v12571_v15  ;;  %v12578_v53 = vld [vmem:[%s15763_s2 + $0x1b0] sm:$0xff] }
 0x2ee   :  { %9753 = vmatmul.mubr.f32.gmra.mrb[4].mxu1 %v12339_v3  ;;  %3277 = vmatprep.mubr.f32.mxu0 %v16104_v58  ;;  %v16156_v3 = vand.u32 4294901760, %v16155_v0 }
 0x2ef   :  { %9755 = vmatprep.mubr.f32.mxu1 %v12378_v17  ;;  %10159 = vmatpush3.bf16.msra.mxu1 %v16131_v57 }
 0x2f0   :  { %10161 = vmatprep.subr.bf16.mxu1 %v16132_v23 }
 0x2f1   :  { %3279 = vmatmul.mubr.f32.gmra.mrb[14].mxu0 %v16120_v18  ;;  %v3789_v18 = vand.u32 4294901760, %v12578_v53 }
 0x2f2   :  { %9756 = vmatmul.mubr.f32.gmra.mrb[6].mxu1 %v12366_v48  ;;  %3284 = vmatprep.mubr.f32.mxu0 %v16104_v58  ;;  %v46_v48 = vld [vmem:[%s15763_s2 + $0x150] sm:$0xff] }
 0x2f3   :  { %10163 = vmatpush3.bf16.msra.mxu1 %v16132_v23  ;;  %9782 = vmatprep.mubr.f32.mxu1 %v1372_v4  ;;  %v16140_v4 = vand.u32 4294901760, %v16139_v26  ;;  %v12660_v26 = vld [vmem:[%s15763_s2 + $0x230] sm:$0xff] }
 0x2f4   :  { %10165 = vmatprep.subr.bf16.mxu1 %v16133_v20  ;;  %v15846_v8 = vand.u32 4294901760, %v12660_v26 }
 0x2f5   :  { %3286 = vmatmul.mubr.f32.gmra.mrb[16].mxu0 %v16122_v5  ;;  %v10176_v6 = vpack.c.bf16 %v16142_v21, %v16140_v4  ;;  %v12591_v5 = vpack.c.bf16 %v3792_v43, %v3789_v18  ;;  %v12665_v4 = vld [vmem:[%s15763_s2 + $0x240] sm:$0xff] }
 0x2f6   :  { %3291 = vmatprep.mubr.f32.mxu0 %v16104_v58  ;;  %v15845_v21 = vand.u32 4294901760, %v12665_v4 }
 0x2f7   :  { %10167 = vmatpush3.bf16.msra.mxu1 %v16133_v20  ;;  %16162 = vst [vmem:[#allocation29_spill] sm:$0xff] %v12591_v5 }
 0x2f8   :  { %10169 = vmatprep.subr.bf16.mxu1 %v16134_v62 }
 0x2f9   :  { %3293 = vmatmul.mubr.f32.gmra.mrb[18].mxu0 %v16124_v52  ;;  %v12603_v52 = vld [vmem:[%s15763_s2 + $0x1e0] sm:$0xff] }
 0x2fa   :  { %3298 = vmatprep.mubr.f32.mxu0 %v16104_v58 }
 0x2fb   :  { %10171 = vmatpush3.bf16.msra.mxu1 %v16134_v62 }
 0x2fc   :  { %10173 = vmatprep.subr.bf16.mxu1 %v10172_v12 }
 0x2fd   :  { %3300 = vmatmul.mubr.f32.gmra.mrb[20].mxu0 %v16126_v55  ;;  %v3798_v55 = vand.u32 4294901760, %v12603_v52 }
 0x2fe   :  { %9783 = vmatmul.mubr.f32.vlgmr.msra.gmra.mrb[0].mxu1 %v1382_v22  ;;  %3305 = vmatprep.mubr.f32.mxu0 %v16104_v58  ;;  %v16148_v22 = vand.u32 4294901760, %v16147_v34 }
 0x2ff   :  { %9785 = vmatprep.mubr.f32.mxu1 %v1392_v11  ;;  %10175 = vmatpush3.bf16.msra.mxu1 %v10172_v12  ;;  %v16150_v11 = vand.u32 4294901760, %v16149_v44  ;;  %v12611_v2 = vpack.c.bf16 %v3798_v55, %v3795_v40  ;;  %v12704_v44 = vld [vmem:[%s15763_s2 + $0x270] sm:$0xff] }
 0x300   :  { %10177 = vmatprep.subr.bf16.mxu1 %v10176_v6 }
 0x301   :  { %3307 = vmatmul.mubr.f32.gmra.mrb[22].mxu0 %v16128_v50  ;;  %v10184_v16 = vpack.c.bf16 %v16150_v11, %v16148_v22  ;;  %16163 = vst [vmem:[#allocation21_spill] sm:$0xff] %v12611_v2  ;;  %v12616_v50 = vld [vmem:[%s15763_s2 + $0x1f0] sm:$0xff]  ;;  %v12709_v11 = vld [vmem:[%s15763_s2 + $0x280] sm:$0xff] }
 0x302   :  { %9786 = vmatmul.mubr.f32.gmra.mrb[2].mxu1 %v1402_v1  ;;  %5322 = vmatprep.mubr.f32.mxu0 %v16104_v58  ;;  %v16152_v1 = vand.u32 4294901760, %v16151_v7  ;;  %16172 = vst [vmem:[#allocation37_spill] sm:$0xff] %v12709_v11  ;;  %v15841_v7 = vand.u32 4294901760, %v12709_v11 }
 0x303   :  { %9788 = vmatprep.mubr.f32.mxu1 %v1412_v31  ;;  %10179 = vmatpush3.bf16.msra.mxu1 %v10176_v6  ;;  %v12675_v6 = vpack.c.bf16 %v15845_v21, %v15846_v8 }
 0x304   :  { %10181 = vmatprep.subr.bf16.mxu1 %v10180_v38  ;;  %v10188_v31 = vpack.c.bf16 %v16154_v39, %v16152_v1  ;;  %v12729_v39 = vld [vmem:[%s15763_s2 + $0x2a0] sm:$0xff] }
 0x305   :  { %16168 = vst [vmem:[#allocation35_spill] sm:$0xff] %v12675_v6  ;;  %16175 = vst [vmem:[#allocation7_spill] sm:$0xff] %v12729_v39  ;;  %v15839_v0 = vand.u32 4294901760, %v12729_v39 }
 0x306   :  { %9789 = vmatmul.mubr.f32.gmra.mrb[4].mxu1 %v1422_v63  ;;  %v16157_v63 = vld [vmem:[#allocation26_spill] sm:$0xff] }
 0x307   :  { %9791 = vmatprep.mubr.f32.mxu1 %v1432_v37  ;;  %10183 = vmatpush3.bf16.msra.mxu1 %v10180_v38  ;;  %v16158_v42 = vand.u32 4294901760, %v16157_v63  ;;  %v12695_v38 = vpack.c.bf16 %v15843_v28, %v15844_v36  ;;  %v12739_v63 = vsub.f32 %v12567_v27, %v3786_v25  ;;  %v9246_v27 = vld [vmem:[%s15763_s2 + $0x6] ss:$8 sm:$0x3] }
 0x308   :  { %10185 = vmatprep.subr.bf16.mxu1 %v10184_v16 }
 0x309   :  { %v10192_v17 = vpack.c.bf16 %v16158_v42, %v16156_v3  ;;  %16169 = vst [vmem:[#allocation28_spill] sm:$0xff] %v12695_v38  ;;  %v12736_v3 = vsub.f32 %v12562_v56, %v3783_v47  ;;  %16177 = vst [vmem:[#allocation9_spill] sm:$0xff] %v12739_v63 }
 0x30a   :  { %9792 = vmatmul.mubr.f32.gmra.mrb[6].mxu1 %v1442_v33 }
 0x30b   :  { %10187 = vmatpush3.bf16.msra.mxu1 %v10184_v16  ;;  %9818 = vmatprep.mubr.f32.mxu1 %v12282_v46  ;;  %v15842_v16 = vand.u32 4294901760, %v12704_v44  ;;  %16176 = vst [vmem:[#allocation8_spill] sm:$0xff] %v12736_v3 }
 0x30c   :  { %10189 = vmatprep.subr.bf16.mxu1 %v10188_v31 }
 0x30d   :  { %v12719_v1 = vpack.c.bf16 %v15841_v7, %v15842_v16 }
 0x30f   :  { %10191 = vmatpush3.bf16.msra.mxu1 %v10188_v31  ;;  %16173 = vst [vmem:[#allocation33_spill] sm:$0xff] %v12719_v1  ;;  %v15840_v31 = vand.u32 4294901760, %v12724_v10 }
 0x310   :  { %10193 = vmatprep.subr.bf16.mxu1 %v10192_v17 }
 0x311   :  { %v12745_v42 = vpack.c.bf16 %v15839_v0, %v15840_v31 }
 0x313   :  { %10195 = vmatpush3.bf16.msra.mxu1 %v10192_v17  ;;  %16178 = vst [vmem:[#allocation10_spill] sm:$0xff] %v12745_v42  ;;  %v12750_v17 = vld [vmem:[%s15763_s2 + $0x2b0] sm:$0xff] }
 0x314   :  { %10197 = vmatprep.subr.bf16.mxu1 %v16129_v32  ;;  %16179 = vst [vmem:[#allocation13_spill] sm:$0xff] %v12750_v17 }
 0x316   :  { %9819 = vmatmul.mubr.f32.vlgmr.msra.gmra.mrb[0].mxu1 %v12266_v49 }
 0x317   :  { %9821 = vmatprep.mubr.f32.mxu1 %v12287_v14  ;;  %10199 = vmatpush3.bf16.msra.mxu1 %v16129_v32  ;;  %v12621_v32 = vld [vmem:[%s15763_s2 + $0x200] sm:$0xff] }
 0x318   :  { %10201 = vmatprep.subr.bf16.mxu1 %v16130_v24 }
 0x31a   :  { %9822 = vmatmul.mubr.f32.gmra.mrb[2].mxu1 %v12284_v41 }
 0x31b   :  { %9824 = vmatprep.mubr.f32.mxu1 %v12335_v13  ;;  %10203 = vmatpush3.bf16.msra.mxu1 %v16130_v24  ;;  %v3801_v24 = vand.u32 4294901760, %v12616_v50 }
 0x31c   :  { %10205 = vmatprep.subr.bf16.mxu1 %v16131_v57 }
 0x31e   :  { %9825 = vmatmul.mubr.f32.gmra.mrb[4].mxu1 %v12329_v19 }
 0x31f   :  { %9827 = vmatprep.mubr.f32.mxu1 %v12373_v45  ;;  %10207 = vmatpush3.bf16.msra.mxu1 %v16131_v57  ;;  %v3804_v57 = vand.u32 4294901760, %v12621_v32 }
 0x320   :  { %10209 = vmatprep.subr.bf16.mxu1 %v16132_v23 }
 0x322   :  { %9828 = vmatmul.mubr.f32.gmra.mrb[6].mxu1 %v12348_v59 }
 0x323   :  { %10211 = vmatpush3.bf16.msra.mxu1 %v16132_v23  ;;  %9854 = vmatprep.mubr.f32.mxu1 %v12282_v46  ;;  %v15836_v46 = vmov 0.0|0.0   ;;  %v12631_v23 = vpack.c.bf16 %v3804_v57, %v3801_v24 }
 0x324   :  { %10213 = vmatprep.subr.bf16.mxu1 %v16133_v20 }
 0x325   :  { %16164 = vst [vmem:[#allocation32_spill] sm:$0xff] %v12631_v23 }
 0x327   :  { %10215 = vmatpush3.bf16.msra.mxu1 %v16133_v20  ;;  %v12636_v20 = vld [vmem:[%s15763_s2 + $0x210] sm:$0xff] }
 0x328   :  { %10217 = vmatprep.subr.bf16.mxu1 %v16134_v62  ;;  %v3807_v60 = vand.u32 4294901760, %v12636_v20 }
 0x32b   :  { %10219 = vmatpush3.bf16.msra.mxu1 %v16134_v62  ;;  %v12641_v62 = vld [vmem:[%s15763_s2 + $0x220] sm:$0xff] }
 0x32c   :  { %10220 = vmatprep.subr.bf16.mxu1 %v15836_v46  ;;  %v3810_v9 = vand.u32 4294901760, %v12641_v62 }
 0x32e   :  { %9855 = vmatmul.mubr.f32.vlgmr.msra.gmra.mrb[0].mxu1 %v12266_v49  ;;  %v47_v49 = vld [vmem:[%s15763_s2 + $0x160] sm:$0xff]  ;;  %v12651_v30 = vpack.c.bf16 %v3810_v9, %v3807_v60  ;;  %v12846_v31 = vsub.f32 %v12641_v62, %v3810_v9 }
 0x32f   :  { %9857 = vmatprep.mubr.f32.mxu1 %v12287_v14  ;;  %v3774_v14 = vand.u32 4294901760, %v47_v49 }
 0x330   :  { %16165 = vst [vmem:[#allocation24_spill] sm:$0xff] %v12651_v30  ;;  %16192 = vst [vmem:[#allocation38_spill] sm:$0xff] %v12846_v31 }
 0x331   :  { %v12655_v12 = vsub.f32 %v47_v49, %v3774_v14  ;;  %v15838_v49 = vand.u32 4294901760, %v12750_v17 }
 0x332   :  { %9858 = vmatmul.mubr.f32.gmra.mrb[2].mxu1 %v12284_v41  ;;  %v3771_v41 = vand.u32 4294901760, %v46_v48 }
 0x333   :  { %9860 = vmatprep.mubr.f32.mxu1 %v12335_v13  ;;  %16167 = vst [vmem:[#allocation27_spill] sm:$0xff] %v12655_v12 }
 0x334   :  { %v12545_v13 = vpack.c.bf16 %v3774_v14, %v3771_v41  ;;  %v12653_v61 = vsub.f32 %v46_v48, %v3771_v41  ;;  %v12755_v48 = vld [vmem:[%s15763_s2 + $0x2c0] sm:$0xff]  ;;  %v2438_v14 = vlaneseq }
 0x335   :  { %16180 = vst [vmem:[#allocation11_spill] sm:$0xff] %v12755_v48  ;;  %v15835_v41 = vand.u32 4294901760, %v12755_v48 }
 0x336   :  { %9861 = vmatmul.mubr.f32.gmra.mrb[4].mxu1 %v12329_v19  ;;  %16159 = vst [vmem:[#allocation5_spill] sm:$0xff] %v12545_v13  ;;  %v48_v19 = vld [vmem:[%s15763_s2 + $0x170] sm:$0xff]  ;;  %16166 = vst [vmem:[#allocation34_spill] sm:$0xff] %v12653_v61 }
 0x337   :  { %9863 = vmatprep.mubr.f32.mxu1 %v12373_v45  ;;  %10222 = vmatpush1.bf16.msra.mxu1 %v12545_v13  ;;  %v3777_v45 = vand.u32 4294901760, %v48_v19 }
 0x338   :  { %10223 = vmatprep.subr.bf16.mxu1 %v15836_v46 }
 0x339   :  { %v12697_v34 = vsub.f32 %v48_v19, %v3777_v45  ;;  %v12765_v19 = vpack.c.bf16 %v15835_v41, %v15838_v49 }
 0x33a   :  { %9864 = vmatmul.mubr.f32.gmra.mrb[6].mxu1 %v12348_v59  ;;  %v49_v59 = vld [vmem:[%s15763_s2 + $0x180] sm:$0xff] }
 0x33b   :  { %v3780_v33 = vand.u32 4294901760, %v49_v59  ;;  %16170 = vst [vmem:[#allocation36_spill] sm:$0xff] %v12697_v34  ;;  %16181 = vst [vmem:[#allocation12_spill] sm:$0xff] %v12765_v19  ;;  %v16193_v21 = vand.u32 4294901760, %v12697_v34 }
 0x33d   :  { %v12555_v37 = vpack.c.bf16 %v3780_v33, %v3777_v45  ;;  %v12699_v22 = vsub.f32 %v49_v59, %v3780_v33  ;;  %v12769_v59 = vshrl.u32 %v2438_v14, 7  ;;  %v12774_v45 = vsub.f32 %v12578_v53, %v3789_v18 }
 0x33e   :  { %v12779_v33 = vsub.f32 %v12583_v29, %v3792_v43  ;;  %v12796_v53 = vsub.f32 %v12598_v54, %v3795_v40  ;;  %v12801_v29 = vsub.f32 %v12603_v52, %v3798_v55  ;;  %v12817_v54 = vsub.f32 %v12621_v32, %v3804_v57 }
 0x33f   :  { %16160 = vst [vmem:[#allocation30_spill] sm:$0xff] %v12555_v37  ;;  %10225 = vmatpush1.bf16.msra.mxu1 %v12555_v37  ;;  %16171 = vst [vmem:[#allocation31_spill] sm:$0xff] %v12699_v22  ;;  %v12782_v56 = vsub.s32 0, %v12769_v59  ;;  %v12788_v47 = vsub.s32 1, %v12769_v59  ;;  %v12837_v57 = vsub.f32 %v12636_v20, %v3807_v60 }
 0x340   :  { %10226 = vmatprep.subr.bf16.mxu1 %v15836_v46  ;;  %16182 = vst [vmem:[#allocation14_spill] sm:$0xff] %v12769_v59  ;;  %16183 = vst [vmem:[#allocation15_spill] sm:$0xff] %v12774_v45 }
 0x341   :  { %16184 = vst [vmem:[#allocation16_spill] sm:$0xff] %v12779_v33  ;;  %16185 = vst [vmem:[#allocation17_spill] sm:$0xff] %v12782_v56  ;;  %v12791_v25 = vrot.slane %v9246_v27, %v12782_v56  ;;  %v12804_v18 = vrot.slane %v9246_v27, %v12788_v47 }
 0x342   :  { %16186 = vst [vmem:[#allocation19_spill] sm:$0xff] %v12788_v47  ;;  %16187 = vst [vmem:[#allocation20_spill] sm:$0xff] %v12796_v53 }
 0x343   :  { %10228 = vmatpush1.bf16.msra.mxu1 %v12571_v15  ;;  %16188 = vst [vmem:[#allocation22_spill] sm:$0xff] %v12801_v29  ;;  %16190 = vst [vmem:[#allocation25_spill] sm:$0xff] %v12817_v54 }
 0x344   :  { %10229 = vmatprep.subr.bf16.mxu1 %v15836_v46  ;;  %16191 = vst [vmem:[#allocation26_spill] sm:$0xff] %v12837_v57 }
 0x347   :  { %10231 = vmatpush1.bf16.msra.mxu1 %v12591_v5 }
 0x348   :  { %10232 = vmatprep.subr.bf16.mxu1 %v15836_v46 }
 0x34b   :  { %10234 = vmatpush1.bf16.msra.mxu1 %v12611_v2 }
 0x34c   :  { %10235 = vmatprep.subr.bf16.mxu1 %v15836_v46 }
 0x34f   :  { %10237 = vmatpush1.bf16.msra.mxu1 %v12631_v23 }
 0x350   :  { %10238 = vmatprep.subr.bf16.mxu1 %v15836_v46 }
 0x353   :  { %10240 = vmatpush1.bf16.msra.mxu1 %v12651_v30 }
 0x354   :  { %10241 = vmatprep.subr.bf16.mxu1 %v15836_v46 }
 0x357   :  { %10243 = vmatpush1.bf16.msra.mxu1 %v12675_v6  ;;  %v16194_v6 = vand.u32 4294901760, %v12699_v22 }
 0x358   :  { %10244 = vmatprep.subr.bf16.mxu1 %v15836_v46 }
 0x35b   :  { %10246 = vmatpush1.bf16.msra.mxu1 %v12695_v38 }
 0x35c   :  { %10247 = vmatprep.subr.bf16.mxu1 %v15836_v46 }
 0x35f   :  { %10249 = vmatpush1.bf16.msra.mxu1 %v12719_v1 }
 0x360   :  { %10250 = vmatprep.subr.bf16.mxu1 %v15836_v46 }
 0x363   :  { %10252 = vmatpush1.bf16.msra.mxu1 %v12745_v42 }
 0x364   :  { %10253 = vmatprep.subr.bf16.mxu1 %v15836_v46 }
 0x367   :  { %10255 = vmatpush1.bf16.msra.mxu1 %v12765_v19 }
 0x368   :  { %10256 = vmatprep.subr.bf16.mxu1 %v15836_v46  ;;  %v12812_v46 = vsub.f32 %v12616_v50, %v3801_v24  ;;  %v15859_v50 = vand.u32 4294901760, %v12655_v12 }
 0x36a   :  { %16189 = vst [vmem:[#allocation23_spill] sm:$0xff] %v12812_v46  ;;  %v3990_v60 = vsub.f32 %v12655_v12, %v15859_v50 }
 0x3b8   :  { %v3259_v43 = vpop.f32.mrb[8].mxu0 }
 0x3b9   :  { %v12807_v14 = vadd.f32 %v3259_v43, %v12791_v25  ;;  %v3261_v41 = vpop.f32.mrb[9].mxu0  ;;  %v15854_v43 = vand.u32 4294901760, %v12653_v61 }
 0x3ba   :  { %v12820_v52 = vadd.f32 %v3261_v41, %v12804_v18 }
 0x3bb   :  { %v12823_v40 = vmul.f32 0.70710677, %v12807_v14  ;;  %v3983_v20 = vsub.f32 %v12653_v61, %v15854_v43 }
 0x3bc   :  { %v12826_v55 = vmul.f32 0.70710677, %v12820_v52  ;;  %v3266_v27 = vpop.f32.mrb[10].mxu0 }
 0x3bd   :  { %v3345_v24 = vand.u32 2147483647, %v12823_v40  ;;  %v12832_v49 = vadd.f32 %v3266_v27, %v12791_v25  ;;  %v3268_v32 = vpop.f32.mrb[11].mxu0  ;;  %v3984_v50 = vand.u32 4294901760, %v3983_v20  ;;  %vm3665_vm12 = vcmp.ge.f32.partialorder %v12823_v40, 0.0 }
 0x3be   :  { %v3346_v41 = vand.u32 2147483647, %v12826_v55  ;;  %v12841_v0 = vadd.f32 %v3268_v32, %v12804_v18  ;;  %vm3666_vm13 = vcmp.ge.f32.partialorder %v12826_v55, 0.0 }
 0x3bf   :  { %v3361_v7 = vmul.f32 0.3275911, %v3345_v24  ;;  %v12849_v27 = vmul.f32 0.70710677, %v12832_v49  ;;  %v3569_v8 = vsub.f32 0.0, %v3345_v24 }
 0x3c0   :  { %v3362_v16 = vmul.f32 0.3275911, %v3346_v41  ;;  %v12852_v28 = vmul.f32 0.70710677, %v12841_v0  ;;  %v3273_v9 = vpop.f32.mrb[12].mxu0  ;;  %v3570_v58 = vsub.f32 0.0, %v3346_v41 }
 0x3c1   :  { %v3377_v32 = vadd.f32 1.0, %v3361_v7  ;;  %v3347_v62 = vand.u32 2147483647, %v12849_v27  ;;  %v3275_v56 = vpop.f32.mrb[13].mxu0  ;;  %v3991_v7 = vand.u32 4294901760, %v3990_v60  ;;  %v12865_v38 = vadd.f32 %v3273_v9, %v12791_v25 }
 0x3c2   :  { %v3378_v59 = vadd.f32 1.0, %v3362_v16  ;;  %v3348_v47 = vand.u32 2147483647, %v12852_v28  ;;  %v3997_v16 = vsub.f32 %v12697_v34, %v16193_v21  ;;  %v3585_v30 = vmul.f32 %v3569_v8, %v3345_v24 }
 0x3c3   :  { %11265 = vrcp.f32 %v3377_v32  ;;  %v3363_v43 = vmul.f32 0.3275911, %v3347_v62  ;;  %v4004_v32 = vsub.f32 %v12699_v22, %v16194_v6  ;;  %v3586_v20 = vmul.f32 %v3570_v58, %v3346_v41 }
 0x3c4   :  { %11267 = vrcp.f32 %v3378_v59  ;;  %v3364_v19 = vmul.f32 0.3275911, %v3348_v47  ;;  %v3280_v42 = vpop.f32.mrb[14].mxu0  ;;  %v12874_v59 = vadd.f32 %v3275_v56, %v12804_v18  ;;  %v12877_v60 = vmul.f32 0.70710677, %v12865_v38 }
 0x3c5   :  { %v3379_v1 = vadd.f32 1.0, %v3363_v43  ;;  %v3282_v36 = vpop.f32.mrb[15].mxu0  ;;  %v3571_v43 = vsub.f32 0.0, %v3347_v62  ;;  %v12884_v2 = vpack.c.bf16 %v3991_v7, %v3984_v50  ;;  %v12888_v6 = vadd.f32 %v3280_v42, %v12791_v25 }
 0x3c6   :  { %v3380_v23 = vadd.f32 1.0, %v3364_v19  ;;  %v12880_v9 = vmul.f32 0.70710677, %v12874_v59  ;;  %v3349_v8 = vand.u32 2147483647, %v12877_v60  ;;  %v3998_v58 = vand.u32 4294901760, %v3997_v16 }
 0x3c7   :  { %11269 = vrcp.f32 %v3379_v1  ;;  %16195 = vst [vmem:[#allocation39_spill] sm:$0xff] %v12884_v2  ;;  %v4005_v1 = vand.u32 4294901760, %v4004_v32  ;;  %v3601_v56 = vmul.f32 1.442695, %v3585_v30  ;;  %v3572_v24 = vsub.f32 0.0, %v3348_v47 }
 0x3c8   :  { %11271 = vrcp.f32 %v3380_v23  ;;  %v12882_v21 = vpop.f32.mrb[16].mxu0  ;;  %v3350_v23 = vand.u32 2147483647, %v12880_v9  ;;  %v12894_v41 = vadd.f32 %v3282_v36, %v12804_v18  ;;  %v3603_v5 = vmul.f32 1.442695, %v3586_v20 }
 0x3c9   :  { %v12890_v19 = vpop.f32.mrb[17].mxu0  ;;  %v3587_v15 = vmul.f32 %v3571_v43, %v3347_v62  ;;  %v3365_v50 = vmul.f32 0.3275911, %v3349_v8  ;;  %v12897_v7 = vmul.f32 0.70710677, %v12888_v6  ;;  %v12900_v42 = vmul.f32 0.5, %v12807_v14 }
 0x3ca   :  { %v3573_v37 = vsub.f32 0.0, %v3349_v8  ;;  %v3366_v13 = vmul.f32 0.3275911, %v3350_v23  ;;  %v12903_v16 = vmul.f32 0.70710677, %v12894_v41  ;;  %v12908_v32 = vmul.f32 0.5, %v12820_v52 }
 0x3cb   :  { %v3381_v36 = vadd.f32 1.0, %v3365_v50  ;;  %v3574_v20 = vsub.f32 0.0, %v3350_v23  ;;  %v3351_v62 = vand.u32 2147483647, %v12897_v7  ;;  %v3588_v34 = vmul.f32 %v3572_v24, %v3348_v47 }
 0x3cc   :  { %v12911_v43 = vpop.f32.mrb[18].mxu0  ;;  %v3382_v12 = vadd.f32 1.0, %v3366_v13  ;;  %v12917_v61 = vand.u32 2147483647, %v12903_v16  ;;  %v3605_v57 = vmul.f32 1.442695, %v3587_v15  ;;  %v3589_v46 = vmul.f32 %v3573_v37, %v3349_v8 }
 0x3cd   :  { %v12905_v30 = vpop.eup %11265  ;;  %v12919_v31 = vpop.f32.mrb[19].mxu0  ;;  %11273 = vrcp.f32 %v3381_v36  ;;  %v3367_v50 = vmul.f32 0.3275911, %v3351_v62  ;;  %v3575_v29 = vsub.f32 0.0, %v3351_v62  ;;  %v12929_v63 = vpack.c.bf16 %v4005_v1, %v3998_v58 }
 0x3ce   :  { %v12913_v22 = vpop.eup %11267  ;;  %v3425_v14 = vmul.f32 1.0614054, %v12905_v30  ;;  %11275 = vrcp.f32 %v3382_v12  ;;  %v3368_v24 = vmul.f32 0.3275911, %v12917_v61  ;;  %v3607_v12 = vmul.f32 1.442695, %v3588_v34 }
 0x3cf   :  { %v3426_v52 = vmul.f32 1.0614054, %v12913_v22  ;;  %v3383_v13 = vadd.f32 1.0, %v3367_v50  ;;  %16196 = vst [vmem:[#allocation40_spill] sm:$0xff] %v12929_v63  ;;  %v3590_v8 = vmul.f32 %v3574_v20, %v3350_v23  ;;  %v3609_v17 = vmul.f32 1.442695, %v3589_v46 }
 0x3d0   :  { %v3441_v54 = vadd.f32 -1.4531521, %v3425_v14  ;;  %v12922_v53 = vpop.f32.mrb[20].mxu0  ;;  %v3591_v63 = vmul.f32 %v3575_v29, %v3351_v62  ;;  %vm3667_vm14 = vcmp.ge.f32.partialorder %v12849_v27, 0.0  ;;  %vm3668_vm3 = vcmp.ge.f32.partialorder %v12852_v28, 0.0 }
 0x3d1   :  { %v12924_v33 = vpop.eup %11269  ;;  %v3442_v47 = vadd.f32 -1.4531521, %v3426_v52  ;;  %v12927_v45 = vpop.f32.mrb[21].mxu0  ;;  %11277 = vrcp.f32 %v3383_v13  ;;  %v3384_v52 = vadd.f32 1.0, %v3368_v24  ;;  %v3611_v23 = vmul.f32 1.442695, %v3590_v8 }
 0x3d2   :  { %v12931_v3 = vpop.eup %11271  ;;  %v3457_v15 = vmul.f32 %v12905_v30, %v3441_v54  ;;  %v3427_v37 = vmul.f32 1.0614054, %v12924_v33  ;;  %11279 = vpow2.f32 %v3601_v56  ;;  %v12945_v56 = vmul.f32 0.5, %v12832_v49 }
 0x3d3   :  { %v3458_v36 = vmul.f32 %v12913_v22, %v3442_v47  ;;  %v3428_v14 = vmul.f32 1.0614054, %v12931_v3  ;;  %11281 = vrcp.f32 %v3384_v52  ;;  %v12949_v13 = vmul.f32 0.5, %v12841_v0 }
 0x3d4   :  { %v3473_v50 = vadd.f32 1.4214138, %v3457_v15  ;;  %v3443_v48 = vadd.f32 -1.4531521, %v3427_v37  ;;  %v12937_v2 = vpop.f32.mrb[22].mxu0  ;;  %11283 = vpow2.f32 %v3603_v5  ;;  %vm3669_vm4 = vcmp.ge.f32.partialorder %v12877_v60, 0.0 }
 0x3d5   :  { %v3474_v58 = vadd.f32 1.4214138, %v3458_v36  ;;  %v3444_v1 = vadd.f32 -1.4531521, %v3428_v14  ;;  %v12941_v20 = vpop.f32.mrb[23].mxu0  ;;  %11285 = vpow2.f32 %v3605_v57  ;;  %v3576_v14 = vsub.f32 0.0, %v12917_v61 }
 0x3d6   :  { %v3489_v54 = vmul.f32 %v12905_v30, %v3473_v50  ;;  %v3459_v34 = vmul.f32 %v12924_v33, %v3443_v48  ;;  %11287 = vpow2.f32 %v3607_v12  ;;  %v3613_v15 = vmul.f32 1.442695, %v3591_v63 }
 0x3d7   :  { %v3490_v47 = vmul.f32 %v12913_v22, %v3474_v58  ;;  %v3460_v46 = vmul.f32 %v12931_v3, %v3444_v1  ;;  %v12951_v5 = vpop.eup %11273  ;;  %11289 = vpow2.f32 %v3609_v17  ;;  %v12964_v50 = vadd.f32 %v12882_v21, %v12791_v25 }
 0x3d8   :  { %v3505_v29 = vadd.f32 -0.28449672, %v3489_v54  ;;  %v3475_v62 = vadd.f32 1.4214138, %v3459_v34  ;;  %v12953_v37 = vpop.eup %11275  ;;  %v3429_v8 = vmul.f32 1.0614054, %v12951_v5  ;;  %11291 = vpow2.f32 %v3611_v23 }
 0x3d9   :  { %v3506_v48 = vadd.f32 -0.28449672, %v3490_v47  ;;  %v3476_v24 = vadd.f32 1.4214138, %v3460_v46  ;;  %v3430_v12 = vmul.f32 1.0614054, %v12953_v37  ;;  %11293 = vpow2.f32 %v3613_v15 }
 0x3da   :  { %v3521_v49 = vmul.f32 %v12905_v30, %v3505_v29  ;;  %v3491_v57 = vmul.f32 %v12924_v33, %v3475_v62  ;;  %v3445_v63 = vadd.f32 -1.4531521, %v3429_v8  ;;  %v3592_v15 = vmul.f32 %v3576_v14, %v12917_v61 }
 0x3db   :  { %v3522_v36 = vmul.f32 %v12913_v22, %v3506_v48  ;;  %v3492_v0 = vmul.f32 %v12931_v3, %v3476_v24  ;;  %v12966_v58 = vpop.eup %11277  ;;  %v3446_v34 = vadd.f32 -1.4531521, %v3430_v12  ;;  %vm3670_vm5 = vcmp.ge.f32.partialorder %v12880_v9, 0.0 }
 0x3dc   :  { %v3537_v52 = vadd.f32 0.2548296, %v3521_v49  ;;  %v3507_v17 = vadd.f32 -0.28449672, %v3491_v57  ;;  %v11280_v23 = vpop.eup %11279  ;;  %v3461_v29 = vmul.f32 %v12951_v5, %v3445_v63  ;;  %v3431_v62 = vmul.f32 1.0614054, %v12966_v58 }
 0x3dd   :  { %v3538_v1 = vadd.f32 0.2548296, %v3522_v36  ;;  %v3508_v54 = vadd.f32 -0.28449672, %v3492_v0  ;;  %v12973_v48 = vpop.eup %11281  ;;  %v3462_v49 = vmul.f32 %v12953_v37, %v3446_v34  ;;  %v13035_v9 = vmul.f32 0.5, %v12894_v41 }
 0x3de   :  { %v3553_v47 = vmul.f32 %v12905_v30, %v3537_v52  ;;  %v3523_v46 = vmul.f32 %v12924_v33, %v3507_v17  ;;  %v11284_v57 = vpop.eup %11283  ;;  %v3477_v36 = vadd.f32 1.4214138, %v3461_v29  ;;  %v3447_v0 = vadd.f32 -1.4531521, %v3431_v62 }
 0x3df   :  { %v3554_v21 = vmul.f32 %v12913_v22, %v3538_v1  ;;  %v3524_v24 = vmul.f32 %v12931_v3, %v3508_v54  ;;  %v11286_v12 = vpop.eup %11285  ;;  %v3478_v63 = vadd.f32 1.4214138, %v3462_v49  ;;  %v3432_v39 = vmul.f32 1.0614054, %v12973_v48 }
 0x3e0   :  { %v3633_v30 = vmul.f32 %v11280_v23, %v3553_v47  ;;  %v3539_v8 = vadd.f32 0.2548296, %v3523_v46  ;;  %v11288_v22 = vpop.eup %11287  ;;  %v3493_v54 = vmul.f32 %v12951_v5, %v3477_v36  ;;  %v3463_v34 = vmul.f32 %v12966_v58, %v3447_v0 }
 0x3e1   :  { %v3634_v52 = vmul.f32 %v11284_v57, %v3554_v21  ;;  %v3540_v17 = vadd.f32 0.2548296, %v3524_v24  ;;  %v11290_v61 = vpop.eup %11289  ;;  %v3494_v47 = vmul.f32 %v12953_v37, %v3478_v63  ;;  %v3448_v46 = vadd.f32 -1.4531521, %v3432_v39 }
 0x3e2   :  { %v3649_v1 = vsub.f32 1.0, %v3633_v30  ;;  %v3555_v10 = vmul.f32 %v12924_v33, %v3539_v8  ;;  %v11292_v29 = vpop.eup %11291  ;;  %v3509_v24 = vadd.f32 -0.28449672, %v3493_v54  ;;  %v3479_v49 = vadd.f32 1.4214138, %v3463_v34 }
 0x3e3   :  { %v3650_v14 = vsub.f32 1.0, %v3634_v52  ;;  %v3556_v23 = vmul.f32 %v12931_v3, %v3540_v17  ;;  %v3510_v11 = vadd.f32 -0.28449672, %v3494_v47  ;;  %v12987_v33 = vmul.f32 0.70710677, %v12964_v50 }
 0x3e4   :  { %v3681_v62 = vsub.f32 0.0, %v3649_v1  ;;  %v3635_v21 = vmul.f32 %v11286_v12, %v3555_v10  ;;  %v3525_v3 = vmul.f32 %v12951_v5, %v3509_v24  ;;  %v3495_v39 = vmul.f32 %v12966_v58, %v3479_v49  ;;  %v11294_v10 = vpop.eup %11293 }
 0x3e5   :  { %v3682_v57 = vsub.f32 0.0, %v3650_v14  ;;  %v3636_v30 = vmul.f32 %v11288_v22, %v3556_v23  ;;  %v3464_v36 = vmul.f32 %v12973_v48, %v3448_v46  ;;  %v3526_v17 = vmul.f32 %v12953_v37, %v3510_v11 }
 0x3e6   :  { %v3697_v8 = vsel %vm3665_vm12, %v3649_v1, %v3681_v62  ;;  %v3651_v12 = vsub.f32 1.0, %v3635_v21  ;;  %v3541_v40 = vadd.f32 0.2548296, %v3525_v3  ;;  %v3511_v22 = vadd.f32 -0.28449672, %v3495_v39 }
 0x3e7   :  { %v3713_v0 = vadd.f32 1.0, %v3697_v8  ;;  %v3652_v52 = vsub.f32 1.0, %v3636_v30  ;;  %v3698_v63 = vsel %vm3666_vm13, %v3650_v14, %v3682_v57  ;;  %v3542_v34 = vadd.f32 0.2548296, %v3526_v17 }
 0x3e8   :  { %v3615_v23 = vmul.f32 1.442695, %v3592_v15  ;;  %v3557_v47 = vmul.f32 %v12951_v5, %v3541_v40  ;;  %v3527_v46 = vmul.f32 %v12966_v58, %v3511_v22  ;;  %v3480_v62 = vadd.f32 1.4214138, %v3464_v36 }
 0x3e9   :  { %v3729_v1 = vmul.f32 %v3713_v0, %v12900_v42  ;;  %v3684_v54 = vsub.f32 0.0, %v3652_v52  ;;  %v13003_v11 = vand.u32 2147483647, %v12987_v33  ;;  %v3714_v55 = vadd.f32 1.0, %v3698_v63 }
 0x3ea   :  { %v3683_v14 = vsub.f32 0.0, %v3651_v12  ;;  %v3317_v21 = vmul.f32 0.5, %v12865_v38  ;;  %v3558_v24 = vmul.f32 %v12953_v37, %v3542_v34  ;;  %v3637_v15 = vmul.f32 %v11290_v61, %v3557_v47 }
 0x3eb   :  { %v13007_v49 = vand.u32 4294901760, %v3729_v1  ;;  %v3700_v42 = vsel %vm3668_vm3, %v3652_v52, %v3684_v54  ;;  %v3543_v57 = vadd.f32 0.2548296, %v3527_v46  ;;  %v3318_v5 = vmul.f32 0.5, %v12874_v59 }
 0x3ec   :  { %v3638_v30 = vmul.f32 %v11292_v29, %v3558_v24  ;;  %11295 = vpow2.f32 %v3615_v23  ;;  %v3653_v8 = vsub.f32 1.0, %v3637_v15  ;;  %v3496_v38 = vmul.f32 %v12973_v48, %v3480_v62 }
 0x3ed   :  { %16197 = vst [vmem:[#allocation41_spill] sm:$0xff] %v13007_v49  ;;  %v3559_v3 = vmul.f32 %v12966_v58, %v3543_v57  ;;  %v3369_v37 = vmul.f32 0.3275911, %v13003_v11  ;;  %v3730_v39 = vmul.f32 %v3714_v55, %v12908_v32  ;;  %v3699_v28 = vsel %vm3667_vm14, %v3651_v12, %v3683_v14 }
 0x3ee   :  { %v3716_v61 = vadd.f32 1.0, %v3700_v42  ;;  %v3654_v36 = vsub.f32 1.0, %v3638_v30  ;;  %v13020_v0 = vsub.f32 %v3729_v1, %v13007_v49  ;;  %v3685_v59 = vsub.f32 0.0, %v3653_v8 }
 0x3ef   :  { %v3639_v29 = vmul.f32 %v11294_v10, %v3559_v3  ;;  %v3512_v52 = vadd.f32 -0.28449672, %v3496_v38  ;;  %v13024_v17 = vmul.f32 0.5, %v12888_v6  ;;  %v13028_v32 = vadd.f32 %v12890_v19, %v12804_v18 }
 0x3f0   :  { %16198 = vst [vmem:[#allocation42_spill] sm:$0xff] %v13020_v0  ;;  %v3686_v58 = vsub.f32 0.0, %v3654_v36  ;;  %v3701_v27 = vsel %vm3669_vm4, %v3653_v8, %v3685_v59  ;;  %v3385_v40 = vadd.f32 1.0, %v3369_v37  ;;  %v3747_v10 = vsel %vm3745_vm15, %v3730_v39, 0 }
 0x3f1   :  { %v3655_v12 = vsub.f32 1.0, %v3639_v29  ;;  %v3528_v63 = vmul.f32 %v12973_v48, %v3512_v52  ;;  %v3715_v22 = vadd.f32 1.0, %v3699_v28  ;;  %v15903_v6 = vand.u32 4294901760, %v13020_v0 }
 0x3f2   :  { %v3702_v1 = vsel %vm3670_vm5, %v3654_v36, %v3686_v58  ;;  %v3732_v54 = vmul.f32 %v3716_v61, %v12949_v13  ;;  %11297 = vrcp.f32 %v3385_v40  ;;  %v3717_v34 = vadd.f32 1.0, %v3701_v27 }
 0x3f3   :  { %v3544_v19 = vadd.f32 0.2548296, %v3528_v63  ;;  %v3718_v60 = vadd.f32 1.0, %v3702_v1  ;;  %vm3671_vm6 = vcmp.ge.f32.partialorder %v12897_v7, 0.0  ;;  %vm3672_vm7 = vcmp.ge.f32.partialorder %v12903_v16, 0.0 }
 0x3f4   :  { %v3687_v23 = vsub.f32 0.0, %v3655_v12  ;;  %v13043_v46 = vmul.f32 0.70710677, %v13028_v32  ;;  %v10810_v41 = vadd.f32 %v12911_v43, %v12791_v25  ;;  %v13047_v55 = vand.u32 4294901760, %v3747_v10 }
 0x3f5   :  { %v3560_v47 = vmul.f32 %v12973_v48, %v3544_v19  ;;  %v3731_v13 = vmul.f32 %v3715_v22, %v12945_v56  ;;  %v13051_v14 = vmul.f32 0.5, %v12964_v50  ;;  %v3577_v24 = vsub.f32 0.0, %v13003_v11 }
 0x3f6   :  { %v11296_v62 = vpop.eup %11295  ;;  %16199 = vst [vmem:[#allocation43_spill] sm:$0xff] %v13047_v55  ;;  %v13057_v48 = vsub.f32 %v13020_v0, %v15903_v6  ;;  %v3750_v42 = vsel %vm3745_vm15, %v3732_v54, 0  ;;  %v3354_v43 = vand.u32 2147483647, %v13043_v46  ;;  %v3733_v57 = vmul.f32 %v3717_v34, %v3317_v21 }
 0x3f7   :  { %v3640_v15 = vmul.f32 %v11296_v62, %v3560_v47  ;;  %v3734_v30 = vmul.f32 %v3718_v60, %v3318_v5  ;;  %v13063_v56 = vadd.f32 %v12919_v31, %v12804_v18  ;;  %v13067_v50 = vadd.f32 %v12922_v53, %v12791_v25 }
 0x3f8   :  { %v3703_v8 = vsel %vm3671_vm6, %v3655_v12, %v3687_v23  ;;  %v3370_v38 = vmul.f32 0.3275911, %v3354_v43  ;;  %v13071_v37 = vmul.f32 0.70710677, %v10810_v41  ;;  %v13074_v39 = vsub.f32 %v3747_v10, %v13047_v55 }
 0x3f9   :  { %v3656_v3 = vsub.f32 1.0, %v3640_v15  ;;  %v13076_v21 = vand.u32 4294901760, %v3731_v13  ;;  %v13078_v5 = vand.u32 4294901760, %v3750_v42  ;;  %v3593_v31 = vmul.f32 %v3577_v24, %v13003_v11 }
 0x3fa   :  { %16200 = vst [vmem:[#allocation44_spill] sm:$0xff] %v13074_v39  ;;  %v3386_v61 = vadd.f32 1.0, %v3370_v38  ;;  %v3355_v7 = vand.u32 2147483647, %v13071_v37  ;;  %v13083_v36 = vand.u32 4294901760, %v3733_v57  ;;  %v3753_v59 = vsel %vm3745_vm15, %v3734_v30, 0 }
 0x3fb   :  { %16201 = vst [vmem:[#allocation45_spill] sm:$0xff] %v13076_v21  ;;  %16202 = vst [vmem:[#allocation46_spill] sm:$0xff] %v13078_v5  ;;  %v3688_v53 = vsub.f32 0.0, %v3656_v3  ;;  %v3719_v29 = vadd.f32 1.0, %v3703_v8  ;;  %v13087_v52 = vmul.f32 0.70710677, %v13063_v56  ;;  %v13094_v63 = vsub.f32 %v3731_v13, %v13076_v21 }
 0x3fc   :  { %16203 = vst [vmem:[#allocation47_spill] sm:$0xff] %v13083_v36  ;;  %v13089_v58 = vpop.eup %11297  ;;  %11299 = vrcp.f32 %v3386_v61  ;;  %v3578_v11 = vsub.f32 0.0, %v3354_v43  ;;  %v3371_v12 = vmul.f32 0.3275911, %v3355_v7  ;;  %v3617_v10 = vmul.f32 1.442695, %v3593_v31 }
 0x3fd   :  { %v3704_v27 = vsel %vm3672_vm7, %v3656_v3, %v3688_v53  ;;  %16204 = vst [vmem:[#allocation48_spill] sm:$0xff] %v13094_v63  ;;  %v3433_v40 = vmul.f32 1.0614054, %v13089_v58  ;;  %v3356_v22 = vand.u32 2147483647, %v13087_v52  ;;  %v3579_v19 = vsub.f32 0.0, %v3355_v7 }
 0x3fe   :  { %v3720_v1 = vadd.f32 1.0, %v3704_v27  ;;  %v3387_v54 = vadd.f32 1.0, %v3371_v12  ;;  %v13099_v34 = vmul.f32 0.70710677, %v13067_v50  ;;  %v13102_v16 = vsub.f32 %v3750_v42, %v13078_v5 }
 0x3ff   :  { %v3449_v60 = vadd.f32 -1.4531521, %v3433_v40  ;;  %v13105_v23 = vmul.f32 0.5, %v13028_v32  ;;  %v3372_v47 = vmul.f32 0.3275911, %v3356_v22  ;;  %v3735_v13 = vmul.f32 %v3719_v29, %v13024_v17 }
 0x400   :  { %16205 = vst [vmem:[#allocation49_spill] sm:$0xff] %v13102_v16  ;;  %v3594_v24 = vmul.f32 %v3578_v11, %v3354_v43  ;;  %11301 = vrcp.f32 %v3387_v54  ;;  %v13111_v15 = vand.u32 2147483647, %v13099_v34  ;;  %v13115_v8 = vand.u32 4294901760, %v3753_v59 }
 0x401   :  { %v13107_v62 = vpop.f32.mrb[0].mxu1  ;;  %v3465_v42 = vmul.f32 %v13089_v58, %v3449_v60  ;;  %v13118_v3 = vmul.f32 0.5, %v10810_v41  ;;  %v3388_v32 = vadd.f32 1.0, %v3372_v47  ;;  %v13121_v38 = vsub.f32 %v3733_v57, %v13083_v36 }
 0x402   :  { %v13113_v30 = vpop.f32.mrb[1].mxu1  ;;  %16206 = vst [vmem:[#allocation50_spill] sm:$0xff] %v13115_v8  ;;  %v3736_v31 = vmul.f32 %v3720_v1, %v13035_v9  ;;  %v3595_v17 = vmul.f32 %v3579_v19, %v3355_v7  ;;  %v3373_v43 = vmul.f32 0.3275911, %v13111_v15  ;;  %11303 = vpow2.f32 %v3617_v10 }
 0x403   :  { %16207 = vst [vmem:[#allocation51_spill] sm:$0xff] %v13121_v38  ;;  %v3481_v53 = vadd.f32 1.4214138, %v3465_v42  ;;  %v10813_v61 = vadd.f32 %v12927_v45, %v12804_v18  ;;  %v13129_v29 = vadd.f32 %v12937_v2, %v12791_v25  ;;  %v13133_v27 = vand.u32 4294901760, %v3735_v13 }
 0x404   :  { %v3619_v57 = vmul.f32 1.442695, %v3594_v24  ;;  %11305 = vrcp.f32 %v3388_v32  ;;  %v3389_v11 = vadd.f32 1.0, %v3373_v43  ;;  %v13138_v7 = vsub.f32 %v3753_v59, %v13115_v8 }
 0x405   :  { %v13131_v41 = vpop.f32.mrb[2].mxu1  ;;  %16208 = vst [vmem:[#allocation52_spill] sm:$0xff] %v13133_v27  ;;  %v3497_v12 = vmul.f32 %v13089_v58, %v3481_v53  ;;  %v3580_v40 = vsub.f32 0.0, %v3356_v22  ;;  %v13141_v45 = vmul.f32 0.70710677, %v10813_v61  ;;  %v3756_v2 = vsel %vm3745_vm15, %v3736_v31, 0 }
 0x406   :  { %v13135_v9 = vpop.f32.mrb[3].mxu1  ;;  %16209 = vst [vmem:[#allocation53_spill] sm:$0xff] %v13138_v7  ;;  %v13143_v10 = vpop.eup %11299  ;;  %v3621_v25 = vmul.f32 1.442695, %v3595_v17  ;;  %v13147_v1 = vmul.f32 0.5, %v13063_v56  ;;  %11307 = vrcp.f32 %v3389_v11  ;;  %v13155_v60 = vadd.f32 %v12941_v20, %v12804_v18 }
 0x407   :  { %v13150_v54 = vmul.f32 0.70710677, %v13129_v29  ;;  %v3513_v19 = vadd.f32 -0.28449672, %v3497_v12  ;;  %v3434_v59 = vmul.f32 1.0614054, %v13143_v10  ;;  %v13158_v47 = vsub.f32 %v3735_v13, %v13133_v27 }
 0x408   :  { %11309 = vpow2.f32 %v3619_v57  ;;  %v3358_v24 = vand.u32 2147483647, %v13141_v45  ;;  %v13162_v42 = vand.u32 4294901760, %v3756_v2  ;;  %v3596_v17 = vmul.f32 %v3580_v40, %v3356_v22 }
 0x409   :  { %16210 = vst [vmem:[#allocation54_spill] sm:$0xff] %v13158_v47  ;;  %v3359_v56 = vand.u32 2147483647, %v13150_v54  ;;  %v3529_v32 = vmul.f32 %v13089_v58, %v3513_v19  ;;  %v3450_v31 = vadd.f32 -1.4531521, %v3434_v59  ;;  %v13165_v43 = vpop.f32.mrb[4].mxu1  ;;  %11311 = vpow2.f32 %v3621_v25 }
 0x40a   :  { %16211 = vst [vmem:[#allocation55_spill] sm:$0xff] %v13162_v42  ;;  %v13167_v53 = vpop.eup %11301  ;;  %v3581_v18 = vsub.f32 0.0, %v13111_v15  ;;  %v3374_v20 = vmul.f32 0.3275911, %v3358_v24  ;;  %v13173_v6 = vmul.f32 0.70710677, %v13155_v60 }
 0x40b   :  { %v3375_v13 = vmul.f32 0.3275911, %v3359_v56  ;;  %v3545_v57 = vadd.f32 0.2548296, %v3529_v32  ;;  %v3466_v11 = vmul.f32 %v13143_v10, %v3450_v31  ;;  %v3435_v12 = vmul.f32 1.0614054, %v13167_v53 }
 0x40c   :  { %v3390_v19 = vadd.f32 1.0, %v3374_v20  ;;  %v3582_v59 = vsub.f32 0.0, %v3358_v24  ;;  %v3583_v40 = vsub.f32 0.0, %v3359_v56  ;;  %v13175_v28 = vpop.f32.mrb[5].mxu1  ;;  %v11304_v0 = vpop.eup %11303  ;;  %v3360_v32 = vand.u32 2147483647, %v13173_v6 }
 0x40d   :  { %v3391_v22 = vadd.f32 1.0, %v3375_v13  ;;  %16212 = vst [vmem:[#allocation56_spill] sm:$0xff] %v13175_v28  ;;  %v3561_v25 = vmul.f32 %v13089_v58, %v3545_v57  ;;  %v3482_v27 = vadd.f32 1.4214138, %v3466_v11  ;;  %v3451_v36 = vadd.f32 -1.4531521, %v3435_v12 }
 0x40e   :  { %v13179_v8 = vpop.eup %11305  ;;  %v13182_v31 = vsub.f32 %v3756_v2, %v13162_v42  ;;  %v13185_v21 = vmul.f32 0.5, %v13067_v50  ;;  %v3597_v20 = vmul.f32 %v3581_v18, %v13111_v15  ;;  %11313 = vrcp.f32 %v3390_v19  ;;  %v13188_v13 = vpop.f32.mrb[6].mxu1 }
 0x40f   :  { %16214 = vst [vmem:[#allocation58_spill] sm:$0xff] %v13188_v13  ;;  %v3641_v5 = vmul.f32 %v11304_v0, %v3561_v25  ;;  %v3498_v58 = vmul.f32 %v13143_v10, %v3482_v27  ;;  %v3467_v57 = vmul.f32 %v13167_v53, %v3451_v36  ;;  %v3436_v11 = vmul.f32 1.0614054, %v13179_v8  ;;  %v13193_v12 = vpop.f32.mrb[7].mxu1 }
 0x410   :  { %16213 = vst [vmem:[#allocation57_spill] sm:$0xff] %v13182_v31  ;;  %16215 = vst [vmem:[#allocation59_spill] sm:$0xff] %v13193_v12  ;;  %v3623_v49 = vmul.f32 1.442695, %v3596_v17  ;;  %v13195_v2 = vmul.f32 0.5, %v10813_v61  ;;  %v3598_v42 = vmul.f32 %v3582_v59, %v3358_v24  ;;  %v13197_v55 = vpop.eup %11307  ;;  %vm3673_vm8 = vcmp.ge.f32.partialorder %v12987_v33, 0.0 }
 0x411   :  { %v3376_v50 = vmul.f32 0.3275911, %v3360_v32  ;;  %v3514_v15 = vadd.f32 -0.28449672, %v3498_v58  ;;  %v3483_v18 = vadd.f32 1.4214138, %v3467_v57  ;;  %11315 = vrcp.f32 %v3391_v22 }
 0x412   :  { %v3599_v0 = vmul.f32 %v3583_v40, %v3359_v56  ;;  %v11310_v27 = vpop.eup %11309  ;;  %v3657_v19 = vsub.f32 1.0, %v3641_v5  ;;  %v3452_v36 = vadd.f32 -1.4531521, %v3436_v11  ;;  %v3437_v25 = vmul.f32 1.0614054, %v13197_v55 }
 0x413   :  { %v3392_v13 = vadd.f32 1.0, %v3376_v50  ;;  %v3530_v17 = vmul.f32 %v13143_v10, %v3514_v15  ;;  %v3499_v61 = vmul.f32 %v13167_v53, %v3483_v18  ;;  %v3625_v24 = vmul.f32 1.442695, %v3597_v20  ;;  %v11312_v12 = vpop.eup %11311 }
 0x414   :  { %v3584_v59 = vsub.f32 0.0, %v3360_v32  ;;  %v3468_v47 = vmul.f32 %v13179_v8, %v3452_v36  ;;  %v3453_v28 = vadd.f32 -1.4531521, %v3437_v25  ;;  %v3627_v58 = vmul.f32 1.442695, %v3598_v42 }
 0x415   :  { %11317 = vrcp.f32 %v3392_v13  ;;  %v3546_v22 = vadd.f32 0.2548296, %v3530_v17  ;;  %v3515_v56 = vadd.f32 -0.28449672, %v3499_v61  ;;  %v13205_v5 = vmul.f32 0.5, %v13129_v29 }
 0x416   :  { %11319 = vpow2.f32 %v3623_v49  ;;  %v3689_v40 = vsub.f32 0.0, %v3657_v19  ;;  %v3484_v57 = vadd.f32 1.4214138, %v3468_v47  ;;  %v3469_v11 = vmul.f32 %v13197_v55, %v3453_v28 }
 0x417   :  { %v3629_v50 = vmul.f32 1.442695, %v3599_v0  ;;  %v3562_v20 = vmul.f32 %v13143_v10, %v3546_v22  ;;  %vm3674_vm9 = vcmp.ge.f32.partialorder %v13043_v46, 0.0  ;;  %v3531_v15 = vmul.f32 %v13167_v53, %v3515_v56  ;;  %v11437_v46 = vld [vmem:[%s15763_s2 + $0x260] sm:$0xff] }
 0x418   :  { %11321 = vpow2.f32 %v3625_v24  ;;  %v3600_v42 = vmul.f32 %v3584_v59, %v3360_v32  ;;  %v13211_v13 = vpop.eup %11313  ;;  %v3500_v49 = vmul.f32 %v13179_v8, %v3484_v57  ;;  %v3485_v18 = vadd.f32 1.4214138, %v3469_v11 }
 0x419   :  { %11323 = vpow2.f32 %v3627_v58  ;;  %v13215_v29 = vmul.f32 0.5, %v13155_v60  ;;  %v3642_v47 = vmul.f32 %v11310_v27, %v3562_v20  ;;  %v3547_v28 = vadd.f32 0.2548296, %v3531_v15 }
 0x41a   :  { %v3438_v0 = vmul.f32 1.0614054, %v13211_v13  ;;  %v16216_v10 = vand.u32 4294901760, %v12660_v26  ;;  %v3705_v32 = vsel %vm3673_vm8, %v3657_v19, %v3689_v40  ;;  %v3516_v25 = vadd.f32 -0.28449672, %v3500_v49 }
 0x41b   :  { %v3501_v17 = vmul.f32 %v13197_v55, %v3485_v18  ;;  %11325 = vpow2.f32 %v3629_v50  ;;  %v13226_v61 = vpop.eup %11315  ;;  %v3658_v60 = vsub.f32 1.0, %v3642_v47  ;;  %v3563_v27 = vmul.f32 %v13167_v53, %v3547_v28 }
 0x41c   :  { %v13221_v36 = vsub.f32 %v12660_v26, %v16216_v10  ;;  %v3454_v24 = vadd.f32 -1.4531521, %v3438_v0  ;;  %v3631_v59 = vmul.f32 1.442695, %v3600_v42  ;;  %vm3675_vm10 = vcmp.ge.f32.partialorder %v13071_v37, 0.0 }
 0x41d   :  { %v3532_v58 = vmul.f32 %v13179_v8, %v3516_v25  ;;  %v3517_v26 = vadd.f32 -0.28449672, %v3501_v17  ;;  %v3439_v22 = vmul.f32 1.0614054, %v13226_v61  ;;  %v16217_v33 = vand.u32 4294901760, %v12665_v4 }
 0x41e   :  { %v3721_v56 = vadd.f32 1.0, %v3705_v32  ;;  %v3690_v40 = vsub.f32 0.0, %v3658_v60  ;;  %v3643_v57 = vmul.f32 %v11312_v12, %v3563_v27  ;;  %v3470_v11 = vmul.f32 %v13211_v13, %v3454_v24 }
 0x41f   :  { %v13235_v19 = vsub.f32 %v12665_v4, %v16217_v33  ;;  %v13238_v53 = vpop.eup %11317  ;;  %v3548_v50 = vadd.f32 0.2548296, %v3532_v58  ;;  %v3533_v20 = vmul.f32 %v13197_v55, %v3517_v26  ;;  %v3455_v15 = vadd.f32 -1.4531521, %v3439_v22 }
 0x420   :  { %v16218_v42 = vand.u32 4294901760, %v12680_v35  ;;  %v11320_v18 = vpop.eup %11319  ;;  %v3659_v47 = vsub.f32 1.0, %v3643_v57  ;;  %vm3676_vm11 = vcmp.ge.f32.partialorder %v13087_v52, 0.0  ;;  %v3486_v4 = vadd.f32 1.4214138, %v3470_v11  ;;  %v11440_v52 = vld [vmem:[%s15763_s2 + $0x290] sm:$0xff] }
 0x421   :  { %v3440_v12 = vmul.f32 1.0614054, %v13238_v53  ;;  %11327 = vpow2.f32 %v3631_v59  ;;  %v3706_v28 = vsel %vm3674_vm9, %v3658_v60, %v3690_v40  ;;  %v3564_v0 = vmul.f32 %v13179_v8, %v3548_v50 }
 0x422   :  { %v13244_v49 = vsub.f32 %v12680_v35, %v16218_v42  ;;  %v3549_v10 = vadd.f32 0.2548296, %v3533_v20  ;;  %v3471_v32 = vmul.f32 %v13226_v61, %v3455_v15  ;;  %v11322_v25 = vpop.eup %11321  ;;  %v3691_v17 = vsub.f32 0.0, %v3659_v47 }
 0x423   :  { %v3502_v35 = vmul.f32 %v13211_v13, %v3486_v4  ;;  %v3456_v27 = vadd.f32 -1.4531521, %v3440_v12  ;;  %v15928_v24 = vand.u32 4294901760, %v13074_v39  ;;  %v11324_v58 = vpop.eup %11323  ;;  %v3644_v26 = vmul.f32 %v11320_v18, %v3564_v0 }
 0x424   :  { %v3565_v22 = vmul.f32 %v13197_v55, %v3549_v10  ;;  %v3487_v59 = vadd.f32 1.4214138, %v3471_v32  ;;  %v16219_v8 = vand.u32 4294901760, %v12685_v51  ;;  %v3737_v33 = vmul.f32 %v3721_v56, %v13051_v14  ;;  %v11438_v51 = vld [vmem:[%s15763_s2 + $0x270] sm:$0xff]  ;;  %v16221_v32 = vld [vmem:[#allocation37_spill] sm:$0xff] }
 0x425   :  { %v3518_v40 = vadd.f32 -0.28449672, %v3502_v35  ;;  %v3472_v57 = vmul.f32 %v13238_v53, %v3456_v27  ;;  %v3861_v11 = vsub.f32 %v13074_v39, %v15928_v24  ;;  %v11326_v50 = vpop.eup %11325  ;;  %v3722_v55 = vadd.f32 1.0, %v3706_v28  ;;  %v13282_v28 = vld [vmem:[%s15763_s2 + $0x5] ss:$0 sm:$0xff] }
 0x426   :  { %v13260_v60 = vsub.f32 %v11437_v46, %v16219_v8  ;;  %v3660_v20 = vsub.f32 1.0, %v3644_v26  ;;  %v3645_v15 = vmul.f32 %v11322_v25, %v3565_v22  ;;  %vm3677_vm12 = vcmp.ge.f32.partialorder %v13099_v34, 0.0 }
 0x427   :  { %v16220_v42 = vand.u32 4294901760, %v12704_v44  ;;  %v3707_v56 = vsel %vm3675_vm10, %v3659_v47, %v3691_v17  ;;  %v3534_v18 = vmul.f32 %v13211_v13, %v3518_v40  ;;  %v3503_v4 = vmul.f32 %v13226_v61, %v3487_v59  ;;  %v11439_v44 = vld [vmem:[%s15763_s2 + $0x280] sm:$0xff] }
 0x428   :  { %v3488_v12 = vadd.f32 1.4214138, %v3472_v57  ;;  %v3692_v0 = vsub.f32 0.0, %v3660_v20  ;;  %v3661_v10 = vsub.f32 1.0, %v3645_v15  ;;  %v16222_v25 = vand.u32 4294901760, %v16221_v32 }
 0x429   :  { %v13273_v14 = vsub.f32 %v11438_v51, %v16220_v42  ;;  %v3862_v47 = vand.u32 4294901760, %v3861_v11  ;;  %v13291_v17 = vand.u32 4294901760, %v3737_v33  ;;  %v3550_v35 = vadd.f32 0.2548296, %v3534_v18 }
 0x42a   :  { %v13289_v37 = vsub.f32 %v11439_v44, %v16222_v25  ;;  %v3519_v27 = vadd.f32 -0.28449672, %v3503_v4  ;;  %v3504_v26 = vmul.f32 %v13238_v53, %v3488_v12  ;;  %v3738_v22 = vmul.f32 %v3722_v55, %v13105_v23  ;;  %v16229_v12 = vld [vmem:[#allocation39_spill] sm:$0xff]  ;;  %v11442_v25 = vld [vmem:[%s15763_s2 + $0x2b0] sm:$0xff] }
 0x42b   :  { %16223 = vst [vmem:[#allocation37_spill] sm:$0xff] %v13291_v17  ;;  %v3723_v59 = vadd.f32 1.0, %v3707_v56  ;;  %v3708_v46 = vsel %vm3676_vm11, %v3660_v20, %v3692_v0  ;;  %vm3678_vm13 = vcmp.ge.f32.partialorder %v13141_v45, 0.0  ;;  %3863 = vmatprep.mubr.f32.mxu1 %v3862_v47  ;;  %v13300_v8 = vadd.f32 %v13107_v62, %v13282_v28  ;;  %v11328_v40 = vpop.eup %11327  ;;  %v16225_v20 = vld [vmem:[#allocation6_spill] sm:$0xff]  ;;  %v11441_v62 = vld [vmem:[%s15763_s2 + $0x2a0] sm:$0xff]  ;;  %v16230_v47 = vld [vmem:[#allocation13_spill] sm:$0xff] }
 0x42c   :  { %v3693_v57 = vsub.f32 0.0, %v3661_v10  ;;  %v3566_v11 = vmul.f32 %v13211_v13, %v3550_v35  ;;  %v3535_v15 = vmul.f32 %v13226_v61, %v3519_v27  ;;  %v3520_v51 = vadd.f32 -0.28449672, %v3504_v26  ;;  %v16227_v13 = vld [vmem:[#allocation7_spill] sm:$0xff] }
 0x42d   :  { %v16224_v23 = vand.u32 4294901760, %v13057_v48  ;;  %v3724_v55 = vadd.f32 1.0, %v3708_v46  ;;  %v16226_v42 = vand.u32 4294901760, %v16225_v20  ;;  %v16228_v18 = vand.u32 4294901760, %v16227_v13 }
 0x42e   :  { %v13322_v48 = vmul.f32 0.70710677, %v13300_v8  ;;  %v13325_v0 = vsub.f32 %v3737_v33, %v13291_v17  ;;  %v3646_v44 = vmul.f32 %v11324_v58, %v3566_v11  ;;  %v3551_v32 = vadd.f32 0.2548296, %v3535_v15 }
 0x42f   :  { %3869 = vmatmul.mubr.f32.vlgmr.msra.gmra.mrb[8].mxu1 %v16224_v23  ;;  %v13311_v56 = vsub.f32 %v11440_v52, %v16226_v42  ;;  %v13318_v4 = vsub.f32 %v11441_v62, %v16228_v18  ;;  %v16231_v35 = vand.u32 4294901760, %v16230_v47  ;;  %v16232_v26 = vmov 0.0|0.0  }
 0x430   :  { %10258 = vmatpush1.bf16.msra.mxu1 %v16229_v12  ;;  %v3759_v46 = vsel %vm3745_vm15, %v3738_v22, 0  ;;  %vm3679_vm14 = vcmp.ge.f32.partialorder %v13150_v54, 0.0  ;;  %v3536_v23 = vmul.f32 %v13238_v53, %v3520_v51  ;;  %v2200_v33 = vand.u32 2147483647, %v13322_v48  ;;  %v11443_v22 = vld [vmem:[%s15763_s2 + $0x2c0] sm:$0xff]  ;;  %v16233_v51 = vld [vmem:[#allocation11_spill] sm:$0xff] }
 0x431   :  { %v13332_v27 = vsub.f32 %v11442_v25, %v16231_v35  ;;  %10259 = vmatprep.subr.bf16.mxu1 %v16232_v26  ;;  %v15927_v58 = vand.u32 4294901760, %v13102_v16  ;;  %v3739_v11 = vmul.f32 %v3723_v59, %v13118_v3  ;;  %v3709_v15 = vsel %vm3677_vm12, %v3661_v10, %v3693_v57  ;;  %v16235_v25 = vld [vmem:[#allocation40_spill] sm:$0xff] }
 0x432   :  { %v3662_v52 = vsub.f32 1.0, %v3646_v44  ;;  %v3567_v20 = vmul.f32 %v13226_v61, %v3551_v32  ;;  %v3740_v42 = vmul.f32 %v3724_v55, %v13147_v1  ;;  %v3552_v62 = vadd.f32 0.2548296, %v3536_v23 }
 0x433   :  { %v16234_v13 = vand.u32 4294901760, %v16233_v51  ;;  %v2208_v12 = vmul.f32 0.3275911, %v2200_v33  ;;  %vm3680_vm3 = vcmp.ge.f32.partialorder %v13173_v6, 0.0  ;;  %v2312_v10 = vsub.f32 0.0, %v2200_v33 }
 0x434   :  { %10261 = vmatpush1.bf16.msra.mxu1 %v16235_v25  ;;  %v3694_v3 = vsub.f32 0.0, %v3662_v52  ;;  %v3647_v34 = vmul.f32 %v11326_v50, %v3567_v20  ;;  %v3876_v1 = vsub.f32 %v13102_v16, %v15927_v58  ;;  %v13358_v61 = vand.u32 4294901760, %v3759_v46 }
 0x435   :  { %v13350_v18 = vsub.f32 %v11443_v22, %v16234_v13  ;;  %10262 = vmatprep.subr.bf16.mxu1 %v16232_v26  ;;  %v3725_v59 = vadd.f32 1.0, %v3709_v15  ;;  %v3568_v57 = vmul.f32 %v13238_v53, %v3552_v62  ;;  %v2216_v55 = vadd.f32 1.0, %v2208_v12 }
 0x436   :  { %v13361_v44 = vand.u32 4294901760, %v3739_v11  ;;  %v3710_v50 = vsel %vm3678_vm13, %v3662_v52, %v3694_v3  ;;  %v3663_v32 = vsub.f32 1.0, %v3647_v34  ;;  %v3877_v47 = vand.u32 4294901760, %v3876_v1 }
 0x437   :  { %v3762_v35 = vsel %vm3745_vm15, %v3740_v42, 0  ;;  %v3726_v23 = vadd.f32 1.0, %v3710_v50  ;;  %v3648_v20 = vmul.f32 %v11328_v40, %v3568_v57  ;;  %11329 = vrcp.f32 %v2216_v55 }
 0x438   :  { %16236 = vst [vmem:[#allocation6_spill] sm:$0xff] %v13361_v44  ;;  %v3695_v22 = vsub.f32 0.0, %v3663_v32  ;;  %v2320_v51 = vmul.f32 %v2312_v10, %v2200_v33  ;;  %3878 = vmatprep.mubr.f32.mxu1 %v3877_v47  ;;  %v10793_v15 = vadd.f32 %v13113_v30, %v13282_v28  ;;  %v15925_v53 = vand.u32 4294901760, %v13094_v63 }
 0x439   :  { %v3741_v62 = vmul.f32 %v3725_v59, %v13185_v21  ;;  %v3664_v13 = vsub.f32 1.0, %v3648_v20  ;;  %v10794_v45 = vadd.f32 %v13131_v41, %v13282_v28  ;;  %v15924_v52 = vand.u32 4294901760, %v13138_v7 }
 0x43a   :  { %v3742_v42 = vmul.f32 %v3726_v23, %v13195_v2  ;;  %v3711_v40 = vsel %vm3679_vm14, %v3663_v32, %v3695_v22  ;;  %v13376_v33 = vmul.f32 0.70710677, %v10793_v15  ;;  %v3882_v30 = vsub.f32 %v13094_v63, %v15925_v53 }
 0x43b   :  { %v13382_v12 = vsub.f32 %v3759_v46, %v13358_v61  ;;  %v13385_v21 = vsub.f32 %v3739_v11, %v13361_v44  ;;  %v13387_v41 = vand.u32 4294901760, %v3762_v35  ;;  %v3696_v25 = vsub.f32 0.0, %v3664_v13  ;;  %v16250_v44 = vld [vmem:[#allocation58_spill] sm:$0xff] }
 0x43c   :  { %v3727_v3 = vadd.f32 1.0, %v3711_v40  ;;  %v2329_v2 = vmul.f32 1.442695, %v2320_v51  ;;  %v2199_v54 = vand.u32 2147483647, %v13376_v33  ;;  %v3883_v34 = vand.u32 4294901760, %v3882_v30 }
 0x43d   :  { %16237 = vst [vmem:[#allocation7_spill] sm:$0xff] %v13385_v21  ;;  %16238 = vst [vmem:[#allocation39_spill] sm:$0xff] %v13387_v41  ;;  %v13390_v10 = vand.u32 4294901760, %v3741_v62  ;;  %v3712_v1 = vsel %vm3680_vm3, %v3664_v13, %v3696_v25  ;;  %v13394_v59 = vmul.f32 0.70710677, %v10794_v45  ;;  %v3891_v46 = vsub.f32 %v13138_v7, %v15924_v52 }
 0x43e   :  { %v3765_v11 = vsel %vm3745_vm15, %v3742_v42, 0  ;;  %v3728_v57 = vadd.f32 1.0, %v3712_v1  ;;  %v2207_v55 = vmul.f32 0.3275911, %v2199_v54  ;;  %v2311_v50 = vsub.f32 0.0, %v2199_v54  ;;  %3884 = vmatmul.mubr.f32.gmra.mrb[10].mxu1 %v3883_v34 }
 0x43f   :  { %16239 = vst [vmem:[#allocation13_spill] sm:$0xff] %v13390_v10  ;;  %v13401_v32 = vsub.f32 %v3762_v35, %v13387_v41  ;;  %v13404_v47 = vmul.f32 0.5, %v13300_v8  ;;  %v2202_v6 = vand.u32 2147483647, %v13394_v59  ;;  %v3892_v23 = vand.u32 4294901760, %v3891_v46 }
 0x440   :  { %v3743_v20 = vmul.f32 %v3727_v3, %v13205_v5  ;;  %11331 = vpow2.f32 %v2329_v2  ;;  %v2215_v22 = vadd.f32 1.0, %v2207_v55  ;;  %v10795_v51 = vadd.f32 %v13135_v9, %v13282_v28 }
 0x441   :  { %16240 = vst [vmem:[#allocation11_spill] sm:$0xff] %v13401_v32  ;;  %v13410_v13 = vpop.eup %11329  ;;  %v13412_v42 = vand.u32 4294901760, %v3765_v11  ;;  %v3744_v35 = vmul.f32 %v3728_v57, %v13215_v29  ;;  %v2210_v40 = vmul.f32 0.3275911, %v2202_v6  ;;  %3893 = vmatprep.mubr.f32.mxu1 %v3892_v23  ;;  %v15923_v8 = vand.u32 4294901760, %v13121_v38 }
 0x442   :  { %v13417_v30 = vsub.f32 %v3741_v62, %v13390_v10  ;;  %v2240_v5 = vmul.f32 1.0614054, %v13410_v13  ;;  %11333 = vrcp.f32 %v2215_v22  ;;  %v2319_v25 = vmul.f32 %v2311_v50, %v2199_v54  ;;  %v16249_v10 = vld [vmem:[#allocation15_spill] sm:$0xff] }
 0x443   :  { %16241 = vst [vmem:[#allocation40_spill] sm:$0xff] %v13412_v42  ;;  %v13420_v3 = vmul.f32 0.5, %v10793_v15  ;;  %v13422_v9 = vmul.f32 0.5, %v10794_v45  ;;  %v2218_v2 = vadd.f32 1.0, %v2210_v40  ;;  %v2314_v34 = vsub.f32 0.0, %v2202_v6  ;;  %v16243_v15 = vld [vmem:[#allocation8_spill] sm:$0xff] }
 0x444   :  { %v13424_v1 = vand.u32 4294901760, %v3743_v20  ;;  %v2248_v29 = vadd.f32 -1.4531521, %v2240_v5  ;;  %v13426_v46 = vmul.f32 0.70710677, %v10795_v51  ;;  %v3897_v62 = vsub.f32 %v13121_v38, %v15923_v8  ;;  %v16244_v8 = vld [vmem:[#allocation9_spill] sm:$0xff] }
 0x445   :  { %v13432_v57 = vsub.f32 %v3765_v11, %v13412_v42  ;;  %v3768_v54 = vsel %vm3745_vm15, %v3744_v35, 0  ;;  %11335 = vrcp.f32 %v2218_v2  ;;  %v15926_v45 = vand.u32 4294901760, %v16243_v15  ;;  %v16246_v38 = vld [vmem:[#allocation56_spill] sm:$0xff] }
 0x446   :  { %16242 = vst [vmem:[#allocation60_spill] sm:$0xff] %v13424_v1  ;;  %v2256_v55 = vmul.f32 %v13410_v13, %v2248_v29  ;;  %v2327_v50 = vmul.f32 1.442695, %v2319_v25  ;;  %v2201_v23 = vand.u32 2147483647, %v13426_v46  ;;  %v3898_v22 = vand.u32 4294901760, %v3897_v62 }
 0x447   :  { %v2322_v40 = vmul.f32 %v2314_v34, %v2202_v6  ;;  %v4011_v5 = vsub.f32 %v16243_v15, %v15926_v45  ;;  %v15933_v52 = vand.u32 4294901760, %v16244_v8  ;;  %v10796_v11 = vadd.f32 %v13165_v43, %v13282_v28 }
 0x448   :  { %v13445_v35 = vsub.f32 %v3743_v20, %v13424_v1  ;;  %v2264_v2 = vadd.f32 1.4214138, %v2256_v55  ;;  %v2209_v53 = vmul.f32 0.3275911, %v2201_v23  ;;  %3899 = vmatmul.mubr.f32.gmra.mrb[12].mxu1 %v3898_v22  ;;  %v15942_v25 = vand.u32 4294901760, %v13182_v31 }
 0x449   :  { %v13448_v29 = vand.u32 4294901760, %v3768_v54  ;;  %v4012_v6 = vand.u32 4294901760, %v4011_v5  ;;  %v4018_v34 = vsub.f32 %v16244_v8, %v15933_v52  ;;  %v13453_v62 = vmul.f32 0.70710677, %v10796_v11 }
 0x44a   :  { %v11332_v45 = vpop.eup %11331  ;;  %v2272_v43 = vmul.f32 %v13410_v13, %v2264_v2  ;;  %v13456_v58 = vmul.f32 0.5, %v10795_v51  ;;  %v2217_v20 = vadd.f32 1.0, %v2209_v53  ;;  %v3906_v55 = vsub.f32 %v13182_v31, %v15942_v25 }
 0x44b   :  { %16245 = vst [vmem:[#allocation8_spill] sm:$0xff] %v13448_v29  ;;  %v2333_v22 = vmul.f32 1.442695, %v2322_v40  ;;  %v4019_v24 = vand.u32 4294901760, %v4018_v34  ;;  %v2204_v5 = vand.u32 2147483647, %v13453_v62  ;;  %v13464_v7 = vadd.f32 %v16246_v38, %v13282_v28 }
 0x44c   :  { %v13466_v52 = vpop.eup %11333  ;;  %v2280_v63 = vadd.f32 -0.28449672, %v2272_v43  ;;  %11337 = vrcp.f32 %v2217_v20  ;;  %v2313_v2 = vsub.f32 0.0, %v2201_v23  ;;  %v3907_v51 = vand.u32 4294901760, %v3906_v55 }
 0x44d   :  { %v2239_v53 = vmul.f32 1.0614054, %v13466_v52  ;;  %v10263_v16 = vpack.c.bf16 %v4019_v24, %v4012_v6  ;;  %v2212_v39 = vmul.f32 0.3275911, %v2204_v5  ;;  %v2316_v1 = vsub.f32 0.0, %v2204_v5  ;;  %v16247_v24 = vld [vmem:[#allocation54_spill] sm:$0xff] }
 0x44e   :  { %v13470_v40 = vsub.f32 %v3768_v54, %v13448_v29  ;;  %v2288_v34 = vmul.f32 %v13410_v13, %v2280_v63  ;;  %11339 = vpow2.f32 %v2327_v50  ;;  %3908 = vmatprep.mubr.f32.mxu1 %v3907_v51  ;;  %v13474_v38 = vmul.f32 0.70710677, %v13464_v7 }
 0x44f   :  { %v13476_v25 = vpop.eup %11335  ;;  %v2247_v43 = vadd.f32 -1.4531521, %v2239_v53  ;;  %10264 = vmatpush1.bf16.msra.mxu1 %v10263_v16  ;;  %v13478_v20 = vmul.f32 0.5, %v10796_v11  ;;  %v2220_v55 = vadd.f32 1.0, %v2212_v39  ;;  %11341 = vpow2.f32 %v2333_v22 }
 0x450   :  { %v2296_v31 = vadd.f32 0.2548296, %v2288_v34  ;;  %v2242_v54 = vmul.f32 1.0614054, %v13476_v25  ;;  %10265 = vmatprep.subr.bf16.mxu1 %v16232_v26  ;;  %v2203_v63 = vand.u32 2147483647, %v13474_v38  ;;  %v2321_v51 = vmul.f32 %v2313_v2, %v2201_v23 }
 0x451   :  { %vm2360_vm4 = vcmp.ge.f32.partialorder %v13322_v48, 0.0  ;;  %v2255_v50 = vmul.f32 %v13466_v52, %v2247_v43  ;;  %11343 = vrcp.f32 %v2220_v55  ;;  %v2324_v16 = vmul.f32 %v2316_v1, %v2204_v5  ;;  %v16251_v55 = vld [vmem:[#allocation16_spill] sm:$0xff] }
 0x452   :  { %v2304_v11 = vmul.f32 %v13410_v13, %v2296_v31  ;;  %v2250_v39 = vadd.f32 -1.4531521, %v2242_v54  ;;  %v2211_v53 = vmul.f32 0.3275911, %v2203_v63  ;;  %v2315_v6 = vsub.f32 0.0, %v2203_v63 }
 0x453   :  { %v2263_v34 = vadd.f32 1.4214138, %v2255_v50  ;;  %v16248_v29 = vand.u32 4294901760, %v16247_v24  ;;  %v15956_v42 = vand.u32 4294901760, %v16249_v10  ;;  %v13493_v41 = vadd.f32 %v16250_v44, %v13282_v28 }
 0x454   :  { %v2344_v43 = vmul.f32 %v11332_v45, %v2304_v11  ;;  %v2258_v23 = vmul.f32 %v13476_v25, %v2250_v39  ;;  %v2219_v1 = vadd.f32 1.0, %v2211_v53  ;;  %v2323_v5 = vmul.f32 %v2315_v6, %v2203_v63 }
 0x455   :  { %v3912_v22 = vsub.f32 %v16247_v24, %v16248_v29  ;;  %v2271_v31 = vmul.f32 %v13466_v52, %v2263_v34  ;;  %v4025_v2 = vsub.f32 %v16249_v10, %v15956_v42  ;;  %v15957_v29 = vand.u32 4294901760, %v16251_v55 }
 0x456   :  { %v13501_v54 = vpop.eup %11337  ;;  %v2352_v50 = vsub.f32 1.0, %v2344_v43  ;;  %v2266_v24 = vadd.f32 1.4214138, %v2258_v23  ;;  %v2331_v44 = vmul.f32 1.442695, %v2321_v51  ;;  %11345 = vrcp.f32 %v2219_v1 }
 0x457   :  { %v3913_v13 = vand.u32 4294901760, %v3912_v22  ;;  %v2279_v45 = vadd.f32 -0.28449672, %v2271_v31  ;;  %v2241_v11 = vmul.f32 1.0614054, %v13501_v54  ;;  %v4026_v6 = vand.u32 4294901760, %v4025_v2 }
 0x458   :  { %v4032_v63 = vsub.f32 %v16251_v55, %v15957_v29  ;;  %v11340_v39 = vpop.eup %11339  ;;  %v2368_v53 = vsub.f32 0.0, %v2352_v50  ;;  %v2274_v34 = vmul.f32 %v13476_v25, %v2266_v24  ;;  %v2337_v22 = vmul.f32 1.442695, %v2324_v16 }
 0x459   :  { %3914 = vmatmul.mubr.f32.gmra.mrb[14].mxu1 %v3913_v13  ;;  %v2335_v42 = vmul.f32 1.442695, %v2323_v5  ;;  %v2287_v43 = vmul.f32 %v13466_v52, %v2279_v45  ;;  %v2249_v23 = vadd.f32 -1.4531521, %v2241_v11  ;;  %v13510_v1 = vmul.f32 0.70710677, %v13493_v41  ;;  %v11342_v31 = vpop.eup %11341 }
 0x45a   :  { %v4033_v51 = vand.u32 4294901760, %v4032_v63  ;;  %v2376_v13 = vsel %vm2360_vm4, %v2352_v50, %v2368_v53  ;;  %v2282_v2 = vadd.f32 -0.28449672, %v2274_v34  ;;  %11347 = vpow2.f32 %v2331_v44 }
 0x45b   :  { %v15960_v29 = vand.u32 4294901760, %v13382_v12  ;;  %v13515_v17 = vpop.eup %11343  ;;  %v2384_v24 = vadd.f32 1.0, %v2376_v13  ;;  %v2295_v16 = vadd.f32 0.2548296, %v2287_v43  ;;  %v2257_v5 = vmul.f32 %v13501_v54, %v2249_v23  ;;  %v16252_v23 = vld [vmem:[#allocation59_spill] sm:$0xff] }
 0x45c   :  { %v10266_v45 = vpack.c.bf16 %v4033_v51, %v4026_v6  ;;  %vm2359_vm5 = vcmp.ge.f32.partialorder %v13376_v33, 0.0  ;;  %v2290_v11 = vmul.f32 %v13476_v25, %v2282_v2  ;;  %v2244_v63 = vmul.f32 1.0614054, %v13515_v17 }
 0x45d   :  { %11349 = vpow2.f32 %v2337_v22  ;;  %v2206_v48 = vand.u32 2147483647, %v13510_v1  ;;  %v2303_v50 = vmul.f32 %v13466_v52, %v2295_v16  ;;  %v2265_v44 = vadd.f32 1.4214138, %v2257_v5 }
 0x45e   :  { %11351 = vpow2.f32 %v2335_v42  ;;  %10267 = vmatpush1.bf16.msra.mxu1 %v10266_v45  ;;  %v3921_v53 = vsub.f32 %v13382_v12, %v15960_v29  ;;  %v2298_v34 = vadd.f32 0.2548296, %v2290_v11  ;;  %v2252_v6 = vadd.f32 -1.4531521, %v2244_v63 }
 0x45f   :  { %v2214_v43 = vmul.f32 0.3275911, %v2206_v48  ;;  %10268 = vmatprep.subr.bf16.mxu1 %v16232_v26  ;;  %v13529_v51 = vadd.f32 %v16252_v23, %v13282_v28  ;;  %v13532_v22 = vmul.f32 %v2384_v24, %v13404_v47  ;;  %v2343_v52 = vmul.f32 %v11340_v39, %v2303_v50 }
 0x460   :  { %vm2362_vm6 = vcmp.ge.f32.partialorder %v13394_v59, 0.0  ;;  %v2273_v42 = vmul.f32 %v13501_v54, %v2265_v44  ;;  %v2318_v13 = vsub.f32 0.0, %v2206_v48  ;;  %v13536_v2 = vpop.eup %11345  ;;  %v2306_v16 = vmul.f32 %v13476_v25, %v2298_v34 }
 0x461   :  { %v2260_v5 = vmul.f32 %v13515_v17, %v2252_v6  ;;  %v2222_v45 = vadd.f32 1.0, %v2214_v43  ;;  %v3922_v11 = vand.u32 4294901760, %v3921_v53  ;;  %v2351_v63 = vsub.f32 1.0, %v2343_v52 }
 0x462   :  { %v2281_v28 = vadd.f32 -0.28449672, %v2273_v42  ;;  %v2243_v23 = vmul.f32 1.0614054, %v13536_v2  ;;  %v2326_v47 = vmul.f32 %v2318_v13, %v2206_v48  ;;  %v2346_v24 = vmul.f32 %v11342_v31, %v2306_v16 }
 0x463   :  { %v2268_v39 = vadd.f32 1.4214138, %v2260_v5  ;;  %v13542_v50 = vmul.f32 0.5, %v13464_v7  ;;  %11353 = vrcp.f32 %v2222_v45  ;;  %3923 = vmatprep.mubr.f32.mxu1 %v3922_v11  ;;  %v2367_v44 = vsub.f32 0.0, %v2351_v63 }
 0x464   :  { %v2289_v29 = vmul.f32 %v13501_v54, %v2281_v28  ;;  %v2251_v25 = vadd.f32 -1.4531521, %v2243_v23  ;;  %v2341_v34 = vmul.f32 1.442695, %v2326_v47  ;;  %v11348_v6 = vpop.eup %11347  ;;  %v2354_v43 = vsub.f32 1.0, %v2346_v24 }
 0x465   :  { %v2276_v53 = vmul.f32 %v13515_v17, %v2268_v39  ;;  %v13547_v52 = vmul.f32 0.70710677, %v13529_v51  ;;  %v15961_v31 = vand.u32 4294901760, %v13325_v0  ;;  %v13552_v7 = vsel %vm2480_vm2, %v13532_v22, -inf }
 0x466   :  { %v2375_v48 = vsel %vm2359_vm5, %v2351_v63, %v2367_v44  ;;  %v2297_v42 = vadd.f32 0.2548296, %v2289_v29  ;;  %v2259_v13 = vmul.f32 %v13536_v2, %v2251_v25  ;;  %v2370_v45 = vsub.f32 0.0, %v2354_v43 }
 0x467   :  { %v11350_v16 = vpop.eup %11349  ;;  %v2383_v5 = vadd.f32 1.0, %v2375_v48  ;;  %vm2361_vm7 = vcmp.ge.f32.partialorder %v13426_v46, 0.0  ;;  %v2284_v11 = vadd.f32 -0.28449672, %v2276_v53  ;;  %v2205_v28 = vand.u32 2147483647, %v13547_v52 }
 0x468   :  { %v11352_v23 = vpop.eup %11351  ;;  %v2305_v47 = vmul.f32 %v13501_v54, %v2297_v42  ;;  %v2267_v24 = vadd.f32 1.4214138, %v2259_v13  ;;  %11355 = vpow2.f32 %v2341_v34  ;;  %v3927_v33 = vsub.f32 %v13325_v0, %v15961_v31 }
 0x469   :  { %v13564_v29 = vmul.f32 %v2383_v5, %v13420_v3  ;;  %v2378_v63 = vsel %vm2362_vm6, %v2354_v43, %v2370_v45  ;;  %v2292_v39 = vmul.f32 %v13515_v17, %v2284_v11  ;;  %v2213_v44 = vmul.f32 0.3275911, %v2205_v28 }
 0x46a   :  { %v2386_v25 = vadd.f32 1.0, %v2378_v63  ;;  %v2345_v53 = vmul.f32 %v11348_v6, %v2305_v47  ;;  %v2275_v48 = vmul.f32 %v13536_v2, %v2267_v24  ;;  %v2317_v54 = vsub.f32 0.0, %v2205_v28  ;;  %v16253_v47 = vld [vmem:[#allocation20_spill] sm:$0xff] }
 0x46b   :  { %v6920_v34 = vsel %vm2480_vm2, %v13564_v29, -inf  ;;  %v2300_v42 = vadd.f32 0.2548296, %v2292_v39  ;;  %v2221_v13 = vadd.f32 1.0, %v2213_v44  ;;  %v3928_v31 = vand.u32 4294901760, %v3927_v33 }
 0x46c   :  { %v6924_v3 = vmax.f32 %v6920_v34, %v13552_v7  ;;  %v13574_v5 = vmul.f32 %v2386_v25, %v13422_v9  ;;  %v2353_v59 = vsub.f32 1.0, %v2345_v53  ;;  %vm2364_vm8 = vcmp.ge.f32.partialorder %v13453_v62, 0.0 }
 0x46d   :  { %v2283_v43 = vadd.f32 -0.28449672, %v2275_v48  ;;  %v13577_v45 = vpop.eup %11353  ;;  %v2308_v6 = vmul.f32 %v13515_v17, %v2300_v42  ;;  %11357 = vrcp.f32 %v2221_v13  ;;  %v2325_v11 = vmul.f32 %v2317_v54, %v2205_v28  ;;  %3929 = vmatmul.mubr.f32.gmra.mrb[16].mxu1 %v3928_v31  ;;  %v16254_v17 = vld [vmem:[#allocation22_spill] sm:$0xff] }
 0x46e   :  { %v15964_v24 = vand.u32 4294901760, %v16253_v47  ;;  %v6923_v33 = vsel %vm2480_vm2, %v13574_v5, -inf  ;;  %v2369_v7 = vsub.f32 0.0, %v2353_v59  ;;  %v2246_v63 = vmul.f32 1.0614054, %v13577_v45 }
 0x46f   :  { %v2291_v9 = vmul.f32 %v13536_v2, %v2283_v43  ;;  %v2348_v39 = vmul.f32 %v11350_v16, %v2308_v6  ;;  %v2339_v44 = vmul.f32 1.442695, %v2325_v11  ;;  %v15963_v53 = vand.u32 4294901760, %v16254_v17 }
 0x470   :  { %v4039_v25 = vsub.f32 %v16253_v47, %v15964_v24  ;;  %v2377_v31 = vsel %vm2361_vm7, %v2353_v59, %v2369_v7  ;;  %v2254_v48 = vadd.f32 -1.4531521, %v2246_v63  ;;  %v15962_v54 = vand.u32 4294901760, %v13401_v32  ;;  %v16255_v63 = vld [vmem:[#allocation23_spill] sm:$0xff] }
 0x471   :  { %v2299_v28 = vadd.f32 0.2548296, %v2291_v9  ;;  %v2385_v34 = vadd.f32 1.0, %v2377_v31  ;;  %v2356_v42 = vsub.f32 1.0, %v2348_v39  ;;  %vm2363_vm9 = vcmp.ge.f32.partialorder %v13474_v38, 0.0  ;;  %v16257_v38 = vld [vmem:[#allocation26_spill] sm:$0xff] }
 0x472   :  { %11359 = vpow2.f32 %v2339_v44  ;;  %v4040_v16 = vand.u32 4294901760, %v4039_v25  ;;  %v13593_v13 = vpop.eup %11355  ;;  %v2262_v6 = vmul.f32 %v13577_v45, %v2254_v48  ;;  %v4046_v46 = vsub.f32 %v16254_v17, %v15963_v53 }
 0x473   :  { %v2307_v43 = vmul.f32 %v13536_v2, %v2299_v28  ;;  %v3936_v59 = vsub.f32 %v13401_v32, %v15962_v54  ;;  %v13604_v11 = vmul.f32 %v2385_v34, %v13456_v58  ;;  %v2372_v7 = vsub.f32 0.0, %v2356_v42 }
 0x474   :  { %v15965_v9 = vand.u32 4294901760, %v13385_v21  ;;  %v15978_v39 = vand.u32 4294901760, %v16255_v63  ;;  %v2270_v2 = vadd.f32 1.4214138, %v2262_v6  ;;  %v4047_v25 = vand.u32 4294901760, %v4046_v46 }
 0x475   :  { %v2347_v44 = vmul.f32 %v11352_v23, %v2307_v43  ;;  %v3937_v31 = vand.u32 4294901760, %v3936_v59  ;;  %v6922_v28 = vsel %vm2480_vm2, %v13604_v11, -inf  ;;  %v2380_v48 = vsel %vm2364_vm8, %v2356_v42, %v2372_v7  ;;  %v16256_v42 = vld [vmem:[#allocation25_spill] sm:$0xff] }
 0x476   :  { %v3942_v58 = vsub.f32 %v13385_v21, %v15965_v9  ;;  %v4053_v34 = vsub.f32 %v16255_v63, %v15978_v39  ;;  %v6925_v54 = vmax.f32 %v6922_v28, %v6923_v33  ;;  %v2388_v53 = vadd.f32 1.0, %v2380_v48 }
 0x477   :  { %v2355_v23 = vsub.f32 1.0, %v2347_v44  ;;  %v2278_v43 = vmul.f32 %v13577_v45, %v2270_v2  ;;  %3938 = vmatprep.mubr.f32.mxu1 %v3937_v31  ;;  %v13619_v6 = vpop.eup %11357  ;;  %v10269_v46 = vpack.c.bf16 %v4047_v25, %v4040_v16  ;;  %v15975_v7 = vand.u32 4294901760, %v16256_v42 }
 0x478   :  { %v3943_v59 = vand.u32 4294901760, %v3942_v58  ;;  %v4054_v62 = vand.u32 4294901760, %v4053_v34  ;;  %v6926_v24 = vmax.f32 %v6924_v3, %v6925_v54  ;;  %v13623_v9 = vmul.f32 %v2388_v53, %v13478_v20 }
 0x479   :  { %v2371_v21 = vsub.f32 0.0, %v2355_v23  ;;  %v2286_v32 = vadd.f32 -0.28449672, %v2278_v43  ;;  %v2245_v33 = vmul.f32 1.0614054, %v13619_v6  ;;  %10270 = vmatpush1.bf16.msra.mxu1 %v10269_v46  ;;  %v4060_v44 = vsub.f32 %v16256_v42, %v15975_v7 }
 0x47a   :  { %v15971_v2 = vand.u32 4294901760, %v13432_v57  ;;  %v15970_v16 = vand.u32 4294901760, %v13417_v30  ;;  %v6927_v25 = vrot.slane %v6926_v24, 4  ;;  %v13633_v3 = vsel %vm2480_vm2, %v13623_v9, -inf  ;;  %10271 = vmatprep.subr.bf16.mxu1 %v16232_v26  ;;  %3944 = vmatmul.mubr.f32.gmra.mrb[18].mxu1 %v3943_v59 }
 0x47b   :  { %v2379_v20 = vsel %vm2363_vm9, %v2355_v23, %v2371_v21  ;;  %v2294_v53 = vmul.f32 %v13577_v45, %v2286_v32  ;;  %v2253_v28 = vadd.f32 -1.4531521, %v2245_v33  ;;  %v4061_v48 = vand.u32 4294901760, %v4060_v44 }
 0x47c   :  { %v13639_v54 = vpop.eup %11359  ;;  %v2387_v31 = vadd.f32 1.0, %v2379_v20  ;;  %v3951_v58 = vsub.f32 %v13432_v57, %v15971_v2  ;;  %v6928_v34 = vmax.f32 %v6926_v24, %v6927_v25  ;;  %v3957_v21 = vsub.f32 %v13417_v30, %v15970_v16 }
 0x47d   :  { %v2302_v43 = vadd.f32 0.2548296, %v2294_v53  ;;  %v15974_v32 = vand.u32 4294901760, %v16257_v38  ;;  %v2261_v46 = vmul.f32 %v13619_v6, %v2253_v28  ;;  %v10272_v59 = vpack.c.bf16 %v4061_v48, %v4054_v62 }
 0x47e   :  { %v13649_v23 = vmul.f32 %v2387_v31, %v13542_v50  ;;  %v3952_v33 = vand.u32 4294901760, %v3951_v58  ;;  %v6929_v44 = vrot.slane %v6928_v34, 2  ;;  %vm2366_vm10 = vcmp.ge.f32.partialorder %v13510_v1, 0.0  ;;  %v16258_v31 = vld [vmem:[#allocation38_spill] sm:$0xff] }
 0x47f   :  { %v2310_v20 = vmul.f32 %v13577_v45, %v2302_v43  ;;  %v3958_v24 = vand.u32 4294901760, %v3957_v21  ;;  %v4067_v25 = vsub.f32 %v16257_v38, %v15974_v32  ;;  %v2269_v50 = vadd.f32 1.4214138, %v2261_v46  ;;  %10273 = vmatpush1.bf16.msra.mxu1 %v10272_v59 }
 0x480   :  { %v13659_v53 = vsel %vm2480_vm2, %v13649_v23, -inf  ;;  %3953 = vmatprep.mubr.f32.mxu1 %v3952_v33  ;;  %v15972_v62 = vand.u32 4294901760, %v16258_v31  ;;  %v15973_v28 = vand.u32 4294901760, %v13470_v40  ;;  %v6930_v48 = vmax.f32 %v6928_v34, %v6929_v44  ;;  %10274 = vmatprep.subr.bf16.mxu1 %v16232_v26 }
 0x481   :  { %v7830_v45 = vmax.f32 %v13659_v53, %v13633_v3  ;;  %v2350_v58 = vmul.f32 %v13593_v13, %v2310_v20  ;;  %3959 = vmatmul.mubr.f32.gmra.mrb[20].mxu1 %v3958_v24  ;;  %v4068_v43 = vand.u32 4294901760, %v4067_v25  ;;  %v2277_v21 = vmul.f32 %v13619_v6, %v2269_v50 }
 0x482   :  { %v4074_v46 = vsub.f32 %v16258_v31, %v15972_v62  ;;  %v3966_v59 = vsub.f32 %v13470_v40, %v15973_v28  ;;  %v15976_v34 = vand.u32 4294901760, %v13445_v35  ;;  %v6931_v33 = vrot.slane %v6930_v48, 1 }
 0x483   :  { %v2358_v44 = vsub.f32 1.0, %v2350_v58  ;;  %v15977_v13 = vand.u32 4294901760, %v13221_v36  ;;  %v15979_v20 = vand.u32 4294901760, %v13235_v19  ;;  %v2285_v24 = vadd.f32 -0.28449672, %v2277_v21 }
 0x484   :  { %v4075_v25 = vand.u32 4294901760, %v4074_v46  ;;  %v3967_v16 = vand.u32 4294901760, %v3966_v59  ;;  %v3972_v50 = vsub.f32 %v13445_v35, %v15976_v34  ;;  %v6932_v2 = vmax.f32 %v6930_v48, %v6931_v33 }
 0x485   :  { %v2374_v62 = vsub.f32 0.0, %v2358_v44  ;;  %v4081_v28 = vsub.f32 %v13221_v36, %v15977_v13  ;;  %v4088_v58 = vsub.f32 %v13235_v19, %v15979_v20  ;;  %v2293_v32 = vmul.f32 %v13619_v6, %v2285_v24 }
 0x486   :  { %v10275_v7 = vpack.c.bf16 %v4075_v25, %v4068_v43  ;;  %3968 = vmatprep.mubr.f32.mxu1 %v3967_v16  ;;  %v3973_v21 = vand.u32 4294901760, %v3972_v50  ;;  %v4094_v46 = vand.u32 4294901760, %v13244_v49  ;;  %v6933_v59 = vsub.f32 %v13564_v29, %v6932_v2 }
 0x487   :  { %v6934_v48 = vsub.f32 %v13532_v22, %v6932_v2  ;;  %v6935_v33 = vsub.f32 %v13604_v11, %v6932_v2  ;;  %v6936_v34 = vsub.f32 %v13574_v5, %v6932_v2  ;;  %v2382_v13 = vsel %vm2366_vm10, %v2358_v44, %v2374_v62  ;;  %v16259_v2 = vld [vmem:[#allocation43_spill] sm:$0xff] }
 0x488   :  { %v2301_v39 = vadd.f32 0.2548296, %v2293_v32  ;;  %10276 = vmatpush1.bf16.msra.mxu1 %v10275_v7  ;;  %v4082_v20 = vand.u32 4294901760, %v4081_v28  ;;  %v4089_v24 = vand.u32 4294901760, %v4088_v58  ;;  %v6937_v43 = vmul.f32 1.442695, %v6933_v59 }
 0x489   :  { %v6939_v16 = vmul.f32 1.442695, %v6934_v48  ;;  %v6941_v25 = vmul.f32 1.442695, %v6935_v33  ;;  %10277 = vmatprep.subr.bf16.mxu1 %v16232_v26  ;;  %3974 = vmatmul.mubr.f32.gmra.mrb[22].mxu1 %v3973_v21  ;;  %v4095_v22 = vsub.f32 %v13244_v49, %v4094_v46  ;;  %v6943_v29 = vmul.f32 1.442695, %v6936_v34 }
 0x48a   :  { %v2190_v5 = vmul.f32 0.5, %v13493_v41  ;;  %v2309_v1 = vmul.f32 %v13619_v6, %v2301_v39  ;;  %v10278_v11 = vpack.c.bf16 %v4089_v24, %v4082_v20  ;;  %4164 = vmatprep.mubr.f32.mxu1 %v16259_v2  ;;  %11361 = vpow2.f32 %v6937_v43 }
 0x48b   :  { %v2390_v7 = vadd.f32 1.0, %v2382_v13  ;;  %v4101_v32 = vand.u32 4294901760, %v13260_v60  ;;  %v4108_v62 = vand.u32 4294901760, %v13273_v14  ;;  %11363 = vpow2.f32 %v6939_v16 }
 0x48c   :  { %v2349_v28 = vmul.f32 %v13639_v54, %v2309_v1  ;;  %10279 = vmatpush1.bf16.msra.mxu1 %v10278_v11  ;;  %v4096_v44 = vand.u32 4294901760, %v4095_v22  ;;  %v4115_v34 = vand.u32 4294901760, %v13289_v37  ;;  %11365 = vpow2.f32 %v6941_v25 }
 0x48d   :  { %10280 = vmatprep.subr.bf16.mxu1 %v16232_v26  ;;  %v4102_v41 = vsub.f32 %v13260_v60, %v4101_v32  ;;  %v4109_v39 = vsub.f32 %v13273_v14, %v4108_v62  ;;  %v15983_v6 = vand.u32 4294901760, %v13311_v56  ;;  %11367 = vpow2.f32 %v6943_v29 }
 0x48e   :  { %v2189_v54 = vmul.f32 0.5, %v13529_v51  ;;  %v2357_v13 = vsub.f32 1.0, %v2349_v28  ;;  %v4116_v20 = vsub.f32 %v13289_v37, %v4115_v34  ;;  %v15982_v59 = vand.u32 4294901760, %v13318_v4 }
 0x48f   :  { %v4103_v50 = vand.u32 4294901760, %v4102_v41  ;;  %v4110_v58 = vand.u32 4294901760, %v4109_v39  ;;  %v4123_v21 = vsub.f32 %v13311_v56, %v15983_v6  ;;  %v15981_v24 = vand.u32 4294901760, %v13332_v27 }
 0x490   :  { %v2373_v48 = vsub.f32 0.0, %v2357_v13  ;;  %v4117_v33 = vand.u32 4294901760, %v4116_v20  ;;  %v15980_v43 = vand.u32 4294901760, %v13350_v18  ;;  %v13723_v51 = vmul.f32 %v2390_v7, %v2190_v5 }
 0x491   :  { %vm2365_vm11 = vcmp.ge.f32.partialorder %v13547_v52, 0.0  ;;  %v10281_v16 = vpack.c.bf16 %v4103_v50, %v4096_v44  ;;  %v4130_v25 = vsub.f32 %v13318_v4, %v15982_v59  ;;  %v4124_v1 = vand.u32 4294901760, %v4123_v21 }
 0x492   :  { %v2381_v22 = vsel %vm2365_vm11, %v2357_v13, %v2373_v48  ;;  %v10284_v29 = vpack.c.bf16 %v4117_v33, %v4110_v58  ;;  %v4137_v11 = vsub.f32 %v13332_v27, %v15981_v24  ;;  %v4144_v5 = vsub.f32 %v13350_v18, %v15980_v43 }
 0x493   :  { %v2389_v28 = vadd.f32 1.0, %v2381_v22  ;;  %10282 = vmatpush1.bf16.msra.mxu1 %v10281_v16  ;;  %v4131_v41 = vand.u32 4294901760, %v4130_v25  ;;  %v7829_v13 = vsel %vm2480_vm2, %v13723_v51, -inf  ;;  %v16260_v43 = vand.u32 4294901760, %v16253_v47 }
 0x494   :  { %10283 = vmatprep.subr.bf16.mxu1 %v16232_v26  ;;  %v13742_v39 = vpop.eup %11361  ;;  %v4138_v48 = vand.u32 4294901760, %v4137_v11  ;;  %v4145_v44 = vand.u32 4294901760, %v4144_v5  ;;  %v16263_v5 = vand.u32 4294901760, %v16256_v42  ;;  %v16264_v3 = vand.u32 4294901760, %v16257_v38 }
 0x495   :  { %v2397_v20 = vmul.f32 %v2389_v28, %v2189_v54  ;;  %v13748_v58 = vpop.eup %11363  ;;  %v6945_v21 = vsel %vm2480_vm2, %v13742_v39, 0.0  ;;  %v10287_v22 = vpack.c.bf16 %v4131_v41, %v4124_v1  ;;  %v16262_v41 = vand.u32 4294901760, %v16255_v63 }
 0x496   :  { %v13752_v33 = vpop.eup %11365  ;;  %v6946_v16 = vsel %vm2480_vm2, %v13748_v58, 0.0  ;;  %v16265_v53 = vand.u32 4294901760, %v16258_v31  ;;  %vm5156_vm8 = vcmask 130112  }
 0x497   :  { %v7828_v25 = vsel %vm2480_vm2, %v2397_v20, -inf  ;;  %10285 = vmatpush1.bf16.msra.mxu1 %v10284_v29  ;;  %v13757_v54 = vpop.eup %11367  ;;  %v6947_v28 = vadd.f32 %v6946_v16, %v6945_v21  ;;  %v6948_v7 = vsel %vm2480_vm2, %v13752_v33, 0.0  ;;  %v16261_v29 = vand.u32 4294901760, %v16254_v17 }
 0x498   :  { %v7831_v50 = vmax.f32 %v7828_v25, %v7829_v13  ;;  %10286 = vmatprep.subr.bf16.mxu1 %v16232_v26  ;;  %v13775_v13 = vpack.c.bf16 %v16263_v5, %v16262_v41  ;;  %v6950_v21 = vsel %vm2480_vm2, %v13757_v54, 0.0  ;;  %v16266_v16 = vand.u32 4294901760, %v13221_v36 }
 0x499   :  { %v6949_v11 = vadd.f32 %v6948_v7, %v6947_v28  ;;  %v13769_v1 = vpack.c.bf16 %v16261_v29, %v16260_v43  ;;  %v10290_v7 = vpack.c.bf16 %v4145_v44, %v4138_v48  ;;  %v16267_v25 = vand.u32 4294901760, %v13235_v19  ;;  %v16268_v44 = vld [vmem:[#allocation34_spill] sm:$0xff]  ;;  %v16269_v48 = vld [vmem:[#allocation27_spill] sm:$0xff] }
 0x49a   :  { %v7832_v52 = vmax.f32 %v7830_v45, %v7831_v50  ;;  %v13783_v45 = vpack.c.bf16 %v16265_v53, %v16264_v3  ;;  %v16270_v53 = vld [vmem:[#allocation41_spill] sm:$0xff] }
 0x49b   :  { %10288 = vmatpush1.bf16.msra.mxu1 %v10287_v22  ;;  %v6951_v50 = vadd.f32 %v6950_v21, %v6949_v11  ;;  %v13790_v28 = vpack.c.bf16 %v16267_v25, %v16266_v16  ;;  %v10293_v22 = vpack.c.bf16 %v16269_v48, %v16268_v44  ;;  %v13799_v11 = vpack.c.bf16 %v4101_v32, %v4094_v46  ;;  %v16271_v16 = vld [vmem:[#allocation46_spill] sm:$0xff] }
 0x49c   :  { %v7833_v43 = vrot.slane %v7832_v52, 4  ;;  %10289 = vmatprep.subr.bf16.mxu1 %v16232_v26  ;;  %v13810_v46 = vpack.c.bf16 %v4115_v34, %v4108_v62  ;;  %v16276_v34 = vand.u32 4294901760, %v13311_v56 }
 0x49d   :  { %v6952_v29 = vrot.slane %v6951_v50, 4 }
 0x49e   :  { %v7834_v41 = vmax.f32 %v7832_v52, %v7833_v43  ;;  %v16272_v52 = vld [vmem:[#allocation36_spill] sm:$0xff] }
 0x49f   :  { %10291 = vmatpush1.bf16.msra.mxu1 %v10290_v7  ;;  %v6953_v5 = vadd.f32 %v6952_v29, %v6951_v50  ;;  %v16273_v7 = vld [vmem:[#allocation31_spill] sm:$0xff]  ;;  %v16274_v29 = vld [vmem:[#allocation45_spill] sm:$0xff] }
 0x4a0   :  { %v7835_v24 = vrot.slane %v7834_v41, 2  ;;  %10292 = vmatprep.subr.bf16.mxu1 %v16232_v26  ;;  %v10296_v43 = vpack.c.bf16 %v16273_v7, %v16272_v52 }
 0x4a1   :  { %v6954_v21 = vrot.slane %v6953_v5, 2 }
 0x4a2   :  { %v7836_v3 = vmax.f32 %v7834_v41, %v7835_v24  ;;  %4166 = vmatmul.mubr.f32.vlgmr.msra.gmra.mrb[8].mxu1 %v16270_v53  ;;  %v16275_v41 = vld [vmem:[#allocation50_spill] sm:$0xff] }
 0x4a3   :  { %4171 = vmatprep.mubr.f32.mxu1 %v16271_v16  ;;  %10294 = vmatpush1.bf16.msra.mxu1 %v10293_v22  ;;  %v6955_v50 = vadd.f32 %v6954_v21, %v6953_v5  ;;  %v10299_v22 = vpack.c.bf16 %v16244_v8, %v16243_v15 }
 0x4a4   :  { %v7837_v25 = vrot.slane %v7836_v3, 1  ;;  %10295 = vmatprep.subr.bf16.mxu1 %v16232_v26 }
 0x4a5   :  { %v6956_v32 = vrot.slane %v6955_v50, 1 }
 0x4a6   :  { %v7838_v24 = vmax.f32 %v7836_v3, %v7837_v25  ;;  %4173 = vmatmul.mubr.f32.gmra.mrb[10].mxu1 %v16274_v29  ;;  %v16277_v3 = vand.u32 4294901760, %v13318_v4 }
 0x4a7   :  { %4178 = vmatprep.mubr.f32.mxu1 %v16275_v41  ;;  %10297 = vmatpush1.bf16.msra.mxu1 %v10296_v43  ;;  %v6957_v5 = vadd.f32 %v6956_v32, %v6955_v50  ;;  %v16278_v50 = vld [vmem:[#allocation47_spill] sm:$0xff] }
 0x4a8   :  { %v7839_v21 = vsub.f32 %v13649_v23, %v7838_v24  ;;  %v7840_v59 = vsub.f32 %v13623_v9, %v7838_v24  ;;  %v7841_v6 = vsub.f32 %v2397_v20, %v7838_v24  ;;  %10298 = vmatprep.subr.bf16.mxu1 %v16232_v26  ;;  %v7842_v62 = vsub.f32 %v13723_v51, %v7838_v24  ;;  %v16279_v32 = vld [vmem:[#allocation55_spill] sm:$0xff]  ;;  %v16282_v24 = vld [vmem:[#allocation52_spill] sm:$0xff] }
 0x4a9   :  { %v13824_v25 = vpack.c.bf16 %v16277_v3, %v16276_v34  ;;  %11369 = vrcp.f32 %v6957_v5  ;;  %v16280_v9 = vand.u32 4294901760, %v13332_v27  ;;  %v16281_v51 = vand.u32 4294901760, %v13350_v18 }
 0x4aa   :  { %v7843_v43 = vmul.f32 1.442695, %v7839_v21  ;;  %v7845_v41 = vmul.f32 1.442695, %v7840_v59  ;;  %v7847_v29 = vmul.f32 1.442695, %v7841_v6  ;;  %4180 = vmatmul.mubr.f32.gmra.mrb[12].mxu1 %v16278_v50  ;;  %v16283_v6 = vpack.c.bf16 %v16251_v55, %v16249_v10 }
 0x4ab   :  { %v7849_v23 = vmul.f32 1.442695, %v7842_v62  ;;  %4185 = vmatprep.mubr.f32.mxu1 %v16279_v32  ;;  %10300 = vmatpush1.bf16.msra.mxu1 %v10299_v22  ;;  %v13833_v20 = vpack.c.bf16 %v16281_v51, %v16280_v9  ;;  %v16284_v59 = vld [vmem:[#allocation37_spill] sm:$0xff]  ;;  %v16285_v22 = vld [vmem:[#allocation39_spill] sm:$0xff]  ;;  %v16286_v5 = vpack.c.bf16 %v16254_v17, %v16253_v47 }
 0x4ac   :  { %11371 = vpow2.f32 %v7843_v43  ;;  %10301 = vmatprep.subr.bf16.mxu1 %v16232_v26  ;;  %v16291_v43 = vld [vmem:[#allocation6_spill] sm:$0xff] }
 0x4ad   :  { %11373 = vpow2.f32 %v7845_v41 }
 0x4ae   :  { %11375 = vpow2.f32 %v7847_v29  ;;  %4187 = vmatmul.mubr.f32.gmra.mrb[14].mxu1 %v16282_v24 }
 0x4af   :  { %11377 = vpow2.f32 %v7849_v23  ;;  %4192 = vmatprep.mubr.f32.mxu1 %v13358_v61  ;;  %10303 = vmatpush1.bf16.msra.mxu1 %v16283_v6  ;;  %v16292_v23 = vld [vmem:[#allocation40_spill] sm:$0xff]  ;;  %v16294_v6 = vld [vmem:[#allocation13_spill] sm:$0xff] }
 0x4b0   :  { %10304 = vmatprep.subr.bf16.mxu1 %v16232_v26 }
 0x4b2   :  { %4194 = vmatmul.mubr.f32.gmra.mrb[16].mxu1 %v16284_v59 }
 0x4b3   :  { %4199 = vmatprep.mubr.f32.mxu1 %v16285_v22  ;;  %10306 = vmatpush1.bf16.msra.mxu1 %v16286_v5  ;;  %v11370_v29 = vpop.eup %11369 }
 0x4b4   :  { %10307 = vmatprep.subr.bf16.mxu1 %v16232_v26  ;;  %v13848_v41 = vmul.f32 %v11370_v29, %v13742_v39  ;;  %v13851_v21 = vmul.f32 %v11370_v29, %v13748_v58  ;;  %v13854_v62 = vmul.f32 %v11370_v29, %v13752_v33  ;;  %v13857_v34 = vmul.f32 %v11370_v29, %v13757_v54  ;;  %v16295_v29 = vld [vmem:[#allocation8_spill] sm:$0xff] }
 0x4b5   :  { %v16293_v39 = vpack.c.bf16 %v16256_v42, %v16255_v63  ;;  %v10314_v63 = vpack.c.bf16 %v13235_v19, %v13221_v36  ;;  %v10320_v36 = vpack.c.bf16 %v13289_v37, %v13273_v14  ;;  %v16300_v14 = vld [vmem:[#allocation49_spill] sm:$0xff] }
 0x4b6   :  { %16287 = vst [vmem:[#allocation9_spill] sm:$0xff] %v13848_v41  ;;  %16288 = vst [vmem:[#allocation56_spill] sm:$0xff] %v13851_v21  ;;  %v11372_v3 = vpop.eup %11371  ;;  %4201 = vmatmul.mubr.f32.gmra.mrb[18].mxu1 %v16291_v43  ;;  %v16301_v37 = vld [vmem:[#allocation5_spill] sm:$0xff]  ;;  %v16323_v41 = vld [vmem:[#allocation10_spill] sm:$0xff] }
 0x4b7   :  { %16289 = vst [vmem:[#allocation15_spill] sm:$0xff] %v13854_v62  ;;  %16290 = vst [vmem:[#allocation58_spill] sm:$0xff] %v13857_v34  ;;  %v11374_v47 = vpop.eup %11373  ;;  %v7851_v17 = vsel %vm2480_vm2, %v11372_v3, 0.0  ;;  %4206 = vmatprep.mubr.f32.mxu1 %v16292_v23  ;;  %10309 = vmatpush1.bf16.msra.mxu1 %v16293_v39  ;;  %v16296_v62 = vpack.c.bf16 %v16258_v31, %v16257_v38  ;;  %v16298_v34 = vld [vmem:[#allocation44_spill] sm:$0xff] }
 0x4b8   :  { %v11376_v58 = vpop.eup %11375  ;;  %v7852_v9 = vsel %vm2480_vm2, %v11374_v47, 0.0  ;;  %10310 = vmatprep.subr.bf16.mxu1 %v16232_v26  ;;  %v16324_v21 = vld [vmem:[#allocation12_spill] sm:$0xff] }
 0x4b9   :  { %v11378_v33 = vpop.eup %11377  ;;  %v7853_v54 = vadd.f32 %v7852_v9, %v7851_v17  ;;  %v7854_v51 = vsel %vm2480_vm2, %v11376_v58, 0.0  ;;  %v16297_v17 = vld [vmem:[#allocation60_spill] sm:$0xff] }
 0x4ba   :  { %4208 = vmatmul.mubr.f32.gmra.mrb[20].mxu1 %v16294_v6  ;;  %v7856_v42 = vsel %vm2480_vm2, %v11378_v33, 0.0 }
 0x4bb   :  { %v7855_v5 = vadd.f32 %v7854_v51, %v7853_v54  ;;  %4213 = vmatprep.mubr.f32.mxu1 %v16295_v29  ;;  %10312 = vmatpush1.bf16.msra.mxu1 %v16296_v62  ;;  %v10317_v54 = vpack.c.bf16 %v13260_v60, %v13244_v49  ;;  %v10323_v51 = vpack.c.bf16 %v13318_v4, %v13311_v56  ;;  %v16299_v60 = vld [vmem:[#allocation42_spill] sm:$0xff] }
 0x4bc   :  { %10313 = vmatprep.subr.bf16.mxu1 %v16232_v26  ;;  %v10326_v49 = vpack.c.bf16 %v13350_v18, %v13332_v27  ;;  %v16306_v18 = vld [vmem:[#allocation48_spill] sm:$0xff] }
 0x4bd   :  { %v7857_v39 = vadd.f32 %v7856_v42, %v7855_v5 }
 0x4be   :  { %4215 = vmatmul.mubr.f32.gmra.mrb[22].mxu1 %v16297_v17 }
 0x4bf   :  { %v7858_v9 = vrot.slane %v7857_v39, 4  ;;  %10315 = vmatpush1.bf16.msra.mxu1 %v10314_v63  ;;  %4334 = vmatprep.mubr.f32.mxu1 %v16298_v34 }
 0x4c0   :  { %10316 = vmatprep.subr.bf16.mxu1 %v16232_v26 }
 0x4c1   :  { %v7859_v38 = vadd.f32 %v7858_v9, %v7857_v39  ;;  %v16307_v39 = vld [vmem:[#allocation53_spill] sm:$0xff]  ;;  %v16308_v9 = vld [vmem:[#allocation30_spill] sm:$0xff] }
 0x4c3   :  { %v7860_v31 = vrot.slane %v7859_v38, 2  ;;  %10318 = vmatpush1.bf16.msra.mxu1 %v10317_v54  ;;  %v16309_v54 = vld [vmem:[#allocation51_spill] sm:$0xff] }
 0x4c4   :  { %10319 = vmatprep.subr.bf16.mxu1 %v16232_v26 }
 0x4c5   :  { %v7861_v19 = vadd.f32 %v7860_v31, %v7859_v38  ;;  %v16310_v38 = vld [vmem:[#allocation57_spill] sm:$0xff] }
 0x4c6   :  { %v16315_v31 = vld [vmem:[#allocation21_spill] sm:$0xff] }
 0x4c7   :  { %v7862_v62 = vrot.slane %v7861_v19, 1  ;;  %10321 = vmatpush1.bf16.msra.mxu1 %v10320_v36  ;;  %v16316_v36 = vld [vmem:[#allocation7_spill] sm:$0xff] }
 0x4c8   :  { %10322 = vmatprep.subr.bf16.mxu1 %v16232_v26 }
 0x4c9   :  { %v7863_v5 = vadd.f32 %v7862_v62, %v7861_v19  ;;  %v16317_v19 = vld [vmem:[#allocation32_spill] sm:$0xff] }
 0x4ca   :  { %v16318_v62 = vld [vmem:[#allocation24_spill] sm:$0xff] }
 0x4cb   :  { %11379 = vrcp.f32 %v7863_v5  ;;  %10324 = vmatpush1.bf16.msra.mxu1 %v10323_v51  ;;  %v16319_v51 = vld [vmem:[#allocation35_spill] sm:$0xff]  ;;  %v16320_v5 = vand.u32 4294901760, %v16298_v34  ;;  %v16326_v34 = vand.u32 4294901760, %v16269_v48  ;;  %v16332_v48 = vand.u32 4294901760, %v16307_v39 }
 0x4cc   :  { %10325 = vmatprep.subr.bf16.mxu1 %v16232_v26 }
 0x4cf   :  { %10327 = vmatpush1.bf16.msra.mxu1 %v10326_v49  ;;  %v16321_v49 = vld [vmem:[#allocation28_spill] sm:$0xff] }
 0x4d0   :  { %10328 = vmatprep.subr.bf16.mxu1 %v16232_v26 }
 0x4d2   :  { %4337 = vmatmul.mubr.f32.vlgmr.msra.gmra.mrb[8].mxu1 %v16299_v60 }
 0x4d3   :  { %4343 = vmatprep.mubr.f32.mxu1 %v16300_v14  ;;  %10330 = vmatpush1.bf16.msra.mxu1 %v16301_v37 }
 0x4d4   :  { %10331 = vmatprep.subr.bf16.mxu1 %v16232_v26 }
 0x4d5   :  { %v11380_v56 = vpop.eup %11379 }
 0x4d6   :  { %v13896_v4 = vmul.f32 %v11380_v56, %v11372_v3  ;;  %v13898_v63 = vmul.f32 %v11380_v56, %v11374_v47  ;;  %v13900_v42 = vmul.f32 %v11380_v56, %v11376_v58  ;;  %v13902_v27 = vmul.f32 %v11380_v56, %v11378_v33  ;;  %4346 = vmatmul.mubr.f32.gmra.mrb[10].mxu1 %v16306_v18  ;;  %v16311_v3 = vld [vmem:[#allocation18_spill] sm:$0xff]  ;;  %v16313_v58 = vld [vmem:[#allocation29_spill] sm:$0xff]  ;;  %v16314_v33 = vld [vmem:[#allocation11_spill] sm:$0xff] }
 0x4d7   :  { %4352 = vmatprep.mubr.f32.mxu1 %v16307_v39  ;;  %10333 = vmatpush1.bf16.msra.mxu1 %v16308_v9  ;;  %v16312_v47 = vld [vmem:[#allocation54_spill] sm:$0xff]  ;;  %v16322_v56 = vld [vmem:[#allocation33_spill] sm:$0xff] }
 0x4d8   :  { %16302 = vst [vmem:[#allocation16_spill] sm:$0xff] %v13896_v4  ;;  %16303 = vst [vmem:[#allocation59_spill] sm:$0xff] %v13898_v63  ;;  %10334 = vmatprep.subr.bf16.mxu1 %v16232_v26  ;;  %v16325_v63 = vand.u32 4294901760, %v16268_v44  ;;  %v16328_v4 = vand.u32 4294901760, %v16300_v14  ;;  %v16331_v44 = vand.u32 4294901760, %v16306_v18  ;;  %v16334_v14 = vand.u32 4294901760, %v16244_v8 }
 0x4d9   :  { %16304 = vst [vmem:[#allocation20_spill] sm:$0xff] %v13900_v42  ;;  %16305 = vst [vmem:[#allocation22_spill] sm:$0xff] %v13902_v27  ;;  %v16327_v27 = vand.u32 4294901760, %v16299_v60  ;;  %v16329_v42 = vand.u32 4294901760, %v16272_v52  ;;  %v16333_v60 = vand.u32 4294901760, %v16243_v15  ;;  %v16335_v52 = vand.u32 4294901760, %v16309_v54 }
 0x4da   :  { %4355 = vmatmul.mubr.f32.gmra.mrb[12].mxu1 %v16309_v54  ;;  %v16339_v15 = vand.u32 4294901760, %v16312_v47  ;;  %v16340_v8 = vand.u32 4294901760, %v13382_v12  ;;  %v16342_v18 = vand.u32 4294901760, %v16314_v33 }
 0x4db   :  { %4361 = vmatprep.mubr.f32.mxu1 %v16310_v38  ;;  %10336 = vmatpush1.bf16.msra.mxu1 %v16311_v3 }
 0x4dc   :  { %10337 = vmatprep.subr.bf16.mxu1 %v16232_v26 }
 0x4de   :  { %4364 = vmatmul.mubr.f32.gmra.mrb[14].mxu1 %v16312_v47 }
 0x4df   :  { %4370 = vmatprep.mubr.f32.mxu1 %v13382_v12  ;;  %10339 = vmatpush1.bf16.msra.mxu1 %v16313_v58  ;;  %v16346_v12 = vand.u32 4294901760, %v13470_v40 }
 0x4e0   :  { %10340 = vmatprep.subr.bf16.mxu1 %v16232_v26 }
 0x4e2   :  { %4373 = vmatmul.mubr.f32.gmra.mrb[16].mxu1 %v13325_v0 }
 0x4e3   :  { %4379 = vmatprep.mubr.f32.mxu1 %v16314_v33  ;;  %10342 = vmatpush1.bf16.msra.mxu1 %v16315_v31 }
 0x4e4   :  { %10343 = vmatprep.subr.bf16.mxu1 %v16232_v26 }
 0x4e6   :  { %4382 = vmatmul.mubr.f32.gmra.mrb[18].mxu1 %v16316_v36 }
 0x4e7   :  { %4388 = vmatprep.mubr.f32.mxu1 %v13432_v57  ;;  %10345 = vmatpush1.bf16.msra.mxu1 %v16317_v19 }
 0x4e8   :  { %10346 = vmatprep.subr.bf16.mxu1 %v16232_v26 }
 0x4ea   :  { %4391 = vmatmul.mubr.f32.gmra.mrb[20].mxu1 %v13417_v30 }
 0x4eb   :  { %4397 = vmatprep.mubr.f32.mxu1 %v13470_v40  ;;  %10348 = vmatpush1.bf16.msra.mxu1 %v16318_v62  ;;  %v16351_v40 = vld [vmem:[#allocation10_spill] sm:$0xff] }
 0x4ec   :  { %10349 = vmatprep.subr.bf16.mxu1 %v16232_v26 }
 0x4ee   :  { %4400 = vmatmul.mubr.f32.gmra.mrb[22].mxu1 %v13445_v35 }
 0x4ef   :  { %10351 = vmatpush1.bf16.msra.mxu1 %v16319_v51  ;;  %4496 = vmatprep.mubr.f32.mxu1 %v16320_v5  ;;  %v10365_v5 = vpack.c.bf16 %v16326_v34, %v16325_v63  ;;  %v16338_v63 = vand.u32 4294901760, %v16251_v55  ;;  %v16344_v55 = vand.u32 4294901760, %v13432_v57  ;;  %v16349_v57 = vld [vmem:[#allocation50_spill] sm:$0xff] }
 0x4f0   :  { %10352 = vmatprep.subr.bf16.mxu1 %v16232_v26 }
 0x4f3   :  { %10354 = vmatpush1.bf16.msra.mxu1 %v16321_v49 }
 0x4f4   :  { %10355 = vmatprep.subr.bf16.mxu1 %v16232_v26 }
 0x4f7   :  { %10357 = vmatpush1.bf16.msra.mxu1 %v16322_v56 }
 0x4f8   :  { %10358 = vmatprep.subr.bf16.mxu1 %v16232_v26 }
 0x4fb   :  { %10360 = vmatpush1.bf16.msra.mxu1 %v16323_v41  ;;  %v16330_v41 = vand.u32 4294901760, %v16273_v7  ;;  %v16336_v7 = vand.u32 4294901760, %v16310_v38 }
 0x4fc   :  { %10361 = vmatprep.subr.bf16.mxu1 %v16232_v26 }
 0x4fd   :  { %v10368_v56 = vpack.c.bf16 %v16330_v41, %v16329_v42  ;;  %v16337_v41 = vand.u32 4294901760, %v16249_v10  ;;  %v16343_v10 = vand.u32 4294901760, %v16316_v36 }
 0x4ff   :  { %10363 = vmatpush1.bf16.msra.mxu1 %v16324_v21  ;;  %v10374_v42 = vpack.c.bf16 %v16338_v63, %v16337_v41 }
 0x500   :  { %10364 = vmatprep.subr.bf16.mxu1 %v16232_v26 }
 0x502   :  { %4500 = vmatmul.mubr.f32.vlgmr.msra.gmra.mrb[8].mxu1 %v16327_v27  ;;  %v16341_v27 = vand.u32 4294901760, %v13325_v0  ;;  %v16345_v0 = vand.u32 4294901760, %v13417_v30  ;;  %v16348_v30 = vld [vmem:[#allocation45_spill] sm:$0xff] }
 0x503   :  { %4507 = vmatprep.mubr.f32.mxu1 %v16328_v4  ;;  %10366 = vmatpush1.bf16.msra.mxu1 %v10365_v5  ;;  %v10371_v4 = vpack.c.bf16 %v16334_v14, %v16333_v60 }
 0x504   :  { %10367 = vmatprep.subr.bf16.mxu1 %v16232_v26 }
 0x506   :  { %4511 = vmatmul.mubr.f32.gmra.mrb[10].mxu1 %v16331_v44 }
 0x507   :  { %4518 = vmatprep.mubr.f32.mxu1 %v16332_v48  ;;  %10369 = vmatpush1.bf16.msra.mxu1 %v10368_v56 }
 0x508   :  { %10370 = vmatprep.subr.bf16.mxu1 %v16232_v26 }
 0x50a   :  { %4522 = vmatmul.mubr.f32.gmra.mrb[12].mxu1 %v16335_v52 }
 0x50b   :  { %4529 = vmatprep.mubr.f32.mxu1 %v16336_v7  ;;  %10372 = vmatpush1.bf16.msra.mxu1 %v10371_v4 }
 0x50c   :  { %10373 = vmatprep.subr.bf16.mxu1 %v16232_v26 }
 0x50e   :  { %4533 = vmatmul.mubr.f32.gmra.mrb[14].mxu1 %v16339_v15 }
 0x50f   :  { %4540 = vmatprep.mubr.f32.mxu1 %v16340_v8  ;;  %10375 = vmatpush1.bf16.msra.mxu1 %v10374_v42 }
 0x510   :  { %10376 = vmatprep.subr.bf16.mxu1 %v16232_v26 }
 0x512   :  { %4544 = vmatmul.mubr.f32.gmra.mrb[16].mxu1 %v16341_v27 }
 0x513   :  { %4551 = vmatprep.mubr.f32.mxu1 %v16342_v18  ;;  %10378 = vmatpush1.bf16.msra.mxu1 %v13769_v1  ;;  %v16347_v1 = vand.u32 4294901760, %v13445_v35  ;;  %v16350_v35 = vld [vmem:[#allocation33_spill] sm:$0xff] }
 0x514   :  { %10379 = vmatprep.subr.bf16.mxu1 %v16232_v26 }
 0x516   :  { %4555 = vmatmul.mubr.f32.gmra.mrb[18].mxu1 %v16343_v10 }
 0x517   :  { %4562 = vmatprep.mubr.f32.mxu1 %v16344_v55  ;;  %10381 = vmatpush1.bf16.msra.mxu1 %v13775_v13 }
 0x518   :  { %10382 = vmatprep.subr.bf16.mxu1 %v16232_v26 }
 0x51a   :  { %4566 = vmatmul.mubr.f32.gmra.mrb[20].mxu1 %v16345_v0 }
 0x51b   :  { %4573 = vmatprep.mubr.f32.mxu1 %v16346_v12  ;;  %10384 = vmatpush1.bf16.msra.mxu1 %v13783_v45 }
 0x51c   :  { %10385 = vmatprep.subr.bf16.mxu1 %v16232_v26 }
 0x51e   :  { %4577 = vmatmul.mubr.f32.gmra.mrb[22].mxu1 %v16347_v1 }
 0x51f   :  { %10387 = vmatpush1.bf16.msra.mxu1 %v13790_v28  ;;  %4719 = vmatprep.mubr.f32.mxu1 %v16259_v2 }
 0x520   :  { %10388 = vmatprep.subr.bf16.mxu1 %v16232_v26 }
 0x523   :  { %10390 = vmatpush1.bf16.msra.mxu1 %v13799_v11 }
 0x524   :  { %10391 = vmatprep.subr.bf16.mxu1 %v16232_v26 }
 0x527   :  { %10393 = vmatpush1.bf16.msra.mxu1 %v13810_v46 }
 0x528   :  { %10394 = vmatprep.subr.bf16.mxu1 %v16232_v26 }
 0x52b   :  { %10396 = vmatpush1.bf16.msra.mxu1 %v13824_v25 }
 0x52c   :  { %10397 = vmatprep.subr.bf16.mxu1 %v16232_v26 }
 0x52f   :  { %10399 = vmatpush1.bf16.msra.mxu1 %v13833_v20 }
 0x530   :  { %10400 = vmatprep.subr.bf16.mxu1 %v16232_v26 }
 0x532   :  { %4721 = vmatmul.mubr.f32.vlgmr.msra.gmra.mrb[8].mxu1 %v16270_v53 }
 0x533   :  { %4726 = vmatprep.mubr.f32.mxu1 %v16271_v16  ;;  %10402 = vmatpush1.bf16.msra.mxu1 %v16301_v37 }
 0x534   :  { %10403 = vmatprep.subr.bf16.mxu1 %v16232_v26 }
 0x536   :  { %4728 = vmatmul.mubr.f32.gmra.mrb[10].mxu1 %v16348_v30 }
 0x537   :  { %4733 = vmatprep.mubr.f32.mxu1 %v16349_v57  ;;  %10405 = vmatpush1.bf16.msra.mxu1 %v16308_v9 }
 0x538   :  { %10406 = vmatprep.subr.bf16.mxu1 %v16232_v26 }
 0x53a   :  { %4735 = vmatmul.mubr.f32.gmra.mrb[12].mxu1 %v16278_v50 }
 0x53b   :  { %4740 = vmatprep.mubr.f32.mxu1 %v16279_v32  ;;  %10408 = vmatpush1.bf16.msra.mxu1 %v16311_v3 }
 0x53c   :  { %10409 = vmatprep.subr.bf16.mxu1 %v16232_v26 }
 0x53e   :  { %4742 = vmatmul.mubr.f32.gmra.mrb[14].mxu1 %v16282_v24 }
 0x53f   :  { %4747 = vmatprep.mubr.f32.mxu1 %v13358_v61  ;;  %10411 = vmatpush1.bf16.msra.mxu1 %v16313_v58 }
 0x540   :  { %10412 = vmatprep.subr.bf16.mxu1 %v16232_v26 }
 0x542   :  { %4749 = vmatmul.mubr.f32.gmra.mrb[16].mxu1 %v16284_v59 }
 0x543   :  { %4754 = vmatprep.mubr.f32.mxu1 %v16285_v22  ;;  %10414 = vmatpush1.bf16.msra.mxu1 %v16315_v31 }
 0x544   :  { %10415 = vmatprep.subr.bf16.mxu1 %v16232_v26 }
 0x546   :  { %4756 = vmatmul.mubr.f32.gmra.mrb[18].mxu1 %v16291_v43 }
 0x547   :  { %4761 = vmatprep.mubr.f32.mxu1 %v16292_v23  ;;  %10417 = vmatpush1.bf16.msra.mxu1 %v16317_v19 }
 0x548   :  { %10418 = vmatprep.subr.bf16.mxu1 %v16232_v26 }
 0x54a   :  { %4763 = vmatmul.mubr.f32.gmra.mrb[20].mxu1 %v16294_v6 }
 0x54b   :  { %4768 = vmatprep.mubr.f32.mxu1 %v16295_v29  ;;  %10420 = vmatpush1.bf16.msra.mxu1 %v16318_v62 }
 0x54c   :  { %10421 = vmatprep.subr.bf16.mxu1 %v16232_v26 }
 0x54e   :  { %4770 = vmatmul.mubr.f32.gmra.mrb[22].mxu1 %v16297_v17 }
 0x54f   :  { %10423 = vmatpush1.bf16.msra.mxu1 %v16319_v51  ;;  %4864 = vmatprep.mubr.f32.mxu1 %v16259_v2  ;;  %v14066_v2 = vld [vmem:[%s15763_s2 + $0x7] ss:$0 sm:$0xff] }
 0x550   :  { %10424 = vmatprep.subr.bf16.mxu1 %v16232_v26 }
 0x553   :  { %10426 = vmatpush1.bf16.msra.mxu1 %v16321_v49 }
 0x554   :  { %10427 = vmatprep.subr.bf16.mxu1 %v16232_v26 }
 0x557   :  { %10429 = vmatpush1.bf16.msra.mxu1 %v16350_v35 }
 0x558   :  { %10430 = vmatprep.subr.bf16.mxu1 %v16232_v26 }
 0x55b   :  { %10432 = vmatpush1.bf16.msra.mxu1 %v16351_v40 }
 0x55c   :  { %10433 = vmatprep.subr.bf16.mxu1 %v16232_v26 }
 0x55f   :  { %10435 = vmatpush1.bf16.msra.mxu1 %v16324_v21 }
 0x560   :  { %10532 = vmatprep.subr.bf16.mxu1 %v16232_v26 }
 0x562   :  { %4866 = vmatmul.mubr.f32.vlgmr.msra.gmra.mrb[8].mxu1 %v16270_v53 }
 0x563   :  { %4871 = vmatprep.mubr.f32.mxu1 %v16271_v16 }
 0x566   :  { %4873 = vmatmul.mubr.f32.gmra.mrb[10].mxu1 %v16348_v30 }
 0x567   :  { %4878 = vmatprep.mubr.f32.mxu1 %v16349_v57 }
 0x56a   :  { %4880 = vmatmul.mubr.f32.gmra.mrb[12].mxu1 %v16278_v50 }
 0x56b   :  { %4885 = vmatprep.mubr.f32.mxu1 %v16279_v32 }
 0x56e   :  { %4887 = vmatmul.mubr.f32.gmra.mrb[14].mxu1 %v16282_v24 }
 0x56f   :  { %4892 = vmatprep.mubr.f32.mxu1 %v13358_v61 }
 0x572   :  { %4894 = vmatmul.mubr.f32.gmra.mrb[16].mxu1 %v16284_v59 }
 0x573   :  { %4899 = vmatprep.mubr.f32.mxu1 %v16285_v22 }
 0x576   :  { %4901 = vmatmul.mubr.f32.gmra.mrb[18].mxu1 %v16291_v43 }
 0x577   :  { %4906 = vmatprep.mubr.f32.mxu1 %v16292_v23 }
 0x57a   :  { %4908 = vmatmul.mubr.f32.gmra.mrb[20].mxu1 %v16294_v6 }
 0x57b   :  { %4913 = vmatprep.mubr.f32.mxu1 %v16295_v29 }
 0x57e   :  { %4915 = vmatmul.mubr.f32.gmra.mrb[22].mxu1 %v16297_v17 }
 0x635   :  { %v4867_v61 = vpop.f32.mrb[8].mxu1 }
 0x636   :  { %v10816_v13 = vadd.f32 %v4867_v61, %v14066_v2  ;;  %v4869_v45 = vpop.f32.mrb[9].mxu1 }
 0x638   :  { %v14069_v28 = vmul.f32 0.70710677, %v10816_v13  ;;  %v14120_v12 = vmul.f32 0.5, %v10816_v13 }
 0x639   :  { %v4874_v11 = vpop.f32.mrb[10].mxu1 }
 0x63a   :  { %v4936_v53 = vand.u32 2147483647, %v14069_v28  ;;  %v14073_v16 = vadd.f32 %v4874_v11, %v14066_v2  ;;  %v4876_v46 = vpop.f32.mrb[11].mxu1  ;;  %vm5096_vm12 = vcmp.ge.f32.partialorder %v14069_v28, 0.0 }
 0x63c   :  { %v4944_v25 = vmul.f32 0.3275911, %v4936_v53  ;;  %v14076_v50 = vmul.f32 0.70710677, %v14073_v16  ;;  %v5048_v38 = vsub.f32 0.0, %v4936_v53  ;;  %v14130_v13 = vmul.f32 0.5, %v14073_v16 }
 0x63d   :  { %v4881_v32 = vpop.f32.mrb[12].mxu1 }
 0x63e   :  { %v4952_v20 = vadd.f32 1.0, %v4944_v25  ;;  %v4937_v24 = vand.u32 2147483647, %v14076_v50  ;;  %v4883_v59 = vpop.f32.mrb[13].mxu1  ;;  %v14080_v22 = vadd.f32 %v4881_v32, %v14066_v2  ;;  %v5056_v51 = vmul.f32 %v5048_v38, %v4936_v53 }
 0x63f   :  { %vm5097_vm13 = vcmp.ge.f32.partialorder %v14076_v50, 0.0 }
 0x640   :  { %11381 = vrcp.f32 %v4952_v20  ;;  %v4945_v21 = vmul.f32 0.3275911, %v4937_v24  ;;  %v14083_v43 = vmul.f32 0.70710677, %v14080_v22  ;;  %v5049_v5 = vsub.f32 0.0, %v4937_v24 }
 0x641   :  { %v4888_v23 = vpop.f32.mrb[14].mxu1  ;;  %v5064_v63 = vmul.f32 1.442695, %v5056_v51 }
 0x642   :  { %v4953_v6 = vadd.f32 1.0, %v4945_v21  ;;  %v14086_v29 = vadd.f32 %v4888_v23, %v14066_v2  ;;  %v4890_v17 = vpop.f32.mrb[15].mxu1  ;;  %v4938_v37 = vand.u32 2147483647, %v14083_v43  ;;  %v5057_v27 = vmul.f32 %v5049_v5, %v4937_v24 }
 0x643   :  { %vm5098_vm14 = vcmp.ge.f32.partialorder %v14083_v43, 0.0 }
 0x644   :  { %11383 = vrcp.f32 %v4953_v6  ;;  %v14090_v39 = vmul.f32 0.70710677, %v14086_v29  ;;  %v4946_v9 = vmul.f32 0.3275911, %v4938_v37  ;;  %v5050_v14 = vsub.f32 0.0, %v4938_v37 }
 0x645   :  { %v4895_v54 = vpop.f32.mrb[16].mxu1  ;;  %v5066_v53 = vmul.f32 1.442695, %v5057_v27 }
 0x646   :  { %v4939_v3 = vand.u32 2147483647, %v14090_v39  ;;  %v14094_v47 = vadd.f32 %v4895_v54, %v14066_v2  ;;  %v4897_v58 = vpop.f32.mrb[17].mxu1  ;;  %v4954_v33 = vadd.f32 1.0, %v4946_v9  ;;  %v5058_v1 = vmul.f32 %v5050_v14, %v4938_v37 }
 0x647   :  { %vm5099_vm3 = vcmp.ge.f32.partialorder %v14090_v39, 0.0 }
 0x648   :  { %v4947_v31 = vmul.f32 0.3275911, %v4939_v3  ;;  %v14097_v36 = vmul.f32 0.70710677, %v14094_v47  ;;  %11385 = vrcp.f32 %v4954_v33  ;;  %v5051_v40 = vsub.f32 0.0, %v4939_v3 }
 0x649   :  { %v4902_v19 = vpop.f32.mrb[18].mxu1  ;;  %v5068_v23 = vmul.f32 1.442695, %v5058_v1 }
 0x64a   :  { %v14099_v62 = vpop.eup %11381  ;;  %v4955_v49 = vadd.f32 1.0, %v4947_v31  ;;  %v4940_v56 = vand.u32 2147483647, %v14097_v36  ;;  %v4904_v34 = vpop.f32.mrb[19].mxu1  ;;  %v14103_v44 = vadd.f32 %v4902_v19, %v14066_v2  ;;  %v5059_v37 = vmul.f32 %v5051_v40, %v4939_v3 }
 0x64b   :  { %v4976_v48 = vmul.f32 1.0614054, %v14099_v62  ;;  %vm5100_vm4 = vcmp.ge.f32.partialorder %v14097_v36, 0.0 }
 0x64c   :  { %11387 = vrcp.f32 %v4955_v49  ;;  %v4948_v60 = vmul.f32 0.3275911, %v4940_v56  ;;  %v14107_v4 = vmul.f32 0.70710677, %v14103_v44  ;;  %v5052_v24 = vsub.f32 0.0, %v4940_v56 }
 0x64d   :  { %v4909_v52 = vpop.f32.mrb[20].mxu1  ;;  %v4984_v7 = vadd.f32 -1.4531521, %v4976_v48 }
 0x64e   :  { %v14109_v41 = vpop.eup %11383  ;;  %v4956_v42 = vadd.f32 1.0, %v4948_v60  ;;  %v14112_v15 = vadd.f32 %v4909_v52, %v14066_v2  ;;  %v4911_v8 = vpop.f32.mrb[21].mxu1  ;;  %v4941_v18 = vand.u32 2147483647, %v14107_v4  ;;  %v5060_v31 = vmul.f32 %v5052_v24, %v4940_v56 }
 0x64f   :  { %v4992_v10 = vmul.f32 %v14099_v62, %v4984_v7  ;;  %v4977_v55 = vmul.f32 1.0614054, %v14109_v41  ;;  %v5070_v60 = vmul.f32 1.442695, %v5059_v37  ;;  %vm5101_vm5 = vcmp.ge.f32.partialorder %v14107_v4, 0.0 }
 0x650   :  { %11389 = vrcp.f32 %v4956_v42  ;;  %v14118_v0 = vmul.f32 0.70710677, %v14112_v15  ;;  %v4949_v30 = vmul.f32 0.3275911, %v4941_v18  ;;  %v5053_v9 = vsub.f32 0.0, %v4941_v18 }
 0x651   :  { %v4916_v57 = vpop.f32.mrb[22].mxu1  ;;  %v5000_v35 = vadd.f32 1.4214138, %v4992_v10  ;;  %11391 = vpow2.f32 %v5064_v63  ;;  %v4985_v32 = vadd.f32 -1.4531521, %v4977_v55  ;;  %v4926_v4 = vmul.f32 0.5, %v14112_v15 }
 0x652   :  { %v4942_v61 = vand.u32 2147483647, %v14118_v0  ;;  %v14124_v45 = vadd.f32 %v4916_v57, %v14066_v2  ;;  %v4918_v11 = vpop.f32.mrb[23].mxu1  ;;  %v4957_v46 = vadd.f32 1.0, %v4949_v30  ;;  %v14127_v20 = vpop.eup %11385  ;;  %v5061_v14 = vmul.f32 %v5053_v9, %v4941_v18 }
 0x653   :  { %v5008_v25 = vmul.f32 %v14099_v62, %v5000_v35  ;;  %v4993_v6 = vmul.f32 %v14109_v41, %v4985_v32  ;;  %v4978_v33 = vmul.f32 1.0614054, %v14127_v20  ;;  %v5072_v27 = vmul.f32 1.442695, %v5060_v31 }
 0x654   :  { %v4950_v59 = vmul.f32 0.3275911, %v4942_v61  ;;  %v14133_v21 = vmul.f32 0.70710677, %v14124_v45  ;;  %11393 = vrcp.f32 %v4957_v46  ;;  %v5054_v19 = vsub.f32 0.0, %v4942_v61 }
 0x655   :  { %v5016_v2 = vadd.f32 -0.28449672, %v5008_v25  ;;  %11395 = vpow2.f32 %v5066_v53  ;;  %v5001_v58 = vadd.f32 1.4214138, %v4993_v6  ;;  %v4986_v5 = vadd.f32 -1.4531521, %v4978_v33 }
 0x656   :  { %v14136_v17 = vpop.eup %11387  ;;  %v4958_v54 = vadd.f32 1.0, %v4950_v59  ;;  %v4943_v38 = vand.u32 2147483647, %v14133_v21  ;;  %v5062_v10 = vmul.f32 %v5054_v19, %v4942_v61  ;;  %v5074_v18 = vmul.f32 1.442695, %v5061_v14 }
 0x657   :  { %v5024_v16 = vmul.f32 %v14099_v62, %v5016_v2  ;;  %v5009_v34 = vmul.f32 %v14109_v41, %v5001_v58  ;;  %v4979_v3 = vmul.f32 1.0614054, %v14136_v17  ;;  %v4994_v42 = vmul.f32 %v14127_v20, %v4986_v5 }
 0x658   :  { %11397 = vrcp.f32 %v4958_v54  ;;  %v4951_v51 = vmul.f32 0.3275911, %v4943_v38  ;;  %v5055_v40 = vsub.f32 0.0, %v4943_v38  ;;  %v5076_v32 = vmul.f32 1.442695, %v5062_v10 }
 0x659   :  { %v5032_v49 = vadd.f32 0.2548296, %v5024_v16  ;;  %11399 = vpow2.f32 %v5068_v23  ;;  %v5017_v56 = vadd.f32 -0.28449672, %v5009_v34  ;;  %v4987_v55 = vadd.f32 -1.4531521, %v4979_v3 }
 0x65a   :  { %v14143_v48 = vpop.eup %11389  ;;  %v4959_v52 = vadd.f32 1.0, %v4951_v51  ;;  %v5002_v35 = vadd.f32 1.4214138, %v4994_v42  ;;  %v5063_v16 = vmul.f32 %v5055_v40, %v4943_v38  ;;  %vm5102_vm6 = vcmp.ge.f32.partialorder %v14118_v0, 0.0 }
 0x65b   :  { %v5040_v7 = vmul.f32 %v14099_v62, %v5032_v49  ;;  %v4980_v63 = vmul.f32 1.0614054, %v14143_v48  ;;  %v11392_v8 = vpop.eup %11391  ;;  %v5025_v30 = vmul.f32 %v14109_v41, %v5017_v56  ;;  %v4995_v62 = vmul.f32 %v14136_v17, %v4987_v55 }
 0x65c   :  { %11401 = vrcp.f32 %v4959_v52  ;;  %v5010_v61 = vmul.f32 %v14127_v20, %v5002_v35  ;;  %vm5103_vm7 = vcmp.ge.f32.partialorder %v14133_v21, 0.0  ;;  %v73_v21 = vld [vmem:[%s15763_s2 + $0x2e8] sm:$0xff] }
 0x65d   :  { %v5080_v1 = vmul.f32 %v11392_v8, %v5040_v7  ;;  %v4988_v57 = vadd.f32 -1.4531521, %v4980_v63  ;;  %11403 = vpow2.f32 %v5070_v60  ;;  %v5033_v46 = vadd.f32 0.2548296, %v5025_v30 }
 0x65e   :  { %v14151_v11 = vpop.eup %11393  ;;  %11405 = vpow2.f32 %v5072_v27  ;;  %v5003_v59 = vadd.f32 1.4214138, %v4995_v62  ;;  %v5018_v9 = vadd.f32 -0.28449672, %v5010_v61  ;;  %v5078_v30 = vmul.f32 1.442695, %v5063_v16 }
 0x65f   :  { %v5088_v53 = vsub.f32 1.0, %v5080_v1  ;;  %v4996_v25 = vmul.f32 %v14143_v48, %v4988_v57  ;;  %v4981_v24 = vmul.f32 1.0614054, %v14151_v11  ;;  %v11396_v23 = vpop.eup %11395  ;;  %v5041_v6 = vmul.f32 %v14109_v41, %v5033_v46 }
 0x660   :  { %11407 = vpow2.f32 %v5074_v18  ;;  %v5011_v33 = vmul.f32 %v14136_v17, %v5003_v59  ;;  %v5026_v3 = vmul.f32 %v14127_v20, %v5018_v9  ;;  %v4922_v16 = vmul.f32 0.5, %v14080_v22 }
 0x661   :  { %v5104_v2 = vsub.f32 0.0, %v5088_v53  ;;  %v5004_v37 = vadd.f32 1.4214138, %v4996_v25  ;;  %v4989_v58 = vadd.f32 -1.4531521, %v4981_v24  ;;  %v5081_v19 = vmul.f32 %v11396_v23, %v5041_v6 }
 0x662   :  { %v14158_v54 = vpop.eup %11397  ;;  %v5019_v60 = vadd.f32 -0.28449672, %v5011_v33  ;;  %11409 = vpow2.f32 %v5076_v32  ;;  %v5034_v63 = vadd.f32 0.2548296, %v5026_v3 }
 0x663   :  { %v5112_v31 = vsel %vm5096_vm12, %v5088_v53, %v5104_v2  ;;  %v5012_v51 = vmul.f32 %v14143_v48, %v5004_v37  ;;  %v4982_v49 = vmul.f32 1.0614054, %v14158_v54  ;;  %v11400_v34 = vpop.eup %11399  ;;  %v4997_v41 = vmul.f32 %v14151_v11, %v4989_v58 }
 0x664   :  { %v5120_v5 = vadd.f32 1.0, %v5112_v31  ;;  %v5089_v38 = vsub.f32 1.0, %v5081_v19  ;;  %v5027_v42 = vmul.f32 %v14136_v17, %v5019_v60  ;;  %v5042_v57 = vmul.f32 %v14127_v20, %v5034_v63 }
 0x665   :  { %v5020_v14 = vadd.f32 -0.28449672, %v5012_v51  ;;  %v4990_v52 = vadd.f32 -1.4531521, %v4982_v49  ;;  %v5005_v56 = vadd.f32 1.4214138, %v4997_v41  ;;  %11411 = vpow2.f32 %v5078_v30 }
 0x666   :  { %v14167_v7 = vpop.eup %11401  ;;  %v5128_v28 = vmul.f32 %v5120_v5, %v14120_v12  ;;  %v5105_v8 = vsub.f32 0.0, %v5089_v38  ;;  %v5035_v35 = vadd.f32 0.2548296, %v5027_v42  ;;  %v5082_v32 = vmul.f32 %v11400_v34, %v5042_v57 }
 0x667   :  { %v5028_v27 = vmul.f32 %v14143_v48, %v5020_v14  ;;  %v4998_v10 = vmul.f32 %v14158_v54, %v4990_v52  ;;  %v4983_v55 = vmul.f32 1.0614054, %v14167_v7  ;;  %v11404_v1 = vpop.eup %11403  ;;  %v5013_v12 = vmul.f32 %v14151_v11, %v5005_v56 }
 0x668   :  { %5165 = vrot.lane.b32.xlu0 %v5128_v28, %s11455_s10  ;;  %5136 = vst.msk [vmem:[#allocation3] sm:$0xff] %vm2480_vm2, %v5128_v28  ;;  %v5113_v18 = vsel %vm5097_vm13, %v5089_v38, %v5105_v8  ;;  %v11406_v46 = vpop.eup %11405  ;;  %v5043_v24 = vmul.f32 %v14136_v17, %v5035_v35  ;;  %v5090_v37 = vsub.f32 1.0, %v5082_v32  ;;  %v4923_v52 = vmul.f32 0.5, %v14086_v29 }
 0x669   :  { %v5036_v40 = vadd.f32 0.2548296, %v5028_v27  ;;  %v5006_v62 = vadd.f32 1.4214138, %v4998_v10  ;;  %v4991_v53 = vadd.f32 -1.4531521, %v4983_v55 }
 0x66a   :  { %v5121_v25 = vadd.f32 1.0, %v5113_v18  ;;  %v5021_v61 = vadd.f32 -0.28449672, %v5013_v12  ;;  %v11408_v20 = vpop.eup %11407  ;;  %v5083_v9 = vmul.f32 %v11404_v1, %v5043_v24 }
 0x66b   :  { %v5044_v59 = vmul.f32 %v14143_v48, %v5036_v40  ;;  %v5014_v23 = vmul.f32 %v14158_v54, %v5006_v62  ;;  %v4999_v2 = vmul.f32 %v14167_v7, %v4991_v53  ;;  %v5106_v48 = vsub.f32 0.0, %v5090_v37 }
 0x66c   :  { %v5129_v6 = vmul.f32 %v5121_v25, %v14130_v13  ;;  %v5029_v50 = vmul.f32 %v14151_v11, %v5021_v61  ;;  %v5091_v19 = vsub.f32 1.0, %v5083_v9  ;;  %v11410_v51 = vpop.eup %11409 }
 0x66d   :  { %v5084_v58 = vmul.f32 %v11406_v46, %v5044_v59  ;;  %v5022_v33 = vadd.f32 -0.28449672, %v5014_v23  ;;  %v5007_v31 = vadd.f32 1.4214138, %v4999_v2  ;;  %v5114_v5 = vsel %vm5098_vm14, %v5090_v37, %v5106_v48 }
 0x66e   :  { %5167 = vrot.lane.b32.xlu0 %v5129_v6, %s11455_s10  ;;  %5137 = vst.msk [vmem:[#allocation3 + $0x8] sm:$0xff] %vm2480_vm2, %v5129_v6  ;;  %v5037_v17 = vadd.f32 0.2548296, %v5029_v50  ;;  %v5107_v41 = vsub.f32 0.0, %v5091_v19  ;;  %v5122_v14 = vadd.f32 1.0, %v5114_v5  ;;  %v70_v6 = vld [vmem:[%s15763_s2 + $0x2d0] sm:$0xff] }
 0x66f   :  { %v5092_v13 = vsub.f32 1.0, %v5084_v58  ;;  %v5030_v49 = vmul.f32 %v14158_v54, %v5022_v33  ;;  %v5015_v34 = vmul.f32 %v14167_v7, %v5007_v31  ;;  %v11412_v57 = vpop.eup %11411  ;;  %v72_v50 = vld [vmem:[%s15763_s2 + $0x2e0] sm:$0xff]  ;;  %v5244_v37 = vand.u32 4294901760, %v70_v6 }
 0x670   :  { %v5045_v22 = vmul.f32 %v14151_v11, %v5037_v17  ;;  %v5115_v28 = vsel %vm5099_vm3, %v5091_v19, %v5107_v41  ;;  %v5130_v39 = vmul.f32 %v5122_v14, %v4922_v16  ;;  %v4924_v11 = vmul.f32 0.5, %v14094_v47  ;;  %v75_v19 = vld [vmem:[%s15763_s2 + $0x2f8] sm:$0xff] }
 0x671   :  { %v5108_v3 = vsub.f32 0.0, %v5092_v13  ;;  %v5038_v60 = vadd.f32 0.2548296, %v5030_v49  ;;  %v5023_v38 = vadd.f32 -0.28449672, %v5015_v34  ;;  %v5123_v10 = vadd.f32 1.0, %v5115_v28 }
 0x672   :  { %v5085_v43 = vmul.f32 %v11408_v20, %v5045_v22  ;;  %5138 = vst.msk [vmem:[#allocation3 + $0x10] sm:$0xff] %vm2480_vm2, %v5130_v39  ;;  %v4925_v47 = vmul.f32 0.5, %v14103_v44  ;;  %v4927_v44 = vmul.f32 0.5, %v14124_v45  ;;  %v71_v45 = vld [vmem:[%s15763_s2 + $0x2d8] sm:$0xff]  ;;  %v5246_v20 = vand.u32 4294901760, %v73_v21  ;;  %v76_v22 = vld [vmem:[%s15763_s2 + $0x300] sm:$0xff] }
 0x673   :  { %v5116_v56 = vsel %vm5100_vm4, %v5092_v13, %v5108_v3  ;;  %v5046_v63 = vmul.f32 %v14158_v54, %v5038_v60  ;;  %v5031_v42 = vmul.f32 %v14167_v7, %v5023_v38  ;;  %v5131_v36 = vmul.f32 %v5123_v10, %v4923_v52  ;;  %v74_v13 = vld [vmem:[%s15763_s2 + $0x2f0] sm:$0xff] }
 0x674   :  { %v5124_v8 = vadd.f32 1.0, %v5116_v56  ;;  %v5093_v27 = vsub.f32 1.0, %v5085_v43  ;;  %v5242_v2 = vand.u32 4294901760, %v71_v45  ;;  %v5248_v9 = vand.u32 4294901760, %v72_v50 }
 0x675   :  { %v5086_v55 = vmul.f32 %v11410_v51, %v5046_v63  ;;  %v5039_v1 = vadd.f32 0.2548296, %v5031_v42  ;;  %5139 = vst.msk [vmem:[#allocation3 + $0x18] sm:$0xff] %vm2480_vm2, %v5131_v36  ;;  %v14236_v33 = vsub.f32 %v70_v6, %v5244_v37  ;;  %v16001_v17 = vmov 0   ;;  %v77_v51 = vld [vmem:[%s15763_s2 + $0x308] sm:$0xff]  ;;  %v79_v42 = vld [vmem:[%s15763_s2 + $0x318] sm:$0xff] }
 0x676   :  { %v5132_v29 = vmul.f32 %v5124_v8, %v4924_v11  ;;  %v5109_v30 = vsub.f32 0.0, %v5093_v27  ;;  %v14232_v16 = vpack.c.bf16 %v5246_v20, %v5242_v2  ;;  %v14234_v58 = vpack.c.bf16 %v5248_v9, %v5244_v37  ;;  %11174 = vset.pattern.permute.xlu0 %v16001_v17 }
 0x677   :  { %v5094_v12 = vsub.f32 1.0, %v5086_v55  ;;  %v5047_v54 = vmul.f32 %v14167_v7, %v5039_v1  ;;  %v14238_v31 = vsub.f32 %v72_v50, %v5248_v9  ;;  %v5250_v49 = vand.u32 4294901760, %v75_v19  ;;  %v78_v1 = vld [vmem:[%s15763_s2 + $0x310] sm:$0xff] }
 0x678   :  { %5144 = vrot.lane.b32.xlu0 %v5132_v29, %s11456_s11  ;;  %v5117_v35 = vsel %vm5101_vm5, %v5093_v27, %v5109_v30  ;;  %10437 = vmatprep.subr.bf16.mxu0 %v14232_v16  ;;  %v5254_v34 = vand.u32 4294901760, %v77_v51  ;;  %v5252_v5 = vand.u32 4294901760, %v74_v13  ;;  %v5256_v3 = vand.u32 4294901760, %v76_v22 }
 0x679   :  { %v5125_v18 = vadd.f32 1.0, %v5117_v35  ;;  %v5110_v40 = vsub.f32 0.0, %v5094_v12  ;;  %v5087_v62 = vmul.f32 %v11412_v57, %v5047_v54  ;;  %10439 = vmatpush1.bf16.msra.mxu0 %v14234_v58  ;;  %v14259_v38 = vsub.f32 %v75_v19, %v5250_v49  ;;  %v83_v35 = vld [vmem:[%s15763_s2 + $0x338] sm:$0xff] }
 0x67a   :  { %v14257_v60 = vpack.c.bf16 %v5254_v34, %v5250_v49  ;;  %v14261_v14 = vsub.f32 %v77_v51, %v5254_v34  ;;  %v14263_v52 = vsub.f32 %v74_v13, %v5252_v5  ;;  %v14265_v43 = vpack.c.bf16 %v5256_v3, %v5252_v5 }
 0x67b   :  { %v5133_v53 = vmul.f32 %v5125_v18, %v4925_v47  ;;  %v5118_v46 = vsel %vm5102_vm6, %v5094_v12, %v5110_v40  ;;  %v5095_v25 = vsub.f32 1.0, %v5087_v62  ;;  %v14267_v28 = vsub.f32 %v76_v22, %v5256_v3  ;;  %v85_v47 = vld [vmem:[%s15763_s2 + $0x348] sm:$0xff] }
 0x67c   :  { %v5126_v61 = vadd.f32 1.0, %v5118_v46  ;;  %10441 = vmatprep.subr.bf16.mxu0 %v14257_v60  ;;  %v14278_v27 = vsub.f32 %v71_v45, %v5242_v2  ;;  %v5258_v10 = vand.u32 4294901760, %v79_v42  ;;  %v14287_v30 = vsub.f32 %v73_v21, %v5246_v20  ;;  %v82_v46 = vld [vmem:[%s15763_s2 + $0x330] sm:$0xff] }
 0x67d   :  { %5146 = vrot.lane.b32.xlu0 %v5133_v53, %s11456_s11  ;;  %v5111_v7 = vsub.f32 0.0, %v5095_v25  ;;  %10443 = vmatpush1.bf16.msra.mxu0 %v14265_v43  ;;  %v5266_v62 = vand.u32 4294901760, %v83_v35  ;;  %v5371_v22 = vand.u32 4294901760, %v14259_v38  ;;  %v5383_v5 = vand.u32 4294901760, %v14261_v14 }
 0x67e   :  { %v14207_v32 = vmul.f32 %v5126_v61, %v4926_v4  ;;  %v5347_v4 = vand.u32 4294901760, %v14278_v27  ;;  %v5268_v61 = vand.u32 4294901760, %v82_v46  ;;  %v14319_v45 = vsub.f32 %v79_v42, %v5258_v10 }
 0x67f   :  { %v5119_v24 = vsel %vm5103_vm7, %v5095_v25, %v5111_v7  ;;  %v84_v25 = vld [vmem:[%s15763_s2 + $0x340] sm:$0xff] }
 0x680   :  { %v5127_v59 = vadd.f32 1.0, %v5119_v24  ;;  %v5272_v7 = vand.u32 4294901760, %v84_v25  ;;  %v5359_v24 = vand.u32 4294901760, %v14287_v30 }
 0x681   :  { %5148 = vrot.lane.b32.xlu0 %v14207_v32, %s11456_s11 }
 0x682   :  { %v14211_v23 = vmul.f32 %v5127_v59, %v4927_v44  ;;  %v5353_v44 = vand.u32 4294901760, %v14236_v33  ;;  %v14332_v9 = vpack.c.bf16 %v5272_v7, %v5268_v61  ;;  %v14337_v19 = vsub.f32 %v84_v25, %v5272_v7 }
 0x683   :  { %v5360_v13 = vsub.f32 %v14287_v30, %v5359_v24 }
 0x684   :  { %v5354_v49 = vsub.f32 %v14236_v33, %v5353_v44 }
 0x685   :  { %5150 = vrot.lane.b32.xlu0 %v14211_v23, %s11456_s11  ;;  %v5361_v3 = vand.u32 4294901760, %v5360_v13 }
 0x689   :  { %5169 = vrot.lane.b32.xlu0 %v5130_v39, %s11455_s10  ;;  %v81_v39 = vld [vmem:[%s15763_s2 + $0x328] sm:$0xff] }
 0x68a   :  { %v5262_v55 = vand.u32 4294901760, %v81_v39 }
 0x68c   :  { %v14289_v54 = vpack.c.bf16 %v5262_v55, %v5258_v10  ;;  %v14321_v21 = vsub.f32 %v81_v39, %v5262_v55 }
 0x68d   :  { %5171 = vrot.lane.b32.xlu0 %v5131_v36, %s11455_s10  ;;  %v5260_v36 = vand.u32 4294901760, %v78_v1 }
 0x68e   :  { %10445 = vmatprep.subr.bf16.mxu0 %v14289_v54 }
 0x68f   :  { %v14323_v2 = vsub.f32 %v78_v1, %v5260_v36  ;;  %v5395_v1 = vand.u32 4294901760, %v14319_v45 }
 0x6da   :  { %v5166_v15 = vpop.permute.xlu0 %5165 }
 0x6db   :  { %5177 = vst.msk [vmem:[#allocation3 + $0x20] sm:$0xff] %vm2480_vm2, %v5166_v15  ;;  %v5348_v15 = vsub.f32 %v14278_v27, %v5347_v4 }
 0x6dc   :  { %5181 = vst.msk [vmem:[#allocation3 + $0x20] sm:$0xff] %vm5156_vm8, %v5132_v29  ;;  %v80_v29 = vld [vmem:[%s15763_s2 + $0x320] sm:$0xff] }
 0x6dd   :  { %v5264_v12 = vand.u32 4294901760, %v80_v29  ;;  %v5349_v51 = vand.u32 4294901760, %v5348_v15 }
 0x6df   :  { %v14291_v57 = vpack.c.bf16 %v5264_v12, %v5260_v36  ;;  %v14325_v20 = vsub.f32 %v80_v29, %v5264_v12  ;;  %v10452_v10 = vpack.c.bf16 %v5361_v3, %v5349_v51  ;;  %v5407_v29 = vand.u32 4294901760, %v14321_v21 }
 0x6e0   :  { %v5168_v0 = vpop.permute.xlu0 %5167 }
 0x6e1   :  { %5178 = vst.msk [vmem:[#allocation3 + $0x28] sm:$0xff] %vm2480_vm2, %v5168_v0  ;;  %10447 = vmatpush1.bf16.msra.mxu0 %v14291_v57  ;;  %v5365_v0 = vand.u32 4294901760, %v14238_v31 }
 0x6e2   :  { %5182 = vst.msk [vmem:[#allocation3 + $0x28] sm:$0xff] %vm5156_vm8, %v5133_v53  ;;  %v5270_v53 = vand.u32 4294901760, %v85_v47 }
 0x6e3   :  { %v5366_v34 = vsub.f32 %v14238_v31, %v5365_v0  ;;  %v5189_v42 = vld [vmem:[#allocation3 + $0x20] sm:$0xff] }
 0x6e4   :  { %v14313_v59 = vpack.c.bf16 %v5270_v53, %v5266_v62  ;;  %v14330_v37 = vsub.f32 %v85_v47, %v5270_v53  ;;  %v5401_v53 = vand.u32 4294901760, %v14323_v2 }
 0x6e5   :  { %v5367_v39 = vand.u32 4294901760, %v5366_v34 }
 0x6e6   :  { %10449 = vmatprep.subr.bf16.mxu0 %v14313_v59  ;;  %v5431_v15 = vand.u32 4294901760, %v14330_v37  ;;  %v5402_v13 = vsub.f32 %v14323_v2, %v5401_v53 }
 0x6e7   :  { %10451 = vmatpush1.bf16.msra.mxu0 %v14332_v9 }
 0x6e8   :  { %10453 = vmatprep.subr.bf16.mxu0 %v10452_v10  ;;  %v5432_v3 = vsub.f32 %v14330_v37, %v5431_v15 }
 0x6ea   :  { %v5145_v48 = vpop.permute.xlu0 %5144 }
 0x6eb   :  { %5157 = vst.msk [vmem:[#allocation3] sm:$0xff] %vm5156_vm8, %v5145_v48  ;;  %v14334_v48 = vsub.f32 %v82_v46, %v5268_v61  ;;  %v5190_v46 = vld [vmem:[#allocation3 + $0x28] sm:$0xff]  ;;  %v5413_v61 = vand.u32 4294901760, %v14325_v20 }
 0x6ef   :  { %v5147_v41 = vpop.permute.xlu0 %5146 }
 0x6f0   :  { %5158 = vst.msk [vmem:[#allocation3 + $0x8] sm:$0xff] %vm5156_vm8, %v5147_v41  ;;  %v5377_v41 = vand.u32 4294901760, %v14263_v52 }
 0x6f2   :  { %v5185_v56 = vld [vmem:[#allocation3] sm:$0xff] }
 0x6f3   :  { %v5149_v63 = vpop.permute.xlu0 %5148  ;;  %5204 = vxpose.xlu1.b32.start [1/8] (short) (narrow) %v5185_v56, 16  ;;  %v5355_v56 = vand.u32 4294901760, %v5354_v49  ;;  %v5414_v49 = vsub.f32 %v14325_v20, %v5413_v61 }
 0x6f4   :  { %5159 = vst.msk [vmem:[#allocation3 + $0x10] sm:$0xff] %vm5156_vm8, %v5149_v63  ;;  %v5389_v63 = vand.u32 4294901760, %v14267_v28 }
 0x6f5   :  { %v14369_v36 = vpack.c.bf16 %v5367_v39, %v5355_v56  ;;  %v5425_v56 = vand.u32 4294901760, %v14334_v48  ;;  %v5403_v39 = vand.u32 4294901760, %v5402_v13  ;;  %v10470_v13 = vpack.c.bf16 %v14238_v31, %v14236_v33 }
 0x6f6   :  { %v5390_v55 = vsub.f32 %v14267_v28, %v5389_v63  ;;  %v16363_v33 = vpack.c.bf16 %v14321_v21, %v14319_v45  ;;  %v16364_v31 = vmov 4  }
 0x6f7   :  { %v5151_v11 = vpop.permute.xlu0 %5150  ;;  %v5186_v8 = vld [vmem:[#allocation3 + $0x8] sm:$0xff] }
 0x6f8   :  { %5160 = vst.msk [vmem:[#allocation3 + $0x18] sm:$0xff] %vm5156_vm8, %v5151_v11  ;;  %5205 = vxpose.xlu1.b32.cont [2/8] (short) (narrow) %v5186_v8, 16  ;;  %v5384_v11 = vsub.f32 %v14261_v14, %v5383_v5  ;;  %v5378_v8 = vsub.f32 %v14263_v52, %v5377_v41 }
 0x6fa   :  { %v5379_v47 = vand.u32 4294901760, %v5378_v8  ;;  %v5415_v8 = vand.u32 4294901760, %v5414_v49  ;;  %v16359_v49 = vmov 0.0  }
 0x6fb   :  { %v5170_v18 = vpop.permute.xlu0 %5169  ;;  %v5187_v40 = vld [vmem:[#allocation3 + $0x10] sm:$0xff] }
 0x6fc   :  { %5179 = vst.msk [vmem:[#allocation3 + $0x30] sm:$0xff] %vm2480_vm2, %v5170_v18  ;;  %5206 = vxpose.xlu1.b32.cont [3/8] (short) (narrow) %v5187_v40, 16  ;;  %v5391_v18 = vand.u32 4294901760, %v5390_v55  ;;  %v5396_v40 = vsub.f32 %v14319_v45, %v5395_v1  ;;  %v5433_v55 = vand.u32 4294901760, %v5432_v3 }
 0x6fd   :  { %5183 = vst.msk [vmem:[#allocation3 + $0x30] sm:$0xff] %vm5156_vm8, %v14207_v32  ;;  %v14328_v32 = vsub.f32 %v83_v35, %v5266_v62  ;;  %v5385_v35 = vand.u32 4294901760, %v5384_v11  ;;  %v5408_v62 = vsub.f32 %v14321_v21, %v5407_v29  ;;  %v16371_v21 = vmov 7  }
 0x6ff   :  { %v5172_v6 = vpop.permute.xlu0 %5171  ;;  %v5188_v50 = vld [vmem:[#allocation3 + $0x18] sm:$0xff]  ;;  %v5419_v7 = vand.u32 4294901760, %v14328_v32  ;;  %v5409_v51 = vand.u32 4294901760, %v5408_v62 }
 0x700   :  { %5180 = vst.msk [vmem:[#allocation3 + $0x38] sm:$0xff] %vm2480_vm2, %v5172_v6  ;;  %5207 = vxpose.xlu1.b32.cont [4/8] (short) (narrow) %v5188_v50, 16  ;;  %v14379_v6 = vpack.c.bf16 %v5391_v18, %v5379_v47  ;;  %v5397_v50 = vand.u32 4294901760, %v5396_v40  ;;  %v14391_v47 = vpack.c.bf16 %v5415_v8, %v5403_v39 }
 0x701   :  { %5184 = vst.msk [vmem:[#allocation3 + $0x38] sm:$0xff] %vm5156_vm8, %v14211_v23  ;;  %v5372_v23 = vsub.f32 %v14259_v38, %v5371_v22  ;;  %v5420_v34 = vsub.f32 %v14328_v32, %v5419_v7  ;;  %v14447_v8 = vpack.c.bf16 %v5431_v15, %v5419_v7 }
 0x703   :  { %v5373_v12 = vand.u32 4294901760, %v5372_v23  ;;  %v5437_v23 = vand.u32 4294901760, %v14337_v19  ;;  %v5421_v10 = vand.u32 4294901760, %v5420_v34  ;;  %v16358_v34 = vld [vmem:[#allocation58_spill] sm:$0xff] }
 0x704   :  { %5208 = vxpose.xlu1.b32.cont [5/8] (short) (narrow) %v5189_v42, 16  ;;  %v14386_v42 = vpack.c.bf16 %v5409_v51, %v5397_v50  ;;  %v5191_v11 = vld [vmem:[#allocation3 + $0x30] sm:$0xff]  ;;  %v10468_v51 = vpack.c.bf16 %v14287_v30, %v14278_v27  ;;  %v16362_v27 = vpack.c.bf16 %v14267_v28, %v14263_v52  ;;  %v16367_v52 = vpack.c.bf16 %v14337_v19, %v14334_v48 }
 0x705   :  { %v14374_v25 = vpack.c.bf16 %v5385_v35, %v5373_v12  ;;  %v5426_v12 = vsub.f32 %v14334_v48, %v5425_v56  ;;  %v5438_v35 = vsub.f32 %v14337_v19, %v5437_v23  ;;  %v14393_v18 = vpack.c.bf16 %v5433_v55, %v5421_v10  ;;  %v16352_v55 = vld [vmem:[#allocation20_spill] sm:$0xff] }
 0x706   :  { %v16005_v10 = vmov 1   ;;  %v16368_v28 = vmov 5   ;;  %v16369_v30 = vmov 6  }
 0x707   :  { %v5427_v40 = vand.u32 4294901760, %v5426_v12  ;;  %v5439_v62 = vand.u32 4294901760, %v5438_v35  ;;  %v14419_v12 = vpack.c.bf16 %v5359_v24, %v5347_v4  ;;  %v14425_v35 = vpack.c.bf16 %v5365_v0, %v5353_v44 }
 0x708   :  { %5209 = vxpose.xlu1.b32.cont [6/8] (short) (narrow) %v5190_v46, 16  ;;  %v5192_v46 = vld [vmem:[#allocation3 + $0x38] sm:$0xff]  ;;  %v14439_v4 = vpack.c.bf16 %v5389_v63, %v5377_v41  ;;  %v14441_v24 = vpack.c.bf16 %v5407_v29, %v5395_v1  ;;  %v16004_v44 = vmov 3   ;;  %v14444_v0 = vpack.c.bf16 %v5413_v61, %v5401_v53  ;;  %v16355_v41 = vld [vmem:[#allocation59_spill] sm:$0xff]  ;;  %v16357_v53 = vld [vmem:[#allocation9_spill] sm:$0xff] }
 0x709   :  { %v14395_v50 = vpack.c.bf16 %v5439_v62, %v5427_v40  ;;  %v15998_v40 = vmov 4   ;;  %v16353_v62 = vld [vmem:[#allocation16_spill] sm:$0xff]  ;;  %v15994_v63 = vmov 6   ;;  %v15992_v1 = vmov 7  }
 0x70a   :  { %v16356_v29 = vld [vmem:[#allocation56_spill] sm:$0xff] }
 0x70c   :  { %5210 = vxpose.xlu1.b32.cont [7/8] (short) (narrow) %v5191_v11, 16  ;;  %v14449_v11 = vpack.c.bf16 %v5437_v23, %v5425_v56  ;;  %v16002_v56 = vmov 2  }
 0x710   :  { %5211 = vxpose.xlu1.b32.end [8/8] (short) (narrow) %v5192_v46, 16  ;;  %v14433_v46 = vpack.c.bf16 %v5383_v5, %v5371_v22  ;;  %v16354_v22 = vld [vmem:[#allocation22_spill] sm:$0xff]  ;;  %v15996_v5 = vmov 5  }
 0x72e   :  { %11176 = vset.pattern.permute.xlu1 %v16005_v10 }
 0x72f   :  { %7910 = vperm.xlu1 %11176, %v16352_v55  }
 0x733   :  { %11179 = vset.pattern.permute.xlu1 %v15998_v40 }
 0x734   :  { %7998 = vperm.xlu1 %11179, %v16353_v62  }
 0x738   :  { %11181 = vset.pattern.permute.xlu1 %v16004_v44 }
 0x739   :  { %7974 = vperm.xlu1 %11181, %v16352_v55  }
 0x73d   :  { %7978 = vperm.xlu1 %11181, %v16354_v22  }
 0x741   :  { %11182 = vset.pattern.permute.xlu1 %v15996_v5 }
 0x742   :  { %8034 = vperm.xlu1 %11182, %v16355_v41  }
 0x746   :  { %11183 = vset.pattern.permute.xlu1 %v15998_v40 }
 0x747   :  { %8006 = vperm.xlu1 %11183, %v16352_v55  }
 0x74b   :  { %11185 = vset.pattern.permute.xlu1 %v15994_v63 }
 0x74c   :  { %8062 = vperm.xlu1 %11185, %v16353_v62  }
 0x750   :  { %8066 = vperm.xlu1 %11185, %v16355_v41  }
 0x754   :  { %11186 = vset.pattern.permute.xlu1 %v15996_v5 }
 0x755   :  { %8042 = vperm.xlu1 %11186, %v16354_v22  }
 0x759   :  { %11187 = vset.pattern.permute.xlu1 %v15992_v1 }
 0x75a   :  { %8094 = vperm.xlu1 %11187, %v16353_v62  }
 0x75e   :  { %11189 = vset.pattern.permute.xlu1 %v15994_v63 }
 0x75f   :  { %8070 = vperm.xlu1 %11189, %v16352_v55  }
 0x763   :  { %8074 = vperm.xlu1 %11189, %v16354_v22  }
 0x767   :  { %11190 = vset.pattern.permute.xlu1 %v15992_v1 }
 0x768   :  { %8106 = vperm.xlu1 %11190, %v16354_v22  }
 0x76c   :  { %11192 = vset.pattern.permute.xlu1 %v16001_v17 }
 0x76d   :  { %6970 = vperm.xlu1 %11192, %v16356_v29  }
 0x771   :  { %11193 = vset.pattern.permute.xlu1 %v16005_v10 }
 0x772   :  { %6996 = vperm.xlu1 %11193, %v16357_v53  }
 0x774   :  { %v5220_v61 = vpop.trf.xlu1 }
 0x775   :  { %v5237_v7 = vsel %vm3745_vm15, %v5220_v61, 0 }
 0x776   :  { %v14473_v15 = vand.u32 4294901760, %v5237_v7  ;;  %11194 = vset.pattern.permute.xlu1 %v16002_v56 }
 0x777   :  { %7028 = vperm.xlu1 %11194, %v16357_v53  }
 0x778   :  { %v14478_v23 = vsub.f32 %v5237_v7, %v14473_v15  ;;  %v5221_v1 = vpop.trf.xlu1 }
 0x779   :  { %v5240_v63 = vsel %vm3745_vm15, %v5221_v1, 0 }
 0x77a   :  { %v16000_v5 = vand.u32 4294901760, %v14478_v23  ;;  %v14482_v39 = vand.u32 4294901760, %v5240_v63  ;;  %v16370_v45 = vand.u32 4294901760, %v14478_v23 }
 0x77b   :  { %7032 = vperm.xlu1 %11194, %v16356_v29  }
 0x77c   :  { %v5326_v61 = vsub.f32 %v14478_v23, %v16000_v5  ;;  %v14489_v40 = vsub.f32 %v5240_v63, %v14482_v39  ;;  %v16360_v63 = vld [vmem:[#allocation15_spill] sm:$0xff] }
 0x77e   :  { %v5327_v3 = vand.u32 4294901760, %v5326_v61  ;;  %v5336_v7 = vand.u32 4294901760, %v14489_v40 }
 0x77f   :  { %11196 = vset.pattern.permute.xlu1 %v16001_v17 }
 0x780   :  { %6980 = vperm.xlu1 %11196, %v16358_v34   ;;  %5328 = vmatmul.mubr.f32.vlgmr.msra.gmra.mrb[24].mxu0 %v5327_v3  ;;  %v5337_v1 = vsub.f32 %v14489_v40, %v5336_v7 }
 0x781   :  { %10455 = vmatpush1.bf16.msra.mxu0 %v14369_v36  ;;  %5333 = vmatprep.mubr.f32.mxu0 %v16359_v49  ;;  %v16361_v36 = vpack.c.bf16 %v14261_v14, %v14259_v38  ;;  %v16365_v38 = vpack.c.bf16 %v14325_v20, %v14323_v2  ;;  %v16366_v14 = vpack.c.bf16 %v14330_v37, %v14328_v32  ;;  %v14618_v2 = vld [vmem:[%s15763_s2 + $0x380] sm:$0xff] }
 0x782   :  { %10457 = vmatprep.subr.bf16.mxu0 %v14374_v25  ;;  %v5338_v5 = vand.u32 4294901760, %v5337_v1 }
 0x784   :  { %11197 = vset.pattern.permute.xlu1 %v16005_v10  ;;  %5339 = vmatmul.mubr.f32.gmra.mrb[26].mxu0 %v5338_v5 }
 0x785   :  { %10459 = vmatpush1.bf16.msra.mxu0 %v14379_v6  ;;  %7004 = vperm.xlu1 %11197, %v16360_v63  }
 0x786   :  { %10461 = vmatprep.subr.bf16.mxu0 %v14386_v42  ;;  %5489 = vmatprep.mubr.f32.mxu0 %v16359_v49  ;;  %v14643_v42 = vld [vmem:[%s15763_s2 + $0x390] sm:$0xff] }
 0x789   :  { %10463 = vmatpush1.bf16.msra.mxu0 %v14391_v47  ;;  %11198 = vset.pattern.permute.xlu1 %v16004_v44  ;;  %v14648_v47 = vld [vmem:[%s15763_s2 + $0x3a0] sm:$0xff] }
 0x78a   :  { %7060 = vperm.xlu1 %11198, %v16357_v53   ;;  %10465 = vmatprep.subr.bf16.mxu0 %v14393_v18 }
 0x78d   :  { %10467 = vmatpush1.bf16.msra.mxu0 %v14395_v50 }
 0x78e   :  { %7064 = vperm.xlu1 %11198, %v16356_v29   ;;  %10469 = vmatprep.subr.bf16.mxu0 %v10468_v51 }
 0x790   :  { %5491 = vmatmul.mubr.f32.vlgmr.msra.gmra.mrb[24].mxu0 %v14473_v15 }
 0x791   :  { %10471 = vmatpush1.bf16.msra.mxu0 %v10470_v13  ;;  %5496 = vmatprep.mubr.f32.mxu0 %v16359_v49  ;;  %v6065_v13 = vand.u32 4294901760, %v14643_v42 }
 0x792   :  { %11200 = vset.pattern.permute.xlu1 %v16002_v56  ;;  %10473 = vmatprep.subr.bf16.mxu0 %v16361_v36 }
 0x793   :  { %7040 = vperm.xlu1 %11200, %v16358_v34  }
 0x794   :  { %5498 = vmatmul.mubr.f32.gmra.mrb[26].mxu0 %v14482_v39 }
 0x795   :  { %10475 = vmatpush1.bf16.msra.mxu0 %v16362_v27  ;;  %5600 = vmatprep.mubr.f32.mxu0 %v16359_v49 }
 0x796   :  { %10477 = vmatprep.subr.bf16.mxu0 %v16363_v33 }
 0x797   :  { %11201 = vset.pattern.permute.xlu1 %v16364_v31 }
 0x798   :  { %7092 = vperm.xlu1 %11201, %v16357_v53  }
 0x799   :  { %10479 = vmatpush1.bf16.msra.mxu0 %v16365_v38  ;;  %v14704_v38 = vld [vmem:[%s15763_s2 + $0x3d0] sm:$0xff] }
 0x79a   :  { %10481 = vmatprep.subr.bf16.mxu0 %v16366_v14  ;;  %v14709_v14 = vld [vmem:[%s15763_s2 + $0x3e0] sm:$0xff] }
 0x79c   :  { %11203 = vset.pattern.permute.xlu1 %v16004_v44 }
 0x79d   :  { %10483 = vmatpush1.bf16.msra.mxu0 %v16367_v52  ;;  %7068 = vperm.xlu1 %11203, %v16360_v63  }
 0x79e   :  { %10485 = vmatprep.subr.bf16.mxu0 %v14232_v16 }
 0x7a0   :  { %5603 = vmatmul.mubr.f32.vlgmr.msra.gmra.mrb[24].mxu0 %v14478_v23 }
 0x7a1   :  { %10487 = vmatpush1.bf16.msra.mxu0 %v14234_v58  ;;  %7072 = vperm.xlu1 %11203, %v16358_v34  }
 0x7a2   :  { %5608 = vmatprep.mubr.f32.mxu0 %v16359_v49  ;;  %10489 = vmatprep.subr.bf16.mxu0 %v14257_v60 }
 0x7a4   :  { %5611 = vmatmul.mubr.f32.gmra.mrb[26].mxu0 %v14489_v40 }
 0x7a5   :  { %10491 = vmatpush1.bf16.msra.mxu0 %v14265_v43  ;;  %11204 = vset.pattern.permute.xlu1 %v16368_v28 }
 0x7a6   :  { %7128 = vperm.xlu1 %11204, %v16356_v29   ;;  %10493 = vmatprep.subr.bf16.mxu0 %v14289_v54 }
 0x7a7   :  { %5697 = vmatprep.mubr.f32.mxu0 %v16359_v49 }
 0x7a9   :  { %10495 = vmatpush1.bf16.msra.mxu0 %v14291_v57 }
 0x7aa   :  { %11205 = vset.pattern.permute.xlu1 %v16364_v31  ;;  %10497 = vmatprep.subr.bf16.mxu0 %v14313_v59 }
 0x7ab   :  { %7100 = vperm.xlu1 %11205, %v16360_v63  }
 0x7ad   :  { %10499 = vmatpush1.bf16.msra.mxu0 %v14332_v9 }
 0x7ae   :  { %10501 = vmatprep.subr.bf16.mxu0 %v14419_v12  ;;  %v14660_v12 = vsub.f32 %v14643_v42, %v6065_v13 }
 0x7af   :  { %11207 = vset.pattern.permute.xlu1 %v16369_v30 }
 0x7b0   :  { %5701 = vmatmul.mubr.f32.vlgmr.msra.gmra.mrb[24].mxu0 %v16370_v45  ;;  %7156 = vperm.xlu1 %11207, %v16357_v53  }
 0x7b1   :  { %10503 = vmatpush1.bf16.msra.mxu0 %v14425_v35  ;;  %5706 = vmatprep.mubr.f32.mxu0 %v16359_v49 }
 0x7b2   :  { %10505 = vmatprep.subr.bf16.mxu0 %v14433_v46  ;;  %v14673_v46 = vld [vmem:[%s15763_s2 + $0x3b0] sm:$0xff] }
 0x7b3   :  { %v6071_v5 = vand.u32 4294901760, %v14673_v46 }
 0x7b4   :  { %5710 = vmatmul.mubr.f32.gmra.mrb[26].mxu0 %v5336_v7  ;;  %7160 = vperm.xlu1 %11207, %v16356_v29  }
 0x7b5   :  { %10507 = vmatpush1.bf16.msra.mxu0 %v14439_v4  ;;  %5828 = vmatprep.mubr.f32.mxu0 %v16359_v49  ;;  %v14678_v4 = vld [vmem:[%s15763_s2 + $0x3c0] sm:$0xff]  ;;  %v14691_v1 = vsub.f32 %v14673_v46, %v6071_v5 }
 0x7b6   :  { %10509 = vmatprep.subr.bf16.mxu0 %v14441_v24 }
 0x7b8   :  { %11208 = vset.pattern.permute.xlu1 %v16368_v28 }
 0x7b9   :  { %10511 = vmatpush1.bf16.msra.mxu0 %v14444_v0  ;;  %7136 = vperm.xlu1 %11208, %v16358_v34   ;;  %v16016_v0 = vand.u32 4294901760, %v14660_v12 }
 0x7ba   :  { %10513 = vmatprep.subr.bf16.mxu0 %v14447_v8 }
 0x7bb   :  { %v6203_v7 = vsub.f32 %v14660_v12, %v16016_v0 }
 0x7bd   :  { %10515 = vmatpush1.bf16.msra.mxu0 %v14449_v11  ;;  %11209 = vset.pattern.permute.xlu1 %v16371_v21  ;;  %v6204_v52 = vand.u32 4294901760, %v6203_v7 }
 0x7be   :  { %7188 = vperm.xlu1 %11209, %v16357_v53   ;;  %10517 = vmatprep.subr.bf16.mxu0 %v14232_v16  ;;  %v86_v16 = vld [vmem:[%s15763_s2 + $0x350] sm:$0xff] }
 0x7c0   :  { %5830 = vmatmul.mubr.f32.vlgmr.msra.gmra.mrb[24].mxu0 %v14473_v15 }
 0x7c1   :  { %10519 = vmatpush1.bf16.msra.mxu0 %v14234_v58  ;;  %5835 = vmatprep.mubr.f32.mxu0 %v16359_v49  ;;  %v87_v58 = vld [vmem:[%s15763_s2 + $0x360] sm:$0xff] }
 0x7c2   :  { %11211 = vset.pattern.permute.xlu1 %v16369_v30  ;;  %10521 = vmatprep.subr.bf16.mxu0 %v14257_v60  ;;  %v6053_v60 = vand.u32 4294901760, %v86_v16  ;;  %v16011_v30 = vand.u32 4294901760, %v14691_v1 }
 0x7c3   :  { %7164 = vperm.xlu1 %11211, %v16360_v63  }
 0x7c4   :  { %5837 = vmatmul.mubr.f32.gmra.mrb[26].mxu0 %v14482_v39 }
 0x7c5   :  { %10523 = vmatpush1.bf16.msra.mxu0 %v14265_v43  ;;  %5923 = vmatprep.mubr.f32.mxu0 %v16359_v49  ;;  %v6056_v43 = vand.u32 4294901760, %v87_v58 }
 0x7c6   :  { %10525 = vmatprep.subr.bf16.mxu0 %v14289_v54  ;;  %v14606_v54 = vsub.f32 %v86_v16, %v6053_v60  ;;  %v6077_v16 = vand.u32 4294901760, %v14704_v38 }
 0x7c7   :  { %7168 = vperm.xlu1 %11211, %v16358_v34  }
 0x7c8   :  { %v16022_v20 = vand.u32 4294901760, %v14606_v54 }
 0x7c9   :  { %10527 = vmatpush1.bf16.msra.mxu0 %v14291_v57  ;;  %v14608_v57 = vsub.f32 %v87_v58, %v6056_v43 }
 0x7ca   :  { %10529 = vmatprep.subr.bf16.mxu0 %v14313_v59  ;;  %v14613_v59 = vld [vmem:[%s15763_s2 + $0x370] sm:$0xff]  ;;  %v6175_v48 = vsub.f32 %v14606_v54, %v16022_v20 }
 0x7cb   :  { %11212 = vset.pattern.permute.xlu1 %v16371_v21  ;;  %v16021_v32 = vand.u32 4294901760, %v14608_v57  ;;  %v6059_v37 = vand.u32 4294901760, %v14613_v59 }
 0x7cc   :  { %7200 = vperm.xlu1 %11212, %v16358_v34   ;;  %v6176_v18 = vand.u32 4294901760, %v6175_v48  ;;  %v6080_v48 = vand.u32 4294901760, %v14709_v14 }
 0x7cd   :  { %10531 = vmatpush1.bf16.msra.mxu0 %v14332_v9  ;;  %v6062_v9 = vand.u32 4294901760, %v14618_v2  ;;  %v6182_v19 = vsub.f32 %v14608_v57, %v16021_v32  ;;  %v14633_v25 = vsub.f32 %v14613_v59, %v6059_v37  ;;  %v14781_v59 = vld [vmem:[%s15763_s2 + $0x420] sm:$0xff] }
 0x7ce   :  { %10568 = vmatprep.subr.bf16.mxu0 %v16232_v26  ;;  %v6092_v56 = vand.u32 4294901760, %v14781_v59 }
 0x7cf   :  { %v14638_v6 = vsub.f32 %v14618_v2, %v6062_v9  ;;  %v6183_v50 = vand.u32 4294901760, %v6182_v19  ;;  %v16018_v51 = vand.u32 4294901760, %v14633_v25  ;;  %v6217_v19 = vsub.f32 %v14691_v1, %v16011_v30  ;;  %v14820_v30 = vld [vmem:[%s15763_s2 + $0x440] sm:$0xff] }
 0x7d0   :  { %5925 = vmatmul.mubr.f32.vlgmr.msra.gmra.mrb[24].mxu0 %v14473_v15  ;;  %v6074_v15 = vand.u32 4294901760, %v14678_v4 }
 0x7d1   :  { %5930 = vmatprep.mubr.f32.mxu0 %v16359_v49  ;;  %v16017_v3 = vand.u32 4294901760, %v14638_v6  ;;  %v10569_v11 = vpack.c.bf16 %v6183_v50, %v6176_v18  ;;  %v6189_v8 = vsub.f32 %v14633_v25, %v16018_v51  ;;  %v14725_v50 = vsub.f32 %v14704_v38, %v6077_v16  ;;  %v14898_v38 = vld [vmem:[%s15763_s2 + $0x480] sm:$0xff] }
 0x7d2   :  { %v14696_v36 = vsub.f32 %v14678_v4, %v6074_v15  ;;  %v6218_v7 = vand.u32 4294901760, %v6217_v19 }
 0x7d3   :  { %v6196_v35 = vsub.f32 %v14638_v6, %v16017_v3  ;;  %10570 = vmatpush1.bf16.msra.mxu0 %v10569_v11  ;;  %v6190_v24 = vand.u32 4294901760, %v6189_v8  ;;  %v14727_v8 = vpack.c.bf16 %v6056_v43, %v6053_v60  ;;  %v16008_v60 = vand.u32 4294901760, %v14725_v50 }
 0x7d4   :  { %5932 = vmatmul.mubr.f32.gmra.mrb[26].mxu0 %v14482_v39  ;;  %v6068_v39 = vand.u32 4294901760, %v14648_v47  ;;  %10571 = vmatprep.subr.bf16.mxu0 %v16232_v26  ;;  %v16010_v45 = vand.u32 4294901760, %v14696_v36 }
 0x7d5   :  { %v6197_v23 = vand.u32 4294901760, %v6196_v35  ;;  %v14732_v35 = vsub.f32 %v14709_v14, %v6080_v48  ;;  %10534 = vmatpush1.bf16.msra.mxu1 %v14727_v8  ;;  %v6231_v19 = vsub.f32 %v14725_v50, %v16008_v60 }
 0x7d6   :  { %v14668_v40 = vsub.f32 %v14648_v47, %v6068_v39  ;;  %v6224_v18 = vsub.f32 %v14696_v36, %v16010_v45  ;;  %10535 = vmatprep.subr.bf16.mxu1 %v16232_v26  ;;  %v14807_v60 = vpack.c.bf16 %v6068_v39, %v6065_v13  ;;  %v14815_v45 = vld [vmem:[%s15763_s2 + $0x430] sm:$0xff] }
 0x7d7   :  { %v10572_v27 = vpack.c.bf16 %v6197_v23, %v6190_v24  ;;  %v14737_v24 = vld [vmem:[%s15763_s2 + $0x3f0] sm:$0xff]  ;;  %v14742_v23 = vld [vmem:[%s15763_s2 + $0x400] sm:$0xff]  ;;  %v6232_v2 = vand.u32 4294901760, %v6231_v19  ;;  %v16030_v13 = vand.u32 4294901760, %v14815_v45 }
 0x7d8   :  { %v16013_v61 = vand.u32 4294901760, %v14668_v40  ;;  %v6083_v43 = vand.u32 4294901760, %v14737_v24  ;;  %16373 = vst [vmem:[#allocation25_spill] sm:$0xff] %v14807_v60 }
 0x7d9   :  { %10573 = vmatpush1.bf16.msra.mxu0 %v10572_v27  ;;  %v6225_v27 = vand.u32 4294901760, %v6224_v18 }
 0x7da   :  { %v6210_v33 = vsub.f32 %v14668_v40, %v16013_v61  ;;  %10574 = vmatprep.subr.bf16.mxu0 %v16232_v26  ;;  %v14757_v18 = vsub.f32 %v14737_v24, %v6083_v43  ;;  %v14844_v61 = vpack.c.bf16 %v6074_v15, %v6071_v5 }
 0x7dc   :  { %v6211_v58 = vand.u32 4294901760, %v6210_v33  ;;  %v16007_v33 = vand.u32 4294901760, %v14732_v35  ;;  %16374 = vst [vmem:[#allocation26_spill] sm:$0xff] %v14844_v61 }
 0x7de   :  { %v10575_v11 = vpack.c.bf16 %v6211_v58, %v6204_v52  ;;  %v6086_v52 = vand.u32 4294901760, %v14742_v23  ;;  %v10578_v58 = vpack.c.bf16 %v6225_v27, %v6218_v7  ;;  %v6238_v17 = vsub.f32 %v14732_v35, %v16007_v33  ;;  %v14776_v27 = vld [vmem:[%s15763_s2 + $0x410] sm:$0xff] }
 0x7e0   :  { %10576 = vmatpush1.bf16.msra.mxu0 %v10575_v11  ;;  %v14763_v11 = vpack.c.bf16 %v6062_v9, %v6059_v37  ;;  %v14771_v7 = vsub.f32 %v14742_v23, %v6086_v52  ;;  %v16009_v37 = vand.u32 4294901760, %v14757_v18  ;;  %v6089_v9 = vand.u32 4294901760, %v14776_v27 }
 0x7e1   :  { %10577 = vmatprep.subr.bf16.mxu0 %v16232_v26  ;;  %v6239_v44 = vand.u32 4294901760, %v6238_v17 }
 0x7e2   :  { %16372 = vst [vmem:[#allocation23_spill] sm:$0xff] %v14763_v11  ;;  %10537 = vmatpush1.bf16.msra.mxu1 %v14763_v11  ;;  %v16012_v10 = vand.u32 4294901760, %v14771_v7  ;;  %v6245_v19 = vsub.f32 %v14757_v18, %v16009_v37  ;;  %v14796_v33 = vsub.f32 %v14776_v27, %v6089_v9 }
 0x7e3   :  { %10538 = vmatprep.subr.bf16.mxu1 %v16232_v26  ;;  %v10581_v17 = vpack.c.bf16 %v6239_v44, %v6232_v2  ;;  %v16029_v2 = vand.u32 4294901760, %v14820_v30 }
 0x7e4   :  { %10579 = vmatpush1.bf16.msra.mxu0 %v10578_v58  ;;  %v14801_v58 = vsub.f32 %v14781_v59, %v6092_v56  ;;  %v6252_v37 = vsub.f32 %v14771_v7, %v16012_v10  ;;  %v6246_v44 = vand.u32 4294901760, %v6245_v19  ;;  %v16014_v42 = vand.u32 4294901760, %v14796_v33 }
 0x7e5   :  { %10580 = vmatprep.subr.bf16.mxu0 %v16232_v26 }
 0x7e6   :  { %v16015_v47 = vand.u32 4294901760, %v14801_v58  ;;  %10540 = vmatpush1.bf16.msra.mxu1 %v14807_v60  ;;  %v6253_v39 = vand.u32 4294901760, %v6252_v37  ;;  %v6259_v19 = vsub.f32 %v14796_v33, %v16014_v42  ;;  %v14849_v42 = vsub.f32 %v14820_v30, %v16029_v2 }
 0x7e7   :  { %10541 = vmatprep.subr.bf16.mxu1 %v16232_v26 }
 0x7e8   :  { %10582 = vmatpush1.bf16.msra.mxu0 %v10581_v17  ;;  %v6266_v10 = vsub.f32 %v14801_v58, %v16015_v47  ;;  %v14838_v17 = vsub.f32 %v14815_v45, %v16030_v13  ;;  %v10584_v37 = vpack.c.bf16 %v6253_v39, %v6246_v44  ;;  %v14854_v47 = vld [vmem:[%s15763_s2 + $0x450] sm:$0xff]  ;;  %v14859_v44 = vld [vmem:[%s15763_s2 + $0x460] sm:$0xff]  ;;  %v6260_v46 = vand.u32 4294901760, %v6259_v19 }
 0x7e9   :  { %10583 = vmatprep.subr.bf16.mxu0 %v16232_v26  ;;  %v16027_v5 = vand.u32 4294901760, %v14854_v47  ;;  %v16019_v15 = vand.u32 4294901760, %v14849_v42  ;;  %v16023_v0 = vand.u32 4294901760, %v14859_v44  ;;  %v108_v13 = vld [vmem:[%s15763_s2 + $0x4b0] sm:$0xff] }
 0x7ea   :  { %v6267_v39 = vand.u32 4294901760, %v6266_v10  ;;  %v16020_v4 = vand.u32 4294901760, %v14838_v17  ;;  %10543 = vmatpush1.bf16.msra.mxu1 %v14844_v61 }
 0x7eb   :  { %10544 = vmatprep.subr.bf16.mxu1 %v16232_v26  ;;  %v14874_v19 = vsub.f32 %v14854_v47, %v16027_v5  ;;  %v6280_v51 = vsub.f32 %v14849_v42, %v16019_v15  ;;  %v16026_v15 = vand.u32 4294901760, %v14898_v38 }
 0x7ec   :  { %10585 = vmatpush1.bf16.msra.mxu0 %v10584_v37  ;;  %v10587_v3 = vpack.c.bf16 %v6267_v39, %v6260_v46  ;;  %v6273_v10 = vsub.f32 %v14838_v17, %v16020_v4  ;;  %v14880_v37 = vpack.c.bf16 %v6080_v48, %v6077_v16  ;;  %v14888_v46 = vsub.f32 %v14859_v44, %v16023_v0  ;;  %v14893_v39 = vld [vmem:[%s15763_s2 + $0x470] sm:$0xff] }
 0x7ed   :  { %10586 = vmatprep.subr.bf16.mxu0 %v16232_v26  ;;  %v16024_v16 = vand.u32 4294901760, %v14874_v19  ;;  %v16025_v48 = vand.u32 4294901760, %v14893_v39  ;;  %v6281_v4 = vand.u32 4294901760, %v6280_v51  ;;  %v14924_v0 = vpack.c.bf16 %v6086_v52, %v6083_v43 }
 0x7ee   :  { %16375 = vst [vmem:[#allocation38_spill] sm:$0xff] %v14880_v37  ;;  %v6274_v14 = vand.u32 4294901760, %v6273_v10  ;;  %10546 = vmatpush1.bf16.msra.mxu1 %v14880_v37  ;;  %v16028_v32 = vand.u32 4294901760, %v14888_v46 }
 0x7ef   :  { %10547 = vmatprep.subr.bf16.mxu1 %v16232_v26  ;;  %v6287_v10 = vsub.f32 %v14874_v19, %v16024_v16  ;;  %v14913_v20 = vsub.f32 %v14893_v39, %v16025_v48  ;;  %16376 = vst [vmem:[#allocation43_spill] sm:$0xff] %v14924_v0  ;;  %v106_v48 = vld [vmem:[%s15763_s2 + $0x490] sm:$0xff] }
 0x7f0   :  { %10588 = vmatpush1.bf16.msra.mxu0 %v10587_v3  ;;  %v14918_v3 = vsub.f32 %v14898_v38, %v16026_v15  ;;  %v10590_v51 = vpack.c.bf16 %v6281_v4, %v6274_v14  ;;  %v6294_v16 = vsub.f32 %v14888_v46, %v16028_v32  ;;  %v107_v15 = vld [vmem:[%s15763_s2 + $0x4a0] sm:$0xff]  ;;  %v6113_v23 = vand.u32 4294901760, %v106_v48 }
 0x7f1   :  { %10589 = vmatprep.subr.bf16.mxu0 %v16232_v26  ;;  %v6288_v5 = vand.u32 4294901760, %v6287_v10  ;;  %v16031_v4 = vand.u32 4294901760, %v14913_v20  ;;  %v6116_v52 = vand.u32 4294901760, %v107_v15 }
 0x7f2   :  { %v16032_v24 = vand.u32 4294901760, %v14918_v3  ;;  %10549 = vmatpush1.bf16.msra.mxu1 %v14924_v0  ;;  %v6295_v43 = vand.u32 4294901760, %v6294_v16  ;;  %v14946_v32 = vsub.f32 %v106_v48, %v6113_v23  ;;  %v14952_v16 = vpack.c.bf16 %v6092_v56, %v6089_v9 }
 0x7f3   :  { %10550 = vmatprep.subr.bf16.mxu1 %v16232_v26  ;;  %v6301_v14 = vsub.f32 %v14913_v20, %v16031_v4  ;;  %v109_v4 = vld [vmem:[%s15763_s2 + $0x4c0] sm:$0xff] }
 0x7f4   :  { %10591 = vmatpush1.bf16.msra.mxu0 %v10590_v51  ;;  %v6308_v10 = vsub.f32 %v14918_v3, %v16032_v24  ;;  %v10593_v2 = vpack.c.bf16 %v6295_v43, %v6288_v5  ;;  %16377 = vst [vmem:[#allocation34_spill] sm:$0xff] %v14952_v16  ;;  %v14954_v51 = vsub.f32 %v107_v15, %v6116_v52  ;;  %v16039_v5 = vand.u32 4294901760, %v14946_v32 }
 0x7f5   :  { %10592 = vmatprep.subr.bf16.mxu0 %v16232_v26  ;;  %v6302_v24 = vand.u32 4294901760, %v6301_v14  ;;  %v6119_v43 = vand.u32 4294901760, %v108_v13  ;;  %v6122_v27 = vand.u32 4294901760, %v109_v4  ;;  %v16378_v14 = vand.u32 4294901760, %v14815_v45 }
 0x7f6   :  { %v6309_v48 = vand.u32 4294901760, %v6308_v10  ;;  %10552 = vmatpush1.bf16.msra.mxu1 %v14952_v16  ;;  %v16038_v56 = vand.u32 4294901760, %v14954_v51  ;;  %v6315_v9 = vsub.f32 %v14946_v32, %v16039_v5 }
 0x7f7   :  { %10553 = vmatprep.subr.bf16.mxu1 %v16232_v26  ;;  %v14970_v15 = vsub.f32 %v108_v13, %v6119_v43  ;;  %v14981_v34 = vsub.f32 %v109_v4, %v6122_v27  ;;  %v16381_v4 = vand.u32 4294901760, %v14854_v47  ;;  %v16384_v47 = vand.u32 4294901760, %v14893_v39 }
 0x7f8   :  { %10594 = vmatpush1.bf16.msra.mxu0 %v10593_v2  ;;  %v10596_v59 = vpack.c.bf16 %v6309_v48, %v6302_v24  ;;  %v16379_v2 = vand.u32 4294901760, %v14820_v30  ;;  %v6322_v49 = vsub.f32 %v14954_v51, %v16038_v56  ;;  %v6316_v29 = vand.u32 4294901760, %v6315_v9 }
 0x7f9   :  { %10595 = vmatprep.subr.bf16.mxu0 %v16232_v26  ;;  %v16037_v24 = vand.u32 4294901760, %v14970_v15  ;;  %v16036_v48 = vand.u32 4294901760, %v14981_v34  ;;  %v16382_v9 = vand.u32 4294901760, %v14859_v44  ;;  %v16385_v44 = vand.u32 4294901760, %v14898_v38 }
 0x7fa   :  { %v14976_v10 = vpack.c.bf16 %v16379_v2, %v16378_v14  ;;  %v6323_v13 = vand.u32 4294901760, %v6322_v49  ;;  %v15020_v38 = vpack.c.bf16 %v6122_v27, %v6119_v43 }
 0x7fb   :  { %v6329_v30 = vsub.f32 %v14970_v15, %v16037_v24  ;;  %v14995_v14 = vpack.c.bf16 %v16382_v9, %v16381_v4  ;;  %v6336_v49 = vsub.f32 %v14981_v34, %v16036_v48  ;;  %v16390_v24 = vld [vmem:[#allocation19_spill] sm:$0xff] }
 0x7fc   :  { %16380 = vst [vmem:[#allocation27_spill] sm:$0xff] %v14976_v10  ;;  %10597 = vmatpush1.bf16.msra.mxu0 %v10596_v59  ;;  %10555 = vmatpush1.bf16.msra.mxu1 %v14976_v10  ;;  %v10599_v45 = vpack.c.bf16 %v6323_v13, %v6316_v29  ;;  %v15007_v13 = vpack.c.bf16 %v16385_v44, %v16384_v47  ;;  %16388 = vst [vmem:[#allocation31_spill] sm:$0xff] %v15020_v38  ;;  %v9247_v47 = vld [vmem:[%s15763_s2 + $0x10] ss:$8 sm:$0x3]  ;;  %v16389_v44 = vld [vmem:[#allocation17_spill] sm:$0xff] }
 0x7fd   :  { %10598 = vmatprep.subr.bf16.mxu0 %v16232_v26  ;;  %10556 = vmatprep.subr.bf16.mxu1 %v16232_v26  ;;  %16383 = vst [vmem:[#allocation41_spill] sm:$0xff] %v14995_v14  ;;  %v6330_v59 = vand.u32 4294901760, %v6329_v30  ;;  %v6337_v2 = vand.u32 4294901760, %v6336_v49  ;;  %v5197_v48 = vrot.slane %v9247_v47, %v16389_v44  ;;  %v5201_v56 = vrot.slane %v9247_v47, %v16390_v24 }
 0x7fe   :  { %16386 = vst [vmem:[#allocation46_spill] sm:$0xff] %v15007_v13 }
 0x7ff   :  { %v10602_v29 = vpack.c.bf16 %v6337_v2, %v6330_v59 }
 0x800   :  { %10600 = vmatpush1.bf16.msra.mxu0 %v10599_v45  ;;  %10558 = vmatpush1.bf16.msra.mxu1 %v14995_v14  ;;  %v15014_v45 = vpack.c.bf16 %v6116_v52, %v6113_v23 }
 0x801   :  { %10601 = vmatprep.subr.bf16.mxu0 %v16232_v26  ;;  %10559 = vmatprep.subr.bf16.mxu1 %v16232_v26 }
 0x802   :  { %16387 = vst [vmem:[#allocation36_spill] sm:$0xff] %v15014_v45 }
 0x804   :  { %10603 = vmatpush1.bf16.msra.mxu0 %v10602_v29  ;;  %10561 = vmatpush1.bf16.msra.mxu1 %v15007_v13 }
 0x805   :  { %10604 = vmatprep.subr.bf16.mxu0 %v16232_v26  ;;  %10562 = vmatprep.subr.bf16.mxu1 %v16232_v26 }
 0x808   :  { %10564 = vmatpush1.bf16.msra.mxu1 %v15014_v45 }
 0x809   :  { %10565 = vmatprep.subr.bf16.mxu1 %v16232_v26 }
 0x80c   :  { %10567 = vmatpush1.bf16.msra.mxu1 %v15020_v38 }
 0x8a3   :  { %v5926_v5 = vpop.f32.mrb[24].mxu0 }
 0x8a4   :  { %v15048_v43 = vadd.f32 %v5926_v5, %v5197_v48  ;;  %v5928_v27 = vpop.f32.mrb[25].mxu0 }
 0x8a5   :  { %v15050_v49 = vadd.f32 %v5928_v27, %v5201_v56 }
 0x8a6   :  { %v15053_v59 = vmul.f32 0.70710677, %v15048_v43 }
 0x8a7   :  { %v15056_v2 = vmul.f32 0.70710677, %v15050_v49  ;;  %v5933_v29 = vpop.f32.mrb[26].mxu0 }
 0x8a8   :  { %v5946_v52 = vand.u32 2147483647, %v15053_v59  ;;  %v15059_v23 = vadd.f32 %v5933_v29, %v5197_v48  ;;  %v5935_v9 = vpop.f32.mrb[27].mxu0  ;;  %vm6026_vm9 = vcmp.ge.f32.partialorder %v15053_v59, 0.0 }
 0x8a9   :  { %v5947_v47 = vand.u32 2147483647, %v15056_v2  ;;  %v15062_v4 = vadd.f32 %v5935_v9, %v5201_v56  ;;  %vm6027_vm10 = vcmp.ge.f32.partialorder %v15056_v2, 0.0 }
 0x8aa   :  { %v5950_v5 = vmul.f32 0.3275911, %v5946_v52  ;;  %v15065_v27 = vmul.f32 0.70710677, %v15059_v23  ;;  %v6002_v31 = vsub.f32 0.0, %v5946_v52 }
 0x8ab   :  { %v5951_v39 = vmul.f32 0.3275911, %v5947_v47  ;;  %v15068_v30 = vmul.f32 0.70710677, %v15062_v4  ;;  %v6003_v22 = vsub.f32 0.0, %v5947_v47 }
 0x8ac   :  { %v5954_v24 = vadd.f32 1.0, %v5950_v5  ;;  %v5948_v63 = vand.u32 2147483647, %v15065_v27  ;;  %v6006_v41 = vmul.f32 %v6002_v31, %v5946_v52  ;;  %vm6028_vm11 = vcmp.ge.f32.partialorder %v15065_v27, 0.0 }
 0x8ad   :  { %v5955_v21 = vadd.f32 1.0, %v5951_v39  ;;  %v5949_v48 = vand.u32 2147483647, %v15068_v30  ;;  %v6007_v38 = vmul.f32 %v6003_v22, %v5947_v47  ;;  %vm6029_vm12 = vcmp.ge.f32.partialorder %v15068_v30, 0.0 }
 0x8ae   :  { %11413 = vrcp.f32 %v5954_v24  ;;  %v5952_v29 = vmul.f32 0.3275911, %v5948_v63  ;;  %v6004_v62 = vsub.f32 0.0, %v5948_v63  ;;  %v6010_v24 = vmul.f32 1.442695, %v6006_v41 }
 0x8af   :  { %11415 = vrcp.f32 %v5955_v21  ;;  %v5953_v28 = vmul.f32 0.3275911, %v5949_v48  ;;  %v6005_v45 = vsub.f32 0.0, %v5949_v48 }
 0x8b0   :  { %v5956_v56 = vadd.f32 1.0, %v5952_v29  ;;  %v6008_v21 = vmul.f32 %v6004_v62, %v5948_v63 }
 0x8b1   :  { %v5957_v9 = vadd.f32 1.0, %v5953_v28  ;;  %v6012_v28 = vmul.f32 1.442695, %v6007_v38 }
 0x8b2   :  { %11417 = vrcp.f32 %v5956_v56  ;;  %v6014_v60 = vmul.f32 1.442695, %v6008_v21 }
 0x8b3   :  { %11419 = vrcp.f32 %v5957_v9  ;;  %v6009_v9 = vmul.f32 %v6005_v45, %v5949_v48 }
 0x8b4   :  { %11421 = vpow2.f32 %v6010_v24 }
 0x8b5   :  { %11423 = vpow2.f32 %v6012_v28  ;;  %v6016_v11 = vmul.f32 1.442695, %v6009_v9 }
 0x8b6   :  { %11425 = vpow2.f32 %v6014_v60 }
 0x8b7   :  { %11427 = vpow2.f32 %v6016_v11 }
 0x8b8   :  { %v11414_v55 = vpop.eup %11413 }
 0x8b9   :  { %v11416_v44 = vpop.eup %11415  ;;  %v5966_v5 = vmul.f32 1.0614054, %v11414_v55 }
 0x8ba   :  { %v5967_v39 = vmul.f32 1.0614054, %v11416_v44 }
 0x8bb   :  { %v5970_v13 = vadd.f32 -1.4531521, %v5966_v5 }
 0x8bc   :  { %v11418_v14 = vpop.eup %11417  ;;  %v5971_v10 = vadd.f32 -1.4531521, %v5967_v39 }
 0x8bd   :  { %v11420_v16 = vpop.eup %11419  ;;  %v5974_v29 = vmul.f32 %v11414_v55, %v5970_v13  ;;  %v5968_v56 = vmul.f32 1.0614054, %v11418_v14 }
 0x8be   :  { %v5975_v0 = vmul.f32 %v11416_v44, %v5971_v10  ;;  %v5969_v37 = vmul.f32 1.0614054, %v11420_v16 }
 0x8bf   :  { %v5978_v61 = vadd.f32 1.4214138, %v5974_v29  ;;  %v5972_v31 = vadd.f32 -1.4531521, %v5968_v56  ;;  %v11422_v56 = vpop.eup %11421 }
 0x8c0   :  { %v5979_v52 = vadd.f32 1.4214138, %v5975_v0  ;;  %v5973_v22 = vadd.f32 -1.4531521, %v5969_v37 }
 0x8c1   :  { %v5982_v47 = vmul.f32 %v11414_v55, %v5978_v61  ;;  %v5976_v5 = vmul.f32 %v11418_v14, %v5972_v31 }
 0x8c2   :  { %v5983_v41 = vmul.f32 %v11416_v44, %v5979_v52  ;;  %v5977_v39 = vmul.f32 %v11420_v16, %v5973_v22  ;;  %v11424_v52 = vpop.eup %11423 }
 0x8c3   :  { %v5986_v62 = vadd.f32 -0.28449672, %v5982_v47  ;;  %v5980_v63 = vadd.f32 1.4214138, %v5976_v5 }
 0x8c4   :  { %v5987_v13 = vadd.f32 -0.28449672, %v5983_v41  ;;  %v5981_v38 = vadd.f32 1.4214138, %v5977_v39 }
 0x8c5   :  { %v5990_v45 = vmul.f32 %v11414_v55, %v5986_v62  ;;  %v5984_v10 = vmul.f32 %v11418_v14, %v5980_v63  ;;  %v11426_v62 = vpop.eup %11425 }
 0x8c6   :  { %v5991_v48 = vmul.f32 %v11416_v44, %v5987_v13  ;;  %v5985_v29 = vmul.f32 %v11420_v16, %v5981_v38  ;;  %v11428_v13 = vpop.eup %11427 }
 0x8c7   :  { %v5994_v24 = vadd.f32 0.2548296, %v5990_v45  ;;  %v5988_v0 = vadd.f32 -0.28449672, %v5984_v10 }
 0x8c8   :  { %v5995_v21 = vadd.f32 0.2548296, %v5991_v48  ;;  %v5989_v37 = vadd.f32 -0.28449672, %v5985_v29  ;;  %v7223_v29 = vsel %vm2480_vm2, %v16357_v53, 0 }
 0x8c9   :  { %v5998_v61 = vmul.f32 %v11414_v55, %v5994_v24  ;;  %v5992_v28 = vmul.f32 %v11418_v14, %v5988_v0  ;;  %v5938_v24 = vmul.f32 0.5, %v15048_v43  ;;  %v15080_v2 = vand.u32 4294901760, %v7223_v29 }
 0x8ca   :  { %v5999_v9 = vmul.f32 %v11416_v44, %v5995_v21  ;;  %v5993_v31 = vmul.f32 %v11420_v16, %v5989_v37  ;;  %v5940_v43 = vmul.f32 0.5, %v15059_v23 }
 0x8cb   :  { %v6018_v22 = vmul.f32 %v11422_v56, %v5998_v61  ;;  %v5996_v47 = vadd.f32 0.2548296, %v5992_v28 }
 0x8cc   :  { %v6019_v5 = vmul.f32 %v11424_v52, %v5999_v9  ;;  %v5997_v60 = vadd.f32 0.2548296, %v5993_v31 }
 0x8cd   :  { %v6022_v41 = vsub.f32 1.0, %v6018_v22  ;;  %v6000_v39 = vmul.f32 %v11418_v14, %v5996_v47  ;;  %v5941_v47 = vmul.f32 0.5, %v15062_v4 }
 0x8ce   :  { %v6023_v11 = vsub.f32 1.0, %v6019_v5  ;;  %v6001_v63 = vmul.f32 %v11420_v16, %v5997_v60  ;;  %v5939_v16 = vmul.f32 0.5, %v15050_v49 }
 0x8cf   :  { %v6030_v38 = vsub.f32 0.0, %v6022_v41  ;;  %v6020_v45 = vmul.f32 %v11426_v62, %v6000_v39 }
 0x8d0   :  { %v6031_v55 = vsub.f32 0.0, %v6023_v11  ;;  %v6021_v10 = vmul.f32 %v11428_v13, %v6001_v63 }
 0x8d1   :  { %v6034_v48 = vsel %vm6026_vm9, %v6022_v41, %v6030_v38  ;;  %v6024_v44 = vsub.f32 1.0, %v6020_v45  ;;  %v16391_v38 = vpack.c.bf16 %v14608_v57, %v14606_v54 }
 0x8d2   :  { %v6038_v14 = vadd.f32 1.0, %v6034_v48  ;;  %v6035_v0 = vsel %vm6027_vm10, %v6023_v11, %v6031_v55  ;;  %v6025_v21 = vsub.f32 1.0, %v6021_v10  ;;  %v15098_v11 = vsub.f32 %v7223_v29, %v15080_v2 }
 0x8d3   :  { %v6039_v37 = vadd.f32 1.0, %v6035_v0  ;;  %v6032_v61 = vsub.f32 0.0, %v6024_v44 }
 0x8d4   :  { %v6042_v28 = vmul.f32 %v6038_v14, %v5938_v24  ;;  %v6033_v59 = vsub.f32 0.0, %v6025_v21  ;;  %v7299_v29 = vand.u32 4294901760, %v15098_v11  ;;  %v16392_v24 = vpack.c.bf16 %v14638_v6, %v14633_v25 }
 0x8d5   :  { %v6043_v56 = vmul.f32 %v6039_v37, %v5939_v16  ;;  %v6036_v9 = vsel %vm6028_vm11, %v6024_v44, %v6032_v61 }
 0x8d6   :  { %v15082_v31 = vand.u32 4294901760, %v6042_v28  ;;  %v6040_v52 = vadd.f32 1.0, %v6036_v9  ;;  %v6037_v22 = vsel %vm6029_vm12, %v6025_v21, %v6033_v59  ;;  %v7300_v61 = vsub.f32 %v15098_v11, %v7299_v29 }
 0x8d7   :  { %v6047_v49 = vsel %vm3745_vm15, %v6043_v56, 0  ;;  %v6041_v5 = vadd.f32 1.0, %v6037_v22  ;;  %v16396_v22 = vpack.c.bf16 %v14771_v7, %v14757_v18 }
 0x8d8   :  { %v15088_v27 = vsub.f32 %v6042_v28, %v15082_v31  ;;  %v6044_v60 = vmul.f32 %v6040_v52, %v5940_v43  ;;  %v15090_v41 = vand.u32 4294901760, %v6047_v49  ;;  %v16393_v28 = vpack.c.bf16 %v14668_v40, %v14660_v12 }
 0x8d9   :  { %v6045_v30 = vmul.f32 %v6041_v5, %v5941_v47  ;;  %v7301_v9 = vand.u32 4294901760, %v7300_v61  ;;  %v16394_v43 = vpack.c.bf16 %v14696_v36, %v14691_v1  ;;  %v16395_v52 = vpack.c.bf16 %v14732_v35, %v14725_v50  ;;  %v16413_v61 = vld [vmem:[#allocation31_spill] sm:$0xff] }
 0x8da   :  { %v6148_v39 = vand.u32 4294901760, %v15088_v27  ;;  %v15093_v62 = vand.u32 4294901760, %v6044_v60  ;;  %6356 = vmatprep.mubr.f32.mxu0 %v15090_v41  ;;  %v6141_v23 = vsub.f32 %v6047_v49, %v15090_v41  ;;  %v16397_v49 = vpack.c.bf16 %v14801_v58, %v14796_v33 }
 0x8db   :  { %v6050_v4 = vsel %vm3745_vm15, %v6045_v30, 0  ;;  %6358 = vmatmul.mubr.f32.vlgmr.msra.gmra.mrb[28].mxu0 %v15082_v31  ;;  %v16398_v47 = vpack.c.bf16 %v14849_v42, %v14838_v17  ;;  %v16399_v5 = vpack.c.bf16 %v14888_v46, %v14874_v19  ;;  %v16401_v30 = vpack.c.bf16 %v14954_v51, %v14946_v32 }
 0x8dc   :  { %v15103_v63 = vsub.f32 %v6044_v60, %v15093_v62  ;;  %v15105_v13 = vand.u32 4294901760, %v6050_v4  ;;  %10606 = vmatpush1.bf16.msra.mxu0 %v16391_v38  ;;  %v6142_v45 = vand.u32 4294901760, %v6141_v23  ;;  %v6149_v55 = vsub.f32 %v15088_v27, %v6148_v39  ;;  %v16404_v38 = vld [vmem:[#allocation25_spill] sm:$0xff] }
 0x8dd   :  { %10607 = vmatprep.subr.bf16.mxu0 %v16232_v26  ;;  %v16400_v60 = vpack.c.bf16 %v14918_v3, %v14913_v20 }
 0x8de   :  { %v15115_v10 = vsub.f32 %v6050_v4, %v15105_v13  ;;  %6363 = vmatprep.mubr.f32.mxu0 %v15105_v13  ;;  %v6143_v48 = vsub.f32 %v6141_v23, %v6142_v45  ;;  %v6163_v44 = vand.u32 4294901760, %v15103_v63  ;;  %v6150_v21 = vand.u32 4294901760, %v6149_v55  ;;  %v16403_v4 = vld [vmem:[#allocation23_spill] sm:$0xff]  ;;  %v16405_v55 = vld [vmem:[#allocation26_spill] sm:$0xff] }
 0x8df   :  { %6365 = vmatmul.mubr.f32.gmra.mrb[30].mxu0 %v15093_v62 }
 0x8e0   :  { %10609 = vmatpush1.bf16.msra.mxu0 %v16392_v24  ;;  %6484 = vmatprep.mubr.f32.mxu0 %v6141_v23  ;;  %v6144_v14 = vand.u32 4294901760, %v6143_v48  ;;  %v6157_v0 = vand.u32 4294901760, %v15115_v10  ;;  %v6164_v16 = vsub.f32 %v15103_v63, %v6163_v44  ;;  %v16402_v23 = vpack.c.bf16 %v14981_v34, %v14970_v15  ;;  %v16406_v48 = vld [vmem:[#allocation38_spill] sm:$0xff]  ;;  %v16407_v24 = vld [vmem:[#allocation43_spill] sm:$0xff] }
 0x8e1   :  { %10610 = vmatprep.subr.bf16.mxu0 %v16232_v26 }
 0x8e2   :  { %6145 = vmatprep.mubr.f32.mxu1 %v6144_v14  ;;  %v6158_v37 = vsub.f32 %v15115_v10, %v6157_v0  ;;  %v6165_v56 = vand.u32 4294901760, %v6164_v16  ;;  %v16408_v14 = vld [vmem:[#allocation34_spill] sm:$0xff] }
 0x8e3   :  { %6151 = vmatmul.mubr.f32.vlgmr.msra.gmra.mrb[24].mxu1 %v6150_v21  ;;  %v16410_v21 = vld [vmem:[#allocation41_spill] sm:$0xff]  ;;  %v16411_v16 = vld [vmem:[#allocation46_spill] sm:$0xff] }
 0x8e4   :  { %10612 = vmatpush1.bf16.msra.mxu0 %v16393_v28  ;;  %v6159_v59 = vand.u32 4294901760, %v6158_v37  ;;  %v16412_v37 = vld [vmem:[#allocation36_spill] sm:$0xff]  ;;  %v16414_v28 = vand.u32 4294901760, %v14606_v54  ;;  %v16418_v54 = vand.u32 4294901760, %v14660_v12  ;;  %v16424_v12 = vand.u32 4294901760, %v14757_v18 }
 0x8e5   :  { %10613 = vmatprep.subr.bf16.mxu0 %v16232_v26  ;;  %v16430_v18 = vand.u32 4294901760, %v14874_v19  ;;  %v16436_v19 = vand.u32 4294901760, %v14970_v15 }
 0x8e6   :  { %6160 = vmatprep.mubr.f32.mxu1 %v6159_v59  ;;  %v16415_v59 = vand.u32 4294901760, %v14608_v57  ;;  %v16419_v57 = vand.u32 4294901760, %v14668_v40  ;;  %v16425_v40 = vand.u32 4294901760, %v14771_v7  ;;  %v16431_v7 = vand.u32 4294901760, %v14888_v46 }
 0x8e7   :  { %6166 = vmatmul.mubr.f32.gmra.mrb[26].mxu1 %v6165_v56  ;;  %v16437_v46 = vand.u32 4294901760, %v14981_v34 }
 0x8e8   :  { %10615 = vmatpush1.bf16.msra.mxu0 %v16394_v43  ;;  %9868 = vmatprep.mubr.f32.mxu1 %v7301_v9  ;;  %v10677_v56 = vpack.c.bf16 %v16415_v59, %v16414_v28  ;;  %v16416_v9 = vand.u32 4294901760, %v14633_v25  ;;  %v16417_v43 = vand.u32 4294901760, %v14638_v6  ;;  %v16420_v25 = vand.u32 4294901760, %v14691_v1 }
 0x8e9   :  { %10616 = vmatprep.subr.bf16.mxu0 %v16232_v26  ;;  %v16421_v6 = vand.u32 4294901760, %v14696_v36  ;;  %v16426_v1 = vand.u32 4294901760, %v14796_v33  ;;  %v16427_v36 = vand.u32 4294901760, %v14801_v58  ;;  %v16432_v33 = vand.u32 4294901760, %v14913_v20 }
 0x8ea   :  { %v16433_v58 = vand.u32 4294901760, %v14918_v3  ;;  %v15299_v3 = vpop.permute.xlu1 %7910 }
 0x8ec   :  { %10618 = vmatpush1.bf16.msra.mxu0 %v16395_v52  ;;  %v10680_v52 = vpack.c.bf16 %v16417_v43, %v16416_v9 }
 0x8ed   :  { %10619 = vmatprep.subr.bf16.mxu0 %v16232_v26 }
 0x8f0   :  { %10621 = vmatpush1.bf16.msra.mxu0 %v16396_v22  ;;  %v10695_v22 = vpack.c.bf16 %v16427_v36, %v16426_v1 }
 0x8f1   :  { %10622 = vmatprep.subr.bf16.mxu0 %v16232_v26 }
 0x8f4   :  { %10624 = vmatpush1.bf16.msra.mxu0 %v16397_v49 }
 0x8f5   :  { %10625 = vmatprep.subr.bf16.mxu0 %v16232_v26 }
 0x8f8   :  { %10627 = vmatpush1.bf16.msra.mxu0 %v16398_v47  ;;  %v10701_v47 = vpack.c.bf16 %v16431_v7, %v16430_v18 }
 0x8f9   :  { %10628 = vmatprep.subr.bf16.mxu0 %v16232_v26 }
 0x8fc   :  { %10630 = vmatpush1.bf16.msra.mxu0 %v16399_v5  ;;  %v10704_v5 = vpack.c.bf16 %v16433_v58, %v16432_v33 }
 0x8fd   :  { %10631 = vmatprep.subr.bf16.mxu0 %v16232_v26 }
 0x900   :  { %10633 = vmatpush1.bf16.msra.mxu0 %v16400_v60 }
 0x901   :  { %10634 = vmatprep.subr.bf16.mxu0 %v16232_v26 }
 0x904   :  { %10636 = vmatpush1.bf16.msra.mxu0 %v16401_v30  ;;  %v10710_v30 = vpack.c.bf16 %v16437_v46, %v16436_v19 }
 0x905   :  { %10637 = vmatprep.subr.bf16.mxu0 %v16232_v26 }
 0x908   :  { %10639 = vmatpush1.bf16.msra.mxu0 %v16402_v23 }
 0x909   :  { %10640 = vmatprep.subr.bf16.mxu0 %v16232_v26 }
 0x90b   :  { %6487 = vmatmul.mubr.f32.vlgmr.msra.gmra.mrb[28].mxu0 %v15088_v27  ;;  %v10683_v27 = vpack.c.bf16 %v16419_v57, %v16418_v54 }
 0x90c   :  { %6493 = vmatprep.mubr.f32.mxu0 %v15115_v10  ;;  %10642 = vmatpush1.bf16.msra.mxu0 %v14727_v8  ;;  %v16423_v10 = vand.u32 4294901760, %v14732_v35  ;;  %v16429_v35 = vand.u32 4294901760, %v14849_v42  ;;  %v16434_v42 = vand.u32 4294901760, %v14946_v32 }
 0x90d   :  { %10643 = vmatprep.subr.bf16.mxu0 %v16232_v26 }
 0x90f   :  { %6496 = vmatmul.mubr.f32.gmra.mrb[30].mxu0 %v15103_v63  ;;  %v16422_v63 = vand.u32 4294901760, %v14725_v50  ;;  %v16428_v50 = vand.u32 4294901760, %v14838_v17  ;;  %v16435_v17 = vand.u32 4294901760, %v14954_v51  ;;  %v15301_v51 = vpop.permute.xlu1 %7998 }
 0x910   :  { %10645 = vmatpush1.bf16.msra.mxu0 %v16403_v4  ;;  %6592 = vmatprep.mubr.f32.mxu0 %v6142_v45  ;;  %v16409_v45 = vld [vmem:[#allocation27_spill] sm:$0xff] }
 0x911   :  { %10646 = vmatprep.subr.bf16.mxu0 %v16232_v26  ;;  %v10698_v49 = vpack.c.bf16 %v16429_v35, %v16428_v50  ;;  %v10707_v60 = vpack.c.bf16 %v16435_v17, %v16434_v42 }
 0x913   :  { %v15303_v15 = vpop.permute.xlu1 %7974 }
 0x914   :  { %10648 = vmatpush1.bf16.msra.mxu0 %v16404_v38 }
 0x915   :  { %10649 = vmatprep.subr.bf16.mxu0 %v16232_v26 }
 0x918   :  { %10651 = vmatpush1.bf16.msra.mxu0 %v16405_v55 }
 0x919   :  { %10652 = vmatprep.subr.bf16.mxu0 %v16232_v26 }
 0x91c   :  { %10654 = vmatpush1.bf16.msra.mxu0 %v16406_v48 }
 0x91d   :  { %10655 = vmatprep.subr.bf16.mxu0 %v16232_v26 }
 0x920   :  { %10657 = vmatpush1.bf16.msra.mxu0 %v16407_v24 }
 0x921   :  { %10658 = vmatprep.subr.bf16.mxu0 %v16232_v26 }
 0x924   :  { %10660 = vmatpush1.bf16.msra.mxu0 %v16408_v14 }
 0x925   :  { %10661 = vmatprep.subr.bf16.mxu0 %v16232_v26 }
 0x928   :  { %10663 = vmatpush1.bf16.msra.mxu0 %v16409_v45 }
 0x929   :  { %10664 = vmatprep.subr.bf16.mxu0 %v16232_v26 }
 0x92c   :  { %10666 = vmatpush1.bf16.msra.mxu0 %v16410_v21 }
 0x92d   :  { %10667 = vmatprep.subr.bf16.mxu0 %v16232_v26 }
 0x930   :  { %10669 = vmatpush1.bf16.msra.mxu0 %v16411_v16 }
 0x931   :  { %10670 = vmatprep.subr.bf16.mxu0 %v16232_v26 }
 0x934   :  { %10672 = vmatpush1.bf16.msra.mxu0 %v16412_v37 }
 0x935   :  { %10673 = vmatprep.subr.bf16.mxu0 %v16232_v26 }
 0x938   :  { %10675 = vmatpush1.bf16.msra.mxu0 %v16413_v61 }
 0x939   :  { %10676 = vmatprep.subr.bf16.mxu0 %v16232_v26 }
 0x93b   :  { %6596 = vmatmul.mubr.f32.vlgmr.msra.gmra.mrb[28].mxu0 %v6148_v39  ;;  %v10686_v39 = vpack.c.bf16 %v16421_v6, %v16420_v25 }
 0x93c   :  { %6603 = vmatprep.mubr.f32.mxu0 %v6157_v0  ;;  %10678 = vmatpush1.bf16.msra.mxu0 %v10677_v56  ;;  %v10692_v0 = vpack.c.bf16 %v16425_v40, %v16424_v12 }
 0x93d   :  { %10679 = vmatprep.subr.bf16.mxu0 %v16232_v26 }
 0x93f   :  { %6607 = vmatmul.mubr.f32.gmra.mrb[30].mxu0 %v6163_v44  ;;  %v10689_v44 = vpack.c.bf16 %v16423_v10, %v16422_v63 }
 0x940   :  { %10681 = vmatpush1.bf16.msra.mxu0 %v10680_v52  ;;  %6749 = vmatprep.mubr.f32.mxu0 %v15090_v41 }
 0x941   :  { %10682 = vmatprep.subr.bf16.mxu0 %v16232_v26 }
 0x944   :  { %10684 = vmatpush1.bf16.msra.mxu0 %v10683_v27 }
 0x945   :  { %10685 = vmatprep.subr.bf16.mxu0 %v16232_v26 }
 0x948   :  { %10687 = vmatpush1.bf16.msra.mxu0 %v10686_v39 }
 0x949   :  { %10688 = vmatprep.subr.bf16.mxu0 %v16232_v26 }
 0x94c   :  { %10690 = vmatpush1.bf16.msra.mxu0 %v10689_v44 }
 0x94d   :  { %10691 = vmatprep.subr.bf16.mxu0 %v16232_v26 }
 0x950   :  { %10693 = vmatpush1.bf16.msra.mxu0 %v10692_v0 }
 0x951   :  { %10694 = vmatprep.subr.bf16.mxu0 %v16232_v26 }
 0x954   :  { %10696 = vmatpush1.bf16.msra.mxu0 %v10695_v22 }
 0x955   :  { %10697 = vmatprep.subr.bf16.mxu0 %v16232_v26 }
 0x958   :  { %10699 = vmatpush1.bf16.msra.mxu0 %v10698_v49 }
 0x959   :  { %10700 = vmatprep.subr.bf16.mxu0 %v16232_v26 }
 0x95c   :  { %10702 = vmatpush1.bf16.msra.mxu0 %v10701_v47 }
 0x95d   :  { %10703 = vmatprep.subr.bf16.mxu0 %v16232_v26 }
 0x960   :  { %10705 = vmatpush1.bf16.msra.mxu0 %v10704_v5 }
 0x961   :  { %10706 = vmatprep.subr.bf16.mxu0 %v16232_v26 }
 0x964   :  { %10708 = vmatpush1.bf16.msra.mxu0 %v10707_v60 }
 0x965   :  { %10709 = vmatprep.subr.bf16.mxu0 %v16232_v26 }
 0x968   :  { %10711 = vmatpush1.bf16.msra.mxu0 %v10710_v30 }
 0x969   :  { %10712 = vmatprep.subr.bf16.mxu0 %v16232_v26 }
 0x96b   :  { %6751 = vmatmul.mubr.f32.vlgmr.msra.gmra.mrb[28].mxu0 %v15082_v31 }
 0x96c   :  { %6756 = vmatprep.mubr.f32.mxu0 %v15105_v13  ;;  %10714 = vmatpush1.bf16.msra.mxu0 %v14727_v8 }
 0x96d   :  { %10715 = vmatprep.subr.bf16.mxu0 %v16232_v26 }
 0x96f   :  { %6758 = vmatmul.mubr.f32.gmra.mrb[30].mxu0 %v15093_v62 }
 0x970   :  { %10717 = vmatpush1.bf16.msra.mxu0 %v16403_v4  ;;  %6852 = vmatprep.mubr.f32.mxu0 %v15090_v41  ;;  %v15305_v41 = vpop.permute.xlu1 %7978 }
 0x971   :  { %10718 = vmatprep.subr.bf16.mxu0 %v16232_v26 }
 0x974   :  { %10720 = vmatpush1.bf16.msra.mxu0 %v16404_v38  ;;  %v15310_v23 = vpop.permute.xlu1 %8034 }
 0x975   :  { %10721 = vmatprep.subr.bf16.mxu0 %v16232_v26 }
 0x978   :  { %10723 = vmatpush1.bf16.msra.mxu0 %v16405_v55 }
 0x979   :  { %10724 = vmatprep.subr.bf16.mxu0 %v16232_v26 }
 0x97c   :  { %10726 = vmatpush1.bf16.msra.mxu0 %v16406_v48 }
 0x97d   :  { %10727 = vmatprep.subr.bf16.mxu0 %v16232_v26 }
 0x980   :  { %10729 = vmatpush1.bf16.msra.mxu0 %v16407_v24  ;;  %v15312_v24 = vpop.permute.xlu1 %8006 }
 0x981   :  { %10730 = vmatprep.subr.bf16.mxu0 %v16232_v26 }
 0x984   :  { %10732 = vmatpush1.bf16.msra.mxu0 %v16408_v14  ;;  %v15314_v56 = vpop.permute.xlu1 %8062 }
 0x985   :  { %10733 = vmatprep.subr.bf16.mxu0 %v16232_v26 }
 0x988   :  { %10735 = vmatpush1.bf16.msra.mxu0 %v16409_v45  ;;  %v15316_v52 = vpop.permute.xlu1 %8066 }
 0x989   :  { %10736 = vmatprep.subr.bf16.mxu0 %v16232_v26 }
 0x98c   :  { %10738 = vmatpush1.bf16.msra.mxu0 %v16410_v21  ;;  %v15318_v6 = vpop.permute.xlu1 %8042 }
 0x98d   :  { %10739 = vmatprep.subr.bf16.mxu0 %v16232_v26 }
 0x990   :  { %10741 = vmatpush1.bf16.msra.mxu0 %v16411_v16  ;;  %v15320_v1 = vpop.permute.xlu1 %8094 }
 0x991   :  { %10742 = vmatprep.subr.bf16.mxu0 %v16232_v26 }
 0x994   :  { %10744 = vmatpush1.bf16.msra.mxu0 %v16412_v37  ;;  %v15322_v47 = vpop.permute.xlu1 %8070 }
 0x995   :  { %10745 = vmatprep.subr.bf16.mxu0 %v16232_v26 }
 0x998   :  { %10747 = vmatpush1.bf16.msra.mxu0 %v16413_v61  ;;  %v15324_v46 = vpop.permute.xlu1 %8074 }
 0x99b   :  { %6854 = vmatmul.mubr.f32.vlgmr.msra.gmra.mrb[28].mxu0 %v15082_v31  ;;  %v25_v31 = vld [vmem:[%s15763_s2 + $0x11] ss:$0 sm:$0xff] }
 0x99c   :  { %6859 = vmatprep.mubr.f32.mxu0 %v15105_v13 }
 0x99f   :  { %6861 = vmatmul.mubr.f32.gmra.mrb[30].mxu0 %v15093_v62 }
 0x9b6   :  { %v6152_v34 = vpop.f32.mrb[24].mxu1 }
 0x9b7   :  { %v6154_v20 = vpop.f32.mrb[25].mxu1  ;;  %v6153_v13 = vadd.f32 %v6152_v34, %v25_v31 }
 0x9ba   :  { %v6167_v32 = vpop.f32.mrb[26].mxu1 }
 0x9bb   :  { %v6169_v8 = vpop.f32.mrb[27].mxu1  ;;  %v6168_v55 = vadd.f32 %v6167_v32, %v25_v31 }
 0xa6e   :  { %v6855_v62 = vpop.f32.mrb[28].mxu0 }
 0xa6f   :  { %v10829_v4 = vadd.f32 %v6855_v62, %v6153_v13  ;;  %v6857_v38 = vpop.f32.mrb[29].mxu0  ;;  %v15326_v62 = vpop.permute.xlu1 %8106 }
 0xa71   :  { %v6868_v48 = vmul.f32 0.70710677, %v10829_v4 }
 0xa72   :  { %v6862_v14 = vpop.f32.mrb[30].mxu0 }
 0xa73   :  { %v6870_v45 = vand.u32 2147483647, %v6868_v48  ;;  %v10831_v21 = vadd.f32 %v6862_v14, %v6168_v55  ;;  %v6864_v16 = vpop.f32.mrb[31].mxu0  ;;  %vm6910_vm13 = vcmp.ge.f32.partialorder %v6868_v48, 0.0  ;;  %v6866_v14 = vmul.f32 0.5, %v10829_v4  ;;  %v6971_v48 = vpop.permute.xlu1 %6970 }
 0xa75   :  { %v6872_v37 = vmul.f32 0.3275911, %v6870_v45  ;;  %v6869_v61 = vmul.f32 0.70710677, %v10831_v21  ;;  %v6898_v54 = vsub.f32 0.0, %v6870_v45 }
 0xa77   :  { %v6874_v28 = vadd.f32 1.0, %v6872_v37  ;;  %v6871_v59 = vand.u32 2147483647, %v6869_v61  ;;  %v6900_v27 = vmul.f32 %v6898_v54, %v6870_v45  ;;  %vm6911_vm14 = vcmp.ge.f32.partialorder %v6869_v61, 0.0  ;;  %v16440_v61 = vld [vmem:[#allocation59_spill] sm:$0xff] }
 0xa79   :  { %11429 = vrcp.f32 %v6874_v28  ;;  %v6873_v9 = vmul.f32 0.3275911, %v6871_v59  ;;  %v6899_v25 = vsub.f32 0.0, %v6871_v59  ;;  %v6902_v44 = vmul.f32 1.442695, %v6900_v27  ;;  %v16439_v27 = vld [vmem:[#allocation16_spill] sm:$0xff] }
 0xa7b   :  { %v6875_v43 = vadd.f32 1.0, %v6873_v9  ;;  %v6901_v12 = vmul.f32 %v6899_v25, %v6871_v59  ;;  %v6867_v59 = vmul.f32 0.5, %v10831_v21  ;;  %v16441_v21 = vld [vmem:[#allocation20_spill] sm:$0xff]  ;;  %v16442_v25 = vld [vmem:[#allocation22_spill] sm:$0xff] }
 0xa7d   :  { %11431 = vrcp.f32 %v6875_v43  ;;  %v6904_v50 = vmul.f32 1.442695, %v6901_v12  ;;  %v16438_v43 = vld [vmem:[#allocation17_spill] sm:$0xff]  ;;  %v16447_v12 = vmov 5  }
 0xa7e   :  { %11433 = vpow2.f32 %v6902_v44  ;;  %v16446_v44 = vmov 4  }
 0xa7f   :  { %11435 = vpow2.f32 %v6904_v50 }
 0xa83   :  { %v11430_v57 = vpop.eup %11429 }
 0xa84   :  { %v6880_v39 = vmul.f32 1.0614054, %v11430_v57 }
 0xa86   :  { %v6882_v63 = vadd.f32 -1.4531521, %v6880_v39  ;;  %v16443_v39 = vmov 1  }
 0xa87   :  { %v11432_v10 = vpop.eup %11431 }
 0xa88   :  { %v6884_v40 = vmul.f32 %v11430_v57, %v6882_v63  ;;  %v6881_v0 = vmul.f32 1.0614054, %v11432_v10  ;;  %v11434_v19 = vpop.eup %11433  ;;  %v16444_v63 = vmov 3  }
 0xa89   :  { %v11436_v8 = vpop.eup %11435 }
 0xa8a   :  { %v6886_v36 = vadd.f32 1.4214138, %v6884_v40  ;;  %v6883_v22 = vadd.f32 -1.4531521, %v6881_v0  ;;  %v16448_v40 = vmov 7   ;;  %v16449_v0 = vmov 0  }
 0xa8c   :  { %v6888_v35 = vmul.f32 %v11430_v57, %v6886_v36  ;;  %v6885_v49 = vmul.f32 %v11432_v10, %v6883_v22  ;;  %v16450_v36 = vld [vmem:[#allocation15_spill] sm:$0xff]  ;;  %v16451_v22 = vld [vmem:[#allocation56_spill] sm:$0xff] }
 0xa8d   :  { %v7225_v50 = vsel %vm2480_vm2, %v16451_v22, 0 }
 0xa8e   :  { %v6890_v18 = vadd.f32 -0.28449672, %v6888_v35  ;;  %v6887_v7 = vadd.f32 1.4214138, %v6885_v49  ;;  %v7227_v35 = vsel %vm2480_vm2, %v16450_v36, 0  ;;  %v15375_v49 = vand.u32 4294901760, %v7225_v50 }
 0xa90   :  { %v6892_v33 = vmul.f32 %v11430_v57, %v6890_v18  ;;  %v6889_v58 = vmul.f32 %v11432_v10, %v6887_v7  ;;  %v15377_v18 = vand.u32 4294901760, %v7227_v35  ;;  %v16452_v7 = vld [vmem:[#allocation58_spill] sm:$0xff] }
 0xa92   :  { %v6894_v5 = vadd.f32 0.2548296, %v6892_v33  ;;  %v6891_v42 = vadd.f32 -0.28449672, %v6889_v58  ;;  %v7229_v33 = vsel %vm2480_vm2, %v16452_v7, 0  ;;  %v7308_v58 = vsub.f32 %v7225_v50, %v15375_v49 }
 0xa94   :  { %v6896_v17 = vmul.f32 %v11430_v57, %v6894_v5  ;;  %v6893_v60 = vmul.f32 %v11432_v10, %v6891_v42  ;;  %v15383_v5 = vand.u32 4294901760, %v7229_v33  ;;  %v15386_v42 = vsub.f32 %v7227_v35, %v15377_v18 }
 0xa96   :  { %v6906_v30 = vmul.f32 %v11434_v19, %v6896_v17  ;;  %v6895_v34 = vadd.f32 0.2548296, %v6893_v60  ;;  %v7309_v17 = vand.u32 4294901760, %v7308_v58  ;;  %v15391_v60 = vsub.f32 %v7229_v33, %v15383_v5 }
 0xa97   :  { %v7319_v19 = vand.u32 4294901760, %v15386_v42 }
 0xa98   :  { %v6908_v20 = vsub.f32 1.0, %v6906_v30  ;;  %v6897_v32 = vmul.f32 %v11432_v10, %v6895_v34  ;;  %v16445_v10 = vmov 2   ;;  %v7310_v30 = vsub.f32 %v7308_v58, %v7309_v17 }
 0xa99   :  { %v7329_v34 = vand.u32 4294901760, %v15391_v60 }
 0xa9a   :  { %v6912_v31 = vsub.f32 0.0, %v6908_v20  ;;  %v6907_v13 = vmul.f32 %v11436_v8, %v6897_v32  ;;  %v7320_v32 = vsub.f32 %v15386_v42, %v7319_v19 }
 0xa9c   :  { %v6914_v38 = vsel %vm6910_vm13, %v6908_v20, %v6912_v31  ;;  %v6909_v55 = vsub.f32 1.0, %v6907_v13  ;;  %v7311_v13 = vand.u32 4294901760, %v7310_v30 }
 0xa9d   :  { %v6916_v45 = vadd.f32 1.0, %v6914_v38  ;;  %v7330_v38 = vsub.f32 %v15391_v60, %v7329_v34 }
 0xa9e   :  { %v6913_v16 = vsub.f32 0.0, %v6909_v55 }
 0xa9f   :  { %v15328_v37 = vmul.f32 %v6916_v45, %v6866_v14  ;;  %v7331_v45 = vand.u32 4294901760, %v7330_v38 }
 0xaa0   :  { %v6915_v28 = vsel %vm6911_vm14, %v6909_v55, %v6913_v16  ;;  %v7321_v55 = vand.u32 4294901760, %v7320_v32 }
 0xaa1   :  { %v6917_v9 = vadd.f32 1.0, %v6915_v28  ;;  %7220 = vrot.lane.b32.xlu0 %v15328_v37, %s11465_s15  ;;  %v15333_v54 = vrot.slane %v15328_v37, %v16438_v43 }
 0xaa3   :  { %v15335_v57 = vmul.f32 %v6917_v9, %v6867_v59  ;;  %v15338_v4 = vmul.f32 %v15333_v54, %v6971_v48 }
 0xaa5   :  { %8126 = vrot.lane.b32.xlu0 %v15335_v57, %s11465_s15 }
 0xaa9   :  { %7871 = vperm.xlu0 %11174, %v16439_v27  }
 0xaad   :  { %7876 = vperm.xlu0 %11174, %v16440_v61  }
 0xab1   :  { %7881 = vperm.xlu0 %11174, %v16441_v21  }
 0xab5   :  { %7886 = vperm.xlu0 %11174, %v16442_v25  }
 0xab9   :  { %11175 = vset.pattern.permute.xlu0 %v16443_v39 }
 0xaba   :  { %7902 = vperm.xlu0 %11175, %v16439_v27  }
 0xabe   :  { %7906 = vperm.xlu0 %11175, %v16440_v61  }
 0xac2   :  { %7914 = vperm.xlu0 %11175, %v16442_v25  }
 0xac6   :  { %11177 = vset.pattern.permute.xlu0 %v16444_v63 }
 0xac7   :  { %7966 = vperm.xlu0 %11177, %v16439_v27  }
 0xacb   :  { %7970 = vperm.xlu0 %11177, %v16440_v61  }
 0xacf   :  { %11178 = vset.pattern.permute.xlu0 %v16445_v10 }
 0xad0   :  { %7934 = vperm.xlu0 %11178, %v16439_v27  }
 0xad4   :  { %7938 = vperm.xlu0 %11178, %v16440_v61  }
 0xad8   :  { %7942 = vperm.xlu0 %11178, %v16441_v21  }
 0xadc   :  { %7946 = vperm.xlu0 %11178, %v16442_v25  }
 0xae0   :  { %11180 = vset.pattern.permute.xlu0 %v16446_v44 }
 0xae1   :  { %8002 = vperm.xlu0 %11180, %v16440_v61  }
 0xae5   :  { %8010 = vperm.xlu0 %11180, %v16442_v25  }
 0xae9   :  { %11184 = vset.pattern.permute.xlu0 %v16447_v12 }
 0xaea   :  { %8030 = vperm.xlu0 %11184, %v16439_v27  }
 0xaee   :  { %8038 = vperm.xlu0 %11184, %v16441_v21  }
 0xaf2   :  { %11188 = vset.pattern.permute.xlu0 %v16448_v40 }
 0xaf3   :  { %8098 = vperm.xlu0 %11188, %v16440_v61  }
 0xaf7   :  { %8102 = vperm.xlu0 %11188, %v16441_v21  }
 0xafb   :  { %11191 = vset.pattern.permute.xlu0 %v16449_v0  ;;  %v8129_v0 = vsel %vm2480_vm2, %v16439_v27, 0  ;;  %v8133_v27 = vsel %vm2480_vm2, %v16441_v21, 0 }
 0xafc   :  { %6965 = vperm.xlu0 %11191, %v16357_v53   ;;  %v15432_v35 = vand.u32 4294901760, %v8129_v0 }
 0xb00   :  { %6975 = vperm.xlu0 %11191, %v16450_v36  }
 0xb04   :  { %11195 = vset.pattern.permute.xlu0 %v16443_v39  ;;  %v16453_v39 = vld [vmem:[#allocation19_spill] sm:$0xff] }
 0xb05   :  { %7000 = vperm.xlu0 %11195, %v16451_v22   ;;  %v7920_v63 = vrot.slane %v15335_v57, %v16453_v39 }
 0xb09   :  { %7008 = vperm.xlu0 %11195, %v16452_v7  }
 0xb0d   :  { %11199 = vset.pattern.permute.xlu0 %v16445_v10 }
 0xb0e   :  { %7036 = vperm.xlu0 %11199, %v16450_v36  }
 0xb12   :  { %11202 = vset.pattern.permute.xlu0 %v16446_v44 }
 0xb13   :  { %7096 = vperm.xlu0 %11202, %v16451_v22   ;;  %v7221_v20 = vpop.permute.xlu0 %7220 }
 0xb14   :  { %v15398_v8 = vand.u32 4294901760, %v7221_v20 }
 0xb16   :  { %v7339_v31 = vsub.f32 %v7221_v20, %v15398_v8  ;;  %9866 = vmatprep.subr.mxu1 %v15398_v8 }
 0xb17   :  { %7104 = vperm.xlu0 %11202, %v16452_v7   ;;  %9867 = vmatpush3.msra.mxu1 %v15398_v8  ;;  %v8127_v59 = vpop.permute.xlu0 %8126 }
 0xb18   :  { %9869 = vmatmul.mubr.f32.vlgmr.msra.gmra.mrb[28].mxu1 %v7311_v13  ;;  %v7340_v14 = vand.u32 4294901760, %v7339_v31 }
 0xb19   :  { %9871 = vmatprep.mubr.f32.mxu1 %v7321_v55 }
 0xb1a   :  { %v7341_v16 = vsub.f32 %v7339_v31, %v7340_v14 }
 0xb1b   :  { %11206 = vset.pattern.permute.xlu0 %v16447_v12  ;;  %v15427_v12 = vand.u32 4294901760, %v8127_v59 }
 0xb1c   :  { %7124 = vperm.xlu0 %11206, %v16357_v53   ;;  %9872 = vmatmul.mubr.f32.gmra.mrb[30].mxu1 %v7331_v45  ;;  %v7342_v28 = vand.u32 4294901760, %v7341_v16  ;;  %v7892_v53 = vrot.slane %v15335_v57, %v16438_v43  ;;  %v7923_v43 = vmul.f32 %v7920_v63, %v15299_v3 }
 0xb1d   :  { %9876 = vmatprep.mubr.f32.mxu1 %v15080_v2 }
 0xb1e   :  { %9874 = vmatprep.subr.mxu1 %v7342_v28  ;;  %v7927_v50 = vsub.f32 1.0, %v7923_v43 }
 0xb1f   :  { %9875 = vmatpush3.msra.mxu1 %v7342_v28 }
 0xb20   :  { %7132 = vperm.xlu0 %11206, %v16450_v36   ;;  %9877 = vmatmul.mubr.f32.vlgmr.msra.gmra.mrb[28].mxu1 %v15375_v49 }
 0xb21   :  { %9882 = vmatprep.subr.mxu1 %v7339_v31  ;;  %9879 = vmatprep.mubr.f32.mxu1 %v15377_v18 }
 0xb22   :  { %9883 = vmatpush3.msra.mxu1 %v7339_v31 }
 0xb23   :  { %9890 = vmatprep.subr.mxu1 %v15398_v8 }
 0xb24   :  { %11210 = vset.pattern.permute.xlu0 %v16448_v40  ;;  %9880 = vmatmul.mubr.f32.gmra.mrb[30].mxu1 %v15383_v5 }
 0xb25   :  { %7192 = vperm.xlu0 %11210, %v16451_v22   ;;  %9884 = vmatprep.mubr.f32.mxu1 %v15098_v11  ;;  %v8131_v11 = vsel %vm2480_vm2, %v16440_v61, 0  ;;  %v8135_v61 = vsel %vm2480_vm2, %v16442_v25, 0  ;;  %vm11466_vm2 = vmmov 0  }
 0xb28   :  { %9885 = vmatmul.mubr.f32.vlgmr.msra.gmra.mrb[28].mxu1 %v7308_v58  ;;  %v7872_v9 = vpop.permute.xlu0 %7871  ;;  %v15444_v58 = vand.u32 4294901760, %v8131_v11 }
 0xb29   :  { %9891 = vmatpush3.msra.mxu1 %v15398_v8  ;;  %v7893_v48 = vmul.f32 %v7892_v53, %v7872_v9  ;;  %7196 = vperm.xlu0 %11210, %v16450_v36  }
 0xb2a   :  { %9887 = vmatprep.mubr.f32.mxu1 %v15386_v42  ;;  %9898 = vmatprep.subr.mxu1 %v7340_v14  ;;  %v15447_v42 = vsub.f32 %v8129_v0, %v15432_v35  ;;  %v15461_v30 = vsub.f32 %v8131_v11, %v15444_v58 }
 0xb2b   :  { %v7897_v32 = vsub.f32 1.0, %v7893_v48 }
 0xb2c   :  { %9888 = vmatmul.mubr.f32.gmra.mrb[30].mxu1 %v15391_v60  ;;  %v7877_v10 = vpop.permute.xlu0 %7876  ;;  %v8205_v25 = vand.u32 4294901760, %v15447_v42 }
 0xb2d   :  { %v7894_v44 = vmul.f32 %v7892_v53, %v7877_v10  ;;  %9892 = vmatprep.mubr.f32.mxu1 %v7299_v29  ;;  %v15437_v29 = vsub.f32 %v8127_v59, %v15427_v12  ;;  %v15481_v59 = vpop.permute.xlu1 %6996 }
 0xb2e   :  { %v8206_v16 = vsub.f32 %v15447_v42, %v8205_v25 }
 0xb2f   :  { %v15455_v60 = vand.u32 4294901760, %v15437_v29 }
 0xb30   :  { %9893 = vmatmul.mubr.f32.vlgmr.msra.gmra.mrb[28].mxu1 %v7309_v17  ;;  %v7882_v40 = vpop.permute.xlu0 %7881  ;;  %v15449_v17 = vand.u32 4294901760, %v8133_v27 }
 0xb31   :  { %9899 = vmatpush3.msra.mxu1 %v7340_v14  ;;  %v7895_v36 = vmul.f32 %v7892_v53, %v7882_v40  ;;  %9895 = vmatprep.mubr.f32.mxu1 %v7319_v19  ;;  %v8215_v14 = vand.u32 4294901760, %v15461_v30 }
 0xb32   :  { %9906 = vmatprep.subr.mxu1 %v15398_v8  ;;  %v15467_v20 = vsub.f32 %v8133_v27, %v15449_v17 }
 0xb33   :  { %v7899_v22 = vsub.f32 1.0, %v7895_v36  ;;  %v8216_v40 = vsub.f32 %v15461_v30, %v8215_v14  ;;  %v8207_v36 = vand.u32 4294901760, %v8206_v16 }
 0xb34   :  { %9896 = vmatmul.mubr.f32.gmra.mrb[30].mxu1 %v7329_v34  ;;  %v7887_v3 = vpop.permute.xlu0 %7886  ;;  %v15463_v34 = vand.u32 4294901760, %v8135_v61  ;;  %v8225_v28 = vand.u32 4294901760, %v15467_v20 }
 0xb35   :  { %v15441_v7 = vmul.f32 %v7927_v50, %v7899_v22  ;;  %v7896_v33 = vmul.f32 %v7892_v53, %v7887_v3  ;;  %9900 = vmatprep.mubr.f32.mxu1 %v15080_v2  ;;  %v7898_v53 = vsub.f32 1.0, %v7894_v44  ;;  %v16454_v44 = vld [vmem:[#allocation14_spill] sm:$0xff] }
 0xb36   :  { %v15475_v45 = vsub.f32 %v8135_v61, %v15463_v34  ;;  %v7077_v22 = vsub.s32 3, %v16454_v44  ;;  %v8217_v61 = vand.u32 4294901760, %v8216_v40 }
 0xb37   :  { %v7900_v50 = vsub.f32 1.0, %v7896_v33 }
 0xb38   :  { %9901 = vmatmul.mubr.f32.vlgmr.msra.gmra.mrb[28].mxu1 %v15375_v49  ;;  %v8235_v0 = vand.u32 4294901760, %v15475_v45 }
 0xb39   :  { %9907 = vmatpush3.msra.mxu1 %v15398_v8  ;;  %9903 = vmatprep.mubr.f32.mxu1 %v15377_v18  ;;  %v7903_v21 = vpop.permute.xlu0 %7902  ;;  %v8247_v8 = vsub.f32 %v15437_v29, %v15455_v60 }
 0xb3a   :  { %9914 = vmatprep.subr.mxu1 %v15427_v12  ;;  %v7921_v19 = vmul.f32 %v7920_v63, %v7903_v21  ;;  %v8236_v21 = vsub.f32 %v15475_v45, %v8235_v0 }
 0xb3c   :  { %v7925_v31 = vsub.f32 1.0, %v7921_v19  ;;  %9904 = vmatmul.mubr.f32.gmra.mrb[30].mxu1 %v15383_v5 }
 0xb3d   :  { %9908 = vmatprep.mubr.f32.mxu1 %v15080_v2  ;;  %v7907_v13 = vpop.permute.xlu0 %7906  ;;  %v8248_v2 = vand.u32 4294901760, %v8247_v8 }
 0xb3e   :  { %v7929_v38 = vmul.f32 %v7925_v31, %v7897_v32  ;;  %v7922_v55 = vmul.f32 %v7920_v63, %v7907_v13  ;;  %v8237_v32 = vand.u32 4294901760, %v8236_v21  ;;  %v7045_v13 = vsub.s32 2, %v16454_v44 }
 0xb40   :  { %v7926_v9 = vsub.f32 1.0, %v7922_v55  ;;  %9909 = vmatmul.mubr.f32.vlgmr.msra.gmra.mrb[28].mxu1 %v15375_v49  ;;  %v8226_v49 = vsub.f32 %v15467_v20, %v8225_v28  ;;  %v7109_v55 = vsub.s32 4, %v16454_v44  ;;  %v7952_v16 = vrot.slane %v15335_v57, %v7045_v13 }
 0xb41   :  { %9915 = vmatpush3.msra.mxu1 %v15427_v12  ;;  %9911 = vmatprep.mubr.f32.mxu1 %v15377_v18  ;;  %v7915_v48 = vpop.permute.xlu0 %7914  ;;  %v7984_v18 = vrot.slane %v15335_v57, %v7077_v22 }
 0xb42   :  { %v7930_v10 = vmul.f32 %v7926_v9, %v7898_v53  ;;  %9922 = vmatprep.subr.mxu1 %v8248_v2  ;;  %v7924_v43 = vmul.f32 %v7920_v63, %v7915_v48  ;;  %v15498_v63 = vpop.permute.xlu1 %7028  ;;  %v8227_v33 = vand.u32 4294901760, %v8226_v49  ;;  %v15517_v53 = vrot.slane %v15335_v57, %v7109_v55 }
 0xb44   :  { %v7928_v11 = vsub.f32 1.0, %v7924_v43  ;;  %9912 = vmatmul.mubr.f32.gmra.mrb[30].mxu1 %v15383_v5  ;;  %v8017_v40 = vmul.f32 %v15517_v53, %v15301_v51 }
 0xb45   :  { %9916 = vmatprep.mubr.f32.mxu1 %v8207_v36 }
 0xb46   :  { %v15500_v3 = vmul.f32 %v7928_v11, %v7900_v50  ;;  %v7967_v27 = vpop.permute.xlu0 %7966  ;;  %v15506_v8 = vpop.permute.xlu1 %7032 }
 0xb47   :  { %v7985_v19 = vmul.f32 %v7984_v18, %v7967_v27 }
 0xb48   :  { %9917 = vmatmul.mubr.f32.vlgmr.msra.gmra.mrb[32].mxu1 %v8217_v61  ;;  %v8021_v61 = vsub.f32 1.0, %v8017_v40 }
 0xb49   :  { %9923 = vmatpush3.msra.mxu1 %v8248_v2  ;;  %9919 = vmatprep.mubr.f32.mxu1 %v8227_v33  ;;  %v7989_v49 = vsub.f32 1.0, %v7985_v19  ;;  %v7987_v33 = vmul.f32 %v7984_v18, %v15303_v15  ;;  %v8019_v15 = vmul.f32 %v15517_v53, %v15312_v24  ;;  %v7173_v24 = vsub.s32 6, %v16454_v44 }
 0xb4a   :  { %9930 = vmatprep.subr.mxu1 %v15437_v29  ;;  %v7971_v5 = vpop.permute.xlu0 %7970  ;;  %v15522_v48 = vpop.permute.xlu1 %6980 }
 0xb4b   :  { %v7986_v31 = vmul.f32 %v7984_v18, %v7971_v5  ;;  %v7991_v40 = vsub.f32 1.0, %v7987_v33 }
 0xb4c   :  { %9920 = vmatmul.mubr.f32.gmra.mrb[34].mxu1 %v8237_v32 }
 0xb4d   :  { %9924 = vmatprep.mubr.f32.mxu1 %v15432_v35  ;;  %v7990_v32 = vsub.f32 1.0, %v7986_v31  ;;  %v7141_v31 = vsub.s32 5, %v16454_v44 }
 0xb4e   :  { %v15530_v5 = vpop.permute.xlu1 %7004 }
 0xb4f   :  { %v7935_v9 = vpop.permute.xlu0 %7934 }
 0xb50   :  { %v7953_v2 = vmul.f32 %v7952_v16, %v7935_v9  ;;  %9925 = vmatmul.mubr.f32.vlgmr.msra.gmra.mrb[32].mxu1 %v15444_v58 }
 0xb51   :  { %9931 = vmatpush3.msra.mxu1 %v15437_v29  ;;  %9927 = vmatprep.mubr.f32.mxu1 %v15449_v17 }
 0xb52   :  { %v7957_v43 = vsub.f32 1.0, %v7953_v2  ;;  %9938 = vmatprep.subr.mxu1 %v15427_v12 }
 0xb53   :  { %v7939_v36 = vpop.permute.xlu0 %7938 }
 0xb54   :  { %v7961_v50 = vmul.f32 %v7957_v43, %v7929_v38  ;;  %v7954_v11 = vmul.f32 %v7952_v16, %v7939_v36  ;;  %9928 = vmatmul.mubr.f32.gmra.mrb[34].mxu1 %v15463_v34 }
 0xb55   :  { %9932 = vmatprep.mubr.f32.mxu1 %v15447_v42 }
 0xb56   :  { %v7993_v27 = vmul.f32 %v7989_v49, %v7961_v50  ;;  %v7958_v29 = vsub.f32 1.0, %v7954_v11  ;;  %v7988_v49 = vmul.f32 %v7984_v18, %v15305_v41  ;;  %v8048_v50 = vrot.slane %v15335_v57, %v7141_v31  ;;  %v15550_v11 = vpop.permute.xlu1 %7060 }
 0xb57   :  { %v7943_v21 = vpop.permute.xlu0 %7942 }
 0xb58   :  { %v7962_v9 = vmul.f32 %v7958_v29, %v7930_v10  ;;  %v7955_v2 = vmul.f32 %v7952_v16, %v7943_v21  ;;  %9933 = vmatmul.mubr.f32.vlgmr.msra.gmra.mrb[32].mxu1 %v15461_v30  ;;  %v15533_v51 = vmul.f32 %v8021_v61, %v7993_v27  ;;  %v8050_v21 = vmul.f32 %v8048_v50, %v15310_v23 }
 0xb59   :  { %9939 = vmatpush3.msra.mxu1 %v15427_v12  ;;  %9935 = vmatprep.mubr.f32.mxu1 %v15467_v20 }
 0xb5a   :  { %v7959_v38 = vsub.f32 1.0, %v7955_v2  ;;  %9946 = vmatprep.subr.mxu1 %v15455_v60  ;;  %v7994_v19 = vmul.f32 %v7990_v32, %v7962_v9  ;;  %v8052_v2 = vmul.f32 %v8048_v50, %v15318_v6 }
 0xb5b   :  { %v7947_v43 = vpop.permute.xlu0 %7946 }
 0xb5c   :  { %v7963_v10 = vmul.f32 %v7959_v38, %v15441_v7  ;;  %v7956_v36 = vmul.f32 %v7952_v16, %v7947_v43  ;;  %9936 = vmatmul.mubr.f32.gmra.mrb[34].mxu1 %v15475_v45  ;;  %v8023_v7 = vsub.f32 1.0, %v8019_v15  ;;  %v8080_v16 = vrot.slane %v15335_v57, %v7173_v24 }
 0xb5d   :  { %9940 = vmatprep.mubr.f32.mxu1 %v8205_v25  ;;  %v7992_v25 = vsub.f32 1.0, %v7988_v49 }
 0xb5e   :  { %v7995_v27 = vmul.f32 %v7991_v40, %v7963_v10  ;;  %v7960_v29 = vsub.f32 1.0, %v7956_v36  ;;  %v8082_v30 = vmul.f32 %v8080_v16, %v15316_v52  ;;  %v8084_v15 = vmul.f32 %v8080_v16, %v15324_v46 }
 0xb5f   :  { %v8081_v40 = vmul.f32 %v8080_v16, %v15314_v56  ;;  %v8083_v56 = vmul.f32 %v8080_v16, %v15322_v47 }
 0xb60   :  { %v7964_v41 = vmul.f32 %v7960_v29, %v15500_v3  ;;  %9941 = vmatmul.mubr.f32.vlgmr.msra.gmra.mrb[32].mxu1 %v8215_v14  ;;  %v8003_v42 = vpop.permute.xlu0 %8002  ;;  %v8027_v18 = vmul.f32 %v8023_v7, %v7995_v27  ;;  %v7205_v3 = vsub.s32 7, %v16454_v44  ;;  %v15566_v14 = vpop.permute.xlu1 %7064  ;;  %v8086_v43 = vsub.f32 1.0, %v8082_v30 }
 0xb61   :  { %9947 = vmatpush3.msra.mxu1 %v15455_v60  ;;  %v8018_v61 = vmul.f32 %v15517_v53, %v8003_v42  ;;  %9943 = vmatprep.mubr.f32.mxu1 %v8225_v28  ;;  %v8054_v28 = vsub.f32 1.0, %v8050_v21  ;;  %v8088_v36 = vsub.f32 1.0, %v8084_v15  ;;  %v8087_v30 = vsub.f32 1.0, %v8083_v56 }
 0xb62   :  { %9954 = vmatprep.subr.mxu1 %v15427_v12  ;;  %v7996_v33 = vmul.f32 %v7992_v25, %v7964_v41  ;;  %v8112_v23 = vrot.slane %v15335_v57, %v7205_v3  ;;  %v8085_v41 = vsub.f32 1.0, %v8081_v40  ;;  %v15613_v15 = vrot.slane %v15328_v37, %v7077_v22 }
 0xb63   :  { %v8022_v32 = vsub.f32 1.0, %v8018_v61 }
 0xb64   :  { %9944 = vmatmul.mubr.f32.gmra.mrb[34].mxu1 %v8235_v0  ;;  %v8011_v60 = vpop.permute.xlu0 %8010  ;;  %v8056_v0 = vsub.f32 1.0, %v8052_v2  ;;  %v15581_v6 = vpop.permute.xlu1 %7040 }
 0xb65   :  { %v8026_v20 = vmul.f32 %v8022_v32, %v7994_v19  ;;  %v8020_v9 = vmul.f32 %v15517_v53, %v8011_v60  ;;  %9948 = vmatprep.mubr.f32.mxu1 %v15432_v35  ;;  %v8116_v53 = vmul.f32 %v8112_v23, %v15326_v62 }
 0xb67   :  { %v8058_v38 = vmul.f32 %v8054_v28, %v8026_v20  ;;  %v8024_v52 = vsub.f32 1.0, %v8020_v9  ;;  %v8120_v7 = vsub.f32 1.0, %v8116_v53  ;;  %v7080_v53 = vmul.f32 %v15613_v15, %v15566_v14 }
 0xb68   :  { %9949 = vmatmul.mubr.f32.vlgmr.msra.gmra.mrb[32].mxu1 %v15444_v58  ;;  %v15592_v61 = vpop.permute.xlu1 %7092  ;;  %v15638_v14 = vrot.slane %v15328_v37, %v7173_v24  ;;  %v15646_v24 = vrot.slane %v15328_v37, %v7205_v3 }
 0xb69   :  { %v8028_v45 = vmul.f32 %v8024_v52, %v7996_v33  ;;  %9955 = vmatpush3.msra.mxu1 %v15427_v12  ;;  %9951 = vmatprep.mubr.f32.mxu1 %v15449_v17  ;;  %v8031_v57 = vpop.permute.xlu0 %8030  ;;  %v8090_v19 = vmul.f32 %v8086_v43, %v8058_v38  ;;  %v8113_v12 = vmul.f32 %v8112_v23, %v15320_v1 }
 0xb6a   :  { %v8049_v10 = vmul.f32 %v8048_v50, %v8031_v57  ;;  %10748 = vmatprep.subr.bf16.mxu1 %v16232_v26  ;;  %v7046_v52 = vrot.slane %v15328_v37, %v7045_v13  ;;  %v6992_v57 = vsub.f32 1.0, %v15338_v4  ;;  %v15633_v4 = vrot.slane %v15328_v37, %v7109_v55 }
 0xb6b   :  { %v8060_v46 = vmul.f32 %v8056_v0, %v8028_v45  ;;  %v8117_v1 = vsub.f32 1.0, %v8113_v12 }
 0xb6c   :  { %v8053_v49 = vsub.f32 1.0, %v8049_v10  ;;  %9952 = vmatmul.mubr.f32.gmra.mrb[34].mxu1 %v15463_v34  ;;  %v15599_v16 = vpop.permute.xlu1 %7068  ;;  %v7048_v0 = vmul.f32 %v7046_v52, %v15506_v8  ;;  %v15628_v8 = vrot.slane %v15328_v37, %v7141_v31 }
 0xb6d   :  { %v8092_v27 = vmul.f32 %v8088_v36, %v8060_v46  ;;  %9956 = vmatprep.mubr.f32.mxu1 %v15432_v35  ;;  %v8039_v29 = vpop.permute.xlu0 %8038  ;;  %v7084_v36 = vsub.f32 1.0, %v7080_v53 }
 0xb6e   :  { %v8057_v62 = vmul.f32 %v8053_v49, %v15533_v51  ;;  %v8051_v42 = vmul.f32 %v8048_v50, %v8039_v29  ;;  %v7052_v46 = vsub.f32 1.0, %v7048_v0 }
 0xb6f   :  { %v15590_v25 = vmul.f32 %v8120_v7, %v8092_v27 }
 0xb70   :  { %v8089_v21 = vmul.f32 %v8085_v41, %v8057_v62  ;;  %v8055_v33 = vsub.f32 1.0, %v8051_v42  ;;  %9957 = vmatmul.mubr.f32.vlgmr.msra.gmra.mrb[32].mxu1 %v15444_v58 }
 0xb71   :  { %9959 = vmatprep.mubr.f32.mxu1 %v15449_v17 }
 0xb72   :  { %v8059_v35 = vmul.f32 %v8055_v33, %v8027_v18  ;;  %v8099_v32 = vpop.permute.xlu0 %8098  ;;  %v15596_v60 = vmul.f32 %v8117_v1, %v8089_v21  ;;  %v15605_v18 = vpop.permute.xlu1 %7072 }
 0xb73   :  { %v8114_v51 = vmul.f32 %v8112_v23, %v8099_v32 }
 0xb74   :  { %9960 = vmatmul.mubr.f32.gmra.mrb[34].mxu1 %v15463_v34  ;;  %v8091_v47 = vmul.f32 %v8087_v30, %v8059_v35 }
 0xb75   :  { %v8118_v50 = vsub.f32 1.0, %v8114_v51 }
 0xb76   :  { %v8103_v20 = vpop.permute.xlu0 %8102  ;;  %v7129_v34 = vpop.permute.xlu1 %7128 }
 0xb77   :  { %v15601_v28 = vmul.f32 %v8118_v50, %v8090_v19  ;;  %v8115_v9 = vmul.f32 %v8112_v23, %v8103_v20  ;;  %v7014_v23 = vrot.slane %v15328_v37, %v16453_v39  ;;  %v7144_v7 = vmul.f32 %v15628_v8, %v7129_v34 }
 0xb78   :  { %v7047_v37 = vmul.f32 %v7046_v52, %v15498_v63 }
 0xb79   :  { %v8119_v58 = vsub.f32 1.0, %v8115_v9  ;;  %v7148_v21 = vsub.f32 1.0, %v7144_v7  ;;  %v7017_v53 = vmul.f32 %v7014_v23, %v15530_v5 }
 0xb7a   :  { %v15621_v13 = vpop.permute.xlu1 %7100 }
 0xb7b   :  { %v15603_v2 = vmul.f32 %v8119_v58, %v8091_v47  ;;  %v6966_v17 = vpop.permute.xlu0 %6965  ;;  %v7015_v58 = vmul.f32 %v7014_v23, %v15481_v59 }
 0xb7c   :  { %v6987_v20 = vmul.f32 %v15333_v54, %v6966_v17  ;;  %v7050_v17 = vmul.f32 %v7046_v52, %v15581_v6  ;;  %v7111_v6 = vmul.f32 %v15633_v4, %v15592_v61 }
 0xb7d   :  { %v7019_v44 = vsub.f32 1.0, %v7015_v58 }
 0xb7e   :  { %v15623_v39 = vpop.permute.xlu1 %7156  ;;  %v7054_v63 = vsub.f32 1.0, %v7050_v17 }
 0xb7f   :  { %v6976_v38 = vpop.permute.xlu0 %6975  ;;  %v7175_v61 = vmul.f32 %v15638_v14, %v15623_v39 }
 0xb82   :  { %v7161_v62 = vpop.permute.xlu1 %7160 }
 0xb83   :  { %v7176_v31 = vmul.f32 %v15638_v14, %v7161_v62 }
 0xb84   :  { %v7001_v43 = vpop.permute.xlu0 %7000 }
 0xb85   :  { %v7016_v45 = vmul.f32 %v7014_v23, %v7001_v43  ;;  %v7180_v55 = vsub.f32 1.0, %v7176_v31  ;;  %v6991_v43 = vsub.f32 1.0, %v6987_v20 }
 0xb86   :  { %v7137_v9 = vpop.permute.xlu1 %7136 }
 0xb87   :  { %v7020_v19 = vsub.f32 1.0, %v7016_v45  ;;  %v6990_v45 = vmul.f32 %v15333_v54, %v15522_v48 }
 0xb88   :  { %v7009_v10 = vpop.permute.xlu0 %7008 }
 0xb89   :  { %v7024_v40 = vmul.f32 %v7020_v19, %v6992_v57  ;;  %v7018_v34 = vmul.f32 %v7014_v23, %v7009_v10  ;;  %v7023_v57 = vmul.f32 %v7019_v44, %v6991_v43  ;;  %v6989_v19 = vmul.f32 %v15333_v54, %v6976_v38 }
 0xb8a   :  { %v7189_v0 = vpop.permute.xlu1 %7188  ;;  %v7079_v10 = vmul.f32 %v15613_v15, %v15550_v11  ;;  %v7081_v11 = vmul.f32 %v15613_v15, %v15599_v16 }
 0xb8b   :  { %v7056_v22 = vmul.f32 %v7052_v46, %v7024_v40  ;;  %v7022_v3 = vsub.f32 1.0, %v7018_v34  ;;  %v6994_v40 = vsub.f32 1.0, %v6990_v45  ;;  %v7051_v46 = vsub.f32 1.0, %v7047_v37 }
 0xb8c   :  { %v7083_v23 = vsub.f32 1.0, %v7079_v10  ;;  %v7179_v34 = vsub.f32 1.0, %v7175_v61  ;;  %v7207_v45 = vmul.f32 %v15646_v24, %v7189_v0 }
 0xb8d   :  { %v7037_v49 = vpop.permute.xlu0 %7036  ;;  %v7088_v12 = vmul.f32 %v7084_v36, %v7056_v22  ;;  %v7026_v22 = vmul.f32 %v7022_v3, %v6994_v40  ;;  %v7055_v48 = vmul.f32 %v7051_v46, %v7023_v57  ;;  %v6993_v36 = vsub.f32 1.0, %v6989_v19 }
 0xb8e   :  { %v7049_v59 = vmul.f32 %v7046_v52, %v7037_v49  ;;  %v7165_v38 = vpop.permute.xlu1 %7164  ;;  %v7211_v19 = vsub.f32 1.0, %v7207_v45 }
 0xb8f   :  { %v7058_v49 = vmul.f32 %v7054_v63, %v7026_v22  ;;  %v7087_v7 = vmul.f32 %v7083_v23, %v7055_v48 }
 0xb90   :  { %v7053_v5 = vsub.f32 1.0, %v7049_v59 }
 0xb92   :  { %v7097_v27 = vpop.permute.xlu0 %7096 }
 0xb93   :  { %v7112_v29 = vmul.f32 %v15633_v4, %v7097_v27  ;;  %v7082_v27 = vmul.f32 %v15613_v15, %v15605_v18  ;;  %v7115_v18 = vsub.f32 1.0, %v7111_v6 }
 0xb95   :  { %v7116_v41 = vsub.f32 1.0, %v7112_v29  ;;  %v7086_v62 = vsub.f32 1.0, %v7082_v27 }
 0xb96   :  { %v7105_v42 = vpop.permute.xlu0 %7104 }
 0xb97   :  { %v7120_v56 = vmul.f32 %v7116_v41, %v7088_v12  ;;  %v7021_v12 = vsub.f32 1.0, %v7017_v53  ;;  %v7114_v54 = vmul.f32 %v15633_v4, %v7105_v42  ;;  %v7085_v42 = vsub.f32 1.0, %v7081_v11 }
 0xb99   :  { %v7152_v33 = vmul.f32 %v7148_v21, %v7120_v56  ;;  %v7025_v29 = vmul.f32 %v7021_v12, %v6993_v36  ;;  %v7118_v41 = vsub.f32 1.0, %v7114_v54  ;;  %v7090_v21 = vmul.f32 %v7086_v62, %v7058_v49 }
 0xb9b   :  { %v7125_v1 = vpop.permute.xlu0 %7124  ;;  %v7184_v35 = vmul.f32 %v7180_v55, %v7152_v33  ;;  %v7057_v31 = vmul.f32 %v7053_v5, %v7025_v29  ;;  %v7146_v33 = vmul.f32 %v15628_v8, %v7137_v9  ;;  %v7169_v55 = vpop.permute.xlu1 %7168  ;;  %v7122_v15 = vmul.f32 %v7118_v41, %v7090_v21 }
 0xb9c   :  { %v7143_v52 = vmul.f32 %v15628_v8, %v7125_v1  ;;  %v7113_v1 = vmul.f32 %v15633_v4, %v15621_v13  ;;  %v7178_v20 = vmul.f32 %v15638_v14, %v7169_v55  ;;  %v7177_v13 = vmul.f32 %v15638_v14, %v7165_v38  ;;  %v11444_v14 = vld [vmem:[%s15762_s0 + $0x8] sm:$0xff]  ;;  %v11445_v38 = vld [vmem:[%s15762_s0] sm:$0xff] }
 0xb9e   :  { %v7147_v56 = vsub.f32 1.0, %v7143_v52  ;;  %v7117_v43 = vsub.f32 1.0, %v7113_v1  ;;  %v7182_v4 = vsub.f32 1.0, %v7178_v20  ;;  %v7181_v40 = vsub.f32 1.0, %v7177_v13  ;;  %v11448_v1 = vld [vmem:[%s15762_s0 + $0x28] sm:$0xff] }
 0xb9f   :  { %v7133_v32 = vpop.permute.xlu0 %7132  ;;  %v7201_v37 = vpop.permute.xlu1 %7200 }
 0xba0   :  { %v7145_v16 = vmul.f32 %v15628_v8, %v7133_v32  ;;  %v7210_v32 = vmul.f32 %v15646_v24, %v7201_v37 }
 0xba2   :  { %v7149_v9 = vsub.f32 1.0, %v7145_v16  ;;  %v7214_v22 = vsub.f32 1.0, %v7210_v32  ;;  %v8721_v16 = vmul.f32 %v11448_v1, %v15601_v28  ;;  %v26_v1 = vld [vmem:[%s15763_s2 + $0x20] sm:$0xff] }
 0xba4   :  { %v7193_v30 = vpop.permute.xlu0 %7192 }
 0xba5   :  { %v7208_v51 = vmul.f32 %v15646_v24, %v7193_v30  ;;  %v7089_v30 = vmul.f32 %v7085_v42, %v7057_v31  ;;  %v11447_v31 = vld [vmem:[%s15762_s0 + $0x10] sm:$0xff] }
 0xba7   :  { %v7212_v47 = vsub.f32 1.0, %v7208_v51  ;;  %v7121_v3 = vmul.f32 %v7117_v43, %v7089_v30  ;;  %v11449_v30 = vld [vmem:[%s15762_s0 + $0x20] sm:$0xff] }
 0xba8   :  { %v7197_v58 = vpop.permute.xlu0 %7196 }
 0xba9   :  { %v15649_v50 = vmul.f32 %v7212_v47, %v7184_v35  ;;  %v7119_v35 = vmul.f32 %v7115_v18, %v7087_v7  ;;  %v7150_v47 = vsub.f32 1.0, %v7146_v33  ;;  %v7209_v8 = vmul.f32 %v15646_v24, %v7197_v58 }
 0xbaa   :  { %v7153_v57 = vmul.f32 %v7149_v9, %v7121_v3 }
 0xbab   :  { %v7151_v51 = vmul.f32 %v7147_v56, %v7119_v35  ;;  %v7154_v44 = vmul.f32 %v7150_v47, %v7122_v15  ;;  %v7213_v17 = vsub.f32 1.0, %v7209_v8  ;;  %v7815_v63 = vmul.f32 %v11444_v14, %v15649_v50  ;;  %v11446_v50 = vld [vmem:[%s15762_s0 + $0x18] sm:$0xff] }
 0xbac   :  { %v7185_v48 = vmul.f32 %v7181_v40, %v7153_v57  ;;  %v16455_v8 = vmov 0.0  }
 0xbad   :  { %v7183_v39 = vmul.f32 %v7179_v34, %v7151_v51  ;;  %v7186_v53 = vmul.f32 %v7182_v4, %v7154_v44  ;;  %v8720_v51 = vmul.f32 %v11449_v30, %v15596_v60  ;;  %v11450_v44 = vld [vmem:[%s15762_s0 + $0x38] sm:$0xff]  ;;  %v11451_v60 = vld [vmem:[%s15762_s0 + $0x30] sm:$0xff]  ;;  %9970 = vmatprep.mubr.msk.f32.mxu1 %vm11466_vm2, %v16455_v8 }
 0xbae   :  { %v7217_v27 = vmul.f32 %v7213_v17, %v7185_v48  ;;  %v8723_v28 = vmul.f32 %v11450_v44, %v15590_v25  ;;  %v27_v25 = vld [vmem:[%s15763_s2 + $0x30] sm:$0xff] }
 0xbaf   :  { %v7215_v59 = vmul.f32 %v7211_v19, %v7183_v39  ;;  %v7218_v24 = vmul.f32 %v7214_v22, %v7186_v53  ;;  %v8722_v39 = vmul.f32 %v11451_v60, %v15603_v2  ;;  %v8753_v4 = vsel %vm120_vm0, %v27_v25, 0 }
 0xbb0   :  { %v7816_v18 = vmul.f32 %v11447_v31, %v7217_v27  ;;  %v15724_v57 = vand.u32 4294901760, %v8753_v4 }
 0xbb1   :  { %v7814_v5 = vmul.f32 %v11445_v38, %v7215_v59  ;;  %v7817_v62 = vmul.f32 %v11446_v50, %v7218_v24 }
 0xbb2   :  { %v8825_v40 = vsub.f32 %v8753_v4, %v15724_v57 }
 0xc13   :  { %v9910_v46 = vpop.f32.mrb[28].mxu1 }
 0xc14   :  { %v7807_v10 = vmul.f32 0.125, %v9910_v46  ;;  %v7784_v0 = vpop.f32.mrb[29].mxu1 }
 0xc15   :  { %v7806_v36 = vmul.f32 0.125, %v7784_v0 }
 0xc16   :  { %v7811_v12 = vsub.f32 1.0, %v7807_v10  ;;  %v8826_v10 = vand.u32 4294901760, %v8825_v40 }
 0xc17   :  { %v7810_v54 = vsub.f32 1.0, %v7806_v36  ;;  %v9913_v23 = vpop.f32.mrb[30].mxu1 }
 0xc18   :  { %v7819_v6 = vadd.f32 %v7815_v63, %v7811_v12  ;;  %v7809_v52 = vmul.f32 0.125, %v9913_v23  ;;  %v7796_v49 = vpop.f32.mrb[31].mxu1  ;;  %v8827_v24 = vsub.f32 %v8825_v40, %v8826_v10 }
 0xc19   :  { %v7818_v11 = vadd.f32 %v7814_v5, %v7810_v54  ;;  %v7808_v29 = vmul.f32 0.125, %v7796_v49 }
 0xc1a   :  { %7823 = vst.msk [vmem:[#allocation4 + $0x8] sm:$0xff] %vm120_vm0, %v7819_v6  ;;  %v7813_v7 = vsub.f32 1.0, %v7809_v52 }
 0xc1b   :  { %7822 = vst.msk [vmem:[#allocation4] sm:$0xff] %vm120_vm0, %v7818_v11  ;;  %v7812_v41 = vsub.f32 1.0, %v7808_v29  ;;  %v8828_v11 = vand.u32 4294901760, %v8827_v24 }
 0xc1c   :  { %v7821_v56 = vadd.f32 %v7817_v62, %v7813_v7 }
 0xc1d   :  { %v7820_v42 = vadd.f32 %v7816_v18, %v7812_v41 }
 0xc1e   :  { %7825 = vst.msk [vmem:[#allocation4 + $0x18] sm:$0xff] %vm120_vm0, %v7821_v56 }
 0xc1f   :  { %7824 = vst.msk [vmem:[#allocation4 + $0x10] sm:$0xff] %vm120_vm0, %v7820_v42 }
 0xc43   :  { %v9958_v21 = vpop.f32.mrb[32].mxu1 }
 0xc44   :  { %v8713_v33 = vmul.f32 0.125, %v9958_v21  ;;  %v8690_v55 = vpop.f32.mrb[33].mxu1 }
 0xc45   :  { %v8712_v35 = vmul.f32 0.125, %v8690_v55 }
 0xc46   :  { %v8717_v61 = vsub.f32 1.0, %v8713_v33 }
 0xc47   :  { %v8716_v15 = vsub.f32 1.0, %v8712_v35  ;;  %v9961_v47 = vpop.f32.mrb[34].mxu1 }
 0xc48   :  { %v8725_v20 = vadd.f32 %v8721_v16, %v8717_v61  ;;  %v8715_v58 = vmul.f32 0.125, %v9961_v47  ;;  %v8702_v34 = vpop.f32.mrb[35].mxu1 }
 0xc49   :  { %v8724_v43 = vadd.f32 %v8720_v51, %v8716_v15  ;;  %v8714_v9 = vmul.f32 0.125, %v8702_v34 }
 0xc4a   :  { %v8719_v45 = vsub.f32 1.0, %v8715_v58  ;;  %8734 = vrot.lane.b32.xlu1 %v8725_v20, %s11452_s20 }
 0xc4b   :  { %v8718_v37 = vsub.f32 1.0, %v8714_v9  ;;  %8732 = vrot.lane.b32.xlu0 %v8724_v43, %s11452_s20 }
 0xc4c   :  { %v8727_v3 = vadd.f32 %v8723_v28, %v8719_v45 }
 0xc4d   :  { %v8726_v13 = vadd.f32 %v8722_v39, %v8718_v37 }
 0xc4e   :  { %8738 = vrot.lane.b32.xlu1 %v8727_v3, %s11452_s20 }
 0xc4f   :  { %8736 = vrot.lane.b32.xlu0 %v8726_v13, %s11452_s20 }
 0xcbc   :  { %v8735_v32 = vpop.permute.xlu1 %8734 }
 0xcbd   :  { %8745 = vst.msk [vmem:[#allocation4 + $0x8] sm:$0xff] %vm2434_vm1, %v8735_v32  ;;  %v8733_v2 = vpop.permute.xlu0 %8732 }
 0xcbe   :  { %8744 = vst.msk [vmem:[#allocation4] sm:$0xff] %vm2434_vm1, %v8733_v2 }
 0xcc0   :  { %v8739_v19 = vpop.permute.xlu1 %8738 }
 0xcc1   :  { %8747 = vst.msk [vmem:[#allocation4 + $0x18] sm:$0xff] %vm2434_vm1, %v8739_v19  ;;  %v8737_v53 = vpop.permute.xlu0 %8736 }
 0xcc2   :  { %8746 = vst.msk [vmem:[#allocation4 + $0x10] sm:$0xff] %vm2434_vm1, %v8737_v53 }
 0xcc4   :  { %v8749_v17 = vld [vmem:[#allocation4 + $0x8] sm:$0xff] }
 0xcc5   :  { %v8748_v46 = vld [vmem:[#allocation4] sm:$0xff]  ;;  %v8759_v59 = vand.u32 4294901760, %v8749_v17 }
 0xcc6   :  { %v8756_v0 = vand.u32 4294901760, %v8748_v46 }
 0xcc7   :  { %v8843_v22 = vsub.f32 %v8749_v17, %v8759_v59 }
 0xcc8   :  { %v10749_v48 = vpack.c.bf16 %v8759_v59, %v8756_v0  ;;  %v8836_v36 = vsub.f32 %v8748_v46, %v8756_v0  ;;  %v8751_v12 = vld [vmem:[#allocation4 + $0x18] sm:$0xff] }
 0xcc9   :  { %v8750_v14 = vld [vmem:[#allocation4 + $0x10] sm:$0xff]  ;;  %v8765_v63 = vand.u32 4294901760, %v8751_v12  ;;  %v8844_v27 = vand.u32 4294901760, %v8843_v22 }
 0xcca   :  { %10750 = vmatpush3.bf16.msra.mxu1 %v10749_v48  ;;  %v8762_v54 = vand.u32 4294901760, %v8750_v14  ;;  %v8837_v38 = vand.u32 4294901760, %v8836_v36  ;;  %v10761_v33 = vpack.c.bf16 %v8843_v22, %v8836_v36 }
 0xccb   :  { %10751 = vmatprep.subr.bf16.mxu1 %v16232_v26  ;;  %v8857_v5 = vsub.f32 %v8751_v12, %v8765_v63  ;;  %v8845_v23 = vsub.f32 %v8843_v22, %v8844_v27 }
 0xccc   :  { %v10752_v6 = vpack.c.bf16 %v8765_v63, %v8762_v54  ;;  %v8850_v52 = vsub.f32 %v8750_v14, %v8762_v54  ;;  %v8838_v49 = vsub.f32 %v8836_v36, %v8837_v38  ;;  %v10773_v35 = vpack.c.bf16 %v8844_v27, %v8837_v38 }
 0xccd   :  { %v8846_v29 = vand.u32 4294901760, %v8845_v23  ;;  %v8858_v7 = vand.u32 4294901760, %v8857_v5 }
 0xcce   :  { %10753 = vmatpush3.bf16.msra.mxu1 %v10752_v6  ;;  %v8839_v50 = vand.u32 4294901760, %v8838_v49  ;;  %v8851_v62 = vand.u32 4294901760, %v8850_v52  ;;  %v10764_v55 = vpack.c.bf16 %v8857_v5, %v8850_v52 }
 0xccf   :  { %10754 = vmatprep.subr.bf16.mxu1 %v16232_v26  ;;  %v8859_v41 = vsub.f32 %v8857_v5, %v8858_v7 }
 0xcd0   :  { %v10755_v31 = vpack.c.bf16 %v8846_v29, %v8839_v50  ;;  %v8852_v18 = vsub.f32 %v8850_v52, %v8851_v62  ;;  %v10776_v61 = vpack.c.bf16 %v8858_v7, %v8851_v62 }
 0xcd1   :  { %9971 = vmatmul.mubr.f32.vlgmr.msra.gmra.mrb[36].mxu1 %v8828_v11  ;;  %v8860_v56 = vand.u32 4294901760, %v8859_v41 }
 0xcd2   :  { %10756 = vmatpush3.bf16.msra.mxu1 %v10755_v31  ;;  %v8853_v42 = vand.u32 4294901760, %v8852_v18  ;;  %9981 = vmatprep.mubr.msk.f32.mxu1 %vm11466_vm2, %v16455_v8 }
 0xcd3   :  { %10757 = vmatprep.subr.bf16.mxu1 %v16232_v26 }
 0xcd4   :  { %v10758_v21 = vpack.c.bf16 %v8860_v56, %v8853_v42 }
 0xcd6   :  { %10759 = vmatpush3.bf16.msra.mxu1 %v10758_v21 }
 0xcd7   :  { %10760 = vmatprep.subr.bf16.mxu1 %v16232_v26 }
 0xcd9   :  { %9982 = vmatmul.mubr.f32.vlgmr.msra.gmra.mrb[36].mxu1 %v15724_v57 }
 0xcda   :  { %10762 = vmatpush3.bf16.msra.mxu1 %v10761_v33  ;;  %9992 = vmatprep.mubr.msk.f32.mxu1 %vm11466_vm2, %v16455_v8 }
 0xcdb   :  { %10763 = vmatprep.subr.bf16.mxu1 %v16232_v26 }
 0xcde   :  { %10765 = vmatpush3.bf16.msra.mxu1 %v10764_v55 }
 0xcdf   :  { %10766 = vmatprep.subr.bf16.mxu1 %v16232_v26 }
 0xce1   :  { %9993 = vmatmul.mubr.f32.vlgmr.msra.gmra.mrb[36].mxu1 %v8825_v40 }
 0xce2   :  { %10768 = vmatpush3.bf16.msra.mxu1 %v10749_v48  ;;  %10003 = vmatprep.mubr.msk.f32.mxu1 %vm11466_vm2, %v16455_v8 }
 0xce3   :  { %10769 = vmatprep.subr.bf16.mxu1 %v16232_v26 }
 0xce6   :  { %10771 = vmatpush3.bf16.msra.mxu1 %v10752_v6 }
 0xce7   :  { %10772 = vmatprep.subr.bf16.mxu1 %v16232_v26 }
 0xce9   :  { %10004 = vmatmul.mubr.f32.vlgmr.msra.gmra.mrb[36].mxu1 %v8826_v10 }
 0xcea   :  { %10774 = vmatpush3.bf16.msra.mxu1 %v10773_v35  ;;  %10014 = vmatprep.mubr.msk.f32.mxu1 %vm11466_vm2, %v16455_v8 }
 0xceb   :  { %10775 = vmatprep.subr.bf16.mxu1 %v16232_v26 }
 0xcee   :  { %10777 = vmatpush3.bf16.msra.mxu1 %v10776_v61 }
 0xcef   :  { %10778 = vmatprep.subr.bf16.mxu1 %v16232_v26 }
 0xcf1   :  { %10015 = vmatmul.mubr.f32.vlgmr.msra.gmra.mrb[36].mxu1 %v15724_v57 }
 0xcf2   :  { %10780 = vmatpush3.bf16.msra.mxu1 %v10749_v48  ;;  %10025 = vmatprep.mubr.msk.f32.mxu1 %vm11466_vm2, %v16455_v8 }
 0xcf3   :  { %10781 = vmatprep.subr.bf16.mxu1 %v16232_v26 }
 0xcf6   :  { %10783 = vmatpush3.bf16.msra.mxu1 %v10752_v6 }
 0xcf9   :  { %10026 = vmatmul.mubr.f32.vlgmr.msra.gmra.mrb[36].mxu1 %v15724_v57 }
 0xdcc   :  { %v9236_v16 = vpop.f32.mrb[36].mxu1 }
 0xdcd   :  { %v10832_v15 = vadd.f32 %v9236_v16, %v26_v1  ;;  %v10027_v30 = vpop.f32.mrb[37].mxu1 }
 0xdcf   :  { %v9240_v51 = vmax.f32 %v10832_v15, 0.0 }
 0xdd1   :  { %9241 = vst.msk [vmem:[%s15764_s3] sm:$0xff] %vm3745_vm15, %v9240_v51 }

</bundles_post_ra>
